<compile_context>
chip_gen: v5e
topology: v5e:2x2
jax: 0.10.0
libtpu: 0.0.40
codegen_flags: <defaults>
</compile_context>

<pallas_src>
import functools

import jax
import jax.numpy as jnp
from jax.experimental import pallas as pl
from jax.experimental.pallas import tpu as pltpu

_HIGHEST = jax.lax.Precision.HIGHEST  # keep the f32 matmuls at full f32 accuracy


def encoder_kernel(ry_ref, rz_ref, sign_ref, ehi_ref, elo_ref, ore_ref, oim_ref):
    # ry_ref/rz_ref : (TB, Q)  f32 angle tiles
    # sign_ref      : (Q,  R)  f32 resident table, +1 where bit_q(r)==1 else -1
    # ehi_ref       : (Hh, R)  f32 resident one-hot table, ehi[h, r] = [(r >> Ql) == h]
    # elo_ref       : (Hl, R)  f32 resident one-hot table, elo[l, r] = [(r & (Hl-1)) == l]
    # ore_ref/oim_ref: (TB, R) f32 output planes (R = 2**Q, lane-dense)
    TB, _ = ry_ref.shape
    Hh = ehi_ref.shape[0]
    Hl = elo_ref.shape[0]
    Qh = Hh.bit_length() - 1
    Ql = Hl.bit_length() - 1

    ry = ry_ref[...] * 0.5
    rz = rz_ref[...] * 0.5
    c = jnp.cos(ry)                      # factor when bit == 0
    s = jnp.sin(ry)                      # factor when bit == 1

    # ---- amplitude: Kronecker half-split partial products (narrow arrays) ----
    hi_idx = jax.lax.broadcasted_iota(jnp.int32, (TB, Hh), 1)
    amp_hi = jnp.ones((TB, Hh), jnp.float32)
    for q in range(Qh):                  # qubits 0 .. Qh-1 (most significant, MSB-first)
        bit = (hi_idx >> (Qh - 1 - q)) & 1
        amp_hi = amp_hi * jnp.where(bit == 0, c[:, q:q + 1], s[:, q:q + 1])

    lo_idx = jax.lax.broadcasted_iota(jnp.int32, (TB, Hl), 1)
    amp_lo = jnp.ones((TB, Hl), jnp.float32)
    for q in range(Ql):                  # qubits Qh .. Q-1 (least significant)
        qq = Qh + q
        bit = (lo_idx >> (Ql - 1 - q)) & 1
        amp_lo = amp_lo * jnp.where(bit == 0, c[:, qq:qq + 1], s[:, qq:qq + 1])

    # Expand the two halves onto the full 2**Q row space via one-hot matmuls
    # (MXU, otherwise idle); one full-width VPU multiply combines them.
    amp = (
        jnp.dot(amp_hi, ehi_ref[...], precision=_HIGHEST,
                preferred_element_type=jnp.float32)
        * jnp.dot(amp_lo, elo_ref[...], precision=_HIGHEST,
                  preferred_element_type=jnp.float32)
    )

    # ---- phase: signed sum of rz/2 as a matmul against the +/-1 table (MXU) ----
    phase = jnp.dot(rz, sign_ref[...], precision=_HIGHEST,
                    preferred_element_type=jnp.float32)

    # Transcendentals go to the EUP; one VPU multiply per output plane.
    ore_ref[...] = amp * jnp.cos(phase)
    oim_ref[...] = amp * jnp.sin(phase)


def _encoder_tables(n_qubits: int):
    """Constant bit/sign tables (built once per compile, VMEM-resident in kernel)."""
    Q = n_qubits
    R = 1 << Q
    Qh = Q // 2
    Ql = Q - Qh
    Hh, Hl = 1 << Qh, 1 << Ql
    r = jnp.arange(R, dtype=jnp.int32)
    q = jnp.arange(Q, dtype=jnp.int32)
    bits = (r[None, :] >> (Q - 1 - q)[:, None]) & 1                    # (Q, R), MSB-first
    sign = (2 * bits - 1).astype(jnp.float32)                          # +1 / -1
    hi = r >> Ql
    lo = r & (Hl - 1)
    ehi = (hi[None, :] == jnp.arange(Hh, dtype=jnp.int32)[:, None]).astype(jnp.float32)
    elo = (lo[None, :] == jnp.arange(Hl, dtype=jnp.int32)[:, None]).astype(jnp.float32)
    return sign, ehi, elo


def _pick_tb(n_batch: int) -> int:
    # Largest sublane-aligned batch tile that (a) divides n_batch, (b) keeps the
    # grid at >= 2 steps when possible (so v7x can shard the parallel batch axis
    # over its 2 TensorCores), (c) stays ~64 rows so the handful of live
    # (tb, 2**Q) f32 arrays fit the 64-vreg file at Q=8 without heavy spilling.
    cap = max(n_batch // 2, 8)
    for cand in (128, 64, 32, 16, 8):
        if cand <= cap and n_batch % cand == 0:
            return cand
    return n_batch


@functools.partial(jax.jit, static_argnames=("tb",))
def encoder_forward(ry_angles, rz_angles, *, tb=None):
    B, Q = ry_angles.shape
    R = 1 << Q
    if tb is None:
        tb = _pick_tb(B)
    assert B % tb == 0, (B, tb)
    # NOTE: for Q < 7 (R < 128) the blocks are only legal because they span the
    # full array dims and stores become masked partial stores; the kernel is
    # tuned for Q >= 7 where R is lane-dense.

    sign, ehi, elo = _encoder_tables(Q)
    Hh, Hl = ehi.shape[0], elo.shape[0]

    out_re, out_im = pl.pallas_call(
        encoder_kernel,
        out_shape=(
            jax.ShapeDtypeStruct((B, R), jnp.float32),
            jax.ShapeDtypeStruct((B, R), jnp.float32),
        ),
        grid_spec=pltpu.PrefetchScalarGridSpec(
            num_scalar_prefetch=0,
            grid=(B // tb,),
            in_specs=[
                pl.BlockSpec((tb, Q), lambda i: (i, 0)),    # ry tile
                pl.BlockSpec((tb, Q), lambda i: (i, 0)),    # rz tile
                # Constant tables: block index never changes -> DMA'd once and
                # kept VMEM-resident across grid steps.
                pl.BlockSpec((Q, R), lambda i: (0, 0)),     # +/-1 sign table
                pl.BlockSpec((Hh, R), lambda i: (0, 0)),    # one-hot, high bits
                pl.BlockSpec((Hl, R), lambda i: (0, 0)),    # one-hot, low bits
            ],
            out_specs=[
                pl.BlockSpec((tb, R), lambda i: (i, 0)),
                pl.BlockSpec((tb, R), lambda i: (i, 0)),
            ],
        ),
        compiler_params=pltpu.CompilerParams(
            dimension_semantics=("parallel",),
        ),
    )(ry_angles, rz_angles, sign, ehi, elo)

    # Assemble complex64 outside the kernel (TPU Pallas has no complex dtype).
    # TODO(synk): if the consumer can take planar (re, im) f32, return the two
    # planes directly and skip this extra HBM read/write pass.
    return jax.lax.complex(out_re, out_im)


def encoder_reference(ry_angles, rz_angles):
    """Pure-JAX reference matching the PyTorch Encoder.forward exactly."""
    ry2 = ry_angles / 2.0
    rz2 = rz_angles / 2.0
    e11 = jnp.cos(ry2) * jnp.exp(-1j * rz2)   # selected when row bit == 0
    e21 = jnp.sin(ry2) * jnp.exp(1j * rz2)    # selected when row bit == 1
    B, Q = ry_angles.shape
    rows = jnp.arange(2 ** Q)
    bits = (rows[:, None] >> (Q - 1 - jnp.arange(Q))[None, :]) & 1    # (R, Q), MSB-first
    sel = jnp.where(bits[None, :, :] == 0, e11[:, None, :], e21[:, None, :])  # (B, R, Q)
    return jnp.prod(sel, axis=-1).astype(jnp.complex64)


if __name__ == "__main__":
    n_batch, n_qubits = 128, 8    # output: (128, 256) complex64; tb=64 -> 2 grid steps
    key = jax.random.PRNGKey(0)
    k1, k2 = jax.random.split(key)
    ry = jax.random.uniform(k1, (n_batch, n_qubits), jnp.float32,
                            minval=-3.0, maxval=3.0)
    rz = jax.random.uniform(k2, (n_batch, n_qubits), jnp.float32,
                            minval=-3.0, maxval=3.0)

    out = jax.block_until_ready(encoder_forward(ry, rz))
    ref = encoder_reference(ry, rz)

    assert out.shape == (n_batch, 2 ** n_qubits), out.shape
    assert out.dtype == jnp.complex64, out.dtype
    err = float(jnp.max(jnp.abs(out - ref)))
    assert err < 2e-5, err
    print("KERNEL_OK")
</pallas_src>

<mosaic_0001>
module attributes {stable_mosaic.version = 11 : i64} {
  func.func @encoder_kernel(%arg0: i32, %arg1: memref<64x8xf32, #tpu.memory_space<vmem>>, %arg2: memref<64x8xf32, #tpu.memory_space<vmem>>, %arg3: memref<8x256xf32, #tpu.memory_space<vmem>>, %arg4: memref<16x256xf32, #tpu.memory_space<vmem>>, %arg5: memref<16x256xf32, #tpu.memory_space<vmem>>, %arg6: memref<64x256xf32, #tpu.memory_space<vmem>>, %arg7: memref<64x256xf32, #tpu.memory_space<vmem>>) attributes {dimension_semantics = [#tpu.dimension_semantics<parallel>], iteration_bounds = array<i64: 2>, scalar_prefetch = 0 : i64, scratch_operands = 0 : i64, tpu.core_type = #tpu.core_type<tc>, window_params = [{transform_indices = @transform_0, window_bounds = array<i64: 64, 8>}, {transform_indices = @transform_1, window_bounds = array<i64: 64, 8>}, {pipeline_mode = #tpu.pipeline_mode<synchronous>, transform_indices = @transform_2, window_bounds = array<i64: 8, 256>}, {pipeline_mode = #tpu.pipeline_mode<synchronous>, transform_indices = @transform_3, window_bounds = array<i64: 16, 256>}, {pipeline_mode = #tpu.pipeline_mode<synchronous>, transform_indices = @transform_4, window_bounds = array<i64: 16, 256>}, {transform_indices = @transform_5, window_bounds = array<i64: 64, 256>}, {transform_indices = @transform_6, window_bounds = array<i64: 64, 256>}]} {
    %c0 = arith.constant 0 : index
    %c0_0 = arith.constant 0 : index
    %0 = vector.load %arg1[%c0, %c0_0] : memref<64x8xf32, #tpu.memory_space<vmem>>, vector<64x8xf32>
    %cst = arith.constant 5.000000e-01 : f32
    %1 = vector.broadcast %cst : f32 to vector<64x8xf32>
    %2 = arith.mulf %0, %1 : vector<64x8xf32>
    %c0_1 = arith.constant 0 : index
    %c0_2 = arith.constant 0 : index
    %3 = vector.load %arg2[%c0_1, %c0_2] : memref<64x8xf32, #tpu.memory_space<vmem>>, vector<64x8xf32>
    %cst_3 = arith.constant 5.000000e-01 : f32
    %4 = vector.broadcast %cst_3 : f32 to vector<64x8xf32>
    %5 = arith.mulf %3, %4 : vector<64x8xf32>
    %6 = math.cos %2 : vector<64x8xf32>
    %7 = math.sin %2 : vector<64x8xf32>
    %8 = tpu.iota {dimensions = array<i32: 1>} : vector<64x16xi32>
    %cst_4 = arith.constant 1.000000e+00 : f32
    %9 = vector.broadcast %cst_4 : f32 to vector<64x16xf32>
    %c3_i32 = arith.constant 3 : i32
    %10 = vector.broadcast %c3_i32 : i32 to vector<64x16xi32>
    %11 = arith.shrsi %8, %10 : vector<64x16xi32>
    %c1_i32 = arith.constant 1 : i32
    %12 = vector.broadcast %c1_i32 : i32 to vector<64x16xi32>
    %13 = arith.andi %11, %12 : vector<64x16xi32>
    %c0_i32 = arith.constant 0 : i32
    %14 = vector.broadcast %c0_i32 : i32 to vector<64x16xi32>
    %15 = arith.cmpi eq, %13, %14 : vector<64x16xi32>
    %16 = vector.extract_strided_slice %6 {offsets = [0, 0], sizes = [64, 1], strides = [1, 1]} : vector<64x8xf32> to vector<64x1xf32>
    %17 = vector.extract_strided_slice %7 {offsets = [0, 0], sizes = [64, 1], strides = [1, 1]} : vector<64x8xf32> to vector<64x1xf32>
    %18 = vector.shape_cast %16 : vector<64x1xf32> to vector<64x1xf32>
    %19 = vector.broadcast %18 : vector<64x1xf32> to vector<64x16xf32>
    %20 = vector.shape_cast %17 : vector<64x1xf32> to vector<64x1xf32>
    %21 = vector.broadcast %20 : vector<64x1xf32> to vector<64x16xf32>
    %22 = arith.select %15, %19, %21 : vector<64x16xi1>, vector<64x16xf32>
    %23 = arith.mulf %9, %22 : vector<64x16xf32>
    %c2_i32 = arith.constant 2 : i32
    %24 = vector.broadcast %c2_i32 : i32 to vector<64x16xi32>
    %25 = arith.shrsi %8, %24 : vector<64x16xi32>
    %c1_i32_5 = arith.constant 1 : i32
    %26 = vector.broadcast %c1_i32_5 : i32 to vector<64x16xi32>
    %27 = arith.andi %25, %26 : vector<64x16xi32>
    %c0_i32_6 = arith.constant 0 : i32
    %28 = vector.broadcast %c0_i32_6 : i32 to vector<64x16xi32>
    %29 = arith.cmpi eq, %27, %28 : vector<64x16xi32>
    %30 = vector.extract_strided_slice %6 {offsets = [0, 1], sizes = [64, 1], strides = [1, 1]} : vector<64x8xf32> to vector<64x1xf32>
    %31 = vector.extract_strided_slice %7 {offsets = [0, 1], sizes = [64, 1], strides = [1, 1]} : vector<64x8xf32> to vector<64x1xf32>
    %32 = vector.shape_cast %30 : vector<64x1xf32> to vector<64x1xf32>
    %33 = vector.broadcast %32 : vector<64x1xf32> to vector<64x16xf32>
    %34 = vector.shape_cast %31 : vector<64x1xf32> to vector<64x1xf32>
    %35 = vector.broadcast %34 : vector<64x1xf32> to vector<64x16xf32>
    %36 = arith.select %29, %33, %35 : vector<64x16xi1>, vector<64x16xf32>
    %37 = arith.mulf %23, %36 : vector<64x16xf32>
    %c1_i32_7 = arith.constant 1 : i32
    %38 = vector.broadcast %c1_i32_7 : i32 to vector<64x16xi32>
    %39 = arith.shrsi %8, %38 : vector<64x16xi32>
    %c1_i32_8 = arith.constant 1 : i32
    %40 = vector.broadcast %c1_i32_8 : i32 to vector<64x16xi32>
    %41 = arith.andi %39, %40 : vector<64x16xi32>
    %c0_i32_9 = arith.constant 0 : i32
    %42 = vector.broadcast %c0_i32_9 : i32 to vector<64x16xi32>
    %43 = arith.cmpi eq, %41, %42 : vector<64x16xi32>
    %44 = vector.extract_strided_slice %6 {offsets = [0, 2], sizes = [64, 1], strides = [1, 1]} : vector<64x8xf32> to vector<64x1xf32>
    %45 = vector.extract_strided_slice %7 {offsets = [0, 2], sizes = [64, 1], strides = [1, 1]} : vector<64x8xf32> to vector<64x1xf32>
    %46 = vector.shape_cast %44 : vector<64x1xf32> to vector<64x1xf32>
    %47 = vector.broadcast %46 : vector<64x1xf32> to vector<64x16xf32>
    %48 = vector.shape_cast %45 : vector<64x1xf32> to vector<64x1xf32>
    %49 = vector.broadcast %48 : vector<64x1xf32> to vector<64x16xf32>
    %50 = arith.select %43, %47, %49 : vector<64x16xi1>, vector<64x16xf32>
    %51 = arith.mulf %37, %50 : vector<64x16xf32>
    %c0_i32_10 = arith.constant 0 : i32
    %52 = vector.broadcast %c0_i32_10 : i32 to vector<64x16xi32>
    %53 = arith.shrsi %8, %52 : vector<64x16xi32>
    %c1_i32_11 = arith.constant 1 : i32
    %54 = vector.broadcast %c1_i32_11 : i32 to vector<64x16xi32>
    %55 = arith.andi %53, %54 : vector<64x16xi32>
    %c0_i32_12 = arith.constant 0 : i32
    %56 = vector.broadcast %c0_i32_12 : i32 to vector<64x16xi32>
    %57 = arith.cmpi eq, %55, %56 : vector<64x16xi32>
    %58 = vector.extract_strided_slice %6 {offsets = [0, 3], sizes = [64, 1], strides = [1, 1]} : vector<64x8xf32> to vector<64x1xf32>
    %59 = vector.extract_strided_slice %7 {offsets = [0, 3], sizes = [64, 1], strides = [1, 1]} : vector<64x8xf32> to vector<64x1xf32>
    %60 = vector.shape_cast %58 : vector<64x1xf32> to vector<64x1xf32>
    %61 = vector.broadcast %60 : vector<64x1xf32> to vector<64x16xf32>
    %62 = vector.shape_cast %59 : vector<64x1xf32> to vector<64x1xf32>
    %63 = vector.broadcast %62 : vector<64x1xf32> to vector<64x16xf32>
    %64 = arith.select %57, %61, %63 : vector<64x16xi1>, vector<64x16xf32>
    %65 = arith.mulf %51, %64 : vector<64x16xf32>
    %66 = tpu.iota {dimensions = array<i32: 1>} : vector<64x16xi32>
    %cst_13 = arith.constant 1.000000e+00 : f32
    %67 = vector.broadcast %cst_13 : f32 to vector<64x16xf32>
    %c3_i32_14 = arith.constant 3 : i32
    %68 = vector.broadcast %c3_i32_14 : i32 to vector<64x16xi32>
    %69 = arith.shrsi %66, %68 : vector<64x16xi32>
    %c1_i32_15 = arith.constant 1 : i32
    %70 = vector.broadcast %c1_i32_15 : i32 to vector<64x16xi32>
    %71 = arith.andi %69, %70 : vector<64x16xi32>
    %c0_i32_16 = arith.constant 0 : i32
    %72 = vector.broadcast %c0_i32_16 : i32 to vector<64x16xi32>
    %73 = arith.cmpi eq, %71, %72 : vector<64x16xi32>
    %74 = vector.extract_strided_slice %6 {offsets = [0, 4], sizes = [64, 1], strides = [1, 1]} : vector<64x8xf32> to vector<64x1xf32>
    %75 = vector.extract_strided_slice %7 {offsets = [0, 4], sizes = [64, 1], strides = [1, 1]} : vector<64x8xf32> to vector<64x1xf32>
    %76 = vector.shape_cast %74 : vector<64x1xf32> to vector<64x1xf32>
    %77 = vector.broadcast %76 : vector<64x1xf32> to vector<64x16xf32>
    %78 = vector.shape_cast %75 : vector<64x1xf32> to vector<64x1xf32>
    %79 = vector.broadcast %78 : vector<64x1xf32> to vector<64x16xf32>
    %80 = arith.select %73, %77, %79 : vector<64x16xi1>, vector<64x16xf32>
    %81 = arith.mulf %67, %80 : vector<64x16xf32>
    %c2_i32_17 = arith.constant 2 : i32
    %82 = vector.broadcast %c2_i32_17 : i32 to vector<64x16xi32>
    %83 = arith.shrsi %66, %82 : vector<64x16xi32>
    %c1_i32_18 = arith.constant 1 : i32
    %84 = vector.broadcast %c1_i32_18 : i32 to vector<64x16xi32>
    %85 = arith.andi %83, %84 : vector<64x16xi32>
    %c0_i32_19 = arith.constant 0 : i32
    %86 = vector.broadcast %c0_i32_19 : i32 to vector<64x16xi32>
    %87 = arith.cmpi eq, %85, %86 : vector<64x16xi32>
    %88 = vector.extract_strided_slice %6 {offsets = [0, 5], sizes = [64, 1], strides = [1, 1]} : vector<64x8xf32> to vector<64x1xf32>
    %89 = vector.extract_strided_slice %7 {offsets = [0, 5], sizes = [64, 1], strides = [1, 1]} : vector<64x8xf32> to vector<64x1xf32>
    %90 = vector.shape_cast %88 : vector<64x1xf32> to vector<64x1xf32>
    %91 = vector.broadcast %90 : vector<64x1xf32> to vector<64x16xf32>
    %92 = vector.shape_cast %89 : vector<64x1xf32> to vector<64x1xf32>
    %93 = vector.broadcast %92 : vector<64x1xf32> to vector<64x16xf32>
    %94 = arith.select %87, %91, %93 : vector<64x16xi1>, vector<64x16xf32>
    %95 = arith.mulf %81, %94 : vector<64x16xf32>
    %c1_i32_20 = arith.constant 1 : i32
    %96 = vector.broadcast %c1_i32_20 : i32 to vector<64x16xi32>
    %97 = arith.shrsi %66, %96 : vector<64x16xi32>
    %c1_i32_21 = arith.constant 1 : i32
    %98 = vector.broadcast %c1_i32_21 : i32 to vector<64x16xi32>
    %99 = arith.andi %97, %98 : vector<64x16xi32>
    %c0_i32_22 = arith.constant 0 : i32
    %100 = vector.broadcast %c0_i32_22 : i32 to vector<64x16xi32>
    %101 = arith.cmpi eq, %99, %100 : vector<64x16xi32>
    %102 = vector.extract_strided_slice %6 {offsets = [0, 6], sizes = [64, 1], strides = [1, 1]} : vector<64x8xf32> to vector<64x1xf32>
    %103 = vector.extract_strided_slice %7 {offsets = [0, 6], sizes = [64, 1], strides = [1, 1]} : vector<64x8xf32> to vector<64x1xf32>
    %104 = vector.shape_cast %102 : vector<64x1xf32> to vector<64x1xf32>
    %105 = vector.broadcast %104 : vector<64x1xf32> to vector<64x16xf32>
    %106 = vector.shape_cast %103 : vector<64x1xf32> to vector<64x1xf32>
    %107 = vector.broadcast %106 : vector<64x1xf32> to vector<64x16xf32>
    %108 = arith.select %101, %105, %107 : vector<64x16xi1>, vector<64x16xf32>
    %109 = arith.mulf %95, %108 : vector<64x16xf32>
    %c0_i32_23 = arith.constant 0 : i32
    %110 = vector.broadcast %c0_i32_23 : i32 to vector<64x16xi32>
    %111 = arith.shrsi %66, %110 : vector<64x16xi32>
    %c1_i32_24 = arith.constant 1 : i32
    %112 = vector.broadcast %c1_i32_24 : i32 to vector<64x16xi32>
    %113 = arith.andi %111, %112 : vector<64x16xi32>
    %c0_i32_25 = arith.constant 0 : i32
    %114 = vector.broadcast %c0_i32_25 : i32 to vector<64x16xi32>
    %115 = arith.cmpi eq, %113, %114 : vector<64x16xi32>
    %116 = vector.extract_strided_slice %6 {offsets = [0, 7], sizes = [64, 1], strides = [1, 1]} : vector<64x8xf32> to vector<64x1xf32>
    %117 = vector.extract_strided_slice %7 {offsets = [0, 7], sizes = [64, 1], strides = [1, 1]} : vector<64x8xf32> to vector<64x1xf32>
    %118 = vector.shape_cast %116 : vector<64x1xf32> to vector<64x1xf32>
    %119 = vector.broadcast %118 : vector<64x1xf32> to vector<64x16xf32>
    %120 = vector.shape_cast %117 : vector<64x1xf32> to vector<64x1xf32>
    %121 = vector.broadcast %120 : vector<64x1xf32> to vector<64x16xf32>
    %122 = arith.select %115, %119, %121 : vector<64x16xi1>, vector<64x16xf32>
    %123 = arith.mulf %109, %122 : vector<64x16xf32>
    %c0_26 = arith.constant 0 : index
    %c0_27 = arith.constant 0 : index
    %124 = vector.load %arg4[%c0_26, %c0_27] : memref<16x256xf32, #tpu.memory_space<vmem>>, vector<16x256xf32>
    %cst_28 = arith.constant dense<0.000000e+00> : vector<64x256xf32>
    %125 = tpu.matmul %65, %124, %cst_28 {dimension_numbers = #tpu.dot_dimension_numbers<[1], [0], [0], [1], [0, 0, 1, 1], [], []>, precision = #tpu.contract_precision<fp32>} : vector<64x16xf32>, vector<16x256xf32>, vector<64x256xf32> -> vector<64x256xf32>
    %c0_29 = arith.constant 0 : index
    %c0_30 = arith.constant 0 : index
    %126 = vector.load %arg5[%c0_29, %c0_30] : memref<16x256xf32, #tpu.memory_space<vmem>>, vector<16x256xf32>
    %cst_31 = arith.constant dense<0.000000e+00> : vector<64x256xf32>
    %127 = tpu.matmul %123, %126, %cst_31 {dimension_numbers = #tpu.dot_dimension_numbers<[1], [0], [0], [1], [0, 0, 1, 1], [], []>, precision = #tpu.contract_precision<fp32>} : vector<64x16xf32>, vector<16x256xf32>, vector<64x256xf32> -> vector<64x256xf32>
    %128 = arith.mulf %125, %127 : vector<64x256xf32>
    %c0_32 = arith.constant 0 : index
    %c0_33 = arith.constant 0 : index
    %129 = vector.load %arg3[%c0_32, %c0_33] : memref<8x256xf32, #tpu.memory_space<vmem>>, vector<8x256xf32>
    %cst_34 = arith.constant dense<0.000000e+00> : vector<64x256xf32>
    %130 = tpu.matmul %5, %129, %cst_34 {dimension_numbers = #tpu.dot_dimension_numbers<[1], [0], [0], [1], [0, 0, 1, 1], [], []>, precision = #tpu.contract_precision<fp32>} : vector<64x8xf32>, vector<8x256xf32>, vector<64x256xf32> -> vector<64x256xf32>
    %131 = math.cos %130 : vector<64x256xf32>
    %132 = arith.mulf %128, %131 : vector<64x256xf32>
    %c0_35 = arith.constant 0 : index
    %c0_36 = arith.constant 0 : index
    %133 = vector.load %arg6[%c0_35, %c0_36] : memref<64x256xf32, #tpu.memory_space<vmem>>, vector<64x256xf32>
    tpu.vector_store %arg6[%c0_35, %c0_36], %132 {strides = array<i32>} : memref<64x256xf32, #tpu.memory_space<vmem>>, vector<64x256xf32>,
    %134 = math.sin %130 : vector<64x256xf32>
    %135 = arith.mulf %128, %134 : vector<64x256xf32>
    %c0_37 = arith.constant 0 : index
    %c0_38 = arith.constant 0 : index
    %136 = vector.load %arg7[%c0_37, %c0_38] : memref<64x256xf32, #tpu.memory_space<vmem>>, vector<64x256xf32>
    tpu.vector_store %arg7[%c0_37, %c0_38], %135 {strides = array<i32>} : memref<64x256xf32, #tpu.memory_space<vmem>>, vector<64x256xf32>,
    return
  }
  func.func @transform_0(%arg0: i32) -> (i32, i32) {
    %c0_i32 = arith.constant 0 : i32
    %c0_i32_0 = arith.constant 0 : i32
    return %arg0, %c0_i32 : i32, i32
  }
  func.func @transform_1(%arg0: i32) -> (i32, i32) {
    %c0_i32 = arith.constant 0 : i32
    %c0_i32_0 = arith.constant 0 : i32
    return %arg0, %c0_i32 : i32, i32
  }
  func.func @transform_2(%arg0: i32) -> (i32, i32) {
    %c0_i32 = arith.constant 0 : i32
    %c0_i32_0 = arith.constant 0 : i32
    %c0_i32_1 = arith.constant 0 : i32
    return %c0_i32, %c0_i32_0 : i32, i32
  }
  func.func @transform_3(%arg0: i32) -> (i32, i32) {
    %c0_i32 = arith.constant 0 : i32
    %c0_i32_0 = arith.constant 0 : i32
    %c0_i32_1 = arith.constant 0 : i32
    return %c0_i32, %c0_i32_0 : i32, i32
  }
  func.func @transform_4(%arg0: i32) -> (i32, i32) {
    %c0_i32 = arith.constant 0 : i32
    %c0_i32_0 = arith.constant 0 : i32
    %c0_i32_1 = arith.constant 0 : i32
    return %c0_i32, %c0_i32_0 : i32, i32
  }
  func.func @transform_5(%arg0: i32) -> (i32, i32) {
    %c0_i32 = arith.constant 0 : i32
    %c0_i32_0 = arith.constant 0 : i32
    return %arg0, %c0_i32 : i32, i32
  }
  func.func @transform_6(%arg0: i32) -> (i32, i32) {
    %c0_i32 = arith.constant 0 : i32
    %c0_i32_0 = arith.constant 0 : i32
    return %arg0, %c0_i32 : i32, i32
  }
}

</mosaic_0001>

<bundles_post_ra>
// kernel: custom-call
= control target key start
LH: loop header
LB: loop body
LE: loop exit
PB: predicated region body
PF: predicated region fallthrough
CT: control target
= control target key end

     0   :  { %s105_s0 = inlined_call_operand.vmem [shape: f32[128,256], index: 0, kind: input, shape index: {}]   ;;  %s106_s1 = inlined_call_operand.vmem [shape: f32[128,256], index: 1, kind: input, shape index: {}]   ;;  %s107_s2 = inlined_call_operand.hbm [shape: c64[128,256], index: 2, kind: output, shape index: {}]  }
   0x1   :  { %s3_s11 = scalar_lea.hbm %s107_s2, 256 }
   0x2   :  { %4 = vsyncpa [#allocation0], 0  ;;  %s6_s14 = sshll.u32 %s105_s0, 4  ;;  %s8_s17 = sshll.u32 %s107_s2, 4  ;;  %s7_s14 = int_to_ptr.vmem [resolvable:$true] %s6_s14  ;;  %s9_s17 = int_to_ptr.hbm [resolvable:$true] %s8_s17 }
   0x3   :  { %11 = dma.vmem_to_hbm [thread:$0]  %s7_s14, 4096, %s9_s17, [#allocation0] }
   0x4   :  { %74 = dma.done.wait [#allocation0], 4096  }
   0x5   :  { %75 = vsyncadd [#allocation0], 4294963200 }
   0x6   :  { %14 = vsyncpa [#allocation0], 1 }
   0x7   :  { %15 = vsyncpa [#allocation1], 0  ;;  %s17_s20 = sshll.u32 %s106_s1, 4  ;;  %s19_s21 = sshll.u32 %s3_s11, 4  ;;  %s18_s20 = int_to_ptr.vmem [resolvable:$true] %s17_s20  ;;  %s20_s21 = int_to_ptr.hbm [resolvable:$true] %s19_s21 }
   0x8   :  { %22 = dma.vmem_to_hbm [thread:$0]  %s18_s20, 4096, %s20_s21, [#allocation1] }
   0x9   :  { %76 = dma.done.wait [#allocation1], 4096  }
   0xa   :  { %77 = vsyncadd [#allocation1], 4294963200 }
   0xb   :  { %25 = vsyncpa [#allocation1], 1 }

// kernel: encoder_forward.1
= control target key start
LH: loop header
LB: loop body
LE: loop exit
PB: predicated region body
PF: predicated region fallthrough
CT: control target
= control target key end

     0   :  { %s11254_s21 = smov 0   ;;  %s16339_s0 = inlined_call_operand.vmem [shape: f32[128,8], index: 0, kind: input, shape index: {}]   ;;  %s16340_s1 = inlined_call_operand.vmem [shape: f32[128,8], index: 1, kind: input, shape index: {}]   ;;  %s16341_s2 = inlined_call_operand.vmem [shape: f32[8,256], index: 2, kind: input, shape index: {}]   ;;  %s16342_s3 = inlined_call_operand.vmem [shape: f32[16,256], index: 3, kind: input, shape index: {}]   ;;  %s16343_s4 = inlined_call_operand.vmem [shape: f32[16,256], index: 4, kind: input, shape index: {}]   ;;  %s16344_s5 = inlined_call_operand.vmem [shape: f32[128,256], index: 5, kind: output, shape index: {0}]   ;;  %s16345_s6 = inlined_call_operand.vmem [shape: f32[128,256], index: 6, kind: output, shape index: {1}]  }
   0x1 LB: > { %s10896_s22 = sadd.s32 4294967295, %s11203_s21   ;;  %p10900_p0 = scmp.ge.s32.totalorder %s11203_s21, 1  ;;  %s11203_s21 = sphi %s11254_s21, %s17_s21  }
   0x2   : > { %p227_p1 = scmp.lt.s32.totalorder %s11203_s21, 3 }
   0x4   : > { %p228_p2 = pnand %p10900_p0, %p227_p1 }
   0x6   : > { %231 = sbr.rel (%p228_p2) target bundleno = 1827 (0x723), region = 40 }
   0xb   : > { %s10901_s23 = sshll.u32 %s10896_s22, 3  ;;  %v11205_v0 = vmov 1   ;;  %v16359_v1 = vmov 0   ;;  %v16357_v30 = vmov 683565275  }
   0xc   : > { %11082 = vset.pattern.permute.xlu1 %v11205_v0  ;;  %11081 = vset.pattern.permute.xlu0 %v16359_v1  ;;  %p270_p3 = scmp.lt.s32.totalorder %s10901_s23, 15  ;;  %v16355_v32 = vmov 2475754826   ;;  %v16353_v34 = vmov 2131351028  }
   0xd   : > { %v16351_v36 = vmov 2102212464   ;;  %v16349_v38 = vmov 920167782   ;;  %v16347_v48 = vmov 1326507024  }
   0xe   : > { %s16712_s23 = smov (!%p270_p3, %s10901_s23), 15 }
   0xf   : > { %s10902_s24 = sshll.u32 %s16712_s23, 3 }
  0x10   : > { %s11272_s27 = scalar_lea.vmem %s16339_s0, %s10902_s24 }
  0x11   : > { %v295_v2 = vld [vmem:[%s11272_s27] sm:$0xff]  ;;  %v296_v3 = vld [vmem:[%s11272_s27 + $0x8] sm:$0xff]  ;;  %v297_v4 = vld [vmem:[%s11272_s27 + $0x10] sm:$0xff] }
  0x12   : > { %v11277_v5 = vmul.f32 0.5, %v295_v2  ;;  %v11279_v6 = vmul.f32 0.5, %v296_v3  ;;  %v11281_v7 = vmul.f32 0.5, %v297_v4 }
  0x14   : > { %v327_v8 = vand.u32 2147483647, %v11277_v5  ;;  %v330_v9 = vand.u32 2139095040, %v11277_v5  ;;  %v484_v10 = vand.u32 2139095040, %v11279_v6  ;;  %v638_v14 = vand.u32 2139095040, %v11281_v7 }
  0x15   : > { %v481_v24 = vand.u32 2147483647, %v11279_v6 }
  0x16   : > { %v331_v11 = vshrl.u32 %v330_v9, 23  ;;  %v334_v12 = vand.u32 8388607, %v327_v8  ;;  %v485_v13 = vshrl.u32 %v484_v10, 23  ;;  %v639_v21 = vshrl.u32 %v638_v14, 23 }
  0x17   : > { %v11308_v45 = vand.u32 8388607, %v481_v24 }
  0x18   : > { %v10911_v15 = vadd.s32 4294967169, %v331_v11  ;;  %v335_v16 = vor.u32 8388608, %v334_v12  ;;  %v10914_v17 = vadd.s32 4294967169, %v485_v13  ;;  %v11293_v28 = vadd.s32 4294967169, %v639_v21 }
  0x19   : > { %v489_v11 = vor.u32 8388608, %v11308_v45 }
  0x1a   : > { %v337_v18 = vadd.s32 1, %v10911_v15  ;;  %v491_v19 = vadd.s32 1, %v10914_v17  ;;  %v11289_v20 = vshll.u32 %v335_v16, 8 }
  0x1c   : > { %vm338_vm0 = vcmp.gt.s32.totalorder %v337_v18, 0  ;;  %vm492_vm1 = vcmp.gt.s32.totalorder %v491_v19, 0  ;;  %v376_v27 = vand.u32 65535, %v11289_v20  ;;  %v377_v40 = vshrl.u32 %v11289_v20, 16 }
  0x1d   : > { %v339_v22 = vsel %vm338_vm0, %v337_v18, 0  ;;  %v493_v25 = vsel %vm492_vm1, %v491_v19, 0 }
  0x1e   : > { %v341_v23 = vand.u32 31, %v339_v22  ;;  %v340_v26 = vshrl.u32 %v339_v22, 5  ;;  %v11301_v41 = vand.u32 31, %v493_v25  ;;  %v11326_v12 = vshrl.u32 %v493_v25, 5 }
  0x20   : > { %v342_v29 = vsub.s32 32, %v341_v23  ;;  %v344_v31 = vshll.u32 %v16357_v30, %v341_v23  ;;  %v347_v33 = vshll.u32 %v16355_v32, %v341_v23  ;;  %v350_v35 = vshll.u32 %v16353_v34, %v341_v23 }
  0x21   : > { %v353_v37 = vshll.u32 %v16351_v36, %v341_v23  ;;  %v356_v39 = vshll.u32 %v16349_v38, %v341_v23  ;;  %vm359_vm2 = vcmp.lt.s32.totalorder %v340_v26, 1  ;;  %vm362_vm3 = vcmp.lt.s32.totalorder %v340_v26, 4 }
  0x22   : > { %v345_v42 = vshrl.u32 %v16355_v32, %v342_v29  ;;  %v348_v43 = vshrl.u32 %v16353_v34, %v342_v29  ;;  %v351_v44 = vshrl.u32 %v16351_v36, %v342_v29  ;;  %v343_v46 = vshrl.u32 %v16357_v30, %v342_v29 }
  0x23   : > { %v354_v47 = vshrl.u32 %v16349_v38, %v342_v29  ;;  %v357_v49 = vshrl.u32 %v16347_v48, %v342_v29  ;;  %vm361_vm4 = vcmp.lt.s32.totalorder %v340_v26, 3  ;;  %v11314_v55 = vsub.s32 32, %v11301_v41 }
  0x24   : > { %v346_v50 = vor.u32 %v345_v42, %v344_v31  ;;  %v349_v51 = vor.u32 %v348_v43, %v347_v33  ;;  %v352_v52 = vor.u32 %v351_v44, %v350_v35  ;;  %vm360_vm5 = vcmp.lt.s32.totalorder %v340_v26, 2 }
  0x25   : > { %v355_v53 = vor.u32 %v354_v47, %v353_v37  ;;  %v358_v54 = vor.u32 %v357_v49, %v356_v39  ;;  %v498_v61 = vshll.u32 %v16357_v30, %v11301_v41  ;;  %v499_v62 = vshrl.u32 %v16355_v32, %v11314_v55 }
  0x26   : > { %v364_v56 = vsel %vm362_vm3, %v352_v52, 2102212464  ;;  %v367_v57 = vsel %vm359_vm2, %v346_v50, %v349_v51  ;;  %v371_v58 = vsel %vm359_vm2, %v349_v51, %v352_v52  ;;  %v363_v63 = vsel %vm359_vm2, %v343_v46, %v346_v50 }
  0x27   : > { %v368_v59 = vsel %vm362_vm3, %v355_v53, 920167782  ;;  %v372_v60 = vsel %vm362_vm3, %v358_v54, 1326507024  ;;  %v365_v2 = vsel %vm361_vm4, %v349_v51, %v364_v56  ;;  %v11331_v18 = vor.u32 %v499_v62, %v498_v61 }
  0x28   : > { %v369_v3 = vsel %vm361_vm4, %v352_v52, %v368_v59  ;;  %v373_v4 = vsel %vm361_vm4, %v355_v53, %v372_v60  ;;  %v11329_v17 = vsel %vm360_vm5, %v363_v63, %v365_v2  ;;  %v501_v19 = vshll.u32 %v16355_v32, %v11301_v41 }
  0x29   : > { %v370_v9 = vsel %vm360_vm5, %v367_v57, %v369_v3  ;;  %v374_v10 = vsel %vm360_vm5, %v371_v58, %v373_v4  ;;  %v502_v21 = vshrl.u32 %v16353_v34, %v11314_v55  ;;  %v504_v25 = vshll.u32 %v16353_v34, %v11301_v41 }
  0x2a   : > { %v378_v13 = vand.u32 65535, %v374_v10  ;;  %v379_v14 = vshrl.u32 %v374_v10, 16  ;;  %v400_v15 = vand.u32 65535, %v370_v9  ;;  %v401_v16 = vshrl.u32 %v370_v9, 16 }
  0x2b   : > { %v505_v26 = vshrl.u32 %v16351_v36, %v11314_v55  ;;  %v507_v43 = vshll.u32 %v16351_v36, %v11301_v41  ;;  %v508_v54 = vshrl.u32 %v16349_v38, %v11314_v55  ;;  %v503_v58 = vor.u32 %v502_v21, %v501_v19 }
  0x2c   : > { %v380_v22 = vmul.u32 %v378_v13, %v376_v27  ;;  %v381_v23 = vmul.u32 %v379_v14, %v376_v27  ;;  %v382_v29 = vmul.u32 %v378_v13, %v377_v40  ;;  %v402_v31 = vmul.u32 %v400_v15, %v376_v27 }
  0x2d   : > { %v403_v33 = vmul.u32 %v401_v16, %v376_v27  ;;  %v404_v35 = vmul.u32 %v400_v15, %v377_v40  ;;  %v383_v37 = vmul.u32 %v379_v14, %v377_v40  ;;  %v405_v46 = vmul.u32 %v401_v16, %v377_v40 }
  0x2e   : > { %v384_v39 = vshll.u32 %v381_v23, 16  ;;  %v386_v42 = vshll.u32 %v382_v29, 16  ;;  %v385_v44 = vshrl.u32 %v381_v23, 16  ;;  %v387_v50 = vshrl.u32 %v382_v29, 16 }
  0x2f   : > { %v406_v47 = vshll.u32 %v403_v33, 16  ;;  %v408_v49 = vshll.u32 %v404_v35, 16  ;;  %v407_v52 = vshrl.u32 %v403_v33, 16  ;;  %v506_v60 = vor.u32 %v505_v26, %v504_v25 }
  0x30   : > { %vm388_vm6 = vc.u32 %v380_v22, %v384_v39  ;;  %v390_v51 = vadd.s32 %v384_v39, %v380_v22  ;;  %v509_v63 = vor.u32 %v508_v54, %v507_v43  ;;  %v510_v2 = vshll.u32 %v16349_v38, %v11301_v41 }
  0x31   : > { %v389_v27 = vsel %vm388_vm6, 1, %v16359_v1  ;;  %vm410_vm7 = vc.u32 %v402_v31, %v406_v47  ;;  %v412_v53 = vadd.s32 %v406_v47, %v402_v31  ;;  %v409_v3 = vshrl.u32 %v404_v35, 16 }
  0x32   : > { %v391_v56 = vadd.s32 %v389_v27, %v383_v37  ;;  %vm392_vm8 = vc.u32 %v390_v51, %v386_v42  ;;  %v411_v57 = vsel %vm410_vm7, 1, %v16359_v1  ;;  %v511_v9 = vshrl.u32 %v16347_v48, %v11314_v55 }
  0x33   : > { %v393_v40 = vsel %vm392_vm8, 1, %v16359_v1  ;;  %v413_v59 = vadd.s32 %v411_v57, %v405_v46  ;;  %vm414_vm9 = vc.u32 %v412_v53, %v408_v49  ;;  %vm513_vm10 = vcmp.lt.s32.totalorder %v11326_v12, 1 }
  0x34   : > { %v395_v61 = vadd.s32 %v393_v40, %v391_v56  ;;  %v415_v62 = vsel %vm414_vm9, 1, %v16359_v1  ;;  %v11354_v13 = vadd.s32 %v412_v53, %v408_v49  ;;  %vm515_vm11 = vcmp.lt.s32.totalorder %v11326_v12, 3 }
  0x35   : > { %v417_v4 = vadd.s32 %v415_v62, %v413_v59  ;;  %vm516_vm12 = vcmp.lt.s32.totalorder %v11326_v12, 4  ;;  %v512_v15 = vor.u32 %v511_v9, %v510_v2  ;;  %vm514_vm13 = vcmp.lt.s32.totalorder %v11326_v12, 2 }
  0x36   : > { %v396_v10 = vadd.s32 %v395_v61, %v385_v44  ;;  %v521_v41 = vsel %vm513_vm10, %v11331_v18, %v503_v58  ;;  %v522_v19 = vsel %vm516_vm12, %v509_v63, 920167782  ;;  %v525_v21 = vsel %vm513_vm10, %v503_v58, %v506_v60 }
  0x37   : > { %v418_v14 = vadd.s32 %v417_v4, %v407_v52  ;;  %v523_v23 = vsel %vm515_vm11, %v506_v60, %v522_v19  ;;  %v526_v29 = vsel %vm516_vm12, %v512_v15, 1326507024  ;;  %v645_v25 = vadd.s32 1, %v11293_v28 }
  0x38   : > { %v11362_v16 = vadd.s32 %v396_v10, %v387_v50  ;;  %v420_v31 = vmul.u32 %v11289_v20, %v11329_v17  ;;  %v524_v33 = vsel %vm514_vm13, %v521_v41, %v523_v23  ;;  %v527_v35 = vsel %vm515_vm11, %v509_v63, %v526_v29 }
  0x39   : > { %v419_v22 = vadd.s32 %v418_v14, %v409_v3  ;;  %v528_v37 = vsel %vm514_vm13, %v525_v21, %v527_v35  ;;  %v11385_v39 = vshll.u32 %v489_v11, 8  ;;  %v554_v20 = vand.u32 65535, %v524_v33 }
  0x3a   : > { %vm422_vm14 = vc.u32 %v11362_v16, %v11354_v13  ;;  %v532_v28 = vand.u32 65535, %v528_v37  ;;  %v533_v42 = vshrl.u32 %v528_v37, 16  ;;  %v555_v17 = vshrl.u32 %v524_v33, 16 }
  0x3b   : > { %v423_v26 = vadd.s32 1, %v419_v22  ;;  %v530_v44 = vand.u32 65535, %v11385_v39  ;;  %v531_v46 = vshrl.u32 %v11385_v39, 16  ;;  %v497_v49 = vshrl.u32 %v16357_v30, %v11314_v55 }
  0x3c   : > { %vm646_vm15 = vcmp.gt.s32.totalorder %v645_v25, 0  ;;  %v518_v50 = vsel %vm516_vm12, %v506_v60, 2102212464  ;;  %v635_v33 = vand.u32 2147483647, %v11281_v7  ;;  %vm329_vm5 = vcmp.lt.s32.totalorder %v11277_v5, 0 }
  0x3d   : > { %v424_v43 = vsel %vm422_vm14, %v423_v26, %v419_v22  ;;  %v534_v45 = vmul.u32 %v532_v28, %v530_v44  ;;  %v535_v11 = vmul.u32 %v533_v42, %v530_v44  ;;  %v536_v51 = vmul.u32 %v532_v28, %v531_v46 }
  0x3e   : > { %v425_v47 = vadd.s32 %v424_v43, %v420_v31  ;;  %v556_v27 = vmul.u32 %v554_v20, %v530_v44  ;;  %v557_v53 = vmul.u32 %v555_v17, %v530_v44  ;;  %v558_v54 = vmul.u32 %v554_v20, %v531_v46 }
  0x3f   : > { %v537_v56 = vmul.u32 %v533_v42, %v531_v46  ;;  %v538_v57 = vshll.u32 %v535_v11, 16  ;;  %v540_v40 = vshll.u32 %v536_v51, 16  ;;  %v647_v59 = vsel %vm646_vm15, %v645_v25, 0 }
  0x40   : > { %v426_v52 = vadd.s32 536870912, %v425_v47  ;;  %v517_v55 = vsel %vm513_vm10, %v497_v49, %v11331_v18  ;;  %v559_v62 = vmul.u32 %v555_v17, %v531_v46  ;;  %v560_v63 = vshll.u32 %v557_v53, 16 }
  0x41   : > { %v519_v60 = vsel %vm515_vm11, %v503_v58, %v518_v50  ;;  %vm542_vm0 = vc.u32 %v534_v45, %v538_v57  ;;  %v544_v2 = vadd.s32 %v538_v57, %v534_v45  ;;  %v562_v3 = vshll.u32 %v558_v54, 16 }
  0x42   : > { %v11393_v61 = vshrl.u32 %v426_v52, 30  ;;  %v539_v9 = vshrl.u32 %v535_v11, 16  ;;  %v543_v10 = vsel %vm542_vm0, 1, %v16359_v1  ;;  %vm564_vm1 = vc.u32 %v556_v27, %v560_v63 }
  0x43   : > { %v545_v14 = vadd.s32 %v543_v10, %v537_v56  ;;  %vm546_vm2 = vc.u32 %v544_v2, %v540_v40  ;;  %v565_v15 = vsel %vm564_vm1, 1, %v16359_v1  ;;  %v566_v41 = vadd.s32 %v560_v63, %v556_v27 }
  0x44   : > { %v428_v4 = vshll.u32 %v11393_v61, 30  ;;  %v547_v19 = vsel %vm546_vm2, 1, %v16359_v1  ;;  %v567_v21 = vadd.s32 %v565_v15, %v559_v62  ;;  %v649_v22 = vand.u32 31, %v647_v59 }
  0x45   : > { %v541_v58 = vshrl.u32 %v536_v51, 16  ;;  %v549_v23 = vadd.s32 %v547_v19, %v545_v14  ;;  %v561_v29 = vshrl.u32 %v557_v53, 16  ;;  %vm568_vm3 = vc.u32 %v566_v41, %v562_v3 }
  0x46   : > { %v429_v18 = vsub.s32 %v425_v47, %v428_v4  ;;  %v569_v31 = vsel %vm568_vm3, 1, %v16359_v1  ;;  %v563_v26 = vshrl.u32 %v558_v54, 16  ;;  %v520_v42 = vsel %vm514_vm13, %v517_v55, %v519_v60 }
  0x47   : > { %v550_v35 = vadd.s32 %v549_v23, %v539_v9  ;;  %v571_v37 = vadd.s32 %v569_v31, %v567_v21  ;;  %v650_v20 = vsub.s32 32, %v649_v22  ;;  %v11410_v44 = vadd.s32 %v566_v41, %v562_v3 }
  0x48   : > { %vm430_vm4 = vcmp.lt.s32.totalorder %v429_v18, 0  ;;  %v431_v25 = vsub.s32 0, %v429_v18  ;;  %v642_v47 = vand.u32 8388607, %v635_v33  ;;  %v421_v49 = vadd.s32 %v11354_v13, %v11362_v16 }
  0x49   : > { %v11408_v43 = vadd.s32 %v550_v35, %v541_v58  ;;  %v572_v46 = vadd.s32 %v571_v37, %v561_v29  ;;  %v574_v11 = vmul.u32 %v11385_v39, %v520_v42  ;;  %v655_v12 = vshll.u32 %v16355_v32, %v649_v22 }
  0x4a   : > { %v432_v28 = vsel %vm430_vm4, %v431_v25, %v429_v18  ;;  %v656_v51 = vshrl.u32 %v16353_v34, %v650_v20  ;;  %v658_v52 = vshll.u32 %v16353_v34, %v649_v22  ;;  %v659_v27 = vshrl.u32 %v16351_v36, %v650_v20 }
  0x4b   : > { %v433_v17 = vclz %v432_v28  ;;  %v573_v45 = vadd.s32 %v572_v46, %v563_v26  ;;  %vm576_vm7 = vc.u32 %v11408_v43, %v11410_v44  ;;  %v661_v13 = vshll.u32 %v16351_v36, %v649_v22 }
  0x4c   : > { %v662_v39 = vshrl.u32 %v16349_v38, %v650_v20  ;;  %v664_v54 = vshll.u32 %v16349_v38, %v649_v22  ;;  %v665_v56 = vshrl.u32 %v16347_v48, %v650_v20  ;;  %v11428_v62 = vshrl.u32 %v647_v59, 5 }
  0x4d   : > { %v10912_v50 = vadd.s32 4294967294, %v433_v17  ;;  %v577_v53 = vadd.s32 1, %v573_v45  ;;  %v643_v60 = vor.u32 8388608, %v642_v47  ;;  %v652_v2 = vshll.u32 %v16357_v30, %v649_v22 }
  0x4e   : > { %v653_v3 = vshrl.u32 %v16355_v32, %v650_v20  ;;  %v451_v10 = vsub.s32 4, %v11393_v61  ;;  %v657_v15 = vor.u32 %v656_v51, %v655_v12  ;;  %v660_v41 = vor.u32 %v659_v27, %v658_v52 }
  0x4f   : > { %vm10913_vm6 = vcmp.lt.s32.totalorder %v10912_v50, 0  ;;  %v578_v63 = vsel %vm576_vm7, %v577_v53, %v573_v45  ;;  %v663_v19 = vor.u32 %v662_v39, %v661_v13  ;;  %v666_v21 = vor.u32 %v665_v56, %v664_v54 }
  0x50   : > { %v436_v16 = vsel %vm10913_vm6, 0, %v10912_v50  ;;  %v579_v14 = vadd.s32 %v578_v63, %v574_v11  ;;  %vm670_vm8 = vcmp.lt.s32.totalorder %v11428_v62, 4  ;;  %vm11436_vm9 = vcmp.le.f32.partialorder %v327_v8, 0.7853982 }
  0x51   : > { %v437_v57 = vsub.s32 32, %v436_v16  ;;  %v438_v40 = vshll.u32 %v429_v18, %v436_v16  ;;  %v441_v55 = vsub.s32 4294967266, %v436_v16  ;;  %v654_v22 = vor.u32 %v653_v3, %v652_v2 }
  0x52   : > { %v580_v23 = vadd.s32 536870912, %v579_v14  ;;  %vm667_vm10 = vcmp.lt.s32.totalorder %v11428_v62, 1  ;;  %v11441_v29 = vshll.u32 %v643_v60, 8  ;;  %v452_v35 = vsel %vm329_vm5, %v451_v10, %v11393_v61 }
  0x53   : > { %v439_v4 = vshrl.u32 %v421_v49, %v437_v57  ;;  %v442_v9 = vadd.s32 127, %v441_v55  ;;  %v651_v37 = vshrl.u32 %v16357_v30, %v650_v20  ;;  %vm669_vm11 = vcmp.lt.s32.totalorder %v11428_v62, 3 }
  0x54   : > { %v11446_v26 = vshrl.u32 %v580_v23, 30  ;;  %v676_v8 = vsel %vm670_vm8, %v663_v19, 920167782  ;;  %v680_v28 = vsel %vm670_vm8, %v666_v21, 1326507024  ;;  %vm668_vm12 = vcmp.lt.s32.totalorder %v11428_v62, 2 }
  0x55   : > { %v440_v58 = vor.u32 %v439_v4, %v438_v40  ;;  %v443_v18 = vshll.u32 %v442_v9, 23  ;;  %v679_v61 = vsel %vm667_vm10, %v657_v15, %v660_v41  ;;  %v454_v46 = vsel %vm11436_vm9, 0, %v452_v35 }
  0x56   : > { %v582_v17 = vshll.u32 %v11446_v26, 30  ;;  %v672_v20 = vsel %vm670_vm8, %v660_v41, 2102212464  ;;  %v675_v47 = vsel %vm667_vm10, %v654_v22, %v657_v15  ;;  %v677_v45 = vsel %vm669_vm11, %v660_v41, %v676_v8 }
  0x57   : > { %v444_v25 = vor.u32 4788187, %v443_v18  ;;  %v447_v31 = vcvt.s32.f32 %v440_v58  ;;  %v681_v11 = vsel %vm669_vm11, %v663_v19, %v680_v28  ;;  %v671_v12 = vsel %vm667_vm10, %v651_v37, %v654_v22 }
  0x58   : > { %v11464_v50 = vsub.s32 %v579_v14, %v582_v17  ;;  %v682_v51 = vsel %vm668_vm12, %v679_v61, %v681_v11  ;;  %v684_v52 = vand.u32 65535, %v11441_v29  ;;  %v11476_v27 = vshrl.u32 %v11441_v29, 16 }
  0x59   : > { %v445_v42 = vand.u32 2147483647, %v444_v25  ;;  %v686_v16 = vand.u32 65535, %v682_v51  ;;  %v1703_v39 = vadd.s32 3, %v454_v46  ;;  %v673_v54 = vsel %vm669_vm11, %v657_v15, %v672_v20 }
  0x5a   : > { %vm584_vm13 = vcmp.lt.s32.totalorder %v11464_v50, 0  ;;  %v585_v13 = vsub.s32 0, %v11464_v50  ;;  %v11484_v56 = vsel %vm668_vm12, %v675_v47, %v677_v45  ;;  %v687_v57 = vshrl.u32 %v682_v51, 16 }
  0x5b   : > { %v448_v49 = vmul.f32 %v447_v31, %v445_v42  ;;  %v688_v63 = vmul.u32 %v686_v16, %v684_v52  ;;  %v708_v60 = vand.u32 65535, %v11484_v56  ;;  %v11498_v9 = vmul.u32 %v686_v16, %v11476_v27 }
  0x5c   : > { %v586_v55 = vsel %vm584_vm13, %v585_v13, %v11464_v50  ;;  %v11495_v4 = vmul.u32 %v687_v57, %v684_v52  ;;  %v11502_v14 = vand.u32 3, %v454_v46  ;;  %v575_v15 = vadd.s32 %v11410_v44, %v11408_v43 }
  0x5d   : > { %v449_v53 = vxor.u32 2147483648, %v448_v49  ;;  %v587_v3 = vclz %v586_v55  ;;  %v11508_v41 = vsel %vm668_vm12, %v671_v12, %v673_v54  ;;  %v11510_v19 = vand.u32 3, %v1703_v39 }
  0x5e   : > { %v692_v58 = vshll.u32 %v11495_v4, 16  ;;  %v709_v18 = vshrl.u32 %v11484_v56, 16  ;;  %v691_v22 = vmul.u32 %v687_v57, %v11476_v27  ;;  %v710_v25 = vmul.u32 %v708_v60, %v684_v52 }
  0x5f   : > { %v450_v40 = vsel %vm329_vm5, %v449_v53, %v448_v49  ;;  %v10915_v21 = vadd.s32 4294967294, %v587_v3  ;;  %vm483_vm14 = vcmp.lt.s32.totalorder %v11279_v6, 0  ;;  %v694_v43 = vshll.u32 %v11498_v9, 16 }
  0x60   : > { %v11493_v2 = vsel %vm11436_vm9, %v11277_v5, %v450_v40  ;;  %vm696_vm0 = vc.u32 %v688_v63, %v692_v58  ;;  %v698_v44 = vadd.s32 %v692_v58, %v688_v63  ;;  %vm476_vm1 = vcmp.eq.s32.totalorder %v11502_v14, 2 }
  0x61   : > { %v455_v10 = vmul.f32 %v11493_v2, %v11493_v2  ;;  %vm10916_vm15 = vcmp.lt.s32.totalorder %v10915_v21, 0  ;;  %v697_v37 = vsel %vm696_vm0, 1, %v16359_v1  ;;  %v11520_v17 = vmul.u32 %v709_v18, %v684_v52 }
  0x62   : > { %v590_v35 = vsel %vm10916_vm15, 0, %v10915_v21  ;;  %v11523_v20 = vmul.u32 %v708_v60, %v11476_v27  ;;  %vm473_vm2 = vcmp.eq.s32.totalorder %v11502_v14, 0  ;;  %v11213_v47 = vmov 2  }
  0x63   : > { %v456_v23 = vmul.f32 -0.001358992, %v455_v10  ;;  %v463_v59 = vmul.f32 -0.00019511016, %v455_v10  ;;  %v591_v8 = vsub.s32 32, %v590_v35  ;;  %v592_v28 = vshll.u32 %v11464_v50, %v590_v35  ;;  %11083 = vset.pattern.permute.xlu2 %v11213_v47 }
  0x64   : > { %v595_v42 = vsub.s32 4294967266, %v590_v35  ;;  %vm11529_vm3 = vcmp.le.f32.partialorder %v481_v24, 0.7853982  ;;  %v693_v11 = vshrl.u32 %v11495_v4, 16  ;;  %v699_v12 = vadd.s32 %v697_v37, %v691_v22 }
  0x65   : > { %v457_v62 = vadd.f32 0.041655596, %v456_v23  ;;  %v464_v31 = vadd.f32 0.008332121, %v463_v59  ;;  %v593_v50 = vshrl.u32 %v575_v15, %v591_v8  ;;  %vm472_vm4 = vcmp.lt.s32.totalorder %v11502_v14, 2 }
  0x66   : > { %v596_v45 = vadd.s32 127, %v595_v42  ;;  %v605_v53 = vsub.s32 4, %v11446_v26  ;;  %vm700_vm5 = vc.u32 %v698_v44, %v694_v43  ;;  %vm470_vm6 = vweird.f32 %v11277_v5 }
  0x67   : > { %v458_v61 = vmul.f32 %v457_v62, %v455_v10  ;;  %v465_v46 = vmul.f32 %v464_v31, %v455_v10  ;;  %v594_v13 = vor.u32 %v593_v50, %v592_v28  ;;  %v701_v24 = vsel %vm700_vm5, 1, %v16359_v1  ;;  %v298_v62 = vld [vmem:[%s11272_s27 + $0x18] sm:$0xff] }
  0x68   : > { %v597_v16 = vshll.u32 %v596_v45, 23  ;;  %v714_v39 = vshll.u32 %v11520_v17, 16  ;;  %vm1706_vm7 = vcmp.eq.s32.totalorder %v11510_v19, 0  ;;  %v703_v57 = vadd.s32 %v701_v24, %v699_v12 }
  0x69   : > { %v459_v51 = vadd.f32 -0.4999988, %v458_v61  ;;  %v466_v52 = vadd.f32 -0.16666654, %v465_v46  ;;  %vm1705_vm8 = vcmp.lt.s32.totalorder %v11510_v19, 2  ;;  %v601_v55 = vcvt.s32.f32 %v594_v13 }
  0x6a   : > { %v598_v40 = vor.u32 4788187, %v597_v16  ;;  %v713_v63 = vmul.u32 %v709_v18, %v11476_v27  ;;  %v716_v60 = vshll.u32 %v11523_v20, 16  ;;  %v606_v15 = vsel %vm483_vm14, %v605_v53, %v11446_v26 }
  0x6b   : > { %v460_v54 = vmul.f32 %v459_v51, %v455_v10  ;;  %v467_v56 = vmul.f32 %v466_v52, %v455_v10  ;;  %v695_v10 = vshrl.u32 %v11498_v9, 16  ;;  %v704_v58 = vadd.s32 %v703_v57, %v693_v11 }
  0x6c   : > { %v599_v21 = vand.u32 2147483647, %v598_v40  ;;  %vm718_vm9 = vc.u32 %v710_v25, %v714_v39  ;;  %v720_v23 = vadd.s32 %v714_v39, %v710_v25  ;;  %vm1709_vm10 = vcmp.eq.s32.totalorder %v11510_v19, 2  ;;  %v299_v39 = vld [vmem:[%s11272_s27 + $0x20] sm:$0xff] }
  0x6d   : > { %v461_v3 = vadd.f32 1.0, %v460_v54  ;;  %v468_v4 = vadd.f32 1.0, %v467_v56  ;;  %v719_v27 = vsel %vm718_vm9, 1, %v16359_v1  ;;  %v715_v43 = vshrl.u32 %v11520_v17, 16 }
  0x6e   : > { %v602_v18 = vmul.f32 %v601_v55, %v599_v21  ;;  %v721_v44 = vadd.s32 %v719_v27, %v713_v63  ;;  %vm722_vm11 = vc.u32 %v720_v23, %v716_v60  ;;  %v11556_v25 = vsel %vm11529_vm3, 0, %v606_v15 }
  0x6f   : > { %v469_v59 = vmul.f32 %v468_v4, %v11493_v2  ;;  %v477_v22 = vxor.u32 2147483648, %v461_v3  ;;  %v723_v2 = vsel %vm722_vm11, 1, %v16359_v1  ;;  %v705_v35 = vadd.s32 %v704_v58, %v695_v10 }
  0x70   : > { %v603_v31 = vxor.u32 2147483648, %v602_v18  ;;  %v717_v37 = vshrl.u32 %v11523_v20, 16  ;;  %v725_v8 = vadd.s32 %v723_v2, %v721_v44  ;;  %v724_v17 = vadd.s32 %v720_v23, %v716_v60 }
  0x71   : > { %v474_v26 = vxor.u32 2147483648, %v469_v59  ;;  %v478_v9 = vsel %vm476_vm1, %v477_v22, %v469_v59  ;;  %v1711_v42 = vsel %vm1709_vm10, %v477_v22, %v469_v59  ;;  %v11564_v61 = vmul.f32 0.5, %v298_v62 }
  0x72   : > { %v604_v45 = vsel %vm483_vm14, %v603_v31, %v602_v18  ;;  %v726_v20 = vadd.s32 %v725_v8, %v715_v43  ;;  %v1858_v52 = vadd.s32 3, %v11556_v25  ;;  %v728_v49 = vmul.u32 %v11441_v29, %v11508_v41 }
  0x73   : > { %v475_v28 = vsel %vm473_vm2, %v461_v3, %v474_v26  ;;  %v1708_v50 = vsel %vm1706_vm7, %v461_v3, %v474_v26  ;;  %v607_v12 = vsel %vm11529_vm3, %v11279_v6, %v604_v45  ;;  %v789_v51 = vand.u32 2147483647, %v11564_v61 }
  0x74   : > { %v479_v46 = vsel %vm472_vm4, %v475_v28, %v478_v9  ;;  %v609_v14 = vmul.f32 %v607_v12, %v607_v12  ;;  %v727_v53 = vadd.s32 %v726_v20, %v717_v37  ;;  %v792_v13 = vand.u32 2139095040, %v11564_v61 }
  0x75   : > { %v11574_v11 = vsel %vm470_vm6, nan, %v479_v46  ;;  %v1712_v16 = vsel %vm1705_vm8, %v1708_v50, %v1711_v42  ;;  %vm730_vm12 = vc.u32 %v705_v35, %v724_v17  ;;  %v796_v24 = vand.u32 8388607, %v789_v51 }
  0x76   : > { %2896 = vperm.xlu1 %11082, %v11574_v11   ;;  %2806 = vperm.xlu0 %11081, %v11574_v11   ;;  %v610_v54 = vmul.f32 -0.001358992, %v609_v14  ;;  %v617_v56 = vmul.f32 -0.00019511016, %v609_v14  ;;  %v731_v57 = vadd.s32 1, %v727_v53  ;;  %v793_v40 = vshrl.u32 %v792_v13, 23 }
  0x77   : > { %2979 = vperm.xlu2 %11083, %v11574_v11   ;;  %v11594_v19 = vsel %vm470_vm6, nan, %v1712_v16  ;;  %v797_v15 = vor.u32 8388608, %v796_v24  ;;  %v11596_v29 = vmul.f32 0.5, %v299_v39  ;;  %v11598_v21 = vand.u32 3, %v1858_v52 }
  0x78   : > { %v611_v55 = vadd.f32 0.041655596, %v610_v54  ;;  %v618_v63 = vadd.f32 0.008332121, %v617_v56  ;;  %v732_v60 = vsel %vm730_vm12, %v731_v57, %v727_v53  ;;  %v10920_v3 = vadd.s32 4294967169, %v793_v40 }
  0x79   : > { %v733_v4 = vadd.s32 %v732_v60, %v728_v49  ;;  %v11603_v18 = vshll.u32 %v797_v15, 8  ;;  %v946_v43 = vand.u32 2139095040, %v11596_v29  ;;  %vm1861_vm14 = vcmp.eq.s32.totalorder %v11598_v21, 0 }
  0x7a   : > { %v612_v41 = vmul.f32 %v611_v55, %v609_v14  ;;  %v619_v10 = vmul.f32 %v618_v63, %v609_v14  ;;  %v799_v58 = vadd.s32 1, %v10920_v3  ;;  %vm1860_vm15 = vcmp.lt.s32.totalorder %v11598_v21, 2 }
  0x7b   : > { %v734_v23 = vadd.s32 536870912, %v733_v4  ;;  %vm1864_vm0 = vcmp.eq.s32.totalorder %v11598_v21, 2  ;;  %v11609_v9 = vadd.s32 %v724_v17, %v705_v35  ;;  %vm624_vm1 = vweird.f32 %v11279_v6 }
  0x7c   : > { %v613_v59 = vadd.f32 -0.4999988, %v612_v41  ;;  %v620_v22 = vadd.f32 -0.16666654, %v619_v10  ;;  %vm800_vm13 = vcmp.gt.s32.totalorder %v799_v58, 0  ;;  %vm637_vm2 = vcmp.lt.s32.totalorder %v11281_v7, 0 }
  0x7d   : > { %v735_v5 = vshrl.u32 %v734_v23, 30  ;;  %v801_v27 = vsel %vm800_vm13, %v799_v58, 0  ;;  %v943_v28 = vand.u32 2147483647, %v11596_v29  ;;  %v11621_v50 = vand.u32 65535, %v11603_v18 }
  0x7e   : > { %2928 = vperm.xlu1 %11082, %v11594_v19   ;;  %2846 = vperm.xlu0 %11081, %v11594_v19   ;;  %v614_v44 = vmul.f32 %v613_v59, %v609_v14  ;;  %v621_v62 = vmul.f32 %v620_v22, %v609_v14  ;;  %v803_v26 = vand.u32 31, %v801_v27  ;;  %v11618_v46 = vshrl.u32 %v801_v27, 5 }
  0x7f   : > { %3011 = vperm.xlu2 %11083, %v11594_v19   ;;  %v736_v2 = vshll.u32 %v735_v5, 30  ;;  %v947_v35 = vshrl.u32 %v946_v43, 23  ;;  %v11214_v16 = vmov 3   ;;  %v759_v57 = vsub.s32 4, %v735_v5 }
  0x80   : > { %v11611_v31 = vadd.f32 1.0, %v614_v44  ;;  %v622_v37 = vadd.f32 1.0, %v621_v62  ;;  %v804_v8 = vsub.s32 32, %v803_v26  ;;  %v806_v20 = vshll.u32 %v16357_v30, %v803_v26 }
  0x81   : > { %v11616_v42 = vsub.s32 %v733_v4, %v736_v2  ;;  %v809_v14 = vshll.u32 %v16355_v32, %v803_v26  ;;  %v812_v49 = vshll.u32 %v16353_v34, %v803_v26  ;;  %v815_v39 = vshll.u32 %v16351_v36, %v803_v26 }
  0x82   : > { %v11623_v17 = vmul.f32 %v622_v37, %v607_v12  ;;  %v631_v45 = vxor.u32 2147483648, %v11611_v31  ;;  %v807_v53 = vshrl.u32 %v16355_v32, %v804_v8  ;;  %v810_v13 = vshrl.u32 %v16353_v34, %v804_v8 }
  0x83   : > { %vm738_vm3 = vcmp.lt.s32.totalorder %v11616_v42, 0  ;;  %v739_v52 = vsub.s32 0, %v11616_v42  ;;  %v813_v24 = vshrl.u32 %v16351_v36, %v804_v8  ;;  %v805_v40 = vshrl.u32 %v16357_v30, %v804_v8 }
  0x84   : > { %v628_v12 = vxor.u32 2147483648, %v11623_v17  ;;  %v1866_v54 = vsel %vm1864_vm0, %v631_v45, %v11623_v17  ;;  %vm11654_vm4 = vcmp.le.f32.partialorder %v635_v33, 0.7853982  ;;  %v808_v3 = vor.u32 %v807_v53, %v806_v20 }
  0x85   : > { %v740_v56 = vsel %vm738_vm3, %v739_v52, %v11616_v42  ;;  %v816_v4 = vshrl.u32 %v16349_v38, %v804_v8  ;;  %v811_v15 = vor.u32 %v810_v13, %v809_v14  ;;  %v818_v41 = vshll.u32 %v16349_v38, %v803_v26 }
  0x86   : > { %11085 = vset.pattern.permute.xlu1 %v11214_v16  ;;  %11084 = vset.pattern.permute.xlu0 %v11214_v16  ;;  %v1863_v55 = vsel %vm1861_vm14, %v11611_v31, %v628_v12  ;;  %v741_v60 = vclz %v740_v56  ;;  %v819_v10 = vshrl.u32 %v16347_v48, %v804_v8  ;;  %vm821_vm5 = vcmp.lt.s32.totalorder %v11618_v46, 1 }
  0x87   : > { %3093 = vperm.xlu1 %11085, %v11594_v19   ;;  %3061 = vperm.xlu0 %11084, %v11574_v11   ;;  %v1867_v58 = vsel %vm1860_vm15, %v1863_v55, %v1866_v54  ;;  %v814_v23 = vor.u32 %v813_v24, %v812_v49  ;;  %v817_v59 = vor.u32 %v816_v4, %v815_v39  ;;  %vm822_vm6 = vcmp.lt.s32.totalorder %v11618_v46, 2 }
  0x88   : > { %11086 = vset.pattern.permute.xlu2 %v16359_v1  ;;  %v10918_v33 = vadd.s32 4294967294, %v741_v60  ;;  %v760_v22 = vsel %vm637_vm2, %v759_v57, %v735_v5  ;;  %vm824_vm7 = vcmp.lt.s32.totalorder %v11618_v46, 4  ;;  %v10923_v27 = vadd.s32 4294967169, %v947_v35 }
  0x89   : > { %v820_v43 = vor.u32 %v819_v10, %v818_v41  ;;  %vm823_vm9 = vcmp.lt.s32.totalorder %v11618_v46, 3  ;;  %v826_v44 = vsel %vm824_vm7, %v814_v23, 2102212464  ;;  %v11674_v21 = vsel %vm624_vm1, nan, %v1867_v58 }
  0x8a   : > { %vm10919_vm8 = vcmp.lt.s32.totalorder %v10918_v33, 0  ;;  %v829_v5 = vsel %vm821_vm5, %v808_v3, %v811_v15  ;;  %v830_v26 = vsel %vm824_vm7, %v817_v59, 920167782  ;;  %v825_v35 = vsel %vm821_vm5, %v805_v40, %v808_v3 }
  0x8b   : > { %v744_v62 = vsel %vm10919_vm8, 0, %v10918_v33  ;;  %v827_v20 = vsel %vm823_vm9, %v811_v15, %v826_v44  ;;  %v831_v14 = vsel %vm823_vm9, %v814_v23, %v830_v26  ;;  %v833_v52 = vsel %vm821_vm5, %v811_v15, %v814_v23 }
  0x8c   : > { %v745_v2 = vsub.s32 32, %v744_v62  ;;  %v746_v37 = vshll.u32 %v11616_v42, %v744_v62  ;;  %v749_v8 = vsub.s32 4294967266, %v744_v62  ;;  %v11693_v42 = vand.u32 8388607, %v943_v28 }
  0x8d   : > { %v832_v49 = vsel %vm822_vm6, %v829_v5, %v831_v14  ;;  %v834_v24 = vsel %vm824_vm7, %v820_v43, 1326507024  ;;  %v762_v39 = vsel %vm11654_vm4, 0, %v760_v22  ;;  %v839_v56 = vshrl.u32 %v11603_v18, 16 }
  0x8e   : > { %v747_v53 = vshrl.u32 %v11609_v9, %v745_v2  ;;  %v750_v13 = vadd.s32 127, %v749_v8  ;;  %v835_v54 = vsel %vm823_vm9, %v817_v59, %v834_v24  ;;  %v953_v57 = vadd.s32 1, %v10923_v27 }
  0x8f   : > { %11087 = vset.pattern.permute.xlu1 %v16359_v1  ;;  %11093 = vset.pattern.permute.xlu0 %v16359_v1  ;;  %v11708_v9 = vsel %vm822_vm6, %v825_v35, %v827_v20  ;;  %v836_v60 = vsel %vm822_vm6, %v833_v52, %v835_v54  ;;  %v862_v15 = vand.u32 65535, %v832_v49  ;;  %v863_v41 = vshrl.u32 %v832_v49, 16 }
  0x90   : > { %2851 = vperm.xlu1 %11087, %v11674_v21   ;;  %v748_v40 = vor.u32 %v747_v53, %v746_v37  ;;  %v751_v55 = vshll.u32 %v750_v13, 23  ;;  %v840_v3 = vand.u32 65535, %v836_v60  ;;  %v841_v4 = vshrl.u32 %v836_v60, 16 }
  0x91   : > { %v951_v33 = vor.u32 8388608, %v11693_v42  ;;  %v11713_v23 = vand.u32 3, %v762_v39  ;;  %vm954_vm10 = vcmp.gt.s32.totalorder %v953_v57, 0  ;;  %v625_v43 = vand.u32 3, %v11556_v25 }
  0x92   : > { %v752_v10 = vor.u32 4788187, %v751_v55  ;;  %v755_v58 = vcvt.s32.f32 %v748_v40  ;;  %v843_v59 = vmul.u32 %v841_v4, %v11621_v50  ;;  %v844_v22 = vmul.u32 %v840_v3, %v839_v56 }
  0x93   : > { %v842_v46 = vmul.u32 %v840_v3, %v11621_v50  ;;  %v882_v44 = vmul.u32 %v11603_v18, %v11708_v9  ;;  %v864_v5 = vmul.u32 %v862_v15, %v11621_v50  ;;  %v11722_v26 = vmul.u32 %v863_v41, %v11621_v50 }
  0x94   : > { %v753_v27 = vand.u32 2147483647, %v752_v10  ;;  %v846_v62 = vshll.u32 %v843_v59, 16  ;;  %v11724_v2 = vmul.u32 %v862_v15, %v839_v56  ;;  %vm627_vm11 = vcmp.eq.s32.totalorder %v625_v43, 0 }
  0x95   : > { %vm630_vm12 = vcmp.eq.s32.totalorder %v625_v43, 2  ;;  %v845_v8 = vmul.u32 %v841_v4, %v839_v56  ;;  %vm626_vm13 = vcmp.lt.s32.totalorder %v625_v43, 2  ;;  %v629_v25 = vsel %vm627_vm11, %v11611_v31, %v628_v12 }
  0x96   : > { %v756_v37 = vmul.f32 %v755_v58, %v753_v27  ;;  %v632_v35 = vsel %vm630_vm12, %v631_v45, %v11623_v17  ;;  %v848_v20 = vshll.u32 %v844_v22, 16  ;;  %v2013_v52 = vadd.s32 3, %v762_v39 }
  0x97   : > { %v633_v14 = vsel %vm626_vm13, %v629_v25, %v632_v35  ;;  %vm850_vm14 = vc.u32 %v842_v46, %v846_v62  ;;  %v852_v49 = vadd.s32 %v846_v62, %v842_v46  ;;  %v868_v24 = vshll.u32 %v11722_v26, 16 }
  0x98   : > { %11089 = vset.pattern.permute.xlu1 %v11213_v47  ;;  %v757_v50 = vxor.u32 2147483648, %v756_v37  ;;  %v11735_v53 = vsel %vm624_vm1, nan, %v633_v14  ;;  %v851_v13 = vsel %vm850_vm14, 1, %v16359_v1  ;;  %v867_v17 = vmul.u32 %v863_v41, %v839_v56 }
  0x99   : > { %2983 = vperm.xlu1 %11089, %v11735_v53   ;;  %2811 = vperm.xlu2 %11086, %v11735_v53   ;;  %v853_v31 = vadd.s32 %v851_v13, %v845_v8  ;;  %v955_v45 = vsel %vm954_vm10, %v953_v57, 0  ;;  %v847_v39 = vshrl.u32 %v843_v59, 16  ;;  %vm854_vm15 = vc.u32 %v852_v49, %v848_v20 }
  0x9a   : > { %v758_v12 = vsel %vm637_vm2, %v757_v50, %v756_v37  ;;  %v870_v54 = vshll.u32 %v11724_v2, 16  ;;  %v11752_v55 = vand.u32 3, %v2013_v52  ;;  %v855_v60 = vsel %vm854_vm15, 1, %v16359_v1 }
  0x9b   : > { %v11747_v6 = vsel %vm11654_vm4, %v11281_v7, %v758_v12  ;;  %vm872_vm0 = vc.u32 %v864_v5, %v868_v24  ;;  %v849_v56 = vshrl.u32 %v844_v22, 16  ;;  %v857_v3 = vadd.s32 %v855_v60, %v853_v31 }
  0x9c   : > { %v763_v40 = vmul.f32 %v11747_v6, %v11747_v6  ;;  %v873_v57 = vsel %vm872_vm0, 1, %v16359_v1  ;;  %v874_v4 = vadd.s32 %v868_v24, %v864_v5  ;;  %v957_v10 = vand.u32 31, %v955_v45 }
  0x9d   : > { %v875_v41 = vadd.s32 %v873_v57, %v867_v17  ;;  %v858_v58 = vadd.s32 %v857_v3, %v847_v39  ;;  %v869_v59 = vshrl.u32 %v11722_v26, 16  ;;  %v11757_v27 = vshrl.u32 %v955_v45, 5 }
  0x9e   : > { %v764_v63 = vmul.f32 -0.001358992, %v763_v40  ;;  %v771_v15 = vmul.f32 -0.00019511016, %v763_v40  ;;  %vm876_vm1 = vc.u32 %v874_v4, %v870_v54  ;;  %v11760_v37 = vsub.s32 32, %v957_v10 }
  0x9f   : > { %v877_v62 = vsel %vm876_vm1, 1, %v16359_v1  ;;  %v11762_v22 = vadd.s32 %v858_v58, %v849_v56  ;;  %v871_v5 = vshrl.u32 %v11724_v2, 16  ;;  %v11765_v8 = vadd.s32 %v874_v4, %v870_v54 }
  0xa0   : > { %v765_v43 = vadd.f32 0.041655596, %v764_v63  ;;  %v772_v46 = vadd.f32 0.008332121, %v771_v15  ;;  %v879_v25 = vadd.s32 %v877_v62, %v875_v41  ;;  %vm784_vm2 = vcmp.eq.s32.totalorder %v11713_v23, 2 }
  0xa1   : > { %11091 = vset.pattern.permute.xlu1 %v11214_v16  ;;  %11088 = vset.pattern.permute.xlu2 %v11205_v0  ;;  %v960_v26 = vshll.u32 %v16357_v30, %v957_v10  ;;  %vm781_vm3 = vcmp.eq.s32.totalorder %v11713_v23, 0  ;;  %vm2016_vm4 = vcmp.eq.s32.totalorder %v11752_v55, 0  ;;  %vm2019_vm5 = vcmp.eq.s32.totalorder %v11752_v55, 2 }
  0xa2   : > { %v766_v35 = vmul.f32 %v765_v43, %v763_v40  ;;  %v773_v20 = vmul.f32 %v772_v46, %v763_v40  ;;  %3065 = vperm.xlu1 %11091, %v11735_v53   ;;  %v880_v2 = vadd.s32 %v879_v25, %v869_v59  ;;  %2900 = vperm.xlu2 %11088, %v11735_v53   ;;  %vm975_vm6 = vcmp.lt.s32.totalorder %v11757_v27, 1 }
  0xa3   : > { %v963_v50 = vshll.u32 %v16355_v32, %v957_v10  ;;  %vm780_vm7 = vcmp.lt.s32.totalorder %v11713_v23, 2  ;;  %v961_v13 = vshrl.u32 %v16355_v32, %v11760_v37  ;;  %v964_v49 = vshrl.u32 %v16353_v34, %v11760_v37 }
  0xa4   : > { %v767_v14 = vadd.f32 -0.4999988, %v766_v35  ;;  %v774_v52 = vadd.f32 -0.16666654, %v773_v20  ;;  %vm778_vm8 = vweird.f32 %v11281_v7  ;;  %v881_v24 = vadd.s32 %v880_v2, %v871_v5 }
  0xa5   : > { %v966_v12 = vshll.u32 %v16353_v34, %v957_v10  ;;  %v967_v31 = vshrl.u32 %v16351_v36, %v11760_v37  ;;  %v969_v17 = vshll.u32 %v16351_v36, %v957_v10  ;;  %vm884_vm9 = vc.u32 %v11762_v22, %v11765_v8 }
  0xa6   : > { %v768_v45 = vmul.f32 %v767_v14, %v763_v40  ;;  %v775_v39 = vmul.f32 %v774_v52, %v763_v40  ;;  %v11790_v54 = vor.u32 %v961_v13, %v960_v26  ;;  %v885_v60 = vadd.s32 1, %v881_v24 }
  0xa7   : > { %v11792_v56 = vor.u32 %v964_v49, %v963_v50  ;;  %v970_v3 = vshrl.u32 %v16349_v38, %v11760_v37  ;;  %v972_v57 = vshll.u32 %v16349_v38, %v957_v10  ;;  %v973_v15 = vshrl.u32 %v16347_v48, %v11760_v37 }
  0xa8   : > { %v769_v4 = vadd.f32 1.0, %v768_v45  ;;  %v776_v63 = vadd.f32 1.0, %v775_v39  ;;  %vm978_vm10 = vcmp.lt.s32.totalorder %v11757_v27, 4  ;;  %v886_v40 = vsel %vm884_vm9, %v885_v60, %v881_v24 }
  0xa9   : > { %v11800_v41 = vor.u32 %v967_v31, %v966_v12  ;;  %v971_v58 = vor.u32 %v970_v3, %v969_v17  ;;  %vm977_vm11 = vcmp.lt.s32.totalorder %v11757_v27, 3  ;;  %v887_v10 = vadd.s32 %v886_v40, %v882_v44 }
  0xaa   : > { %v777_v59 = vmul.f32 %v776_v63, %v11747_v6  ;;  %v785_v43 = vxor.u32 2147483648, %v769_v4  ;;  %v974_v46 = vor.u32 %v973_v15, %v972_v57  ;;  %vm2015_vm12 = vcmp.lt.s32.totalorder %v11752_v55, 2  ;;  %11094 = vset.pattern.permute.xlu1 %v16359_v1  ;;  %11090 = vset.pattern.permute.xlu2 %v11213_v47 }
  0xab   : > { %vm976_vm13 = vcmp.lt.s32.totalorder %v11757_v27, 2  ;;  %v983_v62 = vsel %vm975_vm6, %v11790_v54, %v11792_v56  ;;  %v984_v6 = vsel %vm978_vm10, %v971_v58, 920167782  ;;  %v888_v44 = vadd.s32 536870912, %v887_v10  ;;  %3015 = vperm.xlu2 %11090, %v11674_v21  }
  0xac   : > { %v782_v5 = vxor.u32 2147483648, %v777_v59  ;;  %v786_v18 = vsel %vm784_vm2, %v785_v43, %v777_v59  ;;  %v2021_v9 = vsel %vm2019_vm5, %v785_v43, %v777_v59  ;;  %v985_v25 = vsel %vm977_vm11, %v11800_v41, %v984_v6 }
  0xad   : > { %v987_v35 = vsel %vm975_vm6, %v11792_v56, %v11800_v41  ;;  %v988_v20 = vsel %vm978_vm10, %v974_v46, 1326507024  ;;  %v11833_v26 = vshll.u32 %v951_v33, 8  ;;  %v11839_v14 = vshrl.u32 %v888_v44, 30 }
  0xae   : > { %v783_v2 = vsel %vm781_vm3, %v769_v4, %v782_v5  ;;  %v2018_v50 = vsel %vm2016_vm4, %v769_v4, %v782_v5  ;;  %v986_v52 = vsel %vm976_vm13, %v983_v62, %v985_v25  ;;  %v989_v42 = vsel %vm977_vm11, %v971_v58, %v988_v20 }
  0xaf   : > { %v787_v13 = vsel %vm780_vm7, %v783_v2, %v786_v18  ;;  %v2022_v49 = vsel %vm2015_vm12, %v2018_v50, %v2021_v9  ;;  %v992_v33 = vand.u32 65535, %v11833_v26  ;;  %v890_v31 = vshll.u32 %v11839_v14, 30 }
  0xb0   : > { %v11852_v24 = vsel %vm778_vm8, nan, %v787_v13  ;;  %v11856_v12 = vsel %vm778_vm8, nan, %v2022_v49  ;;  %v990_v23 = vsel %vm976_vm13, %v987_v35, %v989_v42  ;;  %v993_v55 = vshrl.u32 %v11833_v26, 16 }
  0xb1   : > { %2816 = vperm.xlu0 %11093, %v11852_v24   ;;  %2856 = vperm.xlu1 %11094, %v11856_v12   ;;  %v1016_v17 = vand.u32 65535, %v986_v52  ;;  %v1017_v45 = vshrl.u32 %v986_v52, 16  ;;  %v11864_v39 = vsub.s32 %v887_v10, %v890_v31  ;;  %v994_v60 = vand.u32 65535, %v990_v23 }
  0xb2   : > { %v995_v3 = vshrl.u32 %v990_v23, 16  ;;  %v959_v43 = vshrl.u32 %v16357_v30, %v11760_v37  ;;  %v883_v18 = vadd.s32 %v11765_v8, %v11762_v22  ;;  %v980_v20 = vsel %vm978_vm10, %v11800_v41, 2102212464 }
  0xb3   : > { %v11866_v7 = vmul.u32 %v1017_v45, %v992_v33  ;;  %vm892_vm14 = vcmp.lt.s32.totalorder %v11864_v39, 0  ;;  %v893_v57 = vsub.s32 0, %v11864_v39  ;;  %v1018_v4 = vmul.u32 %v1016_v17, %v992_v33  ;;  %11092 = vset.pattern.permute.xlu2 %v11214_v16 }
  0xb4   : > { %v996_v63 = vmul.u32 %v994_v60, %v992_v33  ;;  %v997_v15 = vmul.u32 %v995_v3, %v992_v33  ;;  %v998_v40 = vmul.u32 %v994_v60, %v993_v55  ;;  %v11871_v58 = vmul.u32 %v1016_v17, %v993_v55  ;;  %3097 = vperm.xlu2 %11092, %v11674_v21  }
  0xb5   : > { %v894_v59 = vsel %vm892_vm14, %v893_v57, %v11864_v39  ;;  %v1022_v10 = vshll.u32 %v11866_v7, 16  ;;  %v999_v62 = vmul.u32 %v995_v3, %v993_v55  ;;  %v1021_v9 = vmul.u32 %v1017_v45, %v993_v55  ;;  %v300_v55 = vld [vmem:[%s11272_s27 + $0x28] sm:$0xff] }
  0xb6   : > { %v895_v46 = vclz %v894_v59  ;;  %v1000_v6 = vshll.u32 %v997_v15, 16  ;;  %v1002_v5 = vshll.u32 %v998_v40, 16  ;;  %v1024_v44 = vshll.u32 %v11871_v58, 16 }
  0xb7   : > { %vm1026_vm15 = vc.u32 %v1018_v4, %v1022_v10  ;;  %v1001_v22 = vshrl.u32 %v997_v15, 16  ;;  %v1028_v2 = vadd.s32 %v1022_v10, %v1018_v4  ;;  %v1003_v50 = vshrl.u32 %v998_v40, 16 }
  0xb8   : > { %v10921_v25 = vadd.s32 4294967294, %v895_v46  ;;  %vm1004_vm0 = vc.u32 %v996_v63, %v1000_v6  ;;  %v1006_v35 = vadd.s32 %v1000_v6, %v996_v63  ;;  %v1027_v37 = vsel %vm1026_vm15, 1, %v16359_v1 }
  0xb9   : > { %11098 = vset.pattern.permute.xlu0 %v11213_v47  ;;  %11096 = vset.pattern.permute.xlu1 %v11205_v0  ;;  %v1005_v8 = vsel %vm1004_vm0, 1, %v16359_v1  ;;  %v1029_v42 = vadd.s32 %v1027_v37, %v1021_v9  ;;  %vm1030_vm3 = vc.u32 %v1028_v2, %v1024_v44  ;;  %v979_v17 = vsel %vm975_vm6, %v959_v43, %v11790_v54 }
  0xba   : > { %3019 = vperm.xlu0 %11098, %v11856_v12   ;;  %2936 = vperm.xlu1 %11096, %v11856_v12   ;;  %vm10922_vm1 = vcmp.lt.s32.totalorder %v10921_v25, 0  ;;  %v1007_v52 = vadd.s32 %v1005_v8, %v999_v62  ;;  %vm1008_vm2 = vc.u32 %v1006_v35, %v1002_v5  ;;  %v1023_v45 = vshrl.u32 %v11866_v7, 16 }
  0xbb   : > { %v898_v13 = vsel %vm10922_vm1, 0, %v10921_v25  ;;  %v1009_v49 = vsel %vm1008_vm2, 1, %v16359_v1  ;;  %v1031_v60 = vsel %vm1030_vm3, 1, %v16359_v1  ;;  %v913_v63 = vsub.s32 4, %v11839_v14 }
  0xbc   : > { %v899_v33 = vsub.s32 32, %v898_v13  ;;  %v900_v31 = vshll.u32 %v11864_v39, %v898_v13  ;;  %v903_v41 = vsub.s32 4294967266, %v898_v13  ;;  %v1011_v23 = vadd.s32 %v1009_v49, %v1007_v52  ;;  %11095 = vset.pattern.permute.xlu2 %v11205_v0 }
  0xbd   : > { %2904 = vperm.xlu2 %11095, %v11852_v24   ;;  %v981_v39 = vsel %vm977_vm11, %v11792_v56, %v980_v20  ;;  %v1025_v15 = vshrl.u32 %v11871_v58, 16  ;;  %v1033_v40 = vadd.s32 %v1031_v60, %v1029_v42  ;;  %v11905_v59 = vmul.f32 0.5, %v300_v55 }
  0xbe   : > { %v901_v3 = vshrl.u32 %v883_v18, %v899_v33  ;;  %v904_v57 = vadd.s32 127, %v903_v41  ;;  %v1012_v4 = vadd.s32 %v1011_v23, %v1001_v22  ;;  %v11909_v10 = vadd.s32 %v1028_v2, %v1024_v44 }
  0xbf   : > { %v982_v46 = vsel %vm976_vm13, %v979_v17, %v981_v39  ;;  %v1034_v56 = vadd.s32 %v1033_v40, %v1023_v45  ;;  %v1100_v62 = vand.u32 2139095040, %v11905_v59  ;;  %vm791_vm4 = vcmp.lt.s32.totalorder %v11564_v61, 0 }
  0xc0   : > { %v902_v54 = vor.u32 %v901_v3, %v900_v31  ;;  %v905_v7 = vshll.u32 %v904_v57, 23  ;;  %v11907_v43 = vadd.s32 %v1012_v4, %v1003_v50  ;;  %v914_v5 = vsel %vm791_vm4, %v913_v63, %v11839_v14 }
  0xc1   : > { %v1035_v18 = vadd.s32 %v1034_v56, %v1025_v15  ;;  %v1101_v9 = vshrl.u32 %v1100_v62, 23  ;;  %v1036_v27 = vmul.u32 %v11833_v26, %v982_v46  ;;  %vm11926_vm6 = vcmp.le.f32.partialorder %v789_v51, 0.7853982 }
  0xc2   : > { %11107 = vset.pattern.permute.xlu0 %v11214_v16  ;;  %11099 = vset.pattern.permute.xlu1 %v11214_v16  ;;  %v906_v58 = vor.u32 4788187, %v905_v7  ;;  %v909_v6 = vcvt.s32.f32 %v902_v54  ;;  %vm1038_vm5 = vc.u32 %v11907_v43, %v11909_v10  ;;  %v11933_v14 = vsel %vm11926_vm6, 0, %v914_v5 }
  0xc3   : > { %3069 = vperm.xlu1 %11099, %v11852_v24   ;;  %v1039_v35 = vadd.s32 1, %v1035_v18  ;;  %v10926_v37 = vadd.s32 4294967169, %v1101_v9  ;;  %v2168_v51 = vadd.s32 3, %v11933_v14  ;;  %v1097_v50 = vand.u32 2147483647, %v11905_v59 }
  0xc4   : > { %v907_v44 = vand.u32 2147483647, %v906_v58  ;;  %vm932_vm11 = vweird.f32 %v11564_v61  ;;  %vm945_vm2 = vcmp.lt.s32.totalorder %v11596_v29, 0  ;;  %vm12047_vm3 = vcmp.le.f32.partialorder %v943_v28, 0.7853982 }
  0xc5   : > { %11097 = vset.pattern.permute.xlu2 %v11213_v47  ;;  %v1040_v26 = vsel %vm1038_vm5, %v1039_v35, %v1035_v18  ;;  %v1107_v22 = vadd.s32 1, %v10926_v37  ;;  %v11946_v23 = vand.u32 3, %v2168_v51  ;;  %v1104_v55 = vand.u32 8388607, %v1097_v50 }
  0xc6   : > { %v910_v20 = vmul.f32 %v909_v6, %v907_v44  ;;  %2987 = vperm.xlu2 %11097, %v11852_v24   ;;  %v1041_v2 = vadd.s32 %v1040_v26, %v1036_v27 }
  0xc7   : > { %vm1108_vm7 = vcmp.gt.s32.totalorder %v1107_v22, 0  ;;  %v1105_v56 = vor.u32 8388608, %v1104_v55  ;;  %vm2171_vm9 = vcmp.eq.s32.totalorder %v11946_v23, 0  ;;  %vm2170_vm10 = vcmp.lt.s32.totalorder %v11946_v23, 2 }
  0xc8   : > { %v911_v8 = vxor.u32 2147483648, %v910_v20  ;;  %v1042_v13 = vadd.s32 536870912, %v1041_v2  ;;  %v1109_v49 = vsel %vm1108_vm7, %v1107_v22, 0  ;;  %vm2174_vm14 = vcmp.eq.s32.totalorder %v11946_v23, 2 }
  0xc9   : > { %v1111_v33 = vand.u32 31, %v1109_v49  ;;  %v11966_v62 = vshrl.u32 %v1109_v49, 5  ;;  %v11988_v49 = vshll.u32 %v1105_v56, 8 }
  0xca   : > { %v912_v52 = vsel %vm791_vm4, %v911_v8, %v910_v20  ;;  %v11944_v41 = vshrl.u32 %v1042_v13, 30 }
  0xcb   : > { %11101 = vset.pattern.permute.xlu1 %v16359_v1  ;;  %v915_v42 = vsel %vm11926_vm6, %v11564_v61, %v912_v52  ;;  %v11950_v17 = vsub.s32 32, %v1111_v33  ;;  %v1114_v57 = vshll.u32 %v16357_v30, %v1111_v33  ;;  %v1117_v4 = vshll.u32 %v16355_v32, %v1111_v33 }
  0xcc   : > { %v917_v31 = vmul.f32 %v915_v42, %v915_v42  ;;  %v1044_v3 = vshll.u32 %v11944_v41, 30  ;;  %v1120_v15 = vshll.u32 %v16353_v34, %v1111_v33  ;;  %v1123_v44 = vshll.u32 %v16351_v36, %v1111_v33 }
  0xcd   : > { %v1115_v39 = vshrl.u32 %v16355_v32, %v11950_v17  ;;  %v1118_v63 = vshrl.u32 %v16353_v34, %v11950_v17  ;;  %v1121_v46 = vshrl.u32 %v16351_v36, %v11950_v17  ;;  %v1124_v27 = vshrl.u32 %v16349_v38, %v11950_v17 }
  0xce   : > { %v918_v45 = vmul.f32 -0.001358992, %v917_v31  ;;  %v925_v60 = vmul.f32 -0.00019511016, %v917_v31  ;;  %11100 = vset.pattern.permute.xlu2 %v11214_v16  ;;  %v11962_v7 = vsub.s32 %v1041_v2, %v1044_v3  ;;  %v1126_v8 = vshll.u32 %v16349_v38, %v1111_v33 }
  0xcf   : > { %3101 = vperm.xlu2 %11100, %v11856_v12   ;;  %v11971_v18 = vor.u32 %v1115_v39, %v1114_v57  ;;  %v11973_v9 = vor.u32 %v1118_v63, %v1117_v4  ;;  %v1122_v20 = vor.u32 %v1121_v46, %v1120_v15  ;;  %v1125_v22 = vor.u32 %v1124_v27, %v1123_v44 }
  0xd0   : > { %v919_v40 = vadd.f32 0.041655596, %v918_v45  ;;  %v926_v54 = vadd.f32 0.008332121, %v925_v60  ;;  %vm1046_vm8 = vcmp.lt.s32.totalorder %v11962_v7, 0  ;;  %v1047_v5 = vsub.s32 0, %v11962_v7 }
  0xd1   : > { %v1127_v2 = vshrl.u32 %v16347_v48, %v11950_v17  ;;  %vm1129_vm12 = vcmp.lt.s32.totalorder %v11966_v62, 1  ;;  %vm1132_vm13 = vcmp.lt.s32.totalorder %v11966_v62, 4  ;;  %vm1131_vm15 = vcmp.lt.s32.totalorder %v11966_v62, 3 }
  0xd2   : > { %v920_v58 = vmul.f32 %v919_v40, %v917_v31  ;;  %v927_v6 = vmul.f32 %v926_v54, %v917_v31  ;;  %v1048_v37 = vsel %vm1046_vm8, %v1047_v5, %v11962_v7  ;;  %v1037_v45 = vadd.s32 %v11909_v10, %v11907_v43 }
  0xd3   : > { %v1049_v26 = vclz %v1048_v37  ;;  %v1128_v60 = vor.u32 %v1127_v2, %v1126_v8  ;;  %vm1130_vm1 = vcmp.lt.s32.totalorder %v11966_v62, 2  ;;  %v1137_v3 = vsel %vm1129_vm12, %v11971_v18, %v11973_v9 }
  0xd4   : > { %v921_v25 = vadd.f32 -0.4999988, %v920_v58  ;;  %v928_v35 = vadd.f32 -0.16666654, %v927_v6  ;;  %v1146_v40 = vand.u32 65535, %v11988_v49  ;;  %v1113_v46 = vshrl.u32 %v16357_v30, %v11950_v17 }
  0xd5   : > { %v10924_v13 = vadd.s32 4294967294, %v1049_v26  ;;  %v1147_v56 = vshrl.u32 %v11988_v49, 16  ;;  %v1141_v5 = vsel %vm1129_vm12, %v11973_v9, %v1122_v20  ;;  %v1142_v17 = vsel %vm1132_vm13, %v1128_v60, 1326507024 }
  0xd6   : > { %v922_v51 = vmul.f32 %v921_v25, %v917_v31  ;;  %v929_v52 = vmul.f32 %v928_v35, %v917_v31  ;;  %v1138_v31 = vsel %vm1132_vm13, %v1125_v22, 920167782  ;;  %v1143_v8 = vsel %vm1131_vm15, %v1125_v22, %v1142_v17 }
  0xd7   : > { %11102 = vset.pattern.permute.xlu2 %v16359_v1  ;;  %vm10925_vm0 = vcmp.lt.s32.totalorder %v10924_v13, 0  ;;  %v1139_v43 = vsel %vm1131_vm15, %v1122_v20, %v1138_v31  ;;  %v1134_v22 = vsel %vm1132_vm13, %v1122_v20, 2102212464  ;;  %v1133_v17 = vsel %vm1129_vm12, %v1113_v46, %v11971_v18 }
  0xd8   : > { %v11991_v55 = vadd.f32 1.0, %v922_v51  ;;  %v930_v33 = vadd.f32 1.0, %v929_v52  ;;  %v1052_v4 = vsel %vm10925_vm0, 0, %v10924_v13  ;;  %v1144_v51 = vsel %vm1130_vm1, %v1141_v5, %v1143_v8 }
  0xd9   : > { %v1053_v10 = vsub.s32 32, %v1052_v4  ;;  %v1054_v63 = vshll.u32 %v11962_v7, %v1052_v4  ;;  %v1057_v15 = vsub.s32 4294967266, %v1052_v4  ;;  %v1140_v7 = vsel %vm1130_vm1, %v1137_v3, %v1139_v43 }
  0xda   : > { %v12002_v57 = vmul.f32 %v930_v33, %v915_v42  ;;  %v939_v39 = vxor.u32 2147483648, %v11991_v55  ;;  %v1170_v27 = vand.u32 65535, %v1140_v7  ;;  %v1171_v25 = vshrl.u32 %v1140_v7, 16 }
  0xdb   : > { %v1055_v58 = vshrl.u32 %v1037_v45, %v1053_v10  ;;  %v1058_v6 = vadd.s32 127, %v1057_v15  ;;  %v1148_v23 = vand.u32 65535, %v1144_v51  ;;  %v1149_v31 = vshrl.u32 %v1144_v51, 16 }
  0xdc   : > { %v936_v54 = vxor.u32 2147483648, %v12002_v57  ;;  %v2176_v42 = vsel %vm2174_vm14, %v939_v39, %v12002_v57  ;;  %v1172_v52 = vmul.u32 %v1170_v27, %v1146_v40  ;;  %v1173_v13 = vmul.u32 %v1171_v25, %v1146_v40 }
  0xdd   : > { %v1056_v37 = vor.u32 %v1055_v58, %v1054_v63  ;;  %v1059_v26 = vshll.u32 %v1058_v6, 23  ;;  %v1174_v60 = vmul.u32 %v1170_v27, %v1147_v56  ;;  %v1175_v3 = vmul.u32 %v1171_v25, %v1147_v56 }
  0xde   : > { %v2173_v44 = vsel %vm2171_vm9, %v11991_v55, %v936_v54  ;;  %v1176_v4 = vshll.u32 %v1173_v13, 16  ;;  %v1150_v10 = vmul.u32 %v1148_v23, %v1146_v40  ;;  %v1151_v63 = vmul.u32 %v1149_v31, %v1146_v40 }
  0xdf   : > { %v2177_v35 = vsel %vm2170_vm10, %v2173_v44, %v2176_v42  ;;  %v1060_v33 = vor.u32 4788187, %v1059_v26  ;;  %v1063_v45 = vcvt.s32.f32 %v1056_v37  ;;  %v1152_v15 = vmul.u32 %v1148_v23, %v1147_v56 }
  0xe0   : > { %v12037_v2 = vsel %vm932_vm11, nan, %v2177_v35  ;;  %v1067_v58 = vsub.s32 4, %v11944_v41  ;;  %v1178_v6 = vshll.u32 %v1174_v60, 16  ;;  %vm1180_vm4 = vc.u32 %v1172_v52, %v1176_v4 }
  0xe1   : > { %3105 = vperm.xlu0 %11107, %v12037_v2   ;;  %2861 = vperm.xlu2 %11102, %v12037_v2   ;;  %v1061_v43 = vand.u32 2147483647, %v1060_v33  ;;  %v1153_v5 = vmul.u32 %v1149_v31, %v1147_v56  ;;  %v1154_v20 = vshll.u32 %v1151_v63, 16  ;;  %v1156_v44 = vshll.u32 %v1152_v15, 16 }
  0xe2   : > { %v1135_v40 = vsel %vm1131_vm15, %v11973_v9, %v1134_v22  ;;  %v1181_v28 = vsel %vm1180_vm4, 1, %v16359_v1  ;;  %v1182_v27 = vadd.s32 %v1176_v4, %v1172_v52  ;;  %v1155_v26 = vshrl.u32 %v1151_v63, 16 }
  0xe3   : > { %v1064_v7 = vmul.f32 %v1063_v45, %v1061_v43  ;;  %vm1158_vm5 = vc.u32 %v1150_v10, %v1154_v20  ;;  %v1160_v35 = vadd.s32 %v1154_v20, %v1150_v10  ;;  %v1183_v37 = vadd.s32 %v1181_v28, %v1175_v3  ;;  %v301_v20 = vld [vmem:[%s11272_s27 + $0x30] sm:$0xff] }
  0xe4   : > { %v1159_v56 = vsel %vm1158_vm5, 1, %v16359_v1  ;;  %v1177_v8 = vshrl.u32 %v1173_v13, 16  ;;  %vm1184_vm6 = vc.u32 %v1182_v27, %v1178_v6  ;;  %v1179_v13 = vshrl.u32 %v1174_v60, 16 }
  0xe5   : > { %v1065_v25 = vxor.u32 2147483648, %v1064_v7  ;;  %v1161_v46 = vadd.s32 %v1159_v56, %v1153_v5  ;;  %vm1162_vm7 = vc.u32 %v1160_v35, %v1156_v44  ;;  %v1185_v9 = vsel %vm1184_vm6, 1, %v16359_v1 }
  0xe6   : > { %v1163_v52 = vsel %vm1162_vm7, 1, %v16359_v1  ;;  %v1187_v33 = vadd.s32 %v1185_v9, %v1183_v37  ;;  %v1136_v23 = vsel %vm1130_vm1, %v1133_v17, %v1135_v40  ;;  %v1157_v31 = vshrl.u32 %v1152_v15, 16 }
  0xe7   : > { %v1066_v18 = vsel %vm945_vm2, %v1065_v25, %v1064_v7  ;;  %v1165_v22 = vadd.s32 %v1163_v52, %v1161_v46  ;;  %v12071_v63 = vadd.s32 %v1182_v27, %v1178_v6  ;;  %v1068_v7 = vsel %vm945_vm2, %v1067_v58, %v11944_v41 }
  0xe8   : > { %v1069_v51 = vsel %vm12047_vm3, %v11596_v29, %v1066_v18  ;;  %v1188_v3 = vadd.s32 %v1187_v33, %v1177_v8  ;;  %v1190_v60 = vmul.u32 %v11988_v49, %v1136_v23  ;;  %v12078_v17 = vmul.f32 0.5, %v301_v20 }
  0xe9   : > { %11112 = vset.pattern.permute.xlu0 %v11213_v47  ;;  %11104 = vset.pattern.permute.xlu2 %v11213_v47  ;;  %v1071_v45 = vmul.f32 %v1069_v51, %v1069_v51  ;;  %v1166_v10 = vadd.s32 %v1165_v22, %v1155_v26  ;;  %v12082_v40 = vsel %vm12047_vm3, 0, %v1068_v7  ;;  %vm1086_vm14 = vweird.f32 %v11596_v29 }
  0xea   : > { %v1189_v5 = vadd.s32 %v1188_v3, %v1179_v13  ;;  %v1254_v41 = vand.u32 2139095040, %v12078_v17  ;;  %v1087_v37 = vand.u32 3, %v12082_v40  ;;  %vm1099_vm5 = vcmp.lt.s32.totalorder %v11905_v59, 0 }
  0xeb   : > { %v1072_v4 = vmul.f32 -0.001358992, %v1071_v45  ;;  %v1079_v43 = vmul.f32 -0.00019511016, %v1071_v45  ;;  %v1167_v62 = vadd.s32 %v1166_v10, %v1157_v31  ;;  %vm12177_vm6 = vcmp.le.f32.partialorder %v1097_v50, 0.7853982 }
  0xec   : > { %v1193_v15 = vadd.s32 1, %v1189_v5  ;;  %v1255_v26 = vshrl.u32 %v1254_v41, 23  ;;  %vm1092_vm9 = vcmp.eq.s32.totalorder %v1087_v37, 2  ;;  %vm1089_vm10 = vcmp.eq.s32.totalorder %v1087_v37, 0 }
  0xed   : > { %v1073_v44 = vadd.f32 0.041655596, %v1072_v4  ;;  %v1080_v28 = vadd.f32 0.008332121, %v1079_v43  ;;  %vm1192_vm8 = vc.u32 %v1167_v62, %v12071_v63  ;;  %vm1088_vm13 = vcmp.lt.s32.totalorder %v1087_v37, 2 }
  0xee   : > { %v1194_v25 = vsel %vm1192_vm8, %v1193_v15, %v1189_v5  ;;  %v10929_v46 = vadd.s32 4294967169, %v1255_v26  ;;  %v16346_v5 = vand.u32 2147483647, %v12078_v17 }
  0xef   : > { %v1074_v6 = vmul.f32 %v1073_v44, %v1071_v45  ;;  %v1081_v27 = vmul.f32 %v1080_v28, %v1071_v45  ;;  %v1195_v35 = vadd.s32 %v1194_v25, %v1190_v60 }
  0xf0   : > { %v1261_v13 = vadd.s32 1, %v10929_v46 }
  0xf1   : > { %v1075_v58 = vadd.f32 -0.4999988, %v1074_v6  ;;  %v1082_v49 = vadd.f32 -0.16666654, %v1081_v27  ;;  %v1196_v18 = vadd.s32 536870912, %v1195_v35 }
  0xf2   : > { %vm1262_vm12 = vcmp.gt.s32.totalorder %v1261_v13, 0  ;;  %v1258_v6 = vand.u32 8388607, %v16346_v5 }
  0xf3   : > { %v1076_v56 = vmul.f32 %v1075_v58, %v1071_v45  ;;  %v1083_v8 = vmul.f32 %v1082_v49, %v1071_v45  ;;  %v12089_v52 = vshrl.u32 %v1196_v18, 30  ;;  %v1263_v4 = vsel %vm1262_vm12, %v1261_v13, 0 }
  0xf4   : > { %v1265_v10 = vand.u32 31, %v1263_v4  ;;  %v12114_v27 = vshrl.u32 %v1263_v4, 5  ;;  %v1259_v18 = vor.u32 8388608, %v1258_v6 }
  0xf5   : > { %v12087_v42 = vadd.f32 1.0, %v1076_v56  ;;  %v1084_v9 = vadd.f32 1.0, %v1083_v8  ;;  %v1198_v31 = vshll.u32 %v12089_v52, 30  ;;  %v1191_v8 = vadd.s32 %v12071_v63, %v1167_v62 }
  0xf6   : > { %v12108_v44 = vsub.s32 32, %v1265_v10  ;;  %v1277_v28 = vshll.u32 %v16351_v36, %v1265_v10  ;;  %v1268_v25 = vshll.u32 %v16357_v30, %v1265_v10  ;;  %v1271_v58 = vshll.u32 %v16355_v32, %v1265_v10 }
  0xf7   : > { %v12091_v33 = vmul.f32 %v1084_v9, %v1069_v51  ;;  %v1093_v23 = vxor.u32 2147483648, %v12087_v42  ;;  %v1199_v3 = vsub.s32 %v1195_v35, %v1198_v31  ;;  %v1274_v35 = vshll.u32 %v16353_v34, %v1265_v10 }
  0xf8   : > { %v1269_v41 = vshrl.u32 %v16355_v32, %v12108_v44  ;;  %v1272_v49 = vshrl.u32 %v16353_v34, %v12108_v44  ;;  %v1275_v26 = vshrl.u32 %v16351_v36, %v12108_v44  ;;  %v1278_v56 = vshrl.u32 %v16349_v38, %v12108_v44 }
  0xf9   : > { %v1090_v45 = vxor.u32 2147483648, %v12091_v33  ;;  %v1094_v22 = vsel %vm1092_vm9, %v1093_v23, %v12091_v33  ;;  %vm1200_vm15 = vcmp.lt.s32.totalorder %v1199_v3, 0  ;;  %v1201_v43 = vsub.s32 0, %v1199_v3 }
  0xfa   : > { %v1280_v46 = vshll.u32 %v16349_v38, %v1265_v10  ;;  %v1281_v9 = vshrl.u32 %v16347_v48, %v12108_v44  ;;  %v12131_v13 = vor.u32 %v1269_v41, %v1268_v25  ;;  %v12133_v31 = vor.u32 %v1272_v49, %v1271_v58 }
  0xfb   : > { %v1091_v51 = vsel %vm1089_vm10, %v12087_v42, %v1090_v45  ;;  %v1202_v20 = vsel %vm1200_vm15, %v1201_v43, %v1199_v3  ;;  %vm1283_vm1 = vcmp.lt.s32.totalorder %v12114_v27, 1  ;;  %vm1284_vm2 = vcmp.lt.s32.totalorder %v12114_v27, 2 }
  0xfc   : > { %v1095_v7 = vsel %vm1088_vm13, %v1091_v51, %v1094_v22  ;;  %v1203_v15 = vclz %v1202_v20  ;;  %v12135_v22 = vor.u32 %v1275_v26, %v1274_v35  ;;  %v1279_v51 = vor.u32 %v1278_v56, %v1277_v28 }
  0xfd   : > { %v12106_v60 = vsel %vm1086_vm14, nan, %v1095_v7  ;;  %v1282_v43 = vor.u32 %v1281_v9, %v1280_v46  ;;  %vm1285_vm3 = vcmp.lt.s32.totalorder %v12114_v27, 3  ;;  %vm1286_vm4 = vcmp.lt.s32.totalorder %v12114_v27, 4 }
  0xfe   : > { %2995 = vperm.xlu0 %11112, %v12106_v60   ;;  %v10927_v37 = vadd.s32 4294967294, %v1203_v15  ;;  %v1291_v28 = vsel %vm1283_vm1, %v12131_v13, %v12133_v31  ;;  %v1292_v15 = vsel %vm1286_vm4, %v1279_v51, 920167782  ;;  %v12154_v25 = vshll.u32 %v1259_v18, 8 }
  0xff   : > { %v1296_v6 = vsel %vm1286_vm4, %v1282_v43, 1326507024  ;;  %v1293_v49 = vsel %vm1285_vm3, %v12135_v22, %v1292_v15  ;;  %v1221_v15 = vsub.s32 4, %v12089_v52  ;;  %v2323_v27 = vadd.s32 3, %v12082_v40 }
 0x100   : > { %vm10928_vm0 = vcmp.lt.s32.totalorder %v10927_v37, 0  ;;  %v1297_v35 = vsel %vm1285_vm3, %v1279_v51, %v1296_v6  ;;  %v1300_v56 = vand.u32 65535, %v12154_v25 }
 0x101   : > { %v1206_v4 = vsel %vm10928_vm0, 0, %v10927_v37  ;;  %v1294_v37 = vsel %vm1284_vm2, %v1291_v28, %v1293_v49 }
 0x102   : > { %v1207_v7 = vsub.s32 32, %v1206_v4  ;;  %v1208_v63 = vshll.u32 %v1199_v3, %v1206_v4  ;;  %v1211_v62 = vsub.s32 4294967266, %v1206_v4  ;;  %v1295_v3 = vsel %vm1283_vm1, %v12133_v31, %v12135_v22 }
 0x103   : > { %v1298_v26 = vsel %vm1284_vm2, %v1295_v3, %v1297_v35  ;;  %v1324_v43 = vand.u32 65535, %v1294_v37  ;;  %v1267_v35 = vshrl.u32 %v16357_v30, %v12108_v44 }
 0x104   : > { %v1209_v10 = vshrl.u32 %v1191_v8, %v1207_v7  ;;  %v1212_v20 = vadd.s32 127, %v1211_v62  ;;  %v1301_v8 = vshrl.u32 %v12154_v25, 16  ;;  %v1302_v9 = vand.u32 65535, %v1298_v26 }
 0x105   : > { %v1303_v4 = vshrl.u32 %v1298_v26, 16  ;;  %v1325_v7 = vshrl.u32 %v1294_v37, 16 }
 0x106   : > { %11121 = vset.pattern.permute.xlu0 %v11214_v16  ;;  %v1210_v41 = vor.u32 %v1209_v10, %v1208_v63  ;;  %v1213_v58 = vshll.u32 %v1212_v20, 23  ;;  %v1304_v62 = vmul.u32 %v1302_v9, %v1300_v56  ;;  %v12167_v51 = vmul.u32 %v1302_v9, %v1301_v8 }
 0x107   : > { %v1305_v10 = vmul.u32 %v1303_v4, %v1300_v56  ;;  %v12169_v20 = vmul.u32 %v1325_v7, %v1300_v56  ;;  %v1307_v6 = vmul.u32 %v1303_v4, %v1301_v8  ;;  %v1222_v4 = vsel %vm1099_vm5, %v1221_v15, %v12089_v52 }
 0x108   : > { %v1214_v18 = vor.u32 4788187, %v1213_v58  ;;  %v1217_v46 = vcvt.s32.f32 %v1210_v41  ;;  %v1310_v41 = vshll.u32 %v12167_v51, 16  ;;  %v1326_v58 = vmul.u32 %v1324_v43, %v1300_v56 }
 0x109   : > { %v1308_v3 = vshll.u32 %v1305_v10, 16  ;;  %v1330_v49 = vshll.u32 %v12169_v20, 16  ;;  %v1329_v56 = vmul.u32 %v1325_v7, %v1301_v8  ;;  %v1331_v61 = vshrl.u32 %v12169_v20, 16 }
 0x10a   : > { %v1215_v63 = vand.u32 2147483647, %v1214_v18 }
 0x10b   : > { %vm1312_vm7 = vc.u32 %v1304_v62, %v1308_v3  ;;  %v1314_v26 = vadd.s32 %v1308_v3, %v1304_v62  ;;  %vm1334_vm9 = vc.u32 %v1326_v58, %v1330_v49  ;;  %v1309_v3 = vshrl.u32 %v1305_v10, 16 }
 0x10c   : > { %v1218_v28 = vmul.f32 %v1217_v46, %v1215_v63  ;;  %v1313_v18 = vsel %vm1312_vm7, 1, %v16359_v1  ;;  %v1328_v46 = vmul.u32 %v1324_v43, %v1301_v8  ;;  %v933_v63 = vand.u32 3, %v11933_v14 }
 0x10d   : > { %v1315_v50 = vadd.s32 %v1313_v18, %v1307_v6  ;;  %vm1316_vm8 = vc.u32 %v1314_v26, %v1310_v41  ;;  %v1336_v26 = vadd.s32 %v1330_v49, %v1326_v58  ;;  %v2897_v49 = vpop.permute.xlu1 %2896 }
 0x10e   : > { %v1219_v37 = vxor.u32 2147483648, %v1218_v28  ;;  %vm934_vm10 = vcmp.lt.s32.totalorder %v933_v63, 2  ;;  %vm935_vm12 = vcmp.eq.s32.totalorder %v933_v63, 0  ;;  %vm938_vm13 = vcmp.eq.s32.totalorder %v933_v63, 2 }
 0x10f   : > { %v937_v14 = vsel %vm935_vm12, %v11991_v55, %v936_v54  ;;  %v940_v52 = vsel %vm938_vm13, %v939_v39, %v12002_v57  ;;  %v1317_v8 = vsel %vm1316_vm8, 1, %v16359_v1  ;;  %v1332_v43 = vshll.u32 %v1328_v46, 16  ;;  %v302_v54 = vld [vmem:[%s11272_s27 + $0x38] sm:$0xff]  ;;  %s13605_s27 = scalar_lea.vmem %s16340_s1, %s10902_s24  ;;  %s11057_s24 = sshll.u32 %s16712_s23, 4 }
 0x110   : > { %v1220_v9 = vsel %vm1099_vm5, %v1219_v37, %v1218_v28  ;;  %v941_v15 = vsel %vm934_vm10, %v937_v14, %v940_v52  ;;  %v1319_v41 = vadd.s32 %v1317_v8, %v1315_v50  ;;  %v1335_v37 = vsel %vm1334_vm9, 1, %v16359_v1  ;;  %v2807_v50 = vpop.permute.xlu0 %2806  ;;  %s14384_s7 = scalar_lea.vmem %s16344_s5, %s11057_s24  ;;  %s14396_s10 = scalar_lea.vmem %s16345_s6, %s11057_s24 }
 0x111   : > { %v12187_v5 = vsel %vm12177_vm6, %v11905_v59, %v1220_v9  ;;  %v12200_v6 = vsel %vm932_vm11, nan, %v941_v15  ;;  %v12206_v55 = vsel %vm12177_vm6, 0, %v1222_v4  ;;  %v1337_v10 = vadd.s32 %v1335_v37, %v1329_v56 }
 0x112   : > { %v1225_v62 = vmul.f32 %v12187_v5, %v12187_v5  ;;  %2821 = vperm.xlu1 %11101, %v12200_v6   ;;  %2991 = vperm.xlu2 %11104, %v12200_v6   ;;  %v1333_v18 = vshrl.u32 %v1328_v46, 16  ;;  %vm1338_vm11 = vc.u32 %v1336_v26, %v1332_v43  ;;  %v12211_v9 = vmul.f32 0.5, %v302_v54 }
 0x113   : > { %v1339_v4 = vsel %vm1338_vm11, 1, %v16359_v1  ;;  %v1311_v14 = vshrl.u32 %v12167_v51, 16  ;;  %v1320_v52 = vadd.s32 %v1319_v41, %v1309_v3  ;;  %v1241_v15 = vand.u32 3, %v12206_v55 }
 0x114   : > { %v1226_v7 = vmul.f32 -0.001358992, %v1225_v62  ;;  %v1233_v28 = vmul.f32 -0.00019511016, %v1225_v62  ;;  %v1341_v8 = vadd.s32 %v1339_v4, %v1337_v10  ;;  %v1408_v56 = vand.u32 2139095040, %v12211_v9 }
 0x115   : > { %v1287_v51 = vsel %vm1283_vm1, %v1267_v35, %v12131_v13  ;;  %v12230_v41 = vadd.s32 %v1320_v52, %v1311_v14  ;;  %v12232_v10 = vadd.s32 %v1336_v26, %v1332_v43  ;;  %vm1242_vm15 = vcmp.lt.s32.totalorder %v1241_v15, 2  ;;  %v2980_v26 = vpop.permute.xlu2 %2979  ;;  %v2929_v4 = vpop.permute.xlu1 %2928 }
 0x116   : > { %v1227_v57 = vadd.f32 0.041655596, %v1226_v7  ;;  %v1234_v39 = vadd.f32 0.008332121, %v1233_v28  ;;  %v2799_v7 = vlaneseq  ;;  %v1288_v28 = vsel %vm1286_vm4, %v12135_v22, 2102212464 }
 0x117   : > { %v1342_v37 = vadd.s32 %v1341_v8, %v1331_v61  ;;  %v1409_v44 = vshrl.u32 %v1408_v56, 23  ;;  %v1289_v3 = vsel %vm1285_vm3, %v12133_v31, %v1288_v28  ;;  %vm1246_vm0 = vcmp.eq.s32.totalorder %v1241_v15, 2 }
 0x118   : > { %v1228_v63 = vmul.f32 %v1227_v57, %v1225_v62  ;;  %v1235_v58 = vmul.f32 %v1234_v39, %v1225_v62  ;;  %v12222_v39 = vand.u32 127, %v2799_v7  ;;  %vm1243_vm1 = vcmp.eq.s32.totalorder %v1241_v15, 0  ;;  %v2847_v52 = vpop.permute.xlu0 %2846 }
 0x119   : > { %v1343_v22 = vadd.s32 %v1342_v37, %v1333_v18  ;;  %v1290_v8 = vsel %vm1284_vm2, %v1287_v51, %v1289_v3  ;;  %vm1346_vm3 = vc.u32 %v12230_v41, %v12232_v10  ;;  %vm1240_vm4 = vweird.f32 %v11905_v59 }
 0x11a   : > { %v1229_v20 = vadd.f32 -0.4999988, %v1228_v63  ;;  %v1236_v46 = vadd.f32 -0.16666654, %v1235_v58  ;;  %11103 = vset.pattern.permute.xlu1 %v11205_v0  ;;  %11106 = vset.pattern.permute.xlu2 %v11214_v16  ;;  %v10932_v58 = vadd.s32 4294967169, %v1409_v44  ;;  %v2801_v13 = vshra.s32 %v12222_v39, 3 }
 0x11b   : > { %2940 = vperm.xlu1 %11103, %v12037_v2   ;;  %3073 = vperm.xlu2 %11106, %v12200_v6   ;;  %v2975_v35 = vshra.s32 %v12222_v39, 1  ;;  %v1347_v56 = vadd.s32 1, %v1343_v22  ;;  %v1344_v28 = vmul.u32 %v12154_v25, %v1290_v8  ;;  %v3058_v25 = vand.u32 1, %v12222_v39 }
 0x11c   : > { %v1230_v54 = vmul.f32 %v1229_v20, %v1225_v62  ;;  %v1237_v57 = vmul.f32 %v1236_v46, %v1225_v62  ;;  %v2892_v62 = vshra.s32 %v12222_v39, 2  ;;  %v12249_v14 = vand.u32 1, %v2801_v13 }
 0x11d   : > { %v1415_v46 = vadd.s32 1, %v10932_v58  ;;  %v12270_v44 = vand.u32 1, %v2975_v35  ;;  %v3012_v39 = vpop.permute.xlu2 %3011  ;;  %vm12298_vm12 = vcmp.eq.s32.totalorder %v3058_v25, 0  ;;  %vm3456_vm13 = vcmask 130048  }
 0x11e   : > { %v12234_v63 = vadd.f32 1.0, %v1230_v54  ;;  %v1238_v61 = vadd.f32 1.0, %v1237_v57  ;;  %v12246_v18 = vand.u32 1, %v2892_v62  ;;  %vm2803_vm6 = vcmp.eq.s32.totalorder %v12249_v14, 0 }
 0x11f   : > { %v2324_v54 = vand.u32 3, %v2323_v27  ;;  %v1348_v57 = vsel %vm1346_vm3, %v1347_v56, %v1343_v22  ;;  %v2884_v3 = vsel %vm2803_vm6, %v2807_v50, %v2847_v52  ;;  %vm1416_vm2 = vcmp.gt.s32.totalorder %v1415_v46, 0 }
 0x120   : > { %v12243_v31 = vmul.f32 %v1238_v61, %v12187_v5  ;;  %v1247_v43 = vxor.u32 2147483648, %v12234_v63  ;;  %vm2894_vm5 = vcmp.eq.s32.totalorder %v12246_v18, 0  ;;  %v1349_v50 = vadd.s32 %v1348_v57, %v1344_v28 }
 0x121   : > { %v2959_v40 = vsel %vm2894_vm5, %v2897_v49, %v2929_v4  ;;  %vm2325_vm7 = vcmp.lt.s32.totalorder %v2324_v54, 2  ;;  %vm2326_vm8 = vcmp.eq.s32.totalorder %v2324_v54, 0  ;;  %vm2329_vm9 = vcmp.eq.s32.totalorder %v2324_v54, 2 }
 0x122   : > { %v1244_v20 = vxor.u32 2147483648, %v12243_v31  ;;  %v1248_v5 = vsel %vm1246_vm0, %v1247_v43, %v12243_v31  ;;  %v2328_v15 = vsel %vm2326_vm8, %v12087_v42, %v1090_v45  ;;  %v2331_v49 = vsel %vm2329_vm9, %v1093_v23, %v12091_v33  ;;  %v3094_v42 = vpop.permute.xlu1 %3093  ;;  %v3062_v23 = vpop.permute.xlu0 %3061 }
 0x123   : > { %11105 = vset.pattern.permute.xlu1 %v11213_v47  ;;  %11109 = vset.pattern.permute.xlu2 %v16359_v1  ;;  %v2332_v22 = vsel %vm2325_vm7, %v2328_v15, %v2331_v49  ;;  %v1405_v61 = vand.u32 2147483647, %v12211_v9  ;;  %v1417_v62 = vsel %vm1416_vm2, %v1415_v46, 0  ;;  %vm2977_vm10 = vcmp.eq.s32.totalorder %v12270_v44, 0 }
 0x124   : > { %v1245_v7 = vsel %vm1243_vm1, %v12234_v63, %v1244_v20  ;;  %3023 = vperm.xlu1 %11105, %v12037_v2   ;;  %v2967_v58 = vmul.f32 %v2959_v40, %v2884_v3  ;;  %v12295_v13 = vsel %vm1086_vm14, nan, %v2332_v22  ;;  %v1350_v45 = vadd.s32 536870912, %v1349_v50 }
 0x125   : > { %v1249_v37 = vsel %vm1242_vm15, %v1245_v7, %v1248_v5  ;;  %2866 = vperm.xlu2 %11109, %v12295_v13   ;;  %v1419_v35 = vand.u32 31, %v1417_v62  ;;  %v3042_v52 = vsel %vm2977_vm10, %v2980_v26, %v3012_v39  ;;  %v1412_v29 = vand.u32 8388607, %v1405_v61 }
 0x126   : > { %v12274_v51 = vsel %vm1240_vm4, nan, %v1249_v37  ;;  %v12302_v4 = vshrl.u32 %v1350_v45, 30  ;;  %v3050_v5 = vmul.f32 %v3042_v52, %v2967_v58  ;;  %v3124_v46 = vsel %vm12298_vm12, %v3062_v23, %v3094_v42 }
 0x127   : > { %3081 = vperm.xlu0 %11121, %v12274_v51   ;;  %v12308_v8 = vsub.s32 32, %v1419_v35  ;;  %v1425_v56 = vshll.u32 %v16355_v32, %v1419_v35  ;;  %v1428_v7 = vshll.u32 %v16353_v34, %v1419_v35  ;;  %v12316_v28 = vshrl.u32 %v1417_v62, 5 }
 0x128   : > { %v1352_v27 = vshll.u32 %v12302_v4, 30  ;;  %v1422_v26 = vshll.u32 %v16357_v30, %v1419_v35  ;;  %v1431_v3 = vshll.u32 %v16351_v36, %v1419_v35  ;;  %v3132_v25 = vmul.f32 %v3124_v46, %v3050_v5 }
 0x129   : > { %v1426_v37 = vshrl.u32 %v16353_v34, %v12308_v8  ;;  %v1429_v54 = vshrl.u32 %v16351_v36, %v12308_v8  ;;  %v1423_v40 = vshrl.u32 %v16355_v32, %v12308_v8  ;;  %v1413_v15 = vor.u32 8388608, %v1412_v29 }
 0x12a   : > { %v12325_v57 = vsub.s32 %v1349_v50, %v1352_v27  ;;  %v1432_v50 = vshrl.u32 %v16349_v38, %v12308_v8  ;;  %v1434_v39 = vshll.u32 %v16349_v38, %v1419_v35  ;;  %v1435_v58 = vshrl.u32 %v16347_v48, %v12308_v8  ;;  %v2812_v48 = vpop.permute.xlu2 %2811 }
 0x12b   : > { %v12331_v49 = vor.u32 %v1426_v37, %v1425_v56  ;;  %v12333_v22 = vor.u32 %v1429_v54, %v1428_v7  ;;  %vm1437_vm11 = vcmp.lt.s32.totalorder %v12316_v28, 1  ;;  %v1424_v42 = vor.u32 %v1423_v40, %v1422_v26 }
 0x12c   : > { %11108 = vset.pattern.permute.xlu1 %v16359_v1  ;;  %vm1354_vm14 = vcmp.lt.s32.totalorder %v12325_v57, 0  ;;  %v1355_v62 = vsub.s32 0, %v12325_v57  ;;  %v1433_v23 = vor.u32 %v1432_v50, %v1431_v3  ;;  %vm1440_vm15 = vcmp.lt.s32.totalorder %v12316_v28, 4 }
 0x12d   : > { %2826 = vperm.xlu1 %11108, %v12106_v60   ;;  %11111 = vset.pattern.permute.xlu2 %v11205_v0  ;;  %v1436_v29 = vor.u32 %v1435_v58, %v1434_v39  ;;  %vm1439_vm0 = vcmp.lt.s32.totalorder %v12316_v28, 3  ;;  %v12348_v35 = vshll.u32 %v1413_v15, 8  ;;  %v3458_v56 = vsel %vm3456_vm13, %v3132_v25, 0 }
 0x12e   : > { %v1356_v45 = vsel %vm1354_vm14, %v1355_v62, %v12325_v57  ;;  %2944 = vperm.xlu2 %11111, %v12295_v13   ;;  %vm1438_vm1 = vcmp.lt.s32.totalorder %v12316_v28, 2  ;;  %v1449_v5 = vsel %vm1437_vm11, %v12331_v49, %v12333_v22  ;;  %vm1253_vm3 = vcmp.lt.s32.totalorder %v12078_v17, 0 }
 0x12f   : > { %11122 = vset.pattern.permute.xlu0 %v11205_v0  ;;  %v1357_v52 = vclz %v1356_v45  ;;  %v1345_v46 = vadd.s32 %v12232_v10, %v12230_v41  ;;  %v1450_v7 = vsel %vm1440_vm15, %v1436_v29, 1326507024  ;;  %v1375_v26 = vsub.s32 4, %v12302_v4 }
 0x130   : > { %2932 = vperm.xlu0 %11122, %v11674_v21   ;;  %v1446_v37 = vsel %vm1440_vm15, %v1433_v23, 920167782  ;;  %v1451_v54 = vsel %vm1439_vm0, %v1433_v23, %v1450_v7  ;;  %v12368_v40 = vand.u32 65535, %v12348_v35  ;;  %v12371_v41 = vand.u32 4294901760, %v3458_v56 }
 0x131   : > { %v10930_v27 = vadd.s32 4294967294, %v1357_v52  ;;  %v1445_v10 = vsel %vm1437_vm11, %v1424_v42, %v12331_v49  ;;  %v1452_v3 = vsel %vm1438_vm1, %v1449_v5, %v1451_v54  ;;  %v12380_v15 = vshrl.u32 %v12348_v35, 16 }
 0x132   : > { %v1456_v62 = vand.u32 65535, %v1452_v3  ;;  %v1457_v50 = vshrl.u32 %v1452_v3, 16  ;;  %v1447_v23 = vsel %vm1439_vm0, %v12333_v22, %v1446_v37  ;;  %v1376_v52 = vsel %vm1253_vm3, %v1375_v26, %v12302_v4 }
 0x133   : > { %vm10931_vm2 = vcmp.lt.s32.totalorder %v10930_v27, 0  ;;  %v1421_v29 = vshrl.u32 %v16357_v30, %v12308_v8  ;;  %v1448_v4 = vsel %vm1438_vm1, %v1445_v10, %v1447_v23  ;;  %v3452_v10 = vld [vmem:[%s16342_s3] sm:$0xff] }
 0x134   : > { %v1360_v25 = vsel %vm10931_vm2, 0, %v10930_v27  ;;  %v12393_v5 = vmul.u32 %v1457_v50, %v12368_v40  ;;  %v12396_v27 = vsub.f32 %v3458_v56, %v12371_v41  ;;  %v1458_v8 = vmul.u32 %v1456_v62, %v12368_v40 }
 0x135   : > { %11110 = vset.pattern.permute.xlu1 %v11205_v0  ;;  %v1361_v39 = vsub.s32 32, %v1360_v25  ;;  %v1362_v58 = vshll.u32 %v12325_v57, %v1360_v25  ;;  %v1365_v45 = vsub.s32 4294967266, %v1360_v25  ;;  %v16382_v57 = vand.u32 2147483647, %v12078_v17 }
 0x136   : > { %2912 = vperm.xlu1 %11110, %v12106_v60   ;;  %11114 = vset.pattern.permute.xlu2 %v11214_v16  ;;  %v12409_v26 = vmul.u32 %v1456_v62, %v12380_v15  ;;  %v1462_v56 = vshll.u32 %v12393_v5, 16  ;;  %v12424_v62 = vsel %vm1437_vm11, %v1421_v29, %v1424_v42  ;;  %v1461_v23 = vmul.u32 %v1457_v50, %v12380_v15 }
 0x137   : > { %vm12400_vm7 = vcmp.le.f32.partialorder %v16382_v57, 0.7853982  ;;  %v1363_v37 = vshrl.u32 %v1345_v46, %v1361_v39  ;;  %v1366_v54 = vadd.s32 127, %v1365_v45  ;;  %3077 = vperm.xlu2 %11114, %v12106_v60   ;;  %v1478_v46 = vand.u32 65535, %v1448_v4  ;;  %v3454_v39 = vld [vmem:[%s16342_s3 + $0x10] sm:$0xff]  ;;  %v2852_v45 = vpop.permute.xlu1 %2851 }
 0x138   : > { %2908 = vperm.xlu0 %11122, %v12200_v6   ;;  %v12414_v57 = vsel %vm12400_vm7, 0, %v1376_v52  ;;  %v1464_v52 = vshll.u32 %v12409_v26, 16  ;;  %v12431_v38 = vand.u32 4294901760, %v3454_v39  ;;  %v12433_v36 = vand.u32 4294901760, %v3452_v10 }
 0x139   : > { %v1364_v3 = vor.u32 %v1363_v37, %v1362_v58  ;;  %v1367_v25 = vshll.u32 %v1366_v54, 23  ;;  %v1442_v58 = vsel %vm1440_vm15, %v12333_v22, 2102212464  ;;  %v12438_v42 = vsel %vm2803_vm6, %v2812_v48, %v2852_v45 }
 0x13a   : > { %vm1466_vm8 = vc.u32 %v1458_v8, %v1462_v56  ;;  %v1468_v29 = vadd.s32 %v1462_v56, %v1458_v8  ;;  %v1479_v22 = vshrl.u32 %v1448_v4, 16  ;;  %3699 = vmatpush.msra.mxu3 %v12431_v38  ;;  %3496 = vmatpush.msra.mxu0 %v12431_v38  ;;  %v1463_v32 = vshrl.u32 %v12393_v5, 16 }
 0x13b   : > { %v1368_v37 = vor.u32 4788187, %v1367_v25  ;;  %v1371_v54 = vcvt.s32.f32 %v1364_v3  ;;  %v3579_v25 = vsub.f32 %v3454_v39, %v12431_v38  ;;  %v3585_v3 = vsub.f32 %v3452_v10, %v12433_v36 }
 0x13c   : > { %v1467_v34 = vsel %vm1466_vm8, 1, %v16359_v1  ;;  %vm1470_vm9 = vc.u32 %v1468_v29, %v1464_v52  ;;  %v12448_v8 = vmul.u32 %v1479_v22, %v12368_v40  ;;  %3701 = vmatpush.msra.mxu3 %v12433_v36  ;;  %3498 = vmatpush.msra.mxu0 %v12433_v36  ;;  %v1480_v5 = vmul.u32 %v1478_v46, %v12368_v40 }
 0x13d   : > { %v1369_v50 = vand.u32 2147483647, %v1368_v37  ;;  %v1469_v48 = vadd.s32 %v1467_v34, %v1461_v23  ;;  %v3580_v56 = vand.u32 4294901760, %v3579_v25  ;;  %v3586_v45 = vand.u32 4294901760, %v3585_v3  ;;  %3639 = vmatpush.msra.mxu2 %v3579_v25 }
 0x13e   : > { %11113 = vset.pattern.permute.xlu1 %v11213_v47  ;;  %v1471_v39 = vsel %vm1470_vm9, 1, %v16359_v1  ;;  %v12456_v34 = vmul.u32 %v1478_v46, %v12380_v15  ;;  %v1484_v23 = vshll.u32 %v12448_v8, 16  ;;  %v1443_v29 = vsel %vm1439_vm0, %v12331_v49, %v1442_v58 }
 0x13f   : > { %3027 = vperm.xlu1 %11113, %v12295_v13   ;;  %v1372_v4 = vmul.f32 %v1371_v54, %v1369_v50  ;;  %11116 = vset.pattern.permute.xlu2 %v16359_v1  ;;  %v1473_v10 = vadd.s32 %v1471_v39, %v1469_v48  ;;  %v3581_v37 = vsub.f32 %v3579_v25, %v3580_v56  ;;  %v2478_v50 = vadd.s32 3, %v12206_v55 }
 0x140   : > { %v3587_v54 = vsub.f32 %v3585_v3, %v3586_v45  ;;  %3642 = vmatpush.msra.mxu2 %v3585_v3  ;;  %2831 = vperm.xlu2 %11116, %v12274_v51   ;;  %v1465_v40 = vshrl.u32 %v12409_v26, 16  ;;  %v1483_v48 = vmul.u32 %v1479_v22, %v12380_v15  ;;  %v12470_v30 = vand.u32 4294901760, %v12396_v27 }
 0x141   : > { %v1373_v52 = vxor.u32 2147483648, %v1372_v4  ;;  %3645 = vmatmul.f32.vlgmr.msra.gmra.mxu2 %v12396_v27  ;;  %v1474_v46 = vadd.s32 %v1473_v10, %v1463_v32  ;;  %3768 = vmatpush.msrb.mxu0 %v3580_v56  ;;  %v3582_v3 = vand.u32 4294901760, %v3581_v37  ;;  %v2479_v55 = vand.u32 3, %v2478_v50 }
 0x142   : > { %v3588_v39 = vand.u32 4294901760, %v3587_v54  ;;  %v1486_v26 = vshll.u32 %v12456_v34, 16  ;;  %vm1488_vm14 = vc.u32 %v1480_v5, %v1484_v23  ;;  %v3502_v15 = vsub.f32 %v12396_v27, %v12470_v30  ;;  %3705 = vmatmul.f32.vlgmr.msra.gmra.mxu3 %v12470_v30 }
 0x143   : > { %v1374_v25 = vsel %vm1253_vm3, %v1373_v52, %v1372_v4  ;;  %3772 = vmatpush.msrb.mxu0 %v3586_v45  ;;  %3583 = vmatpush.msra.mxu1 %v3582_v3  ;;  %v1489_v58 = vsel %vm1488_vm14, 1, %v16359_v1  ;;  %v1490_v22 = vadd.s32 %v1484_v23, %v1480_v5  ;;  %vm2480_vm11 = vcmp.lt.s32.totalorder %v2479_v55, 2 }
 0x144   : > { %v12475_v49 = vsel %vm12400_vm7, %v12078_v17, %v1374_v25  ;;  %vm2481_vm15 = vcmp.eq.s32.totalorder %v2479_v55, 0  ;;  %vm2484_vm0 = vcmp.eq.s32.totalorder %v2479_v55, 2  ;;  %v1491_v7 = vadd.s32 %v1489_v58, %v1483_v48 }
 0x145   : > { %v1379_v32 = vmul.f32 %v12475_v49, %v12475_v49  ;;  %3589 = vmatpush.msra.mxu1 %v3588_v39  ;;  %v2483_v45 = vsel %vm2481_vm15, %v12234_v63, %v1244_v20  ;;  %v2486_v10 = vsel %vm2484_vm0, %v1247_v43, %v12243_v31  ;;  %v12493_v23 = vand.u32 4294901760, %v3502_v15  ;;  %v12511_v15 = vpop.permute.xlu2 %2900 }
 0x146   : > { %3591 = vmatmul.f32.vlgmr.msra.gmra.mxu1 %v12371_v41  ;;  %v2487_v5 = vsel %vm2480_vm11, %v2483_v45, %v2486_v10  ;;  %v1485_v52 = vshrl.u32 %v12448_v8, 16  ;;  %vm1492_vm3 = vc.u32 %v1490_v22, %v1486_v26  ;;  %v2633_v63 = vadd.s32 3, %v12414_v57 }
 0x147   : > { %11115 = vset.pattern.permute.xlu1 %v11214_v16  ;;  %v1380_v4 = vmul.f32 -0.001358992, %v1379_v32  ;;  %v1387_v56 = vmul.f32 -0.00019511016, %v1379_v32  ;;  %v12498_v50 = vsel %vm1240_vm4, nan, %v2487_v5  ;;  %v1493_v20 = vsel %vm1492_vm3, 1, %v16359_v1  ;;  %3821 = vmatpush.msrb.mxu1 %v12431_v38 }
 0x148   : > { %3109 = vperm.xlu1 %11115, %v12295_v13   ;;  %11118 = vset.pattern.permute.xlu2 %v11205_v0  ;;  %v1487_v31 = vshrl.u32 %v12456_v34, 16  ;;  %v1495_v43 = vadd.s32 %v1493_v20, %v1491_v7  ;;  %v1475_v59 = vadd.s32 %v1474_v46, %v1465_v40  ;;  %v1494_v25 = vadd.s32 %v1490_v22, %v1486_v26  ;;  %v12523_v22 = vpop.permute.xlu1 %2983 }
 0x149   : > { %v1381_v37 = vadd.f32 0.041655596, %v1380_v4  ;;  %v1388_v54 = vadd.f32 0.008332121, %v1387_v56  ;;  %3504 = vmatmul.f32.vlgmr.msra.gmra.mxu0 %v12493_v23  ;;  %2948 = vperm.xlu2 %11118, %v12498_v50   ;;  %v1444_v3 = vsel %vm1438_vm1, %v12424_v62, %v1443_v29  ;;  %v2634_v58 = vand.u32 3, %v2633_v63 }
 0x14a   : > { %3823 = vmatpush.msrb.mxu1 %v12433_v36  ;;  %v1496_v38 = vadd.s32 %v1495_v43, %v1485_v52  ;;  %v1498_v40 = vmul.u32 %v12348_v35, %v1444_v3  ;;  %vm1500_vm4 = vc.u32 %v1475_v59, %v1494_v25  ;;  %vm1394_vm8 = vweird.f32 %v12078_v17 }
 0x14b   : > { %v1382_v8 = vmul.f32 %v1381_v37, %v1379_v32  ;;  %v1389_v48 = vmul.f32 %v1388_v54, %v1379_v32  ;;  %vm2639_vm1 = vcmp.eq.s32.totalorder %v2634_v58, 2  ;;  %vm2636_vm2 = vcmp.eq.s32.totalorder %v2634_v58, 0 }
 0x14c   : > { %v1497_v34 = vadd.s32 %v1496_v38, %v1487_v31  ;;  %vm2635_vm7 = vcmp.lt.s32.totalorder %v2634_v58, 2  ;;  %v1499_v38 = vadd.s32 %v1494_v25, %v1475_v59  ;;  %vm1407_vm11 = vcmp.lt.s32.totalorder %v12211_v9, 0 }
 0x14d   : > { %v1383_v39 = vadd.f32 -0.4999988, %v1382_v8  ;;  %v1390_v55 = vadd.f32 -0.16666654, %v1389_v48  ;;  %v12532_v10 = vpop.permute.xlu2 %3015  ;;  %vm12564_vm15 = vcmp.le.f32.partialorder %v1405_v61, 0.7853982 }
 0x14e   : > { %v1501_v36 = vadd.s32 1, %v1497_v34 }
 0x14f   : > { %v1384_v7 = vmul.f32 %v1383_v39, %v1379_v32  ;;  %v1391_v4 = vmul.f32 %v1390_v55, %v1379_v32 }
 0x150   : > { %11117 = vset.pattern.permute.xlu1 %v11205_v0  ;;  %v1502_v62 = vsel %vm1500_vm4, %v1501_v36, %v1497_v34  ;;  %v12542_v63 = vpop.permute.xlu1 %3065 }
 0x151   : > { %2916 = vperm.xlu1 %11117, %v12274_v51   ;;  %v12516_v46 = vadd.f32 1.0, %v1384_v7  ;;  %v1392_v28 = vadd.f32 1.0, %v1391_v4  ;;  %11120 = vset.pattern.permute.xlu2 %v11213_v47  ;;  %v1503_v32 = vadd.s32 %v1502_v62, %v1498_v40 }
 0x152   : > { %3031 = vperm.xlu2 %11120, %v12498_v50  }
 0x153   : > { %v12520_v29 = vmul.f32 %v1392_v28, %v12475_v49  ;;  %v1401_v26 = vxor.u32 2147483648, %v12516_v46  ;;  %v1504_v45 = vadd.s32 536870912, %v1503_v32 }
 0x155   : > { %v1398_v35 = vxor.u32 2147483648, %v12520_v29  ;;  %v2641_v56 = vsel %vm2639_vm1, %v1401_v26, %v12520_v29  ;;  %v1505_v5 = vshrl.u32 %v1504_v45, 30  ;;  %v12545_v48 = vpop.permute.xlu2 %3097 }
 0x157   : > { %v2638_v49 = vsel %vm2636_vm2, %v12516_v46, %v1398_v35  ;;  %v1506_v54 = vshll.u32 %v1505_v5, 30 }
 0x158   : > { %v2642_v52 = vsel %vm2635_vm7, %v2638_v49, %v2641_v56  ;;  %v12550_v7 = vpop.permute.xlu1 %2856  ;;  %v1395_v49 = vand.u32 3, %v12414_v57 }
 0x159   : > { %11119 = vset.pattern.permute.xlu1 %v11213_v47  ;;  %v12538_v37 = vsel %vm1394_vm8, nan, %v2642_v52  ;;  %v1507_v20 = vsub.s32 %v1503_v32, %v1506_v54  ;;  %v12556_v32 = vpop.permute.xlu0 %2816 }
 0x15a   : > { %2999 = vperm.xlu1 %11119, %v12274_v51   ;;  %2952 = vperm.xlu0 %11122, %v12538_v37   ;;  %vm1397_vm0 = vcmp.eq.s32.totalorder %v1395_v49, 0  ;;  %vm1400_vm3 = vcmp.eq.s32.totalorder %v1395_v49, 2  ;;  %vm1396_vm4 = vcmp.lt.s32.totalorder %v1395_v49, 2 }
 0x15b   : > { %11124 = vset.pattern.permute.xlu2 %v16359_v1  ;;  %vm1508_vm9 = vcmp.lt.s32.totalorder %v1507_v20, 0  ;;  %v1509_v31 = vsub.s32 0, %v1507_v20  ;;  %v1399_v57 = vsel %vm1397_vm0, %v12516_v46, %v1398_v35 }
 0x15d   : > { %v1510_v43 = vsel %vm1508_vm9, %v1509_v31, %v1507_v20  ;;  %v12552_v36 = vpop.permute.xlu2 %2904  ;;  %v1529_v31 = vsub.s32 4, %v1505_v5 }
 0x15e   : > { %v1511_v8 = vclz %v1510_v43 }
 0x15f   : > { %v1530_v46 = vsel %vm1407_vm11, %v1529_v31, %v1505_v5 }
 0x160   : > { %v10933_v3 = vadd.s32 4294967294, %v1511_v8  ;;  %v12560_v52 = vpop.permute.xlu1 %2936  ;;  %v1402_v8 = vsel %vm1400_vm3, %v1401_v26, %v12520_v29  ;;  %v1532_v35 = vsel %vm12564_vm15, 0, %v1530_v46 }
 0x162   : > { %11123 = vset.pattern.permute.xlu1 %v11214_v16  ;;  %11127 = vset.pattern.permute.xlu0 %v16359_v1  ;;  %vm10934_vm14 = vcmp.lt.s32.totalorder %v10933_v3, 0 }
 0x163   : > { %3113 = vperm.xlu1 %11123, %v12498_v50   ;;  %2871 = vperm.xlu0 %11127, %v12498_v50   ;;  %v1514_v39 = vsel %vm10934_vm14, 0, %v10933_v3  ;;  %v1403_v3 = vsel %vm1396_vm4, %v1399_v57, %v1402_v8 }
 0x164   : > { %v1515_v55 = vsub.s32 32, %v1514_v39  ;;  %v1516_v58 = vshll.u32 %v1507_v20, %v1514_v39  ;;  %v1519_v34 = vsub.s32 4294967266, %v1514_v39 }
 0x165   : > { %v12569_v43 = vpop.permute.xlu2 %2987 }
 0x166   : > { %v1517_v4 = vshrl.u32 %v1499_v38, %v1515_v55  ;;  %v1520_v40 = vadd.s32 127, %v1519_v34  ;;  %v12577_v38 = vpop.permute.xlu0 %3019  ;;  %v12584_v55 = vsel %vm1394_vm8, nan, %v1403_v3 }
 0x167   : > { %2836 = vperm.xlu2 %11124, %v12584_v55  }
 0x168   : > { %v1518_v28 = vor.u32 %v1517_v4, %v1516_v58  ;;  %v1521_v62 = vshll.u32 %v1520_v40, 23  ;;  %v2788_v40 = vadd.s32 3, %v1532_v35 }
 0x16a   : > { %v1522_v59 = vor.u32 4788187, %v1521_v62  ;;  %v1525_v25 = vcvt.s32.f32 %v1518_v28  ;;  %v12592_v28 = vpop.permute.xlu1 %3069  ;;  %v2789_v49 = vand.u32 3, %v2788_v40 }
 0x16b   : > { %11125 = vset.pattern.permute.xlu1 %v16359_v1 }
 0x16c   : > { %2876 = vperm.xlu1 %11125, %v12538_v37   ;;  %v1523_v56 = vand.u32 2147483647, %v1522_v59  ;;  %vm2794_vm2 = vcmp.eq.s32.totalorder %v2789_v49, 2  ;;  %vm2791_vm9 = vcmp.eq.s32.totalorder %v2789_v49, 0  ;;  %vm2790_vm14 = vcmp.lt.s32.totalorder %v2789_v49, 2 }
 0x16d   : > { %v12594_v59 = vpop.permute.xlu2 %3101 }
 0x16e   : > { %v1526_v45 = vmul.f32 %v1525_v25, %v1523_v56  ;;  %v12598_v5 = vpop.permute.xlu0 %3105 }
 0x16f   : > { %11126 = vset.pattern.permute.xlu2 %v11205_v0 }
 0x170   : > { %v1527_v20 = vxor.u32 2147483648, %v1526_v45  ;;  %2920 = vperm.xlu2 %11126, %v12584_v55  }
 0x172   : > { %v1528_v61 = vsel %vm1407_vm11, %v1527_v20, %v1526_v45  ;;  %v1549_v45 = vand.u32 3, %v1532_v35  ;;  %vm1548_vm11 = vweird.f32 %v12211_v9 }
 0x173   : > { %v1531_v39 = vsel %vm12564_vm15, %v12211_v9, %v1528_v61 }
 0x174   : > { %11128 = vset.pattern.permute.xlu1 %v11213_v47  ;;  %v1533_v58 = vmul.f32 %v1531_v39, %v1531_v39  ;;  %vm1554_vm1 = vcmp.eq.s32.totalorder %v1549_v45, 2  ;;  %vm1550_vm7 = vcmp.lt.s32.totalorder %v1549_v45, 2  ;;  %vm1551_vm8 = vcmp.eq.s32.totalorder %v1549_v45, 0 }
 0x175   : > { %3003 = vperm.xlu1 %11128, %v12584_v55   ;;  %v2862_v35 = vpop.permute.xlu2 %2861  ;;  %v2961_v45 = vsel %vm2894_vm5, %v12552_v36, %v12560_v52  ;;  %v3126_v36 = vsel %vm12298_vm12, %v12592_v28, %v12594_v59 }
 0x176   : > { %v1534_v29 = vmul.f32 -0.001358992, %v1533_v58  ;;  %v1541_v26 = vmul.f32 -0.00019511016, %v1533_v58 }
 0x178   : > { %v1535_v34 = vadd.f32 0.041655596, %v1534_v29  ;;  %v1542_v4 = vadd.f32 0.008332121, %v1541_v26  ;;  %11129 = vset.pattern.permute.xlu2 %v11213_v47 }
 0x179   : > { %3035 = vperm.xlu2 %11129, %v12538_v37  }
 0x17a   : > { %v1536_v17 = vmul.f32 %v1535_v34, %v1533_v58  ;;  %v1543_v62 = vmul.f32 %v1542_v4, %v1533_v58 }
 0x17c   : > { %v1537_v25 = vadd.f32 -0.4999988, %v1536_v17  ;;  %v1544_v56 = vadd.f32 -0.16666654, %v1543_v62 }
 0x17d   : > { %11130 = vset.pattern.permute.xlu1 %v11214_v16 }
 0x17e   : > { %3085 = vperm.xlu1 %11130, %v12584_v55   ;;  %v1538_v54 = vmul.f32 %v1537_v25, %v1533_v58  ;;  %v1545_v20 = vmul.f32 %v1544_v56, %v1533_v58  ;;  %v2992_v25 = vpop.permute.xlu2 %2991 }
 0x180   : > { %v1539_v31 = vadd.f32 1.0, %v1538_v54  ;;  %v1546_v57 = vadd.f32 1.0, %v1545_v20  ;;  %v2886_v54 = vsel %vm2803_vm6, %v12556_v32, %v12550_v7 }
 0x181   : > { %11131 = vset.pattern.permute.xlu2 %v11214_v16  ;;  %v2969_v20 = vmul.f32 %v2961_v45, %v2886_v54 }
 0x182   : > { %v1547_v8 = vmul.f32 %v1546_v57, %v1531_v39  ;;  %v1555_v61 = vxor.u32 2147483648, %v1539_v31  ;;  %v12606_v39 = vpop.permute.xlu0 %2995  ;;  %3117 = vperm.xlu2 %11131, %v12538_v37   ;;  %v3044_v57 = vsel %vm2977_vm10, %v12569_v43, %v12577_v38  ;;  %v3043_v38 = vsel %vm2977_vm10, %v12523_v22, %v12532_v10 }
 0x183   : > { %v3052_v52 = vmul.f32 %v3044_v57, %v2969_v20 }
 0x184   : > { %v2822_v3 = vpop.permute.xlu1 %2821  ;;  %v1552_v46 = vxor.u32 2147483648, %v1547_v8  ;;  %v1556_v29 = vsel %vm1554_vm1, %v1555_v61, %v1547_v8  ;;  %v2796_v26 = vsel %vm2794_vm2, %v1555_v61, %v1547_v8  ;;  %v16361_v61 = vmov 6  }
 0x185   : > { %v3134_v7 = vmul.f32 %v3126_v36, %v3052_v52  ;;  %v2887_v10 = vsel %vm2803_vm6, %v2822_v3, %v2862_v35  ;;  %v11217_v36 = vmov 5  }
 0x186   : > { %11132 = vset.pattern.permute.xlu1 %v16359_v1  ;;  %v1553_v58 = vsel %vm1551_vm8, %v1539_v31, %v1552_v46  ;;  %v2793_v34 = vsel %vm2791_vm9, %v1539_v31, %v1552_v46  ;;  %v3074_v31 = vpop.permute.xlu2 %3073  ;;  %v3125_v46 = vsel %vm12298_vm12, %v12542_v63, %v12545_v48 }
 0x187   : > { %v1557_v4 = vsel %vm1550_vm7, %v1553_v58, %v1556_v29  ;;  %v2797_v40 = vsel %vm2790_vm14, %v2793_v34, %v2796_v26  ;;  %v11216_v34 = vmov 4   ;;  %v3127_v35 = vsel %vm12298_vm12, %v3074_v31, %v12598_v5 }
 0x188   : > { %v12609_v17 = vsel %vm1548_vm11, nan, %v1557_v4  ;;  %v12611_v62 = vsel %vm1548_vm11, nan, %v2797_v40 }
 0x189   : > { %2841 = vperm.xlu0 %11127, %v12609_v17   ;;  %2881 = vperm.xlu1 %11132, %v12611_v62  }
 0x18a   : > { %11133 = vset.pattern.permute.xlu2 %v11205_v0 }
 0x18b   : > { %2924 = vperm.xlu2 %11133, %v12609_v17  }
 0x18d   : > { %v2941_v9 = vpop.permute.xlu1 %2940 }
 0x18e   : > { %v2867_v28 = vpop.permute.xlu2 %2866 }
 0x191   : > { %11136 = vset.pattern.permute.xlu0 %v11213_v47  ;;  %11134 = vset.pattern.permute.xlu1 %v11205_v0 }
 0x192   : > { %3039 = vperm.xlu0 %11136, %v12611_v62   ;;  %2956 = vperm.xlu1 %11134, %v12611_v62  }
 0x193   : > { %11135 = vset.pattern.permute.xlu2 %v11213_v47 }
 0x194   : > { %3007 = vperm.xlu2 %11135, %v12609_v17  }
 0x196   : > { %v3024_v49 = vpop.permute.xlu1 %3023  ;;  %v2945_v40 = vpop.permute.xlu2 %2944 }
 0x197   : > { %v3045_v47 = vsel %vm2977_vm10, %v2992_v25, %v3024_v49 }
 0x199   : > { %v12617_v56 = vpop.permute.xlu0 %3081 }
 0x19a   : > { %11149 = vset.pattern.permute.xlu0 %v16361_v61  ;;  %11137 = vset.pattern.permute.xlu1 %v11214_v16 }
 0x19b   : > { %3297 = vperm.xlu0 %11149, %v11735_v53   ;;  %3089 = vperm.xlu1 %11137, %v12609_v17  }
 0x19c   : > { %11138 = vset.pattern.permute.xlu2 %v11214_v16 }
 0x19d   : > { %3121 = vperm.xlu2 %11138, %v12611_v62  }
 0x19f   : > { %v2827_v0 = vpop.permute.xlu1 %2826 }
 0x1a2   : > { %v2933_v8 = vpop.permute.xlu0 %2932 }
 0x1a3   : > { %v2960_v32 = vsel %vm2894_vm5, %v12511_v15, %v2933_v8  ;;  %v3464_v15 = vsel %vm3456_vm13, %v3134_v7, 0  ;;  %11154 = vset.pattern.permute.xlu0 %v11216_v34  ;;  %11139 = vset.pattern.permute.xlu1 %v11216_v34  ;;  %v3078_v8 = vpop.permute.xlu2 %3077 }
 0x1a4   : > { %v2968_v43 = vmul.f32 %v2960_v32, %v12438_v42  ;;  %v12660_v42 = vand.u32 4294901760, %v3464_v15  ;;  %3181 = vperm.xlu0 %11154, %v11856_v12   ;;  %3141 = vperm.xlu1 %11139, %v11574_v11  }
 0x1a5   : > { %11140 = vset.pattern.permute.xlu2 %v11216_v34 }
 0x1a6   : > { %v3051_v59 = vmul.f32 %v3043_v38, %v2968_v43  ;;  %v12683_v25 = vsub.f32 %v3464_v15, %v12660_v42  ;;  %3173 = vperm.xlu2 %11140, %v11594_v19  }
 0x1a8   : > { %v3133_v29 = vmul.f32 %v3125_v46, %v3051_v59  ;;  %v2913_v4 = vpop.permute.xlu1 %2912  ;;  %v12698_v31 = vand.u32 4294901760, %v12683_v25  ;;  %v2888_v59 = vsel %vm2803_vm6, %v2827_v0, %v2867_v28 }
 0x1a9   : > { %v2963_v43 = vsel %vm2894_vm5, %v2913_v4, %v2945_v40 }
 0x1aa   : > { %v3461_v26 = vsel %vm3456_vm13, %v3133_v29, 0  ;;  %v2909_v58 = vpop.permute.xlu0 %2908  ;;  %v3518_v7 = vsub.f32 %v12683_v25, %v12698_v31  ;;  %v2971_v15 = vmul.f32 %v2963_v43, %v2888_v59 }
 0x1ab   : > { %v12663_v22 = vand.u32 4294901760, %v3461_v26  ;;  %v2962_v63 = vsel %vm2894_vm5, %v2909_v58, %v2941_v9 }
 0x1ac   : > { %v2970_v48 = vmul.f32 %v2962_v63, %v2887_v10  ;;  %3157 = vperm.xlu0 %11154, %v12106_v60   ;;  %11141 = vset.pattern.permute.xlu1 %v11217_v36  ;;  %v12720_v38 = vand.u32 4294901760, %v3518_v7 }
 0x1ad   : > { %3595 = vmatmul.f32.gmra.mxu1 %v12663_v22  ;;  %v12677_v3 = vsub.f32 %v3461_v26, %v12663_v22  ;;  %3245 = vperm.xlu1 %11141, %v11594_v19   ;;  %v2832_v26 = vpop.permute.xlu2 %2831 }
 0x1ae   : > { %v3053_v9 = vmul.f32 %v3045_v47, %v2970_v48  ;;  %11142 = vset.pattern.permute.xlu2 %v16361_v61 }
 0x1af   : > { %3650 = vmatmul.f32.gmra.mxu2 %v12677_v3  ;;  %v12687_v45 = vand.u32 4294901760, %v12677_v3  ;;  %3293 = vperm.xlu2 %11142, %v11574_v11  }
 0x1b0   : > { %v3135_v49 = vmul.f32 %v3127_v35, %v3053_v9 }
 0x1b1   : > { %3711 = vmatmul.f32.gmra.mxu3 %v12687_v45  ;;  %v3510_v54 = vsub.f32 %v12677_v3, %v12687_v45  ;;  %v3028_v52 = vpop.permute.xlu1 %3027 }
 0x1b2   : > { %v3467_v5 = vsel %vm3456_vm13, %v3135_v49, 0  ;;  %v3046_v46 = vsel %vm2977_vm10, %v12606_v39, %v3028_v52 }
 0x1b3   : > { %v12695_v20 = vand.u32 4294901760, %v3510_v54  ;;  %v12700_v57 = vand.u32 4294901760, %v3467_v5  ;;  %v3054_v0 = vmul.f32 %v3046_v46, %v2971_v15  ;;  %v11218_v54 = vmov 7  }
 0x1b4   : > { %11167 = vset.pattern.permute.xlu0 %v11217_v36 }
 0x1b5   : > { %3512 = vmatmul.f32.gmra.mxu0 %v12695_v20  ;;  %3599 = vmatmul.f32.gmra.mxu1 %v12660_v42  ;;  %v12707_v16 = vsub.f32 %v3467_v5, %v12700_v57  ;;  %v2949_v4 = vpop.permute.xlu2 %2948 }
 0x1b6   : > { %3213 = vperm.xlu0 %11167, %v11574_v11   ;;  %11143 = vset.pattern.permute.xlu1 %v16361_v61 }
 0x1b7   : > { %3655 = vmatmul.f32.gmra.mxu2 %v12683_v25  ;;  %v12715_v32 = vand.u32 4294901760, %v12707_v16  ;;  %3325 = vperm.xlu1 %11143, %v11594_v19  }
 0x1b8   : > { %11144 = vset.pattern.permute.xlu2 %v11218_v54 }
 0x1b9   : > { %3717 = vmatmul.f32.gmra.mxu3 %v12698_v31  ;;  %v3526_v29 = vsub.f32 %v12707_v16, %v12715_v32  ;;  %3373 = vperm.xlu2 %11144, %v11574_v11  }
 0x1ba   : > { %v3110_v28 = vpop.permute.xlu1 %3109 }
 0x1bb   : > { %v3128_v39 = vsel %vm12298_vm12, %v3078_v8, %v3110_v28  ;;  %v12740_v10 = vand.u32 4294901760, %v3526_v29 }
 0x1bc   : > { %v3136_v58 = vmul.f32 %v3128_v39, %v3054_v0 }
 0x1bd   : > { %3520 = vmatmul.f32.gmra.mxu0 %v12720_v38  ;;  %3603 = vmatmul.f32.gmra.mxu1 %v12700_v57  ;;  %v3032_v5 = vpop.permute.xlu2 %3031 }
 0x1be   : > { %v3470_v63 = vsel %vm3456_vm13, %v3136_v58, 0  ;;  %3257 = vperm.xlu0 %11167, %v12037_v2  }
 0x1bf   : > { %3660 = vmatmul.f32.gmra.mxu2 %v12707_v16  ;;  %v12743_v47 = vand.u32 4294901760, %v3470_v63  ;;  %11145 = vset.pattern.permute.xlu1 %v11216_v34 }
 0x1c0   : > { %3145 = vperm.xlu1 %11145, %v11735_v53  }
 0x1c1   : > { %3723 = vmatmul.f32.gmra.mxu3 %v12715_v32  ;;  %v12750_v48 = vsub.f32 %v3470_v63, %v12743_v47  ;;  %11146 = vset.pattern.permute.xlu2 %v11216_v34 }
 0x1c2   : > { %3177 = vperm.xlu2 %11146, %v11674_v21  }
 0x1c3   : > { %v2917_v35 = vpop.permute.xlu1 %2916  ;;  %v12756_v40 = vand.u32 4294901760, %v12750_v48 }
 0x1c4   : > { %v2964_v11 = vsel %vm2894_vm5, %v2917_v35, %v2949_v4 }
 0x1c5   : > { %3528 = vmatmul.f32.gmra.mxu0 %v12740_v10  ;;  %3607 = vmatmul.f32.gmra.mxu1 %v12743_v47  ;;  %v3534_v9 = vsub.f32 %v12750_v48, %v12756_v40  ;;  %v2837_v7 = vpop.permute.xlu2 %2836 }
 0x1c6   : > { %3233 = vperm.xlu0 %11167, %v12274_v51  }
 0x1c7   : > { %3665 = vmatmul.f32.gmra.mxu2 %v12750_v48  ;;  %v12762_v49 = vand.u32 4294901760, %v3534_v9 }
 0x1c8   : > { %11147 = vset.pattern.permute.xlu1 %v11217_v36 }
 0x1c9   : > { %3729 = vmatmul.f32.gmra.mxu3 %v12756_v40  ;;  %3217 = vperm.xlu1 %11147, %v11735_v53  }
 0x1ca   : > { %11148 = vset.pattern.permute.xlu2 %v11217_v36 }
 0x1cb   : > { %3249 = vperm.xlu2 %11148, %v11674_v21  }
 0x1cc   : > { %v3000_v52 = vpop.permute.xlu1 %2999  ;;  %v2953_v8 = vpop.permute.xlu0 %2952 }
 0x1cd   : > { %3536 = vmatmul.f32.gmra.mxu0 %v12762_v49  ;;  %v2921_v39 = vpop.permute.xlu2 %2920 }
 0x1ce   : > { %11176 = vset.pattern.permute.xlu0 %v11218_v54 }
 0x1cf   : > { %3405 = vperm.xlu0 %11176, %v11594_v19   ;;  %v3047_v19 = vsel %vm2977_vm10, %v3000_v52, %v3032_v5 }
 0x1d1   : > { %11150 = vset.pattern.permute.xlu1 %v16361_v61 }
 0x1d2   : > { %3329 = vperm.xlu1 %11150, %v11674_v21  }
 0x1d3   : > { %11151 = vset.pattern.permute.xlu2 %v11218_v54 }
 0x1d4   : > { %3377 = vperm.xlu2 %11151, %v11735_v53   ;;  %v2965_v53 = vsel %vm2894_vm5, %v2921_v39, %v2953_v8 }
 0x1d5   : > { %v3114_v43 = vpop.permute.xlu1 %3113  ;;  %v2872_v59 = vpop.permute.xlu0 %2871 }
 0x1d6   : > { %v2889_v46 = vsel %vm2803_vm6, %v2832_v26, %v2872_v59  ;;  %v3129_v29 = vsel %vm12298_vm12, %v12617_v56, %v3114_v43  ;;  %v3036_v35 = vpop.permute.xlu2 %3035 }
 0x1d7   : > { %v2972_v15 = vmul.f32 %v2964_v11, %v2889_v46  ;;  %3381 = vperm.xlu0 %11176, %v11852_v24  }
 0x1d9   : > { %v3055_v0 = vmul.f32 %v3047_v19, %v2972_v15 }
 0x1da   : > { %11152 = vset.pattern.permute.xlu1 %v11218_v54 }
 0x1db   : > { %v3137_v28 = vmul.f32 %v3129_v29, %v3055_v0  ;;  %3409 = vperm.xlu1 %11152, %v11674_v21  }
 0x1dc   : > { %11153 = vset.pattern.permute.xlu2 %v11216_v34 }
 0x1dd   : > { %v3473_v26 = vsel %vm3456_vm13, %v3137_v28, 0  ;;  %3149 = vperm.xlu2 %11153, %v11852_v24  }
 0x1de   : > { %v12791_v58 = vand.u32 4294901760, %v3473_v26  ;;  %v2877_v63 = vpop.permute.xlu1 %2876  ;;  %v3118_v59 = vpop.permute.xlu2 %3117 }
 0x1df   : > { %3425 = vperm.xlu0 %11176, %v12498_v50   ;;  %v2890_v52 = vsel %vm2803_vm6, %v2837_v7, %v2877_v63 }
 0x1e0   : > { %v12794_v56 = vsub.f32 %v3473_v26, %v12791_v58  ;;  %3611 = vmatmul.f32.gmra.mxu1 %v12791_v58  ;;  %v2973_v43 = vmul.f32 %v2965_v53, %v2890_v52 }
 0x1e2   : > { %3670 = vmatmul.f32.gmra.mxu2 %v12794_v56  ;;  %v12800_v4 = vand.u32 4294901760, %v12794_v56 }
 0x1e3   : > { %11155 = vset.pattern.permute.xlu1 %v11217_v36 }
 0x1e4   : > { %3735 = vmatmul.f32.gmra.mxu3 %v12800_v4  ;;  %v3542_v21 = vsub.f32 %v12794_v56, %v12800_v4  ;;  %3221 = vperm.xlu1 %11155, %v11852_v24  }
 0x1e5   : > { %11156 = vset.pattern.permute.xlu2 %v11217_v36 }
 0x1e6   : > { %v12809_v9 = vand.u32 4294901760, %v3542_v21  ;;  %3253 = vperm.xlu2 %11156, %v11856_v12   ;;  %v2925_v0 = vpop.permute.xlu2 %2924 }
 0x1e7   : > { %v3004_v5 = vpop.permute.xlu1 %3003  ;;  %11181 = vset.pattern.permute.xlu0 %v16361_v61 }
 0x1e8   : > { %3544 = vmatmul.f32.gmra.mxu0 %v12809_v9  ;;  %3341 = vperm.xlu0 %11181, %v12295_v13   ;;  %v3048_v11 = vsel %vm2977_vm10, %v3004_v5, %v3036_v35  ;;  %v3455_v5 = vld [vmem:[%s16342_s3 + $0x18] sm:$0xff] }
 0x1e9   : > { %v3056_v46 = vmul.f32 %v3048_v11, %v2973_v43  ;;  %v3871_v53 = vand.u32 4294901760, %v3455_v5 }
 0x1eb   : > { %3872 = vmatpush.msrb.mxu2 %v3871_v53  ;;  %4075 = vmatpush.msra.mxu1 %v3871_v53 }
 0x1ec   : > { %11157 = vset.pattern.permute.xlu1 %v16361_v61 }
 0x1ed   : > { %3301 = vperm.xlu1 %11157, %v11852_v24  }
 0x1ee   : > { %11158 = vset.pattern.permute.xlu2 %v16361_v61  ;;  %v3008_v35 = vpop.permute.xlu2 %3007 }
 0x1ef   : > { %3333 = vperm.xlu2 %11158, %v11856_v12  }
 0x1f0   : > { %v3086_v19 = vpop.permute.xlu1 %3085  ;;  %3317 = vperm.xlu0 %11181, %v12584_v55  }
 0x1f1   : > { %v3130_v8 = vsel %vm12298_vm12, %v3086_v19, %v3118_v59 }
 0x1f2   : > { %v3138_v15 = vmul.f32 %v3130_v8, %v3056_v46 }
 0x1f4   : > { %v3476_v7 = vsel %vm3456_vm13, %v3138_v15, 0 }
 0x1f5   : > { %v12830_v29 = vand.u32 4294901760, %v3476_v7  ;;  %11159 = vset.pattern.permute.xlu1 %v11218_v54 }
 0x1f6   : > { %3413 = vperm.xlu1 %11159, %v11856_v12  }
 0x1f7   : > { %v12834_v24 = vsub.f32 %v3476_v7, %v12830_v29  ;;  %3615 = vmatmul.f32.gmra.mxu1 %v12830_v29  ;;  %11160 = vset.pattern.permute.xlu2 %v11216_v34  ;;  %v3122_v19 = vpop.permute.xlu2 %3121 }
 0x1f8   : > { %11190 = vset.pattern.permute.xlu0 %v11216_v34  ;;  %3153 = vperm.xlu2 %11160, %v12200_v6  }
 0x1f9   : > { %3675 = vmatmul.f32.gmra.mxu2 %v12834_v24  ;;  %v12841_v28 = vand.u32 4294901760, %v12834_v24  ;;  %3201 = vperm.xlu0 %11190, %v12611_v62  }
 0x1fb   : > { %3741 = vmatmul.f32.gmra.mxu3 %v12841_v28  ;;  %v3550_v39 = vsub.f32 %v12834_v24, %v12841_v28  ;;  %v2842_v26 = vpop.permute.xlu0 %2841  ;;  %v2882_v63 = vpop.permute.xlu1 %2881 }
 0x1fc   : > { %v2891_v43 = vsel %vm2803_vm6, %v2842_v26, %v2882_v63 }
 0x1fd   : > { %v12848_v21 = vand.u32 4294901760, %v3550_v39  ;;  %v3955_v39 = vsub.f32 %v3455_v5, %v3871_v53  ;;  %v3453_v5 = vld [vmem:[%s16342_s3 + $0x8] sm:$0xff] }
 0x1fe   : > { %11161 = vset.pattern.permute.xlu1 %v11216_v34 }
 0x1ff   : > { %3552 = vmatmul.f32.gmra.mxu0 %v12848_v21  ;;  %3185 = vperm.xlu1 %11161, %v12037_v2   ;;  %v3956_v63 = vand.u32 4294901760, %v3955_v39 }
 0x200   : > { %11162 = vset.pattern.permute.xlu2 %v11217_v36  ;;  %4015 = vmatpush.msra.mxu0 %v3955_v39 }
 0x201   : > { %11195 = vset.pattern.permute.xlu0 %v11218_v54  ;;  %3225 = vperm.xlu2 %11162, %v12200_v6  }
 0x202   : > { %3401 = vperm.xlu0 %11195, %v12609_v17  }
 0x204   : > { %v3040_v52 = vpop.permute.xlu0 %3039  ;;  %v2957_v11 = vpop.permute.xlu1 %2956 }
 0x205   : > { %v2966_v12 = vsel %vm2894_vm5, %v2925_v0, %v2957_v11  ;;  %v3049_v46 = vsel %vm2977_vm10, %v3008_v35, %v3040_v52  ;;  %v3957_v52 = vsub.f32 %v3955_v39, %v3956_v63 }
 0x206   : > { %v2974_v59 = vmul.f32 %v2966_v12, %v2891_v43  ;;  %v3873_v43 = vand.u32 4294901760, %v3453_v5 }
 0x207   : > { %11163 = vset.pattern.permute.xlu1 %v16361_v61  ;;  %v3958_v12 = vand.u32 4294901760, %v3957_v52 }
 0x208   : > { %3305 = vperm.xlu1 %11163, %v12200_v6   ;;  %v3057_v15 = vmul.f32 %v3049_v46, %v2974_v59  ;;  %v3174_v46 = vpop.permute.xlu2 %3173  ;;  %3874 = vmatpush.msrb.mxu2 %v3873_v43 }
 0x209   : > { %3959 = vmatpush.msrb.mxu3 %v3958_v12  ;;  %11164 = vset.pattern.permute.xlu2 %v16361_v61 }
 0x20a   : > { %3337 = vperm.xlu2 %11164, %v12037_v2   ;;  %4144 = vmatpush.msra.mxu2 %v3956_v63 }
 0x20b   : > { %4077 = vmatpush.msra.mxu1 %v3873_v43 }
 0x20d   : > { %v12869_v8 = vpop.permute.xlu0 %3297  ;;  %v3090_v7 = vpop.permute.xlu1 %3089 }
 0x20e   : > { %v3131_v0 = vsel %vm12298_vm12, %v3090_v7, %v3122_v19  ;;  %v3961_v19 = vsub.f32 %v3453_v5, %v3873_v43 }
 0x20f   : > { %v3139_v26 = vmul.f32 %v3131_v0, %v3057_v15 }
 0x210   : > { %11165 = vset.pattern.permute.xlu1 %v11218_v54  ;;  %v3962_v0 = vand.u32 4294901760, %v3961_v19  ;;  %4018 = vmatpush.msra.mxu0 %v3961_v19  ;;  %v3294_v63 = vpop.permute.xlu2 %3293 }
 0x211   : > { %v3479_v35 = vsel %vm3456_vm13, %v3139_v26, 0  ;;  %3385 = vperm.xlu1 %11165, %v12200_v6  }
 0x212   : > { %v12878_v11 = vand.u32 4294901760, %v3479_v35  ;;  %4148 = vmatpush.msra.mxu2 %v3962_v0  ;;  %11166 = vset.pattern.permute.xlu2 %v11218_v54 }
 0x213   : > { %3417 = vperm.xlu2 %11166, %v12037_v2  }
 0x214   : > { %v12884_v59 = vsub.f32 %v3479_v35, %v12878_v11  ;;  %3619 = vmatmul.f32.gmra.mxu1 %v12878_v11  ;;  %v3963_v35 = vsub.f32 %v3961_v19, %v3962_v0 }
 0x216   : > { %v12887_v15 = vpop.permute.xlu0 %3181  ;;  %v3142_v6 = vpop.permute.xlu1 %3141  ;;  %3680 = vmatmul.f32.gmra.mxu2 %v12884_v59  ;;  %v12891_v7 = vand.u32 4294901760, %v12884_v59  ;;  %v3964_v5 = vand.u32 4294901760, %v3963_v35 }
 0x217   : > { %v3204_v39 = vsel %vm2803_vm6, %v3142_v6, %v3174_v46 }
 0x218   : > { %3747 = vmatmul.f32.gmra.mxu3 %v12891_v7  ;;  %v3558_v26 = vsub.f32 %v12884_v59, %v12891_v7  ;;  %v3374_v19 = vpop.permute.xlu2 %3373 }
 0x219   : > { %11168 = vset.pattern.permute.xlu1 %v11216_v34  ;;  %3965 = vmatpush.msrb.mxu3 %v3964_v5 }
 0x21a   : > { %3189 = vperm.xlu1 %11168, %v12295_v13   ;;  %v12902_v52 = vand.u32 4294901760, %v3558_v26 }
 0x21b   : > { %4197 = vmatpush.msra.mxu3 %v3871_v53  ;;  %11169 = vset.pattern.permute.xlu2 %v11217_v36 }
 0x21c   : > { %3560 = vmatmul.f32.gmra.mxu0 %v12902_v52  ;;  %3825 = vmatmul.f32.vlgmr.msrb.gmra.mxu1 %v12371_v41 }
 0x21d   : > { %4199 = vmatpush.msra.mxu3 %v3873_v43  ;;  %3229 = vperm.xlu2 %11169, %v12106_v60  }
 0x21e   : > { %v12906_v12 = vpop.permute.xlu0 %3157  ;;  %3880 = vmatmul.f32.vlgmr.msrb.gmra.mxu2 %v12493_v23 }
 0x21f   : > { %v3246_v46 = vpop.permute.xlu1 %3245 }
 0x220   : > { %3967 = vmatmul.f32.vlgmr.msrb.gmra.mxu3 %v12371_v41 }
 0x222   : > { %11170 = vset.pattern.permute.xlu1 %v11217_v36 }
 0x223   : > { %3261 = vperm.xlu1 %11170, %v12295_v13  }
 0x224   : > { %3774 = vmatmul.f32.vlgmr.msrb.gmra.mxu0 %v12371_v41  ;;  %3829 = vmatmul.f32.gmra.mxu1 %v12663_v22 }
 0x225   : > { %11171 = vset.pattern.permute.xlu2 %v16361_v61 }
 0x226   : > { %3888 = vmatmul.f32.gmra.mxu2 %v12695_v20  ;;  %v3178_v20 = vpop.permute.xlu2 %3177  ;;  %3309 = vperm.xlu2 %11171, %v12106_v60  }
 0x228   : > { %v3214_v23 = vpop.permute.xlu0 %3213  ;;  %3971 = vmatmul.f32.gmra.mxu3 %v12663_v22 }
 0x229   : > { %v3276_v53 = vsel %vm2894_vm5, %v3214_v23, %v3246_v46  ;;  %v3326_v43 = vpop.permute.xlu1 %3325 }
 0x22a   : > { %v3284_v2 = vmul.f32 %v3276_v53, %v3204_v39  ;;  %v3356_v6 = vsel %vm2977_vm10, %v3294_v63, %v3326_v43 }
 0x22b   : > { %11172 = vset.pattern.permute.xlu1 %v11218_v54 }
 0x22c   : > { %v3364_v0 = vmul.f32 %v3356_v6, %v3284_v2  ;;  %3389 = vperm.xlu1 %11172, %v12106_v60   ;;  %3778 = vmatmul.f32.gmra.mxu0 %v12663_v22 }
 0x22d   : > { %3833 = vmatmul.f32.gmra.mxu1 %v12660_v42 }
 0x22e   : > { %3896 = vmatmul.f32.gmra.mxu2 %v12720_v38  ;;  %v3250_v38 = vpop.permute.xlu2 %3249  ;;  %11173 = vset.pattern.permute.xlu2 %v11218_v54 }
 0x22f   : > { %3421 = vperm.xlu2 %11173, %v12295_v13  }
 0x230   : > { %v12929_v26 = vpop.permute.xlu0 %3257  ;;  %3975 = vmatmul.f32.gmra.mxu3 %v12660_v42 }
 0x232   : > { %v3146_v39 = vpop.permute.xlu1 %3145 }
 0x233   : > { %v3205_v35 = vsel %vm2803_vm6, %v3146_v39, %v3178_v20  ;;  %v13001_v39 = vpop.f32.mrf.mxu0 }
 0x234   : > { %11174 = vset.pattern.permute.xlu1 %v11216_v34  ;;  %3782 = vmatmul.f32.gmra.mxu0 %v12660_v42 }
 0x235   : > { %3161 = vperm.xlu1 %11174, %v12274_v51   ;;  %3837 = vmatmul.f32.gmra.mxu1 %v12700_v57 }
 0x236   : > { %3904 = vmatmul.f32.gmra.mxu2 %v12740_v10  ;;  %v3378_v10 = vpop.permute.xlu2 %3377 }
 0x237   : > { %11175 = vset.pattern.permute.xlu2 %v11216_v34 }
 0x238   : > { %v12941_v5 = vpop.permute.xlu0 %3233  ;;  %3979 = vmatmul.f32.gmra.mxu3 %v12700_v57  ;;  %3193 = vperm.xlu2 %11175, %v12498_v50  }
 0x23b   : > { %v3218_v60 = vpop.permute.xlu1 %3217 }
 0x23c   : > { %v3277_v63 = vsel %vm2894_vm5, %v3218_v60, %v3250_v38  ;;  %3786 = vmatmul.f32.gmra.mxu0 %v12700_v57  ;;  %v13015_v60 = vpop.f32.mrf.mxu3 }
 0x23d   : > { %v3285_v46 = vmul.f32 %v3277_v63, %v3205_v35  ;;  %11177 = vset.pattern.permute.xlu1 %v11217_v36  ;;  %3841 = vmatmul.f32.gmra.mxu1 %v12743_v47  ;;  %v13003_v35 = vpop.f32.mrf.mxu2  ;;  %16387 = vst [vmem:[#allocation2_spill] sm:$0xff] %v13015_v60 }
 0x23e   : > { %3265 = vperm.xlu1 %11177, %v12498_v50   ;;  %3912 = vmatmul.f32.gmra.mxu2 %v12762_v49  ;;  %v12965_v49 = vpop.permute.xlu2 %3149 }
 0x240   : > { %3983 = vmatmul.f32.gmra.mxu3 %v12743_v47  ;;  %11178 = vset.pattern.permute.xlu2 %v16361_v61 }
 0x241   : > { %v3406_v23 = vpop.permute.xlu0 %3405  ;;  %3313 = vperm.xlu2 %11178, %v12274_v51  }
 0x242   : > { %v3436_v13 = vsel %vm12298_vm12, %v3374_v19, %v3406_v23 }
 0x243   : > { %v12956_v53 = vmul.f32 %v3436_v13, %v3364_v0 }
 0x244   : > { %v3330_v2 = vpop.permute.xlu1 %3329  ;;  %3790 = vmatmul.f32.gmra.mxu0 %v12743_v47 }
 0x245   : > { %v3357_v43 = vsel %vm2977_vm10, %v12869_v8, %v3330_v2  ;;  %3845 = vmatmul.f32.gmra.mxu1 %v12791_v58  ;;  %v13023_v63 = vpop.f32.mrf.mxu2 }
 0x246   : > { %v3365_v6 = vmul.f32 %v3357_v43, %v3285_v46  ;;  %11179 = vset.pattern.permute.xlu1 %v16361_v61  ;;  %3920 = vmatmul.f32.gmra.mxu2 %v12809_v9  ;;  %v12978_v0 = vpop.permute.xlu2 %3253 }
 0x247   : > { %3345 = vperm.xlu1 %11179, %v12498_v50  }
 0x248   : > { %3987 = vmatmul.f32.gmra.mxu3 %v12791_v58 }
 0x249   : > { %11180 = vset.pattern.permute.xlu2 %v11218_v54 }
 0x24a   : > { %3393 = vperm.xlu2 %11180, %v12274_v51  }
 0x24c   : > { %3794 = vmatmul.f32.gmra.mxu0 %v12791_v58 }
 0x24d   : > { %v3410_v19 = vpop.permute.xlu1 %3409  ;;  %3849 = vmatmul.f32.gmra.mxu1 %v12830_v29  ;;  %v13049_v13 = vpop.f32.mrf.mxu2 }
 0x24e   : > { %v3437_v8 = vsel %vm12298_vm12, %v3378_v10, %v3410_v19  ;;  %3928 = vmatmul.f32.gmra.mxu2 %v12848_v21  ;;  %v12992_v21 = vpop.f32.mrf.mxu1  ;;  %v12996_v20 = vpop.permute.xlu2 %3333  ;;  %16389 = vst [vmem:[#allocation4_spill] sm:$0xff] %v13049_v13 }
 0x24f   : > { %v12980_v9 = vmul.f32 %v3437_v8, %v3365_v6  ;;  %11182 = vset.pattern.permute.xlu1 %v11216_v34  ;;  %v13033_v10 = vpop.f32.mrf.mxu3 }
 0x250   : > { %3165 = vperm.xlu1 %11182, %v12584_v55   ;;  %3991 = vmatmul.f32.gmra.mxu3 %v12830_v29  ;;  %16388 = vst [vmem:[#allocation3_spill] sm:$0xff] %v13033_v10 }
 0x252   : > { %11183 = vset.pattern.permute.xlu2 %v11216_v34 }
 0x253   : > { %3197 = vperm.xlu2 %11183, %v12538_v37  }
 0x254   : > { %3798 = vmatmul.f32.gmra.mxu0 %v12830_v29 }
 0x255   : > { %3853 = vmatmul.f32.gmra.mxu1 %v12878_v11  ;;  %v13073_v8 = vpop.f32.mrf.mxu2 }
 0x256   : > { %v12988_v50 = vpop.permute.xlu1 %3221  ;;  %3936 = vmatmul.f32.gmra.mxu2 %v12902_v52  ;;  %v13007_v51 = vpop.f32.mrf.mxu1  ;;  %16391 = vst [vmem:[#allocation6_spill] sm:$0xff] %v13073_v8 }
 0x257   : > { %v13013_v38 = vpop.permute.xlu2 %3153  ;;  %v13061_v43 = vpop.f32.mrf.mxu3 }
 0x258   : > { %11184 = vset.pattern.permute.xlu1 %v11217_v36  ;;  %3995 = vmatmul.f32.gmra.mxu3 %v12878_v11  ;;  %16390 = vst [vmem:[#allocation5_spill] sm:$0xff] %v13061_v43 }
 0x259   : > { %3237 = vperm.xlu1 %11184, %v12584_v55  }
 0x25b   : > { %11185 = vset.pattern.permute.xlu2 %v11217_v36 }
 0x25c   : > { %3802 = vmatmul.f32.gmra.mxu0 %v12878_v11  ;;  %3269 = vperm.xlu2 %11185, %v12538_v37  }
 0x25d   : > { %4081 = vmatmul.f32.vlgmr.msra.gmra.mxu1 %v12470_v30  ;;  %v13021_v30 = vpop.f32.mrf.mxu0 }
 0x25e   : > { %4150 = vmatmul.f32.vlgmr.msra.gmra.mxu2 %v12371_v41  ;;  %v13031_v46 = vpop.f32.mrf.mxu1 }
 0x25f   : > { %v13009_v52 = vpop.permute.xlu1 %3301 }
 0x260   : > { %4201 = vmatmul.f32.vlgmr.msra.gmra.mxu3 %v12371_v41 }
 0x261   : > { %11186 = vset.pattern.permute.xlu1 %v16361_v61 }
 0x262   : > { %3349 = vperm.xlu1 %11186, %v12538_v37  }
 0x264   : > { %4021 = vmatmul.f32.vlgmr.msra.gmra.mxu0 %v12396_v27  ;;  %v13036_v27 = vpop.permute.xlu2 %3225  ;;  %11187 = vset.pattern.permute.xlu2 %v11218_v54 }
 0x265   : > { %4087 = vmatmul.f32.gmra.mxu1 %v12687_v45  ;;  %v13047_v23 = vpop.f32.mrf.mxu0  ;;  %3397 = vperm.xlu2 %11187, %v12584_v55  }
 0x266   : > { %4154 = vmatmul.f32.gmra.mxu2 %v12663_v22 }
 0x268   : > { %v13027_v41 = vpop.permute.xlu1 %3413  ;;  %4205 = vmatmul.f32.gmra.mxu3 %v12663_v22  ;;  %v4235_v22 = vld [vmem:[%s16343_s4 + $0x10] sm:$0xff] }
 0x269   : > { %v13045_v45 = vand.u32 4294901760, %v4235_v22 }
 0x26a   : > { %11188 = vset.pattern.permute.xlu1 %v11218_v54 }
 0x26b   : > { %3429 = vperm.xlu1 %11188, %v12538_v37   ;;  %v4359_v37 = vsub.f32 %v4235_v22, %v13045_v45  ;;  %4276 = vmatpush.msrb.mxu0 %v13045_v45 }
 0x26c   : > { %4026 = vmatmul.f32.gmra.mxu0 %v12677_v3  ;;  %v13054_v3 = vpop.f32.mrf.mxu1  ;;  %4479 = vmatpush.msrb.mxu3 %v13045_v45 }
 0x26d   : > { %4093 = vmatmul.f32.gmra.mxu1 %v12698_v31  ;;  %4419 = vmatpush.msrb.mxu2 %v4359_v37  ;;  %v4360_v2 = vand.u32 4294901760, %v4359_v37  ;;  %v13070_v19 = vpop.f32.mrf.mxu0 }
 0x26e   : > { %4158 = vmatmul.f32.gmra.mxu2 %v12660_v42  ;;  %11189 = vset.pattern.permute.xlu2 %v11216_v34  ;;  %v4233_v34 = vld [vmem:[%s16343_s4] sm:$0xff] }
 0x26f   : > { %v4361_v6 = vsub.f32 %v4359_v37, %v4360_v2  ;;  %3169 = vperm.xlu2 %11189, %v12609_v17   ;;  %v13081_v37 = vpop.f32.mrf.mxu3 }
 0x270   : > { %4209 = vmatmul.f32.gmra.mxu3 %v12660_v42  ;;  %v13066_v42 = vpop.permute.xlu2 %3337  ;;  %16392 = vst [vmem:[#allocation7_spill] sm:$0xff] %v13081_v37 }
 0x271   : > { %v13056_v31 = vpop.permute.xlu1 %3185  ;;  %v4362_v55 = vand.u32 4294901760, %v4361_v6 }
 0x273   : > { %11191 = vset.pattern.permute.xlu1 %v11217_v36  ;;  %4363 = vmatpush.msrb.mxu1 %v4362_v55  ;;  %v13096_v55 = vpop.f32.mrf.mxu2 }
 0x274   : > { %3241 = vperm.xlu1 %11191, %v12609_v17   ;;  %4031 = vmatmul.f32.gmra.mxu0 %v12683_v25  ;;  %v13075_v22 = vpop.f32.mrf.mxu1  ;;  %16393 = vst [vmem:[#allocation8_spill] sm:$0xff] %v13096_v55 }
 0x275   : > { %4099 = vmatmul.f32.gmra.mxu1 %v12715_v32  ;;  %v4277_v32 = vand.u32 4294901760, %v4233_v34  ;;  %v13093_v6 = vpop.f32.mrf.mxu0 }
 0x276   : > { %4162 = vmatmul.f32.gmra.mxu2 %v12700_v57 }
 0x277   : > { %4481 = vmatpush.msrb.mxu3 %v4277_v32  ;;  %4278 = vmatpush.msrb.mxu0 %v4277_v32 }
 0x278   : > { %4213 = vmatmul.f32.gmra.mxu3 %v12700_v57  ;;  %v13088_v57 = vpop.permute.xlu2 %3417  ;;  %11192 = vset.pattern.permute.xlu2 %v11217_v36 }
 0x279   : > { %4548 = vmatpush.msra.mxu0 %v4360_v2  ;;  %3273 = vperm.xlu2 %11192, %v12611_v62  }
 0x27a   : > { %v13078_v25 = vpop.permute.xlu1 %3305 }
 0x27c   : > { %11193 = vset.pattern.permute.xlu1 %v16361_v61  ;;  %4036 = vmatmul.f32.gmra.mxu0 %v12707_v16  ;;  %v13098_v16 = vpop.f32.mrf.mxu1 }
 0x27d   : > { %3321 = vperm.xlu1 %11193, %v12609_v17   ;;  %4105 = vmatmul.f32.gmra.mxu1 %v12756_v40  ;;  %16394 = vst [vmem:[#allocation9_spill] sm:$0xff] %v13098_v16  ;;  %v4365_v17 = vsub.f32 %v4233_v34, %v4277_v32  ;;  %v13101_v40 = vpop.f32.mrf.mxu3  ;;  %v13113_v34 = vpop.f32.mrf.mxu0 }
 0x27e   : > { %4166 = vmatmul.f32.gmra.mxu2 %v12743_v47  ;;  %16395 = vst [vmem:[#allocation10_spill] sm:$0xff] %v13101_v40  ;;  %v13116_v40 = vpop.f32.mrf.mxu2 }
 0x27f   : > { %v4366_v61 = vand.u32 4294901760, %v4365_v17  ;;  %4422 = vmatpush.msrb.mxu2 %v4365_v17  ;;  %16396 = vst [vmem:[#allocation11_spill] sm:$0xff] %v13113_v34 }
 0x280   : > { %4217 = vmatmul.f32.gmra.mxu3 %v12743_v47  ;;  %v13111_v36 = vpop.permute.xlu2 %3229  ;;  %16397 = vst [vmem:[#allocation12_spill] sm:$0xff] %v13116_v40 }
 0x281   : > { %v4367_v47 = vsub.f32 %v4365_v17, %v4366_v61  ;;  %4552 = vmatpush.msra.mxu0 %v4366_v61  ;;  %v4238_v61 = vsel %vm3456_vm13, %v12956_v53, 0 }
 0x283   : > { %v13103_v1 = vpop.permute.xlu1 %3385  ;;  %v4368_v2 = vand.u32 4294901760, %v4367_v47 }
 0x284   : > { %4041 = vmatmul.f32.gmra.mxu0 %v12750_v48  ;;  %v13118_v48 = vpop.f32.mrf.mxu1 }
 0x285   : > { %11196 = vset.pattern.permute.xlu1 %v11218_v54  ;;  %4111 = vmatmul.f32.gmra.mxu1 %v12800_v4  ;;  %16398 = vst [vmem:[#allocation13_spill] sm:$0xff] %v13118_v48  ;;  %v13121_v54 = vpop.f32.mrf.mxu3  ;;  %v16400_v4 = vmov 6   ;;  %v13130_v47 = vpop.f32.mrf.mxu0 }
 0x286   : > { %3433 = vperm.xlu1 %11196, %v12611_v62   ;;  %4170 = vmatmul.f32.gmra.mxu2 %v12791_v58  ;;  %16399 = vst [vmem:[#allocation14_spill] sm:$0xff] %v13121_v54 }
 0x287   : > { %4369 = vmatpush.msrb.mxu1 %v4368_v2  ;;  %11194 = vset.pattern.permute.xlu2 %v16400_v4  ;;  %16401 = vst [vmem:[#allocation15_spill] sm:$0xff] %v13130_v47  ;;  %v13133_v2 = vpop.f32.mrf.mxu2 }
 0x288   : > { %4221 = vmatmul.f32.gmra.mxu3 %v12791_v58  ;;  %3353 = vperm.xlu2 %11194, %v12611_v62   ;;  %v3382_v58 = vpop.permute.xlu0 %3381  ;;  %16402 = vst [vmem:[#allocation16_spill] sm:$0xff] %v13133_v2  ;;  %v4234_v2 = vld [vmem:[%s16343_s4 + $0x8] sm:$0xff] }
 0x289   : > { %4601 = vmatpush.msra.mxu1 %v13045_v45  ;;  %v3310_v45 = vpop.permute.xlu2 %3309  ;;  %v4653_v40 = vand.u32 4294901760, %v4234_v2 }
 0x28b   : > { %4603 = vmatpush.msra.mxu1 %v4277_v32  ;;  %v3206_v32 = vsel %vm2803_vm6, %v12965_v49, %v12887_v15 }
 0x28c   : > { %v3190_v17 = vpop.permute.xlu1 %3189  ;;  %4046 = vmatmul.f32.gmra.mxu0 %v12794_v56  ;;  %v13137_v56 = vand.u32 4294901760, %v4238_v61 }
 0x28d   : > { %4117 = vmatmul.f32.gmra.mxu1 %v12841_v28  ;;  %v13139_v62 = vpop.f32.mrf.mxu3  ;;  %v3278_v28 = vsel %vm2894_vm5, %v12988_v50, %v12978_v0 }
 0x28e   : > { %4174 = vmatmul.f32.gmra.mxu2 %v12830_v29  ;;  %16404 = vst [vmem:[#allocation18_spill] sm:$0xff] %v13139_v62  ;;  %v3286_v0 = vmul.f32 %v3278_v28, %v3206_v32 }
 0x290   : > { %4225 = vmatmul.f32.gmra.mxu3 %v12830_v29  ;;  %v13148_v29 = vsub.f32 %v4238_v61, %v13137_v56  ;;  %v13164_v50 = vpop.permute.xlu0 %3425 }
 0x291   : > { %v13135_v4 = vpop.f32.mrf.mxu1  ;;  %v3422_v62 = vpop.permute.xlu2 %3421 }
 0x292   : > { %16403 = vst [vmem:[#allocation17_spill] sm:$0xff] %v13135_v4  ;;  %v3358_v4 = vsel %vm2977_vm10, %v13009_v52, %v12996_v20 }
 0x293   : > { %v3366_v15 = vmul.f32 %v3358_v4, %v3286_v0  ;;  %v3359_v4 = vsel %vm2977_vm10, %v13078_v25, %v13066_v42 }
 0x294   : > { %4051 = vmatmul.f32.gmra.mxu0 %v12834_v24  ;;  %v4241_v24 = vsel %vm3456_vm13, %v12980_v9, 0  ;;  %v13176_v9 = vand.u32 4294901760, %v13148_v29 }
 0x295   : > { %v3262_v53 = vpop.permute.xlu1 %3261  ;;  %4123 = vmatmul.f32.gmra.mxu1 %v12891_v7  ;;  %v3438_v7 = vsel %vm12298_vm12, %v3382_v58, %v13027_v41  ;;  %v13171_v20 = vand.u32 4294901760, %v4241_v24  ;;  %v3207_v41 = vsel %vm2803_vm6, %v13013_v38, %v13056_v31 }
 0x296   : > { %4178 = vmatmul.f32.gmra.mxu2 %v12878_v11  ;;  %v3446_v28 = vmul.f32 %v3438_v7, %v3366_v15  ;;  %v3280_v7 = vsel %vm2894_vm5, %v13111_v36, %v3262_v53 }
 0x297   : > { %v13191_v58 = vsub.f32 %v4241_v24, %v13171_v20 }
 0x298   : > { %4229 = vmatmul.f32.gmra.mxu3 %v12878_v11  ;;  %v3279_v11 = vsel %vm2894_vm5, %v13036_v27, %v12929_v26  ;;  %v4282_v26 = vsub.f32 %v13148_v29, %v13176_v9  ;;  %v4244_v38 = vsel %vm3456_vm13, %v3446_v28, 0  ;;  %v3342_v15 = vpop.permute.xlu0 %3341 }
 0x299   : > { %v13167_v49 = vpop.f32.mrf.mxu0  ;;  %v13169_v61 = vpop.f32.mrf.mxu2  ;;  %v3287_v27 = vmul.f32 %v3279_v11, %v3207_v41  ;;  %v13210_v25 = vand.u32 4294901760, %v4244_v38  ;;  %v13218_v11 = vand.u32 4294901760, %v13191_v58  ;;  %v3360_v53 = vsel %vm2977_vm10, %v3310_v45, %v3342_v15 }
 0x29a   : > { %16405 = vst [vmem:[#allocation19_spill] sm:$0xff] %v13167_v49  ;;  %v13173_v52 = vpop.f32.mrf.mxu1  ;;  %v13215_v28 = vand.u32 4294901760, %v4282_v26 }
 0x29b   : > { %16406 = vst [vmem:[#allocation20_spill] sm:$0xff] %v13169_v61  ;;  %v13178_v32 = vpop.f32.mrf.mxu3  ;;  %v3367_v31 = vmul.f32 %v3359_v4, %v3287_v27  ;;  %v3208_v4 = vsel %vm2803_vm6, %v12906_v12, %v3190_v17  ;;  %v3194_v27 = vpop.permute.xlu2 %3193  ;;  %v13230_v36 = vsub.f32 %v4244_v38, %v13210_v25  ;;  %v4290_v26 = vsub.f32 %v13191_v58, %v13218_v11 }
 0x29c   : > { %16407 = vst [vmem:[#allocation21_spill] sm:$0xff] %v13173_v52  ;;  %4056 = vmatmul.f32.gmra.mxu0 %v12884_v59  ;;  %v3439_v59 = vsel %vm12298_vm12, %v13103_v1, %v13088_v57 }
 0x29d   : > { %16408 = vst [vmem:[#allocation22_spill] sm:$0xff] %v13178_v32  ;;  %4371 = vmatmul.f32.vlgmr.msrb.gmra.mxu1 %v13137_v56  ;;  %v3447_v1 = vmul.f32 %v3439_v59, %v3367_v31  ;;  %v3288_v32 = vmul.f32 %v3280_v7, %v3208_v4  ;;  %v13243_v38 = vand.u32 4294901760, %v4290_v26  ;;  %v13246_v45 = vand.u32 4294901760, %v13230_v36 }
 0x29e   : > { %v3390_v0 = vpop.permute.xlu1 %3389  ;;  %4425 = vmatmul.f32.vlgmr.msrb.gmra.mxu2 %v13148_v29 }
 0x29f   : > { %v4247_v59 = vsel %vm3456_vm13, %v3447_v1, 0  ;;  %v3440_v17 = vsel %vm12298_vm12, %v3390_v0, %v3422_v62  ;;  %v3368_v31 = vmul.f32 %v3360_v53, %v3288_v32  ;;  %v4236_v32 = vld [vmem:[%s16343_s4 + $0x18] sm:$0xff]  ;;  %v4298_v53 = vsub.f32 %v13230_v36, %v13246_v45 }
 0x2a0   : > { %4485 = vmatmul.f32.vlgmr.msrb.gmra.mxu3 %v13176_v9  ;;  %v13241_v7 = vand.u32 4294901760, %v4247_v59  ;;  %v13267_v26 = vand.u32 4294901760, %v4236_v32  ;;  %v3318_v48 = vpop.permute.xlu0 %3317 }
 0x2a1   : > { %v13206_v24 = vpop.f32.mrf.mxu0  ;;  %v13208_v42 = vpop.f32.mrf.mxu2  ;;  %v3448_v15 = vmul.f32 %v3440_v17, %v3368_v31 }
 0x2a2   : > { %16409 = vst [vmem:[#allocation23_spill] sm:$0xff] %v13206_v24  ;;  %v13220_v57 = vpop.f32.mrf.mxu1  ;;  %v13262_v0 = vsub.f32 %v4247_v59, %v13241_v7  ;;  %4652 = vmatpush.msra.mxu2 %v13267_v26  ;;  %4855 = vmatpush.msrb.mxu1 %v13267_v26 }
 0x2a3   : > { %16410 = vst [vmem:[#allocation24_spill] sm:$0xff] %v13208_v42  ;;  %v13222_v41 = vpop.f32.mrf.mxu3  ;;  %v3314_v1 = vpop.permute.xlu2 %3313  ;;  %v4250_v17 = vsel %vm3456_vm13, %v3448_v15, 0 }
 0x2a4   : > { %16411 = vst [vmem:[#allocation25_spill] sm:$0xff] %v13220_v57  ;;  %4284 = vmatmul.f32.vlgmr.msrb.gmra.mxu0 %v13215_v28  ;;  %v13276_v59 = vand.u32 4294901760, %v4250_v17  ;;  %v13281_v42 = vand.u32 4294901760, %v13262_v0  ;;  %4654 = vmatpush.msra.mxu2 %v4653_v40 }
 0x2a5   : > { %16412 = vst [vmem:[#allocation26_spill] sm:$0xff] %v13222_v41  ;;  %4375 = vmatmul.f32.gmra.mxu1 %v13171_v20 }
 0x2a6   : > { %4430 = vmatmul.f32.gmra.mxu2 %v13191_v58  ;;  %v4306_v52 = vsub.f32 %v13262_v0, %v13281_v42  ;;  %4857 = vmatpush.msrb.mxu1 %v4653_v40 }
 0x2a7   : > { %v3162_v12 = vpop.permute.xlu1 %3161 }
 0x2a8   : > { %4491 = vmatmul.f32.gmra.mxu3 %v13218_v11 }
 0x2a9   : > { %v13248_v4 = vpop.f32.mrf.mxu0  ;;  %v13250_v61 = vpop.f32.mrf.mxu2 }
 0x2aa   : > { %16413 = vst [vmem:[#allocation27_spill] sm:$0xff] %v13248_v4  ;;  %v13253_v41 = vpop.f32.mrf.mxu1 }
 0x2ab   : > { %16414 = vst [vmem:[#allocation28_spill] sm:$0xff] %v13250_v61  ;;  %v13255_v62 = vpop.f32.mrf.mxu3  ;;  %v13278_v61 = vand.u32 4294901760, %v4298_v53  ;;  %v13295_v53 = vsub.f32 %v4250_v17, %v13276_v59  ;;  %v3394_v57 = vpop.permute.xlu2 %3393 }
 0x2ac   : > { %4292 = vmatmul.f32.gmra.mxu0 %v13243_v38  ;;  %16415 = vst [vmem:[#allocation29_spill] sm:$0xff] %v13253_v41 }
 0x2ad   : > { %16416 = vst [vmem:[#allocation30_spill] sm:$0xff] %v13255_v62  ;;  %4379 = vmatmul.f32.gmra.mxu1 %v13210_v25  ;;  %v13273_v62 = vsub.f32 %v4236_v32, %v13267_v26 }
 0x2ae   : > { %4435 = vmatmul.f32.gmra.mxu2 %v13230_v36 }
 0x2af   : > { %v16362_v49 = vand.u32 4294901760, %v13273_v62  ;;  %4795 = vmatpush.msrb.mxu0 %v13273_v62  ;;  %v16431_v43 = vand.u32 4294901760, %v13273_v62 }
 0x2b0   : > { %v3266_v31 = vpop.permute.xlu1 %3265  ;;  %4497 = vmatmul.f32.gmra.mxu3 %v13246_v45 }
 0x2b1   : > { %v4737_v15 = vsub.f32 %v13273_v62, %v16362_v49  ;;  %v13289_v32 = vpop.f32.mrf.mxu0  ;;  %v13291_v54 = vpop.f32.mrf.mxu2  ;;  %v3281_v41 = vsel %vm2894_vm5, %v12941_v5, %v3266_v31  ;;  %v3441_v31 = vsel %vm12298_vm12, %v3394_v57, %v13164_v50  ;;  %4924 = vmatpush.msrb.mxu2 %v16431_v43 }
 0x2b2   : > { %16417 = vst [vmem:[#allocation31_spill] sm:$0xff] %v13289_v32  ;;  %v13303_v4 = vpop.f32.mrf.mxu1 }
 0x2b3   : > { %16418 = vst [vmem:[#allocation32_spill] sm:$0xff] %v13291_v54  ;;  %v4738_v49 = vand.u32 4294901760, %v4737_v15  ;;  %v13305_v32 = vpop.f32.mrf.mxu3  ;;  %v3209_v54 = vsel %vm2803_vm6, %v3162_v12, %v3194_v27  ;;  %v13315_v15 = vand.u32 4294901760, %v4306_v52 }
 0x2b4   : > { %4300 = vmatmul.f32.gmra.mxu0 %v13278_v61  ;;  %16419 = vst [vmem:[#allocation33_spill] sm:$0xff] %v13303_v4  ;;  %v3289_v17 = vmul.f32 %v3281_v41, %v3209_v54  ;;  %v13318_v4 = vand.u32 4294901760, %v13295_v53 }
 0x2b5   : > { %4383 = vmatmul.f32.gmra.mxu1 %v13241_v7  ;;  %16420 = vst [vmem:[#allocation34_spill] sm:$0xff] %v13305_v32  ;;  %4739 = vmatpush.msra.mxu3 %v4738_v49 }
 0x2b6   : > { %4440 = vmatmul.f32.gmra.mxu2 %v13262_v0  ;;  %v4314_v54 = vsub.f32 %v13295_v53, %v13318_v4 }
 0x2b8   : > { %4503 = vmatmul.f32.gmra.mxu3 %v13281_v42 }
 0x2b9   : > { %v3346_v24 = vpop.permute.xlu1 %3345  ;;  %v13328_v50 = vpop.f32.mrf.mxu2 }
 0x2ba   : > { %v3361_v5 = vsel %vm2977_vm10, %v3314_v1, %v3346_v24  ;;  %v13326_v24 = vpop.f32.mrf.mxu0  ;;  %16422 = vst [vmem:[#allocation36_spill] sm:$0xff] %v13328_v50  ;;  %v13333_v57 = vpop.f32.mrf.mxu1 }
 0x2bb   : > { %v3369_v32 = vmul.f32 %v3361_v5, %v3289_v17  ;;  %16421 = vst [vmem:[#allocation35_spill] sm:$0xff] %v13326_v24  ;;  %v13335_v41 = vpop.f32.mrf.mxu3  ;;  %v3198_v1 = vpop.permute.xlu2 %3197  ;;  %v13340_v17 = vand.u32 4294901760, %v4314_v54 }
 0x2bc   : > { %4308 = vmatmul.f32.gmra.mxu0 %v13315_v15  ;;  %16423 = vst [vmem:[#allocation37_spill] sm:$0xff] %v13333_v57 }
 0x2bd   : > { %v3449_v27 = vmul.f32 %v3441_v31, %v3369_v32  ;;  %4387 = vmatmul.f32.gmra.mxu1 %v13276_v59  ;;  %16424 = vst [vmem:[#allocation38_spill] sm:$0xff] %v13335_v41 }
 0x2be   : > { %4445 = vmatmul.f32.gmra.mxu2 %v13295_v53 }
 0x2bf   : > { %v4253_v49 = vsel %vm3456_vm13, %v3449_v27, 0 }
 0x2c0   : > { %v13330_v52 = vand.u32 4294901760, %v4253_v49  ;;  %4509 = vmatmul.f32.gmra.mxu3 %v13318_v4 }
 0x2c2   : > { %v13338_v12 = vsub.f32 %v4253_v49, %v13330_v52  ;;  %v3166_v32 = vpop.permute.xlu1 %3165  ;;  %v13351_v27 = vpop.f32.mrf.mxu0 }
 0x2c3   : > { %16425 = vst [vmem:[#allocation39_spill] sm:$0xff] %v13351_v27  ;;  %v13353_v49 = vpop.f32.mrf.mxu2  ;;  %v13357_v41 = vpop.f32.mrf.mxu1 }
 0x2c4   : > { %4316 = vmatmul.f32.gmra.mxu0 %v13340_v17  ;;  %v13344_v5 = vand.u32 4294901760, %v13338_v12  ;;  %16426 = vst [vmem:[#allocation40_spill] sm:$0xff] %v13353_v49  ;;  %v13359_v57 = vpop.f32.mrf.mxu3  ;;  %v3270_v24 = vpop.permute.xlu2 %3269 }
 0x2c5   : > { %4391 = vmatmul.f32.gmra.mxu1 %v13330_v52  ;;  %16427 = vst [vmem:[#allocation41_spill] sm:$0xff] %v13357_v41 }
 0x2c6   : > { %4450 = vmatmul.f32.gmra.mxu2 %v13338_v12  ;;  %v4322_v31 = vsub.f32 %v13338_v12, %v13344_v5  ;;  %16428 = vst [vmem:[#allocation42_spill] sm:$0xff] %v13359_v57 }
 0x2c8   : > { %4515 = vmatmul.f32.gmra.mxu3 %v13344_v5  ;;  %v13355_v54 = vand.u32 4294901760, %v4322_v31  ;;  %v4741_v31 = vsub.f32 %v4234_v2, %v4653_v40  ;;  %v3210_v2 = vsel %vm2803_vm6, %v3166_v32, %v3198_v1 }
 0x2ca   : > { %v13365_v37 = vpop.f32.mrf.mxu0  ;;  %v4742_v57 = vand.u32 4294901760, %v4741_v31  ;;  %4798 = vmatpush.msrb.mxu0 %v4741_v31 }
 0x2cb   : > { %v3238_v50 = vpop.permute.xlu1 %3237  ;;  %16429 = vst [vmem:[#allocation43_spill] sm:$0xff] %v13365_v37  ;;  %v13367_v27 = vpop.f32.mrf.mxu2 }
 0x2cc   : > { %4324 = vmatmul.f32.gmra.mxu0 %v13355_v54  ;;  %16430 = vst [vmem:[#allocation44_spill] sm:$0xff] %v13367_v27  ;;  %v3398_v41 = vpop.permute.xlu2 %3397  ;;  %v13371_v10 = vpop.f32.mrf.mxu1  ;;  %v4743_v47 = vsub.f32 %v4741_v31, %v4742_v57  ;;  %4928 = vmatpush.msrb.mxu2 %v4742_v57  ;;  %v3282_v27 = vsel %vm2894_vm5, %v3238_v50, %v3270_v24 }
 0x2cd   : > { %16432 = vst [vmem:[#allocation45_spill] sm:$0xff] %v13371_v10  ;;  %v13373_v60 = vpop.f32.mrf.mxu3  ;;  %v3290_v43 = vmul.f32 %v3282_v27, %v3210_v2 }
 0x2ce   : > { %16433 = vst [vmem:[#allocation46_spill] sm:$0xff] %v13373_v60  ;;  %v4744_v37 = vand.u32 4294901760, %v4743_v47 }
 0x2d0   : > { %4745 = vmatpush.msra.mxu3 %v4744_v37 }
 0x2d2   : > { %4977 = vmatpush.msrb.mxu3 %v13267_v26  ;;  %v13382_v10 = vpop.f32.mrf.mxu0 }
 0x2d3   : > { %16434 = vst [vmem:[#allocation47_spill] sm:$0xff] %v13382_v10  ;;  %v13384_v31 = vpop.f32.mrf.mxu2 }
 0x2d4   : > { %v3350_v49 = vpop.permute.xlu1 %3349  ;;  %16435 = vst [vmem:[#allocation48_spill] sm:$0xff] %v13384_v31  ;;  %v3170_v47 = vpop.permute.xlu2 %3169  ;;  %4979 = vmatpush.msrb.mxu3 %v4653_v40 }
 0x2d5   : > { %v3362_v62 = vsel %vm2977_vm10, %v3318_v48, %v3350_v49  ;;  %v13388_v57 = vpop.f32.mrf.mxu1  ;;  %v13390_v1 = vpop.f32.mrf.mxu3 }
 0x2d6   : > { %v3370_v60 = vmul.f32 %v3362_v62, %v3290_v43  ;;  %16436 = vst [vmem:[#allocation49_spill] sm:$0xff] %v13388_v57  ;;  %v3202_v43 = vpop.permute.xlu0 %3201 }
 0x2d7   : > { %16437 = vst [vmem:[#allocation50_spill] sm:$0xff] %v13390_v1 }
 0x2db   : > { %v13405_v40 = vpop.f32.mrf.mxu2 }
 0x2dc   : > { %16439 = vst [vmem:[#allocation52_spill] sm:$0xff] %v13405_v40 }
 0x2dd   : > { %v3430_v16 = vpop.permute.xlu1 %3429  ;;  %v13410_v49 = vpop.f32.mrf.mxu1 }
 0x2de   : > { %v3442_v24 = vsel %vm12298_vm12, %v3398_v41, %v3430_v16  ;;  %v3274_v41 = vpop.permute.xlu2 %3273  ;;  %16440 = vst [vmem:[#allocation53_spill] sm:$0xff] %v13410_v49  ;;  %v13412_v2 = vpop.f32.mrf.mxu3 }
 0x2df   : > { %v3450_v50 = vmul.f32 %v3442_v24, %v3370_v60  ;;  %v13403_v60 = vpop.f32.mrf.mxu0  ;;  %16441 = vst [vmem:[#allocation54_spill] sm:$0xff] %v13412_v2  ;;  %v3402_v49 = vpop.permute.xlu0 %3401 }
 0x2e0   : > { %16438 = vst [vmem:[#allocation51_spill] sm:$0xff] %v13403_v60 }
 0x2e1   : > { %v4256_v37 = vsel %vm3456_vm13, %v3450_v50, 0 }
 0x2e2   : > { %v13393_v48 = vand.u32 4294901760, %v4256_v37 }
 0x2e4   : > { %v13396_v26 = vsub.f32 %v4256_v37, %v13393_v48  ;;  %4395 = vmatmul.f32.gmra.mxu1 %v13393_v48  ;;  %v13419_v37 = vpop.f32.mrf.mxu2 }
 0x2e5   : > { %16443 = vst [vmem:[#allocation56_spill] sm:$0xff] %v13419_v37  ;;  %v13423_v31 = vpop.f32.mrf.mxu1 }
 0x2e6   : > { %v3242_v32 = vpop.permute.xlu1 %3241  ;;  %4455 = vmatmul.f32.gmra.mxu2 %v13396_v26  ;;  %v13401_v16 = vand.u32 4294901760, %v13396_v26  ;;  %v3354_v40 = vpop.permute.xlu2 %3353  ;;  %16444 = vst [vmem:[#allocation57_spill] sm:$0xff] %v13423_v31 }
 0x2e7   : > { %v13417_v50 = vpop.f32.mrf.mxu0  ;;  %v3283_v1 = vsel %vm2894_vm5, %v3242_v32, %v3274_v41  ;;  %v13425_v57 = vpop.f32.mrf.mxu3  ;;  %vm5031_vm5 = vcmask 64512  }
 0x2e8   : > { %4521 = vmatmul.f32.gmra.mxu3 %v13401_v16  ;;  %v4330_v27 = vsub.f32 %v13396_v26, %v13401_v16  ;;  %16442 = vst [vmem:[#allocation55_spill] sm:$0xff] %v13417_v50 }
 0x2e9   : > { %16445 = vst [vmem:[#allocation58_spill] sm:$0xff] %v13425_v57 }
 0x2ea   : > { %v13414_v62 = vand.u32 4294901760, %v4330_v27  ;;  %v3211_v27 = vsel %vm2803_vm6, %v3170_v47, %v3202_v43 }
 0x2eb   : > { %v3291_v60 = vmul.f32 %v3283_v1, %v3211_v27 }
 0x2ec   : > { %4332 = vmatmul.f32.gmra.mxu0 %v13414_v62  ;;  %v13435_v32 = vpop.f32.mrf.mxu2 }
 0x2ed   : > { %16447 = vst [vmem:[#allocation60_spill] sm:$0xff] %v13435_v32  ;;  %v13440_v14 = vpop.f32.mrf.mxu1 }
 0x2ee   : > { %16448 = vst [vmem:[#allocation61_spill] sm:$0xff] %v13440_v14 }
 0x2ef   : > { %v3322_v24 = vpop.permute.xlu1 %3321  ;;  %v13433_v18 = vpop.f32.mrf.mxu0 }
 0x2f0   : > { %v3363_v2 = vsel %vm2977_vm10, %v3322_v24, %v3354_v40  ;;  %16446 = vst [vmem:[#allocation59_spill] sm:$0xff] %v13433_v18  ;;  %v13442_v44 = vpop.f32.mrf.mxu3 }
 0x2f1   : > { %v3371_v10 = vmul.f32 %v3363_v2, %v3291_v60  ;;  %16449 = vst [vmem:[#allocation62_spill] sm:$0xff] %v13442_v44 }
 0x2f4   : > { %v13459_v60 = vpop.f32.mrf.mxu2 }
 0x2f5   : > { %16451 = vst [vmem:[#allocation64_spill] sm:$0xff] %v13459_v60  ;;  %v13463_v40 = vpop.f32.mrf.mxu1 }
 0x2f6   : > { %16452 = vst [vmem:[#allocation65_spill] sm:$0xff] %v13463_v40 }
 0x2f8   : > { %v3434_v50 = vpop.permute.xlu1 %3433 }
 0x2f9   : > { %v3443_v37 = vsel %vm12298_vm12, %v3402_v49, %v3434_v50  ;;  %v13465_v49 = vpop.f32.mrf.mxu3 }
 0x2fa   : > { %v3451_v34 = vmul.f32 %v3443_v37, %v3371_v10  ;;  %16453 = vst [vmem:[#allocation66_spill] sm:$0xff] %v13465_v49 }
 0x2fc   : > { %v4259_v41 = vsel %vm3456_vm13, %v3451_v34, 0  ;;  %v13455_v34 = vpop.f32.mrf.mxu0  ;;  %v13473_v43 = vpop.f32.mrf.mxu2 }
 0x2fd   : > { %v13438_v31 = vand.u32 4294901760, %v4259_v41  ;;  %16450 = vst [vmem:[#allocation63_spill] sm:$0xff] %v13455_v34  ;;  %v13476_v24 = vpop.f32.mrf.mxu1 }
 0x2fe   : > { %16455 = vst [vmem:[#allocation68_spill] sm:$0xff] %v13473_v43 }
 0x2ff   : > { %v13445_v47 = vsub.f32 %v4259_v41, %v13438_v31  ;;  %4399 = vmatmul.f32.gmra.mxu1 %v13438_v31  ;;  %16456 = vst [vmem:[#allocation69_spill] sm:$0xff] %v13476_v24 }
 0x301   : > { %4460 = vmatmul.f32.gmra.mxu2 %v13445_v47  ;;  %v13450_v33 = vand.u32 4294901760, %v13445_v47  ;;  %v13478_v50 = vpop.f32.mrf.mxu3 }
 0x302   : > { %16457 = vst [vmem:[#allocation70_spill] sm:$0xff] %v13478_v50 }
 0x303   : > { %4527 = vmatmul.f32.gmra.mxu3 %v13450_v33  ;;  %v4338_v10 = vsub.f32 %v13445_v47, %v13450_v33 }
 0x304   : > { %v13469_v2 = vpop.f32.mrf.mxu0  ;;  %v13486_v37 = vpop.f32.mrf.mxu2 }
 0x305   : > { %v13457_v1 = vand.u32 4294901760, %v4338_v10  ;;  %16454 = vst [vmem:[#allocation67_spill] sm:$0xff] %v13469_v2  ;;  %v13489_v27 = vpop.f32.mrf.mxu1 }
 0x306   : > { %16459 = vst [vmem:[#allocation72_spill] sm:$0xff] %v13486_v37 }
 0x307   : > { %4340 = vmatmul.f32.gmra.mxu0 %v13457_v1  ;;  %4605 = vmatmul.f32.vlgmr.msra.gmra.mxu1 %v13137_v56  ;;  %16460 = vst [vmem:[#allocation73_spill] sm:$0xff] %v13489_v27 }
 0x309   : > { %4660 = vmatmul.f32.vlgmr.msra.gmra.mxu2 %v13215_v28 }
 0x30b   : > { %4747 = vmatmul.f32.vlgmr.msra.gmra.mxu3 %v13137_v56 }
 0x30c   : > { %v13483_v28 = vpop.f32.mrf.mxu0  ;;  %v13499_v10 = vpop.f32.mrf.mxu2 }
 0x30d   : > { %16458 = vst [vmem:[#allocation71_spill] sm:$0xff] %v13483_v28 }
 0x30e   : > { %16463 = vst [vmem:[#allocation76_spill] sm:$0xff] %v13499_v10  ;;  %v5029_v10 = vld [vmem:[%s16341_s2] sm:$0xff] }
 0x30f   : > { %4554 = vmatmul.f32.vlgmr.msra.gmra.mxu0 %v13137_v56  ;;  %4609 = vmatmul.f32.gmra.mxu1 %v13171_v20 }
 0x311   : > { %4668 = vmatmul.f32.gmra.mxu2 %v13243_v38  ;;  %v13491_v38 = vpop.f32.mrf.mxu3 }
 0x312   : > { %16461 = vst [vmem:[#allocation74_spill] sm:$0xff] %v13491_v38 }
 0x313   : > { %4751 = vmatmul.f32.gmra.mxu3 %v13171_v20 }
 0x314   : > { %v13496_v41 = vpop.f32.mrf.mxu0 }
 0x315   : > { %16462 = vst [vmem:[#allocation75_spill] sm:$0xff] %v13496_v41 }
 0x317   : > { %4558 = vmatmul.f32.gmra.mxu0 %v13171_v20  ;;  %4613 = vmatmul.f32.gmra.mxu1 %v13210_v25 }
 0x319   : > { %4676 = vmatmul.f32.gmra.mxu2 %v13278_v61  ;;  %v13501_v61 = vpop.f32.mrf.mxu1  ;;  %v13503_v50 = vpop.f32.mrf.mxu3 }
 0x31a   : > { %16464 = vst [vmem:[#allocation77_spill] sm:$0xff] %v13501_v61  ;;  %v5071_v61 = vand.u32 4294901760, %v5029_v10 }
 0x31b   : > { %4755 = vmatmul.f32.gmra.mxu3 %v13210_v25  ;;  %16465 = vst [vmem:[#allocation78_spill] sm:$0xff] %v13503_v50 }
 0x31c   : > { %v13509_v27 = vpop.f32.mrf.mxu0  ;;  %5072 = vmatpush.msra.mxu0 %v5071_v61  ;;  %5267 = vmatpush.msra.mxu3 %v5071_v61 }
 0x31d   : > { %16466 = vst [vmem:[#allocation79_spill] sm:$0xff] %v13509_v27 }
 0x31f   : > { %4562 = vmatmul.f32.gmra.mxu0 %v13210_v25  ;;  %4617 = vmatmul.f32.gmra.mxu1 %v13241_v7 }
 0x321   : > { %4684 = vmatmul.f32.gmra.mxu2 %v13315_v15  ;;  %v13511_v15 = vpop.f32.mrf.mxu2  ;;  %v13518_v50 = vpop.f32.mrf.mxu1 }
 0x322   : > { %16467 = vst [vmem:[#allocation80_spill] sm:$0xff] %v13511_v15  ;;  %v13520_v41 = vpop.f32.mrf.mxu3 }
 0x323   : > { %4759 = vmatmul.f32.gmra.mxu3 %v13241_v7  ;;  %16468 = vst [vmem:[#allocation81_spill] sm:$0xff] %v13518_v50 }
 0x324   : > { %16469 = vst [vmem:[#allocation82_spill] sm:$0xff] %v13520_v41  ;;  %v13524_v38 = vpop.f32.mrf.mxu0 }
 0x325   : > { %16470 = vst [vmem:[#allocation83_spill] sm:$0xff] %v13524_v38 }
 0x327   : > { %4566 = vmatmul.f32.gmra.mxu0 %v13241_v7  ;;  %4621 = vmatmul.f32.gmra.mxu1 %v13276_v59 }
 0x329   : > { %4692 = vmatmul.f32.gmra.mxu2 %v13340_v17  ;;  %v5154_v17 = vsub.f32 %v5029_v10, %v5071_v61  ;;  %v13528_v50 = vpop.f32.mrf.mxu2 }
 0x32a   : > { %16471 = vst [vmem:[#allocation84_spill] sm:$0xff] %v13528_v50  ;;  %v13533_v10 = vpop.f32.mrf.mxu3 }
 0x32b   : > { %4763 = vmatmul.f32.gmra.mxu3 %v13276_v59  ;;  %5209 = vmatpush.msra.mxu2 %v5154_v17  ;;  %v5155_v15 = vand.u32 4294901760, %v5154_v17  ;;  %16473 = vst [vmem:[#allocation86_spill] sm:$0xff] %v13533_v10 }
 0x32d   : > { %v5156_v27 = vsub.f32 %v5154_v17, %v5155_v15  ;;  %v13538_v17 = vpop.f32.mrf.mxu0 }
 0x32e   : > { %16474 = vst [vmem:[#allocation87_spill] sm:$0xff] %v13538_v17 }
 0x32f   : > { %4570 = vmatmul.f32.gmra.mxu0 %v13276_v59  ;;  %4625 = vmatmul.f32.gmra.mxu1 %v13330_v52  ;;  %v5157_v37 = vand.u32 4294901760, %v5156_v27 }
 0x331   : > { %4700 = vmatmul.f32.gmra.mxu2 %v13355_v54  ;;  %5158 = vmatpush.msra.mxu1 %v5157_v37  ;;  %v13531_v54 = vpop.f32.mrf.mxu1  ;;  %v13541_v27 = vpop.f32.mrf.mxu2 }
 0x332   : > { %16472 = vst [vmem:[#allocation85_spill] sm:$0xff] %v13531_v54  ;;  %v13546_v37 = vpop.f32.mrf.mxu3 }
 0x333   : > { %4767 = vmatmul.f32.gmra.mxu3 %v13330_v52  ;;  %16475 = vst [vmem:[#allocation88_spill] sm:$0xff] %v13541_v27 }
 0x334   : > { %16477 = vst [vmem:[#allocation90_spill] sm:$0xff] %v13546_v37 }
 0x335   : > { %v13551_v10 = vpop.f32.mrf.mxu0 }
 0x336   : > { %16478 = vst [vmem:[#allocation91_spill] sm:$0xff] %v13551_v10 }
 0x337   : > { %4574 = vmatmul.f32.gmra.mxu0 %v13330_v52  ;;  %4629 = vmatmul.f32.gmra.mxu1 %v13393_v48 }
 0x339   : > { %4708 = vmatmul.f32.gmra.mxu2 %v13414_v62  ;;  %v13544_v62 = vpop.f32.mrf.mxu1 }
 0x33a   : > { %16476 = vst [vmem:[#allocation89_spill] sm:$0xff] %v13544_v62  ;;  %v13558_v38 = vpop.f32.mrf.mxu3 }
 0x33b   : > { %4771 = vmatmul.f32.gmra.mxu3 %v13393_v48  ;;  %16481 = vst [vmem:[#allocation94_spill] sm:$0xff] %v13558_v38 }
 0x33f   : > { %4578 = vmatmul.f32.gmra.mxu0 %v13393_v48  ;;  %4633 = vmatmul.f32.gmra.mxu1 %v13438_v31 }
 0x341   : > { %4716 = vmatmul.f32.gmra.mxu2 %v13457_v1  ;;  %v13554_v1 = vpop.f32.mrf.mxu2  ;;  %v13556_v50 = vpop.f32.mrf.mxu1 }
 0x342   : > { %16479 = vst [vmem:[#allocation92_spill] sm:$0xff] %v13554_v1  ;;  %v13572_v41 = vpop.f32.mrf.mxu3 }
 0x343   : > { %4775 = vmatmul.f32.gmra.mxu3 %v13438_v31  ;;  %16480 = vst [vmem:[#allocation93_spill] sm:$0xff] %v13556_v50 }
 0x344   : > { %16485 = vst [vmem:[#allocation98_spill] sm:$0xff] %v13572_v41 }
 0x347   : > { %4582 = vmatmul.f32.gmra.mxu0 %v13438_v31  ;;  %4861 = vmatmul.f32.vlgmr.msrb.gmra.mxu1 %v13176_v9  ;;  %v13564_v9 = vpop.f32.mrf.mxu0 }
 0x348   : > { %5385 = vmatpush.msrb.mxu1 %v5071_v61  ;;  %16482 = vst [vmem:[#allocation95_spill] sm:$0xff] %v13564_v9 }
 0x349   : > { %4930 = vmatmul.f32.vlgmr.msrb.gmra.mxu2 %v13137_v56  ;;  %v13566_v61 = vpop.f32.mrf.mxu2 }
 0x34a   : > { %16483 = vst [vmem:[#allocation96_spill] sm:$0xff] %v13566_v61 }
 0x34b   : > { %4981 = vmatmul.f32.vlgmr.msrb.gmra.mxu3 %v13137_v56  ;;  %v13570_v56 = vpop.f32.mrf.mxu1 }
 0x34c   : > { %16484 = vst [vmem:[#allocation97_spill] sm:$0xff] %v13570_v56 }
 0x34f   : > { %4801 = vmatmul.f32.vlgmr.msrb.gmra.mxu0 %v13148_v29  ;;  %4867 = vmatmul.f32.gmra.mxu1 %v13218_v11  ;;  %v13576_v29 = vpop.f32.mrf.mxu0  ;;  %v13585_v11 = vpop.f32.mrf.mxu3 }
 0x350   : > { %5335 = vmatpush.msrb.mxu0 %v5155_v15  ;;  %16486 = vst [vmem:[#allocation99_spill] sm:$0xff] %v13576_v29 }
 0x351   : > { %4934 = vmatmul.f32.gmra.mxu2 %v13171_v20  ;;  %16489 = vst [vmem:[#allocation102_spill] sm:$0xff] %v13585_v11 }
 0x353   : > { %4985 = vmatmul.f32.gmra.mxu3 %v13171_v20  ;;  %v13580_v20 = vpop.f32.mrf.mxu2 }
 0x354   : > { %16487 = vst [vmem:[#allocation100_spill] sm:$0xff] %v13580_v20 }
 0x357   : > { %4806 = vmatmul.f32.gmra.mxu0 %v13191_v58  ;;  %4873 = vmatmul.f32.gmra.mxu1 %v13246_v45  ;;  %v13583_v58 = vpop.f32.mrf.mxu1  ;;  %v13598_v45 = vpop.f32.mrf.mxu3 }
 0x358   : > { %16488 = vst [vmem:[#allocation101_spill] sm:$0xff] %v13583_v58 }
 0x359   : > { %4938 = vmatmul.f32.gmra.mxu2 %v13210_v25  ;;  %16493 = vst [vmem:[#allocation106_spill] sm:$0xff] %v13598_v45 }
 0x35b   : > { %4989 = vmatmul.f32.gmra.mxu3 %v13210_v25  ;;  %v13590_v25 = vpop.f32.mrf.mxu0 }
 0x35c   : > { %16490 = vst [vmem:[#allocation103_spill] sm:$0xff] %v13590_v25 }
 0x35f   : > { %4811 = vmatmul.f32.gmra.mxu0 %v13230_v36  ;;  %4879 = vmatmul.f32.gmra.mxu1 %v13281_v42  ;;  %v13593_v36 = vpop.f32.mrf.mxu2  ;;  %v13596_v42 = vpop.f32.mrf.mxu1 }
 0x360   : > { %16491 = vst [vmem:[#allocation104_spill] sm:$0xff] %v13593_v36  ;;  %v13621_v24 = vpop.f32.mrf.mxu3 }
 0x361   : > { %4942 = vmatmul.f32.gmra.mxu2 %v13241_v7  ;;  %16492 = vst [vmem:[#allocation105_spill] sm:$0xff] %v13596_v42 }
 0x362   : > { %16497 = vst [vmem:[#allocation110_spill] sm:$0xff] %v13621_v24 }
 0x363   : > { %4993 = vmatmul.f32.gmra.mxu3 %v13241_v7  ;;  %v311_v7 = vld [vmem:[%s13605_s27] sm:$0xff] }
 0x367   : > { %4816 = vmatmul.f32.gmra.mxu0 %v13262_v0  ;;  %4885 = vmatmul.f32.gmra.mxu1 %v13318_v4  ;;  %v5030_v4 = vld [vmem:[%s16341_s2 + $0x8] sm:$0xff]  ;;  %v13617_v15 = vpop.f32.mrf.mxu2  ;;  %v13619_v43 = vpop.f32.mrf.mxu1 }
 0x368   : > { %v5434_v0 = vand.u32 4294901760, %v5030_v4  ;;  %16495 = vst [vmem:[#allocation108_spill] sm:$0xff] %v13617_v15 }
 0x369   : > { %4946 = vmatmul.f32.gmra.mxu2 %v13276_v59  ;;  %16496 = vst [vmem:[#allocation109_spill] sm:$0xff] %v13619_v43 }
 0x36a   : > { %5435 = vmatpush.msrb.mxu2 %v5434_v0 }
 0x36b   : > { %4997 = vmatmul.f32.gmra.mxu3 %v13276_v59  ;;  %v13614_v59 = vpop.f32.mrf.mxu0 }
 0x36c   : > { %16494 = vst [vmem:[#allocation107_spill] sm:$0xff] %v13614_v59 }
 0x36f   : > { %4821 = vmatmul.f32.gmra.mxu0 %v13295_v53  ;;  %4891 = vmatmul.f32.gmra.mxu1 %v13344_v5  ;;  %v319_v53 = vmul.f32 0.5, %v311_v7  ;;  %v5517_v5 = vsub.f32 %v5030_v4, %v5434_v0  ;;  %v13633_v4 = vpop.f32.mrf.mxu2 }
 0x370   : > { %16499 = vst [vmem:[#allocation112_spill] sm:$0xff] %v13633_v4 }
 0x371   : > { %4950 = vmatmul.f32.gmra.mxu2 %v13330_v52  ;;  %v5518_v28 = vand.u32 4294901760, %v5517_v5  ;;  %v5033_v40 = vsel %vm5031_vm5, %v319_v53, 0 }
 0x372   : > { %v13631_v7 = vand.u32 4294901760, %v5033_v40 }
 0x373   : > { %5001 = vmatmul.f32.gmra.mxu3 %v13330_v52  ;;  %v5519_v2 = vsub.f32 %v5517_v5, %v5518_v28  ;;  %v312_v52 = vld [vmem:[%s13605_s27 + $0x8] sm:$0xff]  ;;  %v13628_v44 = vpop.f32.mrf.mxu0 }
 0x374   : > { %16498 = vst [vmem:[#allocation111_spill] sm:$0xff] %v13628_v44  ;;  %v13640_v53 = vsub.f32 %v5033_v40, %v13631_v7 }
 0x375   : > { %v5520_v49 = vand.u32 4294901760, %v5519_v2 }
 0x376   : > { %v13647_v32 = vand.u32 4294901760, %v13640_v53 }
 0x377   : > { %4826 = vmatmul.f32.gmra.mxu0 %v13338_v12  ;;  %4897 = vmatmul.f32.gmra.mxu1 %v13401_v16  ;;  %v320_v12 = vmul.f32 0.5, %v312_v52  ;;  %v13635_v16 = vpop.f32.mrf.mxu3 }
 0x378   : > { %5521 = vmatpush.msrb.mxu3 %v5520_v49  ;;  %16500 = vst [vmem:[#allocation113_spill] sm:$0xff] %v13635_v16 }
 0x379   : > { %4954 = vmatmul.f32.gmra.mxu2 %v13393_v48  ;;  %v5036_v2 = vsel %vm5031_vm5, %v320_v12, 0  ;;  %v5076_v12 = vsub.f32 %v13640_v53, %v13647_v32 }
 0x37a   : > { %v13649_v49 = vand.u32 4294901760, %v5036_v2 }
 0x37b   : > { %5005 = vmatmul.f32.gmra.mxu3 %v13393_v48  ;;  %v313_v48 = vld [vmem:[%s13605_s27 + $0x10] sm:$0xff] }
 0x37c   : > { %v4400_v60 = vpop.f32.mrf.mxu1  ;;  %v321_v14 = vmul.f32 0.5, %v313_v48 }
 0x37e   : > { %v5039_v57 = vsel %vm5031_vm5, %v321_v14, 0 }
 0x37f   : > { %4831 = vmatmul.f32.gmra.mxu0 %v13396_v26  ;;  %4903 = vmatmul.f32.gmra.mxu1 %v13450_v33 }
 0x381   : > { %4958 = vmatmul.f32.gmra.mxu2 %v13438_v31 }
 0x383   : > { %5009 = vmatmul.f32.gmra.mxu3 %v13438_v31  ;;  %v13658_v31 = vsub.f32 %v5036_v2, %v13649_v49 }
 0x384   : > { %v4341_v52 = vpop.f32.mrf.mxu0  ;;  %v4461_v26 = vpop.f32.mrf.mxu2 }
 0x385   : > { %v4401_v33 = vadd.f32 %v4400_v60, %v4341_v52  ;;  %v13651_v34 = vpop.f32.mrf.mxu1  ;;  %v314_v60 = vld [vmem:[%s13605_s27 + $0x18] sm:$0xff]  ;;  %v13669_v48 = vand.u32 4294901760, %v13658_v31  ;;  %v13671_v52 = vand.u32 4294901760, %v5039_v57 }
 0x386   : > { %16501 = vst [vmem:[#allocation114_spill] sm:$0xff] %v13651_v34  ;;  %v4528_v40 = vpop.f32.mrf.mxu3 }
 0x387   : > { %v4462_v18 = vadd.f32 %v4461_v26, %v4401_v33  ;;  %4836 = vmatmul.f32.gmra.mxu0 %v13445_v47  ;;  %5160 = vmatmul.f32.vlgmr.msra.gmra.mxu1 %v13631_v7  ;;  %v13666_v47 = vand.u32 4294901760, %v5076_v12  ;;  %v322_v26 = vmul.f32 0.5, %v314_v60  ;;  %v13684_v12 = vsub.f32 %v5039_v57, %v13671_v52 }
 0x388   : > { %5630 = vmatpush.msra.mxu1 %v5434_v0 }
 0x389   : > { %v13661_v16 = vadd.f32 %v4528_v40, %v4462_v18  ;;  %5212 = vmatmul.f32.vlgmr.msra.gmra.mxu2 %v13640_v53  ;;  %v5042_v24 = vsel %vm5031_vm5, %v322_v26, 0 }
 0x38a   : > { %5698 = vmatpush.msra.mxu2 %v5518_v28  ;;  %v5084_v28 = vsub.f32 %v13658_v31, %v13669_v48 }
 0x38b   : > { %5271 = vmatmul.f32.vlgmr.msra.gmra.mxu3 %v13647_v32 }
 0x38c   : > { %v13673_v2 = vpop.f32.mrf.mxu0  ;;  %v4661_v14 = vpop.f32.mrf.mxu2  ;;  %5748 = vmatpush.msra.mxu3 %v5434_v0  ;;  %v315_v0 = vld [vmem:[%s13605_s27 + $0x20] sm:$0xff]  ;;  %v13690_v60 = vand.u32 4294901760, %v5084_v28 }
 0x38d   : > { %16502 = vst [vmem:[#allocation115_spill] sm:$0xff] %v13673_v2  ;;  %v13675_v18 = vpop.f32.mrf.mxu1  ;;  %v323_v15 = vmul.f32 0.5, %v315_v0  ;;  %v316_v0 = vld [vmem:[%s13605_s27 + $0x28] sm:$0xff] }
 0x38e   : > { %16503 = vst [vmem:[#allocation116_spill] sm:$0xff] %v13675_v18  ;;  %v4748_v33 = vpop.f32.mrf.mxu3 }
 0x38f   : > { %v13677_v40 = vadd.f32 %v4748_v33, %v4661_v14  ;;  %5078 = vmatmul.f32.vlgmr.msra.gmra.mxu0 %v13666_v47  ;;  %5164 = vmatmul.f32.gmra.mxu1 %v13649_v49  ;;  %v13693_v14 = vand.u32 4294901760, %v13684_v12  ;;  %v13695_v33 = vand.u32 4294901760, %v5042_v24  ;;  %v5045_v42 = vsel %vm5031_vm5, %v323_v15, 0 }
 0x390   : > { %5572 = vmatpush.msra.mxu0 %v5517_v5  ;;  %v13719_v59 = vand.u32 4294901760, %v5045_v42 }
 0x391   : > { %5217 = vmatmul.f32.gmra.mxu2 %v13658_v31  ;;  %v5092_v28 = vsub.f32 %v13684_v12, %v13693_v14  ;;  %v13708_v44 = vsub.f32 %v5042_v24, %v13695_v33  ;;  %v324_v24 = vmul.f32 0.5, %v316_v0  ;;  %v317_v0 = vld [vmem:[%s13605_s27 + $0x30] sm:$0xff] }
 0x393   : > { %5277 = vmatmul.f32.gmra.mxu3 %v13669_v48  ;;  %v5048_v18 = vsel %vm5031_vm5, %v324_v24, 0 }
 0x394   : > { %v13697_v4 = vpop.f32.mrf.mxu0  ;;  %v4669_v57 = vpop.f32.mrf.mxu2 }
 0x395   : > { %16504 = vst [vmem:[#allocation117_spill] sm:$0xff] %v13697_v4  ;;  %v13699_v43 = vpop.f32.mrf.mxu1 }
 0x396   : > { %16505 = vst [vmem:[#allocation118_spill] sm:$0xff] %v13699_v43  ;;  %v4752_v5 = vpop.f32.mrf.mxu3  ;;  %v13732_v43 = vsub.f32 %v5045_v42, %v13719_v59  ;;  %v325_v42 = vmul.f32 0.5, %v317_v0  ;;  %v318_v0 = vld [vmem:[%s13605_s27 + $0x38] sm:$0xff] }
 0x397   : > { %v13701_v26 = vadd.f32 %v4752_v5, %v4669_v57  ;;  %5086 = vmatmul.f32.gmra.mxu0 %v13690_v60  ;;  %5168 = vmatmul.f32.gmra.mxu1 %v13671_v52  ;;  %v13714_v57 = vand.u32 4294901760, %v5092_v28  ;;  %v13717_v5 = vand.u32 4294901760, %v13708_v44  ;;  %v326_v2 = vmul.f32 0.5, %v318_v0 }
 0x398   : > { %v5051_v56 = vsel %vm5031_vm5, %v325_v42, 0 }
 0x399   : > { %5222 = vmatmul.f32.gmra.mxu2 %v13684_v12  ;;  %v5100_v28 = vsub.f32 %v13708_v44, %v13717_v5  ;;  %v5054_v37 = vsel %vm5031_vm5, %v326_v2, 0 }
 0x39b   : > { %5283 = vmatmul.f32.gmra.mxu3 %v13693_v14 }
 0x39c   : > { %v13721_v45 = vpop.f32.mrf.mxu0  ;;  %v4677_v11 = vpop.f32.mrf.mxu2 }
 0x39d   : > { %16506 = vst [vmem:[#allocation119_spill] sm:$0xff] %v13721_v45  ;;  %v13723_v36 = vpop.f32.mrf.mxu1 }
 0x39e   : > { %16507 = vst [vmem:[#allocation120_spill] sm:$0xff] %v13723_v36  ;;  %v4756_v15 = vpop.f32.mrf.mxu3  ;;  %v13743_v36 = vand.u32 4294901760, %v5048_v18 }
 0x39f   : > { %v13725_v20 = vadd.f32 %v4756_v15, %v4677_v11  ;;  %5094 = vmatmul.f32.gmra.mxu0 %v13714_v57  ;;  %5172 = vmatmul.f32.gmra.mxu1 %v13695_v33  ;;  %v13738_v11 = vand.u32 4294901760, %v5100_v28  ;;  %v13741_v15 = vand.u32 4294901760, %v13732_v43 }
 0x3a0   : > { %v13756_v25 = vsub.f32 %v5048_v18, %v13743_v36 }
 0x3a1   : > { %5227 = vmatmul.f32.gmra.mxu2 %v13708_v44  ;;  %v5108_v28 = vsub.f32 %v13732_v43, %v13741_v15 }
 0x3a3   : > { %5289 = vmatmul.f32.gmra.mxu3 %v13717_v5 }
 0x3a4   : > { %v13745_v45 = vpop.f32.mrf.mxu0  ;;  %v4685_v4 = vpop.f32.mrf.mxu2 }
 0x3a5   : > { %16508 = vst [vmem:[#allocation121_spill] sm:$0xff] %v13745_v45  ;;  %v13747_v34 = vpop.f32.mrf.mxu1 }
 0x3a6   : > { %16509 = vst [vmem:[#allocation122_spill] sm:$0xff] %v13747_v34  ;;  %v4760_v24 = vpop.f32.mrf.mxu3  ;;  %v13762_v34 = vand.u32 4294901760, %v5108_v28 }
 0x3a7   : > { %v13749_v58 = vadd.f32 %v4760_v24, %v4685_v4  ;;  %5102 = vmatmul.f32.gmra.mxu0 %v13738_v11  ;;  %5176 = vmatmul.f32.gmra.mxu1 %v13719_v59  ;;  %v13765_v4 = vand.u32 4294901760, %v13756_v25  ;;  %v13767_v24 = vand.u32 4294901760, %v5051_v56 }
 0x3a9   : > { %5232 = vmatmul.f32.gmra.mxu2 %v13732_v43  ;;  %v5116_v28 = vsub.f32 %v13756_v25, %v13765_v4  ;;  %v13780_v38 = vsub.f32 %v5051_v56, %v13767_v24 }
 0x3ab   : > { %5295 = vmatmul.f32.gmra.mxu3 %v13741_v15  ;;  %v13785_v0 = vand.u32 4294901760, %v5116_v28 }
 0x3ac   : > { %v13769_v45 = vpop.f32.mrf.mxu0  ;;  %v4693_v29 = vpop.f32.mrf.mxu2 }
 0x3ad   : > { %16510 = vst [vmem:[#allocation123_spill] sm:$0xff] %v13769_v45  ;;  %v13771_v18 = vpop.f32.mrf.mxu1 }
 0x3ae   : > { %16511 = vst [vmem:[#allocation124_spill] sm:$0xff] %v13771_v18  ;;  %v4764_v41 = vpop.f32.mrf.mxu3 }
 0x3af   : > { %v13773_v42 = vadd.f32 %v4764_v41, %v4693_v29  ;;  %5110 = vmatmul.f32.gmra.mxu0 %v13762_v34  ;;  %5180 = vmatmul.f32.gmra.mxu1 %v13743_v36  ;;  %v13788_v41 = vand.u32 4294901760, %v13780_v38  ;;  %v13790_v29 = vand.u32 4294901760, %v5054_v37 }
 0x3b1   : > { %5237 = vmatmul.f32.gmra.mxu2 %v13756_v25  ;;  %v5124_v2 = vsub.f32 %v13780_v38, %v13788_v41  ;;  %v13803_v28 = vsub.f32 %v5054_v37, %v13790_v29 }
 0x3b3   : > { %5301 = vmatmul.f32.gmra.mxu3 %v13765_v4 }
 0x3b4   : > { %v13792_v18 = vpop.f32.mrf.mxu0  ;;  %v4701_v45 = vpop.f32.mrf.mxu2 }
 0x3b5   : > { %16512 = vst [vmem:[#allocation125_spill] sm:$0xff] %v13792_v18  ;;  %v13794_v61 = vpop.f32.mrf.mxu1  ;;  %v13807_v18 = vand.u32 4294901760, %v5124_v2 }
 0x3b6   : > { %16513 = vst [vmem:[#allocation126_spill] sm:$0xff] %v13794_v61  ;;  %v4768_v56 = vpop.f32.mrf.mxu3  ;;  %v13810_v61 = vand.u32 4294901760, %v13803_v28 }
 0x3b7   : > { %v13796_v50 = vadd.f32 %v4768_v56, %v4701_v45  ;;  %5118 = vmatmul.f32.gmra.mxu0 %v13785_v0  ;;  %5184 = vmatmul.f32.gmra.mxu1 %v13767_v24 }
 0x3b8   : > { %v5132_v37 = vsub.f32 %v13803_v28, %v13810_v61 }
 0x3b9   : > { %5242 = vmatmul.f32.gmra.mxu2 %v13780_v38 }
 0x3ba   : > { %v13822_v2 = vand.u32 4294901760, %v5132_v37 }
 0x3bb   : > { %5307 = vmatmul.f32.gmra.mxu3 %v13788_v41 }
 0x3bc   : > { %v13812_v45 = vpop.f32.mrf.mxu0  ;;  %v4709_v56 = vpop.f32.mrf.mxu2 }
 0x3bd   : > { %16514 = vst [vmem:[#allocation127_spill] sm:$0xff] %v13812_v45  ;;  %v4634_v9 = vpop.f32.mrf.mxu1 }
 0x3be   : > { %v4772_v1 = vpop.f32.mrf.mxu3 }
 0x3bf   : > { %v13814_v62 = vadd.f32 %v4772_v1, %v4709_v56  ;;  %5126 = vmatmul.f32.gmra.mxu0 %v13807_v18  ;;  %5188 = vmatmul.f32.gmra.mxu1 %v13790_v29 }
 0x3c1   : > { %5247 = vmatmul.f32.gmra.mxu2 %v13803_v28 }
 0x3c3   : > { %5313 = vmatmul.f32.gmra.mxu3 %v13810_v61 }
 0x3c4   : > { %v4583_v10 = vpop.f32.mrf.mxu0  ;;  %v4717_v45 = vpop.f32.mrf.mxu2 }
 0x3c5   : > { %v4584_v27 = vadd.f32 %v4583_v10, %v13661_v16  ;;  %v4862_v54 = vpop.f32.mrf.mxu1 }
 0x3c6   : > { %v4776_v1 = vpop.f32.mrf.mxu3 }
 0x3c7   : > { %v13825_v56 = vadd.f32 %v4634_v9, %v4584_v27  ;;  %v13827_v17 = vadd.f32 %v4776_v1, %v4717_v45  ;;  %5134 = vmatmul.f32.gmra.mxu0 %v13822_v2  ;;  %5387 = vmatmul.f32.vlgmr.msrb.gmra.mxu1 %v13631_v7 }
 0x3c9   : > { %16515 = vst [vmem:[#allocation128_spill] sm:$0xff] %v13825_v56  ;;  %5441 = vmatmul.f32.vlgmr.msrb.gmra.mxu2 %v13666_v47 }
 0x3cb   : > { %5523 = vmatmul.f32.vlgmr.msrb.gmra.mxu3 %v13631_v7 }
 0x3cc   : > { %v4802_v37 = vpop.f32.mrf.mxu0  ;;  %v4931_v55 = vpop.f32.mrf.mxu2 }
 0x3cd   : > { %v4803_v8 = vadd.f32 %v4802_v37, %v13677_v40  ;;  %v4868_v13 = vpop.f32.mrf.mxu1 }
 0x3ce   : > { %v4982_v10 = vpop.f32.mrf.mxu3 }
 0x3cf   : > { %v4863_v16 = vadd.f32 %v4862_v54, %v4803_v8  ;;  %5337 = vmatmul.f32.vlgmr.msrb.gmra.mxu0 %v13631_v7  ;;  %5391 = vmatmul.f32.gmra.mxu1 %v13649_v49 }
 0x3d1   : > { %v4932_v27 = vadd.f32 %v4931_v55, %v4863_v16  ;;  %5449 = vmatmul.f32.gmra.mxu2 %v13690_v60 }
 0x3d3   : > { %v13837_v9 = vadd.f32 %v4982_v10, %v4932_v27  ;;  %5527 = vmatmul.f32.gmra.mxu3 %v13649_v49 }
 0x3d4   : > { %v4807_v47 = vpop.f32.mrf.mxu0  ;;  %v4935_v45 = vpop.f32.mrf.mxu2 }
 0x3d5   : > { %16516 = vst [vmem:[#allocation129_spill] sm:$0xff] %v13837_v9  ;;  %v4808_v1 = vadd.f32 %v4807_v47, %v13701_v26  ;;  %v4874_v56 = vpop.f32.mrf.mxu1 }
 0x3d6   : > { %v4986_v40 = vpop.f32.mrf.mxu3 }
 0x3d7   : > { %v4869_v37 = vadd.f32 %v4868_v13, %v4808_v1  ;;  %5341 = vmatmul.f32.gmra.mxu0 %v13649_v49  ;;  %5395 = vmatmul.f32.gmra.mxu1 %v13671_v52 }
 0x3d9   : > { %v4936_v8 = vadd.f32 %v4935_v45, %v4869_v37  ;;  %5457 = vmatmul.f32.gmra.mxu2 %v13714_v57 }
 0x3db   : > { %v13844_v55 = vadd.f32 %v4986_v40, %v4936_v8  ;;  %5531 = vmatmul.f32.gmra.mxu3 %v13671_v52 }
 0x3dc   : > { %v4812_v54 = vpop.f32.mrf.mxu0  ;;  %v4939_v60 = vpop.f32.mrf.mxu2 }
 0x3dd   : > { %16517 = vst [vmem:[#allocation130_spill] sm:$0xff] %v13844_v55  ;;  %v4813_v10 = vadd.f32 %v4812_v54, %v13725_v20  ;;  %v4880_v16 = vpop.f32.mrf.mxu1 }
 0x3de   : > { %v4990_v26 = vpop.f32.mrf.mxu3 }
 0x3df   : > { %v4875_v27 = vadd.f32 %v4874_v56, %v4813_v10  ;;  %5345 = vmatmul.f32.gmra.mxu0 %v13671_v52  ;;  %5399 = vmatmul.f32.gmra.mxu1 %v13695_v33 }
 0x3e1   : > { %v4940_v13 = vadd.f32 %v4939_v60, %v4875_v27  ;;  %5465 = vmatmul.f32.gmra.mxu2 %v13738_v11 }
 0x3e3   : > { %v13851_v47 = vadd.f32 %v4990_v26, %v4940_v13  ;;  %5535 = vmatmul.f32.gmra.mxu3 %v13695_v33 }
 0x3e4   : > { %v4817_v57 = vpop.f32.mrf.mxu0  ;;  %v4943_v45 = vpop.f32.mrf.mxu2 }
 0x3e5   : > { %16518 = vst [vmem:[#allocation131_spill] sm:$0xff] %v13851_v47  ;;  %v4818_v1 = vadd.f32 %v4817_v57, %v13749_v58  ;;  %v4886_v40 = vpop.f32.mrf.mxu1 }
 0x3e6   : > { %v4994_v20 = vpop.f32.mrf.mxu3 }
 0x3e7   : > { %v4881_v37 = vadd.f32 %v4880_v16, %v4818_v1  ;;  %5349 = vmatmul.f32.gmra.mxu0 %v13695_v33  ;;  %5403 = vmatmul.f32.gmra.mxu1 %v13719_v59 }
 0x3e9   : > { %v4944_v56 = vadd.f32 %v4943_v45, %v4881_v37  ;;  %5473 = vmatmul.f32.gmra.mxu2 %v13762_v34 }
 0x3eb   : > { %v13858_v8 = vadd.f32 %v4994_v20, %v4944_v56  ;;  %5539 = vmatmul.f32.gmra.mxu3 %v13719_v59 }
 0x3ec   : > { %v4822_v11 = vpop.f32.mrf.mxu0  ;;  %v4947_v54 = vpop.f32.mrf.mxu2 }
 0x3ed   : > { %16519 = vst [vmem:[#allocation132_spill] sm:$0xff] %v13858_v8  ;;  %v4823_v60 = vadd.f32 %v4822_v11, %v13773_v42  ;;  %v4892_v10 = vpop.f32.mrf.mxu1 }
 0x3ee   : > { %v4998_v58 = vpop.f32.mrf.mxu3 }
 0x3ef   : > { %v4887_v26 = vadd.f32 %v4886_v40, %v4823_v60  ;;  %5353 = vmatmul.f32.gmra.mxu0 %v13719_v59  ;;  %5407 = vmatmul.f32.gmra.mxu1 %v13743_v36 }
 0x3f1   : > { %v4948_v16 = vadd.f32 %v4947_v54, %v4887_v26  ;;  %5481 = vmatmul.f32.gmra.mxu2 %v13785_v0 }
 0x3f3   : > { %v13865_v27 = vadd.f32 %v4998_v58, %v4948_v16  ;;  %5543 = vmatmul.f32.gmra.mxu3 %v13743_v36 }
 0x3f4   : > { %v4827_v34 = vpop.f32.mrf.mxu0  ;;  %v4951_v13 = vpop.f32.mrf.mxu2 }
 0x3f5   : > { %16520 = vst [vmem:[#allocation133_spill] sm:$0xff] %v13865_v27  ;;  %v4828_v57 = vadd.f32 %v4827_v34, %v13796_v50  ;;  %v4898_v45 = vpop.f32.mrf.mxu1 }
 0x3f6   : > { %v5002_v42 = vpop.f32.mrf.mxu3 }
 0x3f7   : > { %v4893_v1 = vadd.f32 %v4892_v10, %v4828_v57  ;;  %5357 = vmatmul.f32.gmra.mxu0 %v13743_v36  ;;  %5411 = vmatmul.f32.gmra.mxu1 %v13767_v24 }
 0x3f9   : > { %v4952_v40 = vadd.f32 %v4951_v13, %v4893_v1  ;;  %5489 = vmatmul.f32.gmra.mxu2 %v13807_v18 }
 0x3fb   : > { %v13872_v20 = vadd.f32 %v5002_v42, %v4952_v40  ;;  %5547 = vmatmul.f32.gmra.mxu3 %v13767_v24 }
 0x3fc   : > { %v4832_v0 = vpop.f32.mrf.mxu0  ;;  %v4955_v37 = vpop.f32.mrf.mxu2 }
 0x3fd   : > { %16521 = vst [vmem:[#allocation134_spill] sm:$0xff] %v13872_v20  ;;  %v4833_v56 = vadd.f32 %v4832_v0, %v13814_v62  ;;  %v4904_v11 = vpop.f32.mrf.mxu1 }
 0x3fe   : > { %v5006_v50 = vpop.f32.mrf.mxu3 }
 0x3ff   : > { %v4899_v54 = vadd.f32 %v4898_v45, %v4833_v56  ;;  %5361 = vmatmul.f32.gmra.mxu0 %v13767_v24  ;;  %5415 = vmatmul.f32.gmra.mxu1 %v13790_v29 }
 0x401   : > { %v4956_v60 = vadd.f32 %v4955_v37, %v4899_v54  ;;  %5497 = vmatmul.f32.gmra.mxu2 %v13822_v2 }
 0x403   : > { %v13879_v10 = vadd.f32 %v5006_v50, %v4956_v60  ;;  %5551 = vmatmul.f32.gmra.mxu3 %v13790_v29 }
 0x404   : > { %v4837_v18 = vpop.f32.mrf.mxu0  ;;  %v4959_v58 = vpop.f32.mrf.mxu2 }
 0x405   : > { %16522 = vst [vmem:[#allocation135_spill] sm:$0xff] %v13879_v10  ;;  %v4838_v26 = vadd.f32 %v4837_v18, %v13827_v17  ;;  %v13883_v16 = vpop.f32.mrf.mxu1 }
 0x406   : > { %v5010_v62 = vpop.f32.mrf.mxu3 }
 0x407   : > { %v4905_v34 = vadd.f32 %v4904_v11, %v4838_v26  ;;  %5365 = vmatmul.f32.gmra.mxu0 %v13790_v29  ;;  %5634 = vmatmul.f32.vlgmr.msra.gmra.mxu1 %v13647_v32 }
 0x409   : > { %v4960_v13 = vadd.f32 %v4959_v58, %v4905_v34  ;;  %5700 = vmatmul.f32.vlgmr.msra.gmra.mxu2 %v13631_v7 }
 0x40b   : > { %v13888_v2 = vadd.f32 %v5010_v62, %v4960_v13  ;;  %5750 = vmatmul.f32.vlgmr.msra.gmra.mxu3 %v13631_v7 }
 0x40c   : > { %v5079_v57 = vpop.f32.mrf.mxu0  ;;  %v13891_v45 = vpop.f32.mrf.mxu2 }
 0x40d   : > { %16523 = vst [vmem:[#allocation136_spill] sm:$0xff] %v13888_v2  ;;  %v5165_v42 = vpop.f32.mrf.mxu1 }
 0x40e   : > { %v13893_v17 = vpop.f32.mrf.mxu3 }
 0x40f   : > { %5575 = vmatmul.f32.vlgmr.msra.gmra.mxu0 %v13640_v53  ;;  %5640 = vmatmul.f32.gmra.mxu1 %v13669_v48 }
 0x411   : > { %5704 = vmatmul.f32.gmra.mxu2 %v13649_v49 }
 0x413   : > { %5754 = vmatmul.f32.gmra.mxu3 %v13649_v49 }
 0x414   : > { %v5087_v32 = vpop.f32.mrf.mxu0  ;;  %v13899_v1 = vpop.f32.mrf.mxu2 }
 0x415   : > { %v13901_v40 = vadd.f32 %v5165_v42, %v5087_v32  ;;  %v5169_v7 = vpop.f32.mrf.mxu1 }
 0x416   : > { %v13903_v0 = vpop.f32.mrf.mxu3 }
 0x417   : > { %5580 = vmatmul.f32.gmra.mxu0 %v13658_v31  ;;  %5646 = vmatmul.f32.gmra.mxu1 %v13693_v14 }
 0x419   : > { %5708 = vmatmul.f32.gmra.mxu2 %v13671_v52 }
 0x41b   : > { %5758 = vmatmul.f32.gmra.mxu3 %v13671_v52 }
 0x41c   : > { %v5095_v53 = vpop.f32.mrf.mxu0  ;;  %v13909_v48 = vpop.f32.mrf.mxu2 }
 0x41d   : > { %v13911_v49 = vadd.f32 %v5169_v7, %v5095_v53  ;;  %v5173_v37 = vpop.f32.mrf.mxu1 }
 0x41e   : > { %v13913_v56 = vpop.f32.mrf.mxu3 }
 0x41f   : > { %5585 = vmatmul.f32.gmra.mxu0 %v13684_v12  ;;  %5652 = vmatmul.f32.gmra.mxu1 %v13717_v5 }
 0x421   : > { %5712 = vmatmul.f32.gmra.mxu2 %v13695_v33 }
 0x423   : > { %5762 = vmatmul.f32.gmra.mxu3 %v13695_v33 }
 0x424   : > { %v5103_v31 = vpop.f32.mrf.mxu0  ;;  %v13919_v14 = vpop.f32.mrf.mxu2 }
 0x425   : > { %v13921_v52 = vadd.f32 %v5173_v37, %v5103_v31  ;;  %v5177_v11 = vpop.f32.mrf.mxu1  ;;  %v3593_v37 = vadd.f32 %v12992_v21, %v13001_v39  ;;  %v3609_v31 = vadd.f32 %v13075_v22, %v13093_v6  ;;  %v16533_v6 = vld [vmem:[#allocation8_spill] sm:$0xff] }
 0x426   : > { %v13923_v50 = vpop.f32.mrf.mxu3 }
 0x427   : > { %5590 = vmatmul.f32.gmra.mxu0 %v13708_v44  ;;  %5658 = vmatmul.f32.gmra.mxu1 %v13741_v15  ;;  %v3647_v39 = vadd.f32 %v13003_v35, %v3593_v37  ;;  %v16537_v35 = vld [vmem:[#allocation13_spill] sm:$0xff] }
 0x429   : > { %5716 = vmatmul.f32.gmra.mxu2 %v13719_v59 }
 0x42b   : > { %5766 = vmatmul.f32.gmra.mxu3 %v13719_v59 }
 0x42c   : > { %v5111_v12 = vpop.f32.mrf.mxu0  ;;  %v13929_v5 = vpop.f32.mrf.mxu2 }
 0x42d   : > { %v13931_v33 = vadd.f32 %v5177_v11, %v5111_v12  ;;  %v5181_v60 = vpop.f32.mrf.mxu1 }
 0x42e   : > { %v13933_v54 = vpop.f32.mrf.mxu3 }
 0x42f   : > { %5595 = vmatmul.f32.gmra.mxu0 %v13732_v43  ;;  %5664 = vmatmul.f32.gmra.mxu1 %v13765_v4 }
 0x431   : > { %5720 = vmatmul.f32.gmra.mxu2 %v13743_v36 }
 0x433   : > { %5770 = vmatmul.f32.gmra.mxu3 %v13743_v36 }
 0x434   : > { %v5119_v44 = vpop.f32.mrf.mxu0  ;;  %v13939_v15 = vpop.f32.mrf.mxu2 }
 0x435   : > { %v13941_v59 = vadd.f32 %v5181_v60, %v5119_v44  ;;  %v5185_v58 = vpop.f32.mrf.mxu1  ;;  %v3667_v60 = vadd.f32 %v16533_v6, %v3609_v31 }
 0x436   : > { %v13943_v18 = vpop.f32.mrf.mxu3 }
 0x437   : > { %16524 = vst [vmem:[#allocation137_spill] sm:$0xff] %v13943_v18  ;;  %5600 = vmatmul.f32.gmra.mxu0 %v13756_v25  ;;  %5670 = vmatmul.f32.gmra.mxu1 %v13788_v41  ;;  %v5162_v41 = vadd.f32 %v13883_v16, %v5079_v57 }
 0x439   : > { %5724 = vmatmul.f32.gmra.mxu2 %v13767_v24  ;;  %v5214_v42 = vadd.f32 %v13891_v45, %v5162_v41  ;;  %v3601_v45 = vadd.f32 %v13031_v46, %v13047_v23  ;;  %v16532_v23 = vld [vmem:[#allocation6_spill] sm:$0xff]  ;;  %v16535_v41 = vld [vmem:[#allocation9_spill] sm:$0xff] }
 0x43b   : > { %5774 = vmatmul.f32.gmra.mxu3 %v13767_v24 }
 0x43c   : > { %v5127_v43 = vpop.f32.mrf.mxu0  ;;  %v13949_v4 = vpop.f32.mrf.mxu2 }
 0x43d   : > { %v13951_v36 = vadd.f32 %v5185_v58, %v5127_v43  ;;  %v5189_v25 = vpop.f32.mrf.mxu1 }
 0x43e   : > { %v13953_v26 = vpop.f32.mrf.mxu3 }
 0x43f   : > { %16525 = vst [vmem:[#allocation138_spill] sm:$0xff] %v13953_v26  ;;  %5605 = vmatmul.f32.gmra.mxu0 %v13780_v38  ;;  %5676 = vmatmul.f32.gmra.mxu1 %v13810_v61  ;;  %v5273_v61 = vadd.f32 %v13893_v17, %v5214_v42  ;;  %v3605_v17 = vadd.f32 %v13054_v3, %v13070_v19 }
 0x441   : > { %5728 = vmatmul.f32.gmra.mxu2 %v13790_v29  ;;  %v3662_v3 = vadd.f32 %v16532_v23, %v3605_v17  ;;  %v16541_v17 = vld [vmem:[#allocation5_spill] sm:$0xff]  ;;  %v16545_v23 = vld [vmem:[#allocation10_spill] sm:$0xff] }
 0x443   : > { %5778 = vmatmul.f32.gmra.mxu3 %v13790_v29  ;;  %v5219_v29 = vadd.f32 %v13899_v1, %v13901_v40 }
 0x444   : > { %v5135_v62 = vpop.f32.mrf.mxu0  ;;  %v13962_v34 = vpop.f32.mrf.mxu2 }
 0x445   : > { %v13960_v24 = vadd.f32 %v5189_v25, %v5135_v62  ;;  %16527 = vst [vmem:[#allocation140_spill] sm:$0xff] %v13962_v34  ;;  %v5388_v38 = vpop.f32.mrf.mxu1  ;;  %v5279_v40 = vadd.f32 %v13903_v0, %v5219_v29  ;;  %v16534_v25 = vld [vmem:[#allocation11_spill] sm:$0xff]  ;;  %v16539_v29 = vld [vmem:[#allocation2_spill] sm:$0xff] }
 0x446   : > { %v13964_v13 = vpop.f32.mrf.mxu3  ;;  %v3613_v62 = vadd.f32 %v16535_v41, %v16534_v25  ;;  %v3707_v37 = vadd.f32 %v16539_v29, %v3647_v39  ;;  %v16550_v25 = vld [vmem:[#allocation23_spill] sm:$0xff] }
 0x447   : > { %16526 = vst [vmem:[#allocation139_spill] sm:$0xff] %v13960_v24  ;;  %5610 = vmatmul.f32.gmra.mxu0 %v13803_v28  ;;  %v3597_v28 = vadd.f32 %v13007_v51, %v13021_v30  ;;  %v16531_v30 = vld [vmem:[#allocation4_spill] sm:$0xff] }
 0x448   : > { %16528 = vst [vmem:[#allocation141_spill] sm:$0xff] %v13964_v13  ;;  %v3657_v46 = vadd.f32 %v16531_v30, %v3601_v45  ;;  %v14025_v41 = vadd.f32 %v16550_v25, %v3707_v37  ;;  %v16559_v25 = vmov 2131351028  }
 0x449   : > { %v3652_v51 = vadd.f32 %v13023_v63, %v3597_v28  ;;  %v16540_v28 = vld [vmem:[#allocation3_spill] sm:$0xff] }
 0x44a   : > { %v3719_v31 = vadd.f32 %v16541_v17, %v3657_v46  ;;  %v16548_v46 = vld [vmem:[#allocation16_spill] sm:$0xff]  ;;  %v16556_v17 = vld [vmem:[#allocation89_spill] sm:$0xff] }
 0x44b   : > { %v3713_v45 = vadd.f32 %v16540_v28, %v3652_v51  ;;  %v16555_v28 = vld [vmem:[#allocation91_spill] sm:$0xff] }
 0x44c   : > { %v5338_v32 = vpop.f32.mrf.mxu0  ;;  %v13969_v53 = vpop.f32.mrf.mxu2 }
 0x44d   : > { %v5339_v7 = vadd.f32 %v5338_v32, %v5273_v61  ;;  %16529 = vst [vmem:[#allocation142_spill] sm:$0xff] %v13969_v53  ;;  %v5392_v22 = vpop.f32.mrf.mxu1 }
 0x44e   : > { %v13971_v16 = vpop.f32.mrf.mxu3 }
 0x44f   : > { %16530 = vst [vmem:[#allocation143_spill] sm:$0xff] %v13971_v16  ;;  %v13975_v57 = vadd.f32 %v5388_v38, %v5339_v7  ;;  %v16536_v38 = vld [vmem:[#allocation15_spill] sm:$0xff] }
 0x450   : > { %v3617_v61 = vadd.f32 %v16537_v35, %v16536_v38 }
 0x451   : > { %v16363_v11 = vand.u32 2147483647, %v13975_v57  ;;  %v5785_v1 = vand.u32 2139095040, %v13975_v57 }
 0x453   : > { %v5786_v12 = vshrl.u32 %v5785_v1, 23  ;;  %v5789_v21 = vand.u32 8388607, %v16363_v11  ;;  %v16542_v1 = vld [vmem:[#allocation87_spill] sm:$0xff]  ;;  %v16562_v11 = vmov 1326507024  }
 0x454   : > { %v5342_v19 = vpop.f32.mrf.mxu0  ;;  %v5450_v0 = vpop.f32.mrf.mxu2 }
 0x455   : > { %v10959_v44 = vadd.s32 4294967169, %v5786_v12  ;;  %v5790_v58 = vor.u32 8388608, %v5789_v21  ;;  %v5343_v43 = vadd.f32 %v5342_v19, %v5279_v40  ;;  %v16543_v40 = vld [vmem:[#allocation85_spill] sm:$0xff]  ;;  %v16544_v21 = vld [vmem:[#allocation7_spill] sm:$0xff]  ;;  %v14012_v19 = vadd.f32 %v16545_v23, %v3667_v60 }
 0x456   : > { %v5528_v42 = vpop.f32.mrf.mxu3  ;;  %v4373_v12 = vadd.f32 %v16543_v40, %v16542_v1  ;;  %v3725_v30 = vadd.f32 %v16544_v21, %v3662_v3  ;;  %v16551_v3 = vld [vmem:[#allocation27_spill] sm:$0xff]  ;;  %v16557_v23 = vmov 683565275  }
 0x457   : > { %v5792_v63 = vadd.s32 1, %v10959_v44  ;;  %v14001_v32 = vadd.f32 %v5392_v22, %v5343_v43  ;;  %v14003_v7 = vadd.f32 %v5528_v42, %v5450_v0  ;;  %v14014_v6 = vshll.u32 %v5790_v58, 8  ;;  %v16546_v22 = vld [vmem:[#allocation12_spill] sm:$0xff]  ;;  %v16552_v58 = vld [vmem:[#allocation31_spill] sm:$0xff] }
 0x458   : > { %v14017_v44 = vadd.f32 %v16546_v22, %v3613_v62  ;;  %v14022_v0 = vadd.f32 %v16548_v46, %v3617_v61  ;;  %v14028_v60 = vadd.f32 %v16551_v3, %v3713_v45  ;;  %v14031_v38 = vadd.f32 %v16552_v58, %v3719_v31  ;;  %v16553_v62 = vld [vmem:[#allocation35_spill] sm:$0xff] }
 0x459   : > { %16538 = vst [vmem:[#allocation4_spill] sm:$0xff] %v14003_v7  ;;  %vm5793_vm6 = vcmp.gt.s32.totalorder %v5792_v63, 0  ;;  %v16364_v39 = vand.u32 2147483647, %v14001_v32  ;;  %v6093_v51 = vand.u32 2139095040, %v14001_v32  ;;  %v14034_v35 = vadd.f32 %v16553_v62, %v3725_v30 }
 0x45a   : > { %16547 = vst [vmem:[#allocation6_spill] sm:$0xff] %v14017_v44  ;;  %v5794_v43 = vsel %vm5793_vm6, %v5792_v63, 0  ;;  %v16554_v63 = vld [vmem:[#allocation88_spill] sm:$0xff]  ;;  %v4377_v61 = vadd.f32 %v16556_v17, %v16555_v28  ;;  %v5831_v37 = vand.u32 65535, %v14014_v6  ;;  %v5832_v40 = vshrl.u32 %v14014_v6, 16  ;;  %v16576_v44 = vld [vmem:[#allocation115_spill] sm:$0xff] }
 0x45b   : > { %16549 = vst [vmem:[#allocation8_spill] sm:$0xff] %v14022_v0  ;;  %v5796_v42 = vand.u32 31, %v5794_v43  ;;  %v14037_v29 = vadd.f32 %v16554_v63, %v4373_v12  ;;  %v6094_v45 = vshrl.u32 %v6093_v51, 23  ;;  %v5795_v21 = vshrl.u32 %v5794_v43, 5 }
 0x45c   : > { %v16558_v31 = vmov 2475754826   ;;  %v14047_v30 = vand.u32 8388607, %v16364_v39  ;;  %v16560_v62 = vmov 2102212464  }
 0x45d   : > { %v5797_v1 = vsub.s32 32, %v5796_v42  ;;  %v5799_v22 = vshll.u32 %v16557_v23, %v5796_v42  ;;  %v5802_v46 = vshll.u32 %v16558_v31, %v5796_v42  ;;  %v5805_v58 = vshll.u32 %v16559_v25, %v5796_v42 }
 0x45e   : > { %v5808_v28 = vshll.u32 %v16560_v62, %v5796_v42  ;;  %v16561_v51 = vmov 920167782   ;;  %v10965_v27 = vadd.s32 4294967169, %v6094_v45  ;;  %vm5814_vm10 = vcmp.lt.s32.totalorder %v5795_v21, 1 }
 0x45f   : > { %v5800_v12 = vshrl.u32 %v16558_v31, %v5797_v1  ;;  %v5803_v3 = vshrl.u32 %v16559_v25, %v5797_v1  ;;  %v5806_v63 = vshrl.u32 %v16560_v62, %v5797_v1  ;;  %v5809_v43 = vshrl.u32 %v16561_v51, %v5797_v1 }
 0x460   : > { %v5811_v17 = vshll.u32 %v16561_v51, %v5796_v42  ;;  %v5812_v2 = vshrl.u32 %v16562_v11, %v5797_v1  ;;  %vm5817_vm12 = vcmp.lt.s32.totalorder %v5795_v21, 4  ;;  %v5798_v55 = vshrl.u32 %v16557_v23, %v5797_v1 }
 0x461   : > { %v5801_v10 = vor.u32 %v5800_v12, %v5799_v22  ;;  %v5804_v20 = vor.u32 %v5803_v3, %v5802_v46  ;;  %v5807_v39 = vor.u32 %v5806_v63, %v5805_v58  ;;  %v5810_v8 = vor.u32 %v5809_v43, %v5808_v28  ;;  %v16563_v63 = vld [vmem:[#allocation92_spill] sm:$0xff]  ;;  %v16564_v43 = vld [vmem:[#allocation95_spill] sm:$0xff] }
 0x462   : > { %v5813_v47 = vor.u32 %v5812_v2, %v5811_v17  ;;  %vm5816_vm13 = vcmp.lt.s32.totalorder %v5795_v21, 3  ;;  %v6100_v0 = vadd.s32 1, %v10965_v27  ;;  %vm5815_vm15 = vcmp.lt.s32.totalorder %v5795_v21, 2 }
 0x463   : > { %v5819_v9 = vsel %vm5817_vm12, %v5807_v39, 2102212464  ;;  %v5822_v7 = vsel %vm5814_vm10, %v5801_v10, %v5804_v20  ;;  %v5826_v16 = vsel %vm5814_vm10, %v5804_v20, %v5807_v39  ;;  %v5823_v53 = vsel %vm5817_vm12, %v5810_v8, 920167782 }
 0x464   : > { %v5827_v13 = vsel %vm5817_vm12, %v5813_v47, 1326507024  ;;  %v5818_v42 = vsel %vm5814_vm10, %v5798_v55, %v5801_v10  ;;  %v5824_v34 = vsel %vm5816_vm13, %v5807_v39, %v5823_v53  ;;  %v5820_v46 = vsel %vm5816_vm13, %v5804_v20, %v5819_v9  ;;  %v16565_v47 = vld [vmem:[#allocation93_spill] sm:$0xff] }
 0x465   : > { %v5828_v22 = vsel %vm5816_vm13, %v5810_v8, %v5827_v13  ;;  %v5825_v45 = vsel %vm5815_vm15, %v5822_v7, %v5824_v34  ;;  %vm6101_vm0 = vcmp.gt.s32.totalorder %v6100_v0, 0  ;;  %v14061_v28 = vadd.f32 %v16563_v63, %v4377_v61 }
 0x466   : > { %v5829_v2 = vsel %vm5815_vm15, %v5826_v16, %v5828_v22  ;;  %v5855_v1 = vand.u32 65535, %v5825_v45  ;;  %v5856_v58 = vshrl.u32 %v5825_v45, 16  ;;  %v4381_v27 = vadd.f32 %v16565_v47, %v16564_v43 }
 0x467   : > { %v5833_v12 = vand.u32 65535, %v5829_v2  ;;  %v5834_v3 = vshrl.u32 %v5829_v2, 16  ;;  %v5224_v55 = vadd.f32 %v13909_v48, %v13911_v49  ;;  %v6098_v9 = vor.u32 8388608, %v14047_v30 }
 0x468   : > { %v14069_v8 = vsel %vm5815_vm15, %v5818_v42, %v5820_v46  ;;  %v6102_v34 = vsel %vm6101_vm0, %v6100_v0, 0  ;;  %v5858_v16 = vmul.u32 %v5856_v58, %v5831_v37  ;;  %v5859_v7 = vmul.u32 %v5855_v1, %v5832_v40 }
 0x469   : > { %v5836_v20 = vmul.u32 %v5834_v3, %v5831_v37  ;;  %v5837_v10 = vmul.u32 %v5833_v12, %v5832_v40  ;;  %v5835_v13 = vmul.u32 %v5833_v12, %v5831_v37  ;;  %v5838_v53 = vmul.u32 %v5834_v3, %v5832_v40 }
 0x46a   : > { %v5857_v17 = vmul.u32 %v5855_v1, %v5831_v37  ;;  %v5860_v22 = vmul.u32 %v5856_v58, %v5832_v40  ;;  %v5861_v63 = vshll.u32 %v5858_v16, 16  ;;  %v5862_v48 = vshrl.u32 %v5858_v16, 16 }
 0x46b   : > { %v5839_v39 = vshll.u32 %v5836_v20, 16  ;;  %v5840_v61 = vshrl.u32 %v5836_v20, 16  ;;  %v5841_v45 = vshll.u32 %v5837_v10, 16  ;;  %v5842_v2 = vshrl.u32 %v5837_v10, 16 }
 0x46c   : > { %v5863_v21 = vshll.u32 %v5859_v7, 16  ;;  %v6104_v30 = vand.u32 31, %v6102_v34  ;;  %v16566_v42 = vmov 0   ;;  %v5864_v43 = vshrl.u32 %v5859_v7, 16 }
 0x46d   : > { %vm5843_vm3 = vc.u32 %v5835_v13, %v5839_v39  ;;  %v5845_v49 = vadd.s32 %v5839_v39, %v5835_v13  ;;  %vm5865_vm4 = vc.u32 %v5857_v17, %v5861_v63  ;;  %v5867_v0 = vadd.s32 %v5861_v63, %v5857_v17 }
 0x46e   : > { %v5844_v46 = vsel %vm5843_vm3, 1, %v16566_v42  ;;  %v5866_v3 = vsel %vm5865_vm4, 1, %v16566_v42  ;;  %v14073_v47 = vsub.s32 32, %v6104_v30  ;;  %v14076_v1 = vshrl.u32 %v6102_v34, 5 }
 0x46f   : > { %v5846_v12 = vadd.s32 %v5844_v46, %v5838_v53  ;;  %vm5847_vm1 = vc.u32 %v5845_v49, %v5841_v45  ;;  %v5868_v40 = vadd.s32 %v5866_v3, %v5860_v22  ;;  %vm5869_vm2 = vc.u32 %v5867_v0, %v5863_v21 }
 0x470   : > { %v5848_v37 = vsel %vm5847_vm1, 1, %v16566_v42  ;;  %v5870_v20 = vsel %vm5869_vm2, 1, %v16566_v42  ;;  %v14079_v10 = vadd.s32 %v5867_v0, %v5863_v21  ;;  %v6107_v13 = vshll.u32 %v16557_v23, %v6104_v30 }
 0x471   : > { %v5850_v58 = vadd.s32 %v5848_v37, %v5846_v12  ;;  %v5872_v16 = vadd.s32 %v5870_v20, %v5868_v40  ;;  %v6108_v53 = vshrl.u32 %v16558_v31, %v14073_v47  ;;  %v6110_v7 = vshll.u32 %v16558_v31, %v6104_v30  ;;  %v16567_v37 = vld [vmem:[#allocation96_spill] sm:$0xff] }
 0x472   : > { %v6111_v39 = vshrl.u32 %v16559_v25, %v14073_v47  ;;  %v6113_v34 = vshll.u32 %v16559_v25, %v6104_v30  ;;  %v6114_v22 = vshrl.u32 %v16560_v62, %v14073_v47  ;;  %v6116_v45 = vshll.u32 %v16560_v62, %v6104_v30 }
 0x473   : > { %v5851_v17 = vadd.s32 %v5850_v58, %v5840_v61  ;;  %v5873_v63 = vadd.s32 %v5872_v16, %v5862_v48  ;;  %v14091_v49 = vor.u32 %v6108_v53, %v6107_v13  ;;  %v6117_v46 = vshrl.u32 %v16561_v51, %v14073_v47  ;;  %v5346_v53 = vpop.f32.mrf.mxu0 }
 0x474   : > { %v14093_v21 = vor.u32 %v6111_v39, %v6110_v7  ;;  %v14099_v12 = vor.u32 %v6114_v22, %v6113_v34  ;;  %v6119_v61 = vshll.u32 %v16561_v51, %v6104_v30  ;;  %v6120_v3 = vshrl.u32 %v16562_v11, %v14073_v47 }
 0x475   : > { %v14097_v0 = vadd.s32 %v5851_v17, %v5842_v2  ;;  %v4437_v40 = vadd.f32 %v16567_v37, %v4381_v27  ;;  %v5285_v48 = vadd.f32 %v13913_v56, %v5224_v55  ;;  %v5874_v58 = vadd.s32 %v5873_v63, %v5864_v43  ;;  %v16569_v37 = vld [vmem:[#allocation25_spill] sm:$0xff] }
 0x476   : > { %v6118_v20 = vor.u32 %v6117_v46, %v6116_v45  ;;  %v6121_v13 = vor.u32 %v6120_v3, %v6119_v61  ;;  %vm6122_vm8 = vcmp.lt.s32.totalorder %v14076_v1, 1  ;;  %v14109_v2 = vshll.u32 %v6098_v9, 8  ;;  %v16568_v61 = vld [vmem:[#allocation21_spill] sm:$0xff] }
 0x477   : > { %vm5877_vm7 = vc.u32 %v14097_v0, %v14079_v10  ;;  %v5875_v30 = vmul.u32 %v14014_v6, %v14069_v8  ;;  %v5878_v16 = vadd.s32 1, %v5874_v58  ;;  %vm6125_vm9 = vcmp.lt.s32.totalorder %v14076_v1, 4 }
 0x478   : > { %v6130_v56 = vsel %vm6122_vm8, %v14091_v49, %v14093_v21  ;;  %vm6124_vm14 = vcmp.lt.s32.totalorder %v14076_v1, 3  ;;  %v6131_v27 = vsel %vm6125_vm9, %v6118_v20, 920167782  ;;  %v6134_v55 = vsel %vm6122_vm8, %v14093_v21, %v14099_v12 }
 0x479   : > { %v6135_v6 = vsel %vm6125_vm9, %v6121_v13, 1326507024  ;;  %v5879_v9 = vsel %vm5877_vm7, %v5878_v16, %v5874_v58  ;;  %vm6123_vm11 = vcmp.lt.s32.totalorder %v14076_v1, 2  ;;  %v6132_v8 = vsel %vm6124_vm14, %v14099_v12, %v6131_v27  ;;  %v16584_v1 = vld [vmem:[#allocation119_spill] sm:$0xff] }
 0x47a   : > { %v6136_v43 = vsel %vm6124_vm14, %v6118_v20, %v6135_v6  ;;  %v5880_v7 = vadd.s32 %v5879_v9, %v5875_v30  ;;  %v6133_v39 = vsel %vm6123_vm11, %v6130_v56, %v6132_v8  ;;  %v6139_v34 = vand.u32 65535, %v14109_v2  ;;  %v16570_v30 = vld [vmem:[#allocation29_spill] sm:$0xff]  ;;  %v5396_v6 = vpop.f32.mrf.mxu1 }
 0x47b   : > { %v6137_v17 = vsel %vm6123_vm11, %v6134_v55, %v6136_v43  ;;  %v6140_v22 = vshrl.u32 %v14109_v2, 16  ;;  %v6164_v46 = vshrl.u32 %v6133_v39, 16  ;;  %v14141_v3 = vadd.f32 %v16568_v61, %v14025_v41  ;;  %v16571_v9 = vld [vmem:[#allocation33_spill] sm:$0xff]  ;;  %v16573_v41 = vld [vmem:[#allocation90_spill] sm:$0xff] }
 0x47c   : > { %v6141_v45 = vand.u32 65535, %v6137_v17  ;;  %v6142_v63 = vshrl.u32 %v6137_v17, 16  ;;  %v14145_v58 = vadd.f32 %v16569_v37, %v14028_v60  ;;  %v5881_v20 = vadd.s32 536870912, %v5880_v7 }
 0x47d   : > { %v5347_v13 = vadd.f32 %v5346_v53, %v5285_v48  ;;  %v14149_v16 = vadd.f32 %v16570_v30, %v14031_v38  ;;  %v6163_v55 = vand.u32 65535, %v6133_v39  ;;  %v14155_v8 = vadd.f32 %v16571_v9, %v14034_v35  ;;  %v16574_v48 = vld [vmem:[#allocation94_spill] sm:$0xff] }
 0x47e   : > { %v6144_v56 = vmul.u32 %v6142_v63, %v6139_v34  ;;  %v14151_v27 = vmul.u32 %v6141_v45, %v6140_v22  ;;  %v4487_v43 = vadd.f32 %v16573_v41, %v14037_v29  ;;  %v14159_v60 = vshrl.u32 %v5881_v20, 30  ;;  %v16575_v53 = vld [vmem:[#allocation98_spill] sm:$0xff] }
 0x47f   : > { %16572 = vst [vmem:[#allocation11_spill] sm:$0xff] %v14155_v8  ;;  %v14161_v17 = vmul.u32 %v6164_v46, %v6139_v34  ;;  %v4493_v38 = vadd.f32 %v16574_v48, %v14061_v28  ;;  %v14166_v61 = vadd.f32 %v16575_v53, %v4437_v40  ;;  %v6143_v37 = vmul.u32 %v6141_v45, %v6139_v34  ;;  %v16577_v48 = vld [vmem:[#allocation99_spill] sm:$0xff]  ;;  %v16578_v53 = vld [vmem:[#allocation97_spill] sm:$0xff] }
 0x480   : > { %v6147_v39 = vshll.u32 %v6144_v56, 16  ;;  %v5883_v30 = vshll.u32 %v14159_v60, 30  ;;  %v6146_v24 = vmul.u32 %v6142_v63, %v6140_v22  ;;  %v14170_v9 = vadd.f32 %v5396_v6, %v5347_v13  ;;  %v16579_v13 = vld [vmem:[#allocation103_spill] sm:$0xff]  ;;  %v16580_v6 = vld [vmem:[#allocation101_spill] sm:$0xff] }
 0x481   : > { %v6169_v35 = vshll.u32 %v14161_v17, 16  ;;  %v6149_v29 = vshll.u32 %v14151_v27, 16  ;;  %v6165_v41 = vmul.u32 %v6163_v55, %v6139_v34  ;;  %v4556_v8 = vadd.f32 %v16576_v44, %v4487_v43 }
 0x482   : > { %vm6151_vm5 = vc.u32 %v6143_v37, %v6147_v39  ;;  %v6153_v20 = vadd.s32 %v6147_v39, %v6143_v37  ;;  %v14174_v28 = vsub.s32 %v5880_v7, %v5883_v30  ;;  %v6167_v45 = vmul.u32 %v6163_v55, %v6140_v22  ;;  %v16581_v39 = vld [vmem:[#allocation114_spill] sm:$0xff] }
 0x483   : > { %v6152_v40 = vsel %vm6151_vm5, 1, %v16566_v42  ;;  %v14179_v26 = vadd.f32 %v16578_v53, %v16577_v48  ;;  %vm6173_vm10 = vc.u32 %v6165_v41, %v6169_v35  ;;  %v14183_v18 = vadd.f32 %v16580_v6, %v16579_v13  ;;  %v16582_v53 = vld [vmem:[#allocation117_spill] sm:$0xff]  ;;  %v5458_v6 = vpop.f32.mrf.mxu2 }
 0x484   : > { %v6154_v63 = vadd.s32 %v6152_v40, %v6146_v24  ;;  %vm6155_vm6 = vc.u32 %v6153_v20, %v6149_v29  ;;  %vm5885_vm12 = vcmp.lt.s32.totalorder %v14174_v28, 0  ;;  %v5886_v44 = vsub.s32 0, %v14174_v28 }
 0x485   : > { %v6168_v7 = vmul.u32 %v6164_v46, %v6140_v22  ;;  %v6156_v34 = vsel %vm6155_vm6, 1, %v16566_v42  ;;  %v6174_v55 = vsel %vm6173_vm10, 1, %v16566_v42  ;;  %v6175_v43 = vadd.s32 %v6169_v35, %v6165_v41 }
 0x486   : > { %v6401_v37 = vand.u32 2139095040, %v14170_v9  ;;  %v4607_v24 = vadd.f32 %v16581_v39, %v4556_v8  ;;  %v5887_v30 = vsel %vm5885_vm12, %v5886_v44, %v14174_v28  ;;  %v6127_v29 = vsel %vm6125_vm9, %v14099_v12, 2102212464  ;;  %v5532_v8 = vpop.f32.mrf.mxu3 }
 0x487   : > { %v6171_v20 = vshll.u32 %v6167_v45, 16  ;;  %v5888_v40 = vclz %v5887_v30  ;;  %v6106_v22 = vshrl.u32 %v16557_v23, %v14073_v47  ;;  %v6158_v46 = vadd.s32 %v6156_v34, %v6154_v63 }
 0x488   : > { %v6176_v48 = vadd.s32 %v6174_v55, %v6168_v7  ;;  %v4560_v13 = vadd.f32 %v16582_v53, %v4493_v38  ;;  %v6148_v35 = vshrl.u32 %v6144_v56, 16  ;;  %v6402_v41 = vshrl.u32 %v6401_v37, 23 }
 0x489   : > { %vm6177_vm13 = vc.u32 %v6175_v43, %v6171_v20  ;;  %v10960_v39 = vadd.s32 4294967294, %v5888_v40  ;;  %v6126_v44 = vsel %vm6122_vm8, %v6106_v22, %v14091_v49  ;;  %v6128_v12 = vsel %vm6124_vm14, %v14093_v21, %v6127_v29 }
 0x48a   : > { %v16365_v47 = vand.u32 2147483647, %v14170_v9  ;;  %v6150_v63 = vshrl.u32 %v14151_v27, 16  ;;  %v6159_v7 = vadd.s32 %v6158_v46, %v6148_v35  ;;  %v6178_v56 = vsel %vm6177_vm13, 1, %v16566_v42 }
 0x48b   : > { %v10971_v38 = vadd.s32 4294967169, %v6402_v41  ;;  %vm10961_vm15 = vcmp.lt.s32.totalorder %v10960_v39, 0  ;;  %v6170_v34 = vshrl.u32 %v14161_v17, 16  ;;  %v6180_v55 = vadd.s32 %v6178_v56, %v6176_v48 }
 0x48c   : > { %v14208_v37 = vadd.f32 %v5532_v8, %v5458_v6  ;;  %v5876_v49 = vadd.s32 %v14079_v10, %v14097_v0  ;;  %v5891_v30 = vsel %vm10961_vm15, 0, %v10960_v39  ;;  %v14212_v40 = vadd.s32 %v6159_v7, %v6150_v63  ;;  %v16583_v8 = vld [vmem:[#allocation116_spill] sm:$0xff] }
 0x48d   : > { %v6408_v21 = vadd.s32 1, %v10971_v38  ;;  %v5892_v29 = vsub.s32 32, %v5891_v30  ;;  %v5896_v22 = vsub.s32 4294967266, %v5891_v30  ;;  %v6172_v27 = vshrl.u32 %v6167_v45, 16 }
 0x48e   : > { %v6181_v46 = vadd.s32 %v6180_v55, %v6170_v34  ;;  %v5893_v53 = vshll.u32 %v14174_v28, %v5891_v30  ;;  %v6129_v35 = vsel %vm6123_vm11, %v6126_v44, %v6128_v12  ;;  %v14217_v17 = vadd.s32 %v6175_v43, %v6171_v20 }
 0x48f   : > { %vm6409_vm0 = vcmp.gt.s32.totalorder %v6408_v21, 0  ;;  %v5894_v48 = vshrl.u32 %v5876_v49, %v5892_v29  ;;  %v5897_v41 = vadd.s32 127, %v5896_v22  ;;  %v14220_v0 = vmul.f32 %v4607_v24, %v14141_v3 }
 0x490   : > { %v6182_v6 = vadd.s32 %v6181_v46, %v6172_v27  ;;  %v6410_v10 = vsel %vm6409_vm0, %v6408_v21, 0  ;;  %v14223_v39 = vadd.f32 %v16583_v8, %v4560_v13  ;;  %vm6185_vm3 = vc.u32 %v14212_v40, %v14217_v17 }
 0x491   : > { %v6412_v28 = vand.u32 31, %v6410_v10  ;;  %v14229_v45 = vadd.f32 %v16584_v1, %v14166_v61  ;;  %v5895_v43 = vor.u32 %v5894_v48, %v5893_v53  ;;  %v5898_v20 = vshll.u32 %v5897_v41, 23 }
 0x492   : > { %v6186_v44 = vadd.s32 1, %v6182_v6  ;;  %vm5784_vm4 = vcmp.lt.s32.totalorder %v13975_v57, 0  ;;  %v5906_v12 = vsub.s32 4, %v14159_v60  ;;  %v6183_v3 = vmul.u32 %v14109_v2, %v6129_v35 }
 0x493   : > { %v14234_v24 = vsub.s32 32, %v6412_v28  ;;  %v5899_v13 = vor.u32 4788187, %v5898_v20  ;;  %v6405_v7 = vand.u32 8388607, %v16365_v47  ;;  %v14238_v56 = vshrl.u32 %v6410_v10, 5 }
 0x494   : > { %v6187_v63 = vsel %vm6185_vm3, %v6186_v44, %v6182_v6  ;;  %v5902_v61 = vcvt.s32.f32 %v5895_v43  ;;  %v6424_v30 = vshll.u32 %v16560_v62, %v6412_v28  ;;  %v6415_v22 = vshll.u32 %v16557_v23, %v6412_v28 }
 0x495   : > { %v6188_v38 = vadd.s32 %v6187_v63, %v6183_v3  ;;  %v6416_v34 = vshrl.u32 %v16558_v31, %v14234_v24  ;;  %v6419_v55 = vshrl.u32 %v16559_v25, %v14234_v24  ;;  %v5900_v49 = vand.u32 2147483647, %v5899_v13 }
 0x496   : > { %v6422_v2 = vshrl.u32 %v16560_v62, %v14234_v24  ;;  %v6425_v21 = vshrl.u32 %v16561_v51, %v14234_v24  ;;  %v6418_v27 = vshll.u32 %v16558_v31, %v6412_v28  ;;  %v6428_v46 = vshrl.u32 %v16562_v11, %v14234_v24 }
 0x497   : > { %v6189_v29 = vadd.s32 536870912, %v6188_v38  ;;  %v5903_v53 = vmul.f32 %v5902_v61, %v5900_v49  ;;  %v6421_v35 = vshll.u32 %v16559_v25, %v6412_v28  ;;  %v6427_v41 = vshll.u32 %v16561_v51, %v6412_v28 }
 0x498   : > { %v6426_v48 = vor.u32 %v6425_v21, %v6424_v30  ;;  %v5907_v6 = vsel %vm5784_vm4, %v5906_v12, %v14159_v60  ;;  %v14260_v8 = vor.u32 %v6416_v34, %v6415_v22  ;;  %v14262_v1 = vor.u32 %v6419_v55, %v6418_v27 }
 0x499   : > { %v14258_v10 = vshrl.u32 %v6189_v29, 30  ;;  %v5904_v43 = vxor.u32 2147483648, %v5903_v53  ;;  %v14264_v20 = vor.u32 %v6422_v2, %v6421_v35  ;;  %v6429_v44 = vor.u32 %v6428_v46, %v6427_v41 }
 0x49a   : > { %vm6433_vm1 = vcmp.lt.s32.totalorder %v14238_v56, 4  ;;  %v5229_v3 = vadd.f32 %v13919_v14, %v13921_v52  ;;  %v16585_v28 = vand.u32 2147483647, %v13975_v57  ;;  %v5234_v13 = vadd.f32 %v13929_v5, %v13931_v33 }
 0x49b   : > { %v6191_v60 = vshll.u32 %v14258_v10, 30  ;;  %v6439_v12 = vsel %vm6433_vm1, %v6426_v48, 920167782  ;;  %v5905_v63 = vsel %vm5784_vm4, %v5904_v43, %v5903_v53  ;;  %v6406_v34 = vor.u32 8388608, %v6405_v7 }
 0x49c   : > { %vm5783_vm2 = vcmp.le.f32.partialorder %v16585_v28, 0.7853982  ;;  %vm6430_vm7 = vcmp.lt.s32.totalorder %v14238_v56, 1  ;;  %vm6432_vm8 = vcmp.lt.s32.totalorder %v14238_v56, 3  ;;  %v6443_v7 = vsel %vm6433_vm1, %v6429_v44, 1326507024 }
 0x49d   : > { %v5909_v61 = vsel %vm5783_vm2, 0, %v5907_v6  ;;  %v14279_v55 = vsel %vm5783_vm2, %v13975_v57, %v5905_v63  ;;  %v14281_v14 = vsub.s32 %v6188_v38, %v6191_v60  ;;  %v6438_v5 = vsel %vm6430_vm7, %v14260_v8, %v14262_v1 }
 0x49e   : > { %v5910_v52 = vmul.f32 %v14279_v55, %v14279_v55  ;;  %v6440_v33 = vsel %vm6432_vm8, %v14264_v20, %v6439_v12  ;;  %v8422_v38 = vadd.s32 3, %v5909_v61  ;;  %vm6431_vm14 = vcmp.lt.s32.totalorder %v14238_v56, 2 }
 0x49f   : > { %vm6193_vm9 = vcmp.lt.s32.totalorder %v14281_v14, 0  ;;  %v6194_v49 = vsub.s32 0, %v14281_v14  ;;  %v6442_v21 = vsel %vm6430_vm7, %v14262_v1, %v14264_v20  ;;  %v6444_v29 = vsel %vm6432_vm8, %v6426_v48, %v6443_v7 }
 0x4a0   : > { %v5911_v2 = vmul.f32 -0.001358992, %v5910_v52  ;;  %v5918_v30 = vmul.f32 -0.00019511016, %v5910_v52  ;;  %v5291_v22 = vadd.f32 %v13923_v50, %v5229_v3  ;;  %v14309_v46 = vsel %vm6431_vm14, %v6438_v5, %v6440_v33  ;;  %v5350_v3 = vpop.f32.mrf.mxu0 }
 0x4a1   : > { %v6195_v27 = vsel %vm6193_vm9, %v6194_v49, %v14281_v14  ;;  %v14311_v53 = vshll.u32 %v6406_v34, 8  ;;  %v14313_v6 = vand.u32 3, %v5909_v61  ;;  %v14316_v44 = vadd.f32 %v13933_v54, %v5234_v13 }
 0x4a2   : > { %v5912_v35 = vadd.f32 0.041655596, %v5911_v2  ;;  %v5919_v41 = vadd.f32 0.008332121, %v5918_v30  ;;  %v6196_v43 = vclz %v6195_v27  ;;  %v14318_v28 = vand.u32 3, %v8422_v38 }
 0x4a3   : > { %v6184_v50 = vadd.s32 %v14217_v17, %v14212_v40  ;;  %v6445_v48 = vsel %vm6431_vm14, %v6442_v21, %v6444_v29  ;;  %v16366_v34 = vshrl.u32 %v14309_v46, 16  ;;  %v6447_v61 = vand.u32 65535, %v14311_v53 }
 0x4a4   : > { %v5913_v60 = vmul.f32 %v5912_v35, %v5910_v52  ;;  %v5920_v12 = vmul.f32 %v5919_v41, %v5910_v52  ;;  %v10966_v63 = vadd.s32 4294967294, %v6196_v43  ;;  %v14327_v5 = vshrl.u32 %v14311_v53, 16 }
 0x4a5   : > { %v6449_v54 = vand.u32 65535, %v6445_v48  ;;  %v6450_v13 = vshrl.u32 %v6445_v48, 16  ;;  %vm5931_vm11 = vcmp.eq.s32.totalorder %v14313_v6, 2  ;;  %v14330_v40 = vadd.f32 %v5350_v3, %v5291_v22 }
 0x4a6   : > { %v5914_v33 = vadd.f32 -0.4999988, %v5913_v60  ;;  %v5921_v7 = vadd.f32 -0.16666654, %v5920_v12  ;;  %vm10967_vm5 = vcmp.lt.s32.totalorder %v10966_v63, 0  ;;  %vm5928_vm6 = vcmp.eq.s32.totalorder %v14313_v6, 0 }
 0x4a7   : > { %vm8425_vm10 = vcmp.eq.s32.totalorder %v14318_v28, 0  ;;  %vm8428_vm12 = vcmp.eq.s32.totalorder %v14318_v28, 2  ;;  %v6199_v17 = vsel %vm10967_vm5, 0, %v10966_v63  ;;  %v14335_v38 = vmul.u32 %v6450_v13, %v6447_v61 }
 0x4a8   : > { %v14338_v49 = vmul.u32 %v6449_v54, %v14327_v5  ;;  %v6471_v2 = vand.u32 65535, %v14309_v46  ;;  %v5915_v30 = vmul.f32 %v5914_v33, %v5910_v52  ;;  %v5922_v21 = vmul.f32 %v5921_v7, %v5910_v52 }
 0x4a9   : > { %vm5927_vm13 = vcmp.lt.s32.totalorder %v14313_v6, 2  ;;  %vm8424_vm15 = vcmp.lt.s32.totalorder %v14318_v28, 2  ;;  %v6200_v29 = vsub.s32 32, %v6199_v17  ;;  %v14345_v22 = vmul.u32 %v16366_v34, %v6447_v61  ;;  %v5466_v28 = vpop.f32.mrf.mxu2 }
 0x4aa   : > { %vm5925_vm0 = vweird.f32 %v13975_v57  ;;  %v6201_v27 = vshll.u32 %v14281_v14, %v6199_v17  ;;  %v6204_v35 = vsub.s32 4294967266, %v6199_v17  ;;  %v6451_v41 = vmul.u32 %v6449_v54, %v6447_v61 }
 0x4ab   : > { %v6455_v43 = vshll.u32 %v14335_v38, 16  ;;  %v5916_v48 = vadd.f32 1.0, %v5915_v30  ;;  %v5923_v3 = vadd.f32 1.0, %v5922_v21  ;;  %v6202_v52 = vshrl.u32 %v6184_v50, %v6200_v29 }
 0x4ac   : > { %v6454_v60 = vmul.u32 %v6450_v13, %v14327_v5  ;;  %v6205_v12 = vadd.s32 127, %v6204_v35  ;;  %v6457_v63 = vshll.u32 %v14338_v49, 16  ;;  %vm6092_vm4 = vcmp.lt.s32.totalorder %v14001_v32, 0 }
 0x4ad   : > { %vm6459_vm3 = vc.u32 %v6451_v41, %v6455_v43  ;;  %v6461_v33 = vadd.s32 %v6455_v43, %v6451_v41  ;;  %v5924_v7 = vmul.f32 %v5923_v3, %v14279_v55  ;;  %v5932_v47 = vxor.u32 2147483648, %v5916_v48 }
 0x4ae   : > { %v6203_v34 = vor.u32 %v6202_v52, %v6201_v27  ;;  %v6460_v14 = vsel %vm6459_vm3, 1, %v16566_v42  ;;  %v6206_v54 = vshll.u32 %v6205_v12, 23  ;;  %v6214_v17 = vsub.s32 4, %v14258_v10 }
 0x4af   : > { %v6462_v50 = vadd.s32 %v6460_v14, %v6454_v60  ;;  %vm6463_vm2 = vc.u32 %v6461_v33, %v6457_v63  ;;  %v5929_v13 = vxor.u32 2147483648, %v5924_v7  ;;  %v6456_v30 = vshrl.u32 %v14335_v38, 16  ;;  %v5400_v38 = vpop.f32.mrf.mxu1 }
 0x4b0   : > { %v6473_v21 = vmul.u32 %v6471_v2, %v6447_v61  ;;  %v14358_v29 = vmul.u32 %v6471_v2, %v14327_v5  ;;  %v5933_v55 = vsel %vm5931_vm11, %v5932_v47, %v5924_v7  ;;  %v16586_v27 = vand.u32 2147483647, %v14001_v32 }
 0x4b1   : > { %v6207_v41 = vor.u32 4788187, %v6206_v54  ;;  %v6464_v43 = vsel %vm6463_vm2, 1, %v16566_v42  ;;  %v6477_v3 = vshll.u32 %v14345_v22, 16  ;;  %v5930_v61 = vsel %vm5928_vm6, %v5916_v48, %v5929_v13 }
 0x4b2   : > { %vm14365_vm9 = vcmp.le.f32.partialorder %v16586_v27, 0.7853982  ;;  %v8427_v2 = vsel %vm8425_vm10, %v5916_v48, %v5929_v13  ;;  %v8430_v52 = vsel %vm8428_vm12, %v5932_v47, %v5924_v7  ;;  %v6210_v60 = vcvt.s32.f32 %v6203_v34  ;;  %v5536_v7 = vpop.f32.mrf.mxu3 }
 0x4b3   : > { %v5934_v12 = vsel %vm5927_vm13, %v5930_v61, %v5933_v55  ;;  %v8431_v63 = vsel %vm8424_vm15, %v8427_v2, %v8430_v52  ;;  %v6208_v33 = vand.u32 2147483647, %v6207_v41  ;;  %v6466_v14 = vadd.s32 %v6464_v43, %v6462_v50  ;;  %v5354_v52 = vpop.f32.mrf.mxu0 }
 0x4b4   : > { %v5935_v48 = vsel %vm5925_vm0, nan, %v5934_v12  ;;  %v8432_v47 = vsel %vm5925_vm0, nan, %v8431_v63  ;;  %v16589_v6 = vshrl.u32 %v14309_v46, 16  ;;  %vm6481_vm11 = vc.u32 %v6473_v21, %v6477_v3 }
 0x4b5   : > { %v8246_v54 = vmul.f32 %v5935_v48, %v14220_v0  ;;  %v10758_v50 = vmul.f32 %v8432_v47, %v14220_v0  ;;  %v6211_v13 = vmul.f32 %v6210_v60, %v6208_v33  ;;  %v6482_v57 = vsel %vm6481_vm11, 1, %v16566_v42  ;;  %v16590_v33 = vld [vmem:[#allocation118_spill] sm:$0xff] }
 0x4b6   : > { %v6476_v34 = vmul.u32 %v16589_v6, %v14327_v5  ;;  %v6414_v46 = vshrl.u32 %v16557_v23, %v14234_v24  ;;  %v6479_v5 = vshll.u32 %v14358_v29, 16  ;;  %v6483_v55 = vadd.s32 %v6477_v3, %v6473_v21 }
 0x4b7   : > { %8262 = vst [vmem:[%s14384_s7] sm:$0xff] %v8246_v54  ;;  %v6212_v41 = vxor.u32 2147483648, %v6211_v13  ;;  %v6467_v43 = vadd.s32 %v6466_v14, %v6456_v30  ;;  %v14406_v61 = vadd.f32 %v5400_v38, %v14330_v40  ;;  %v14408_v2 = vadd.f32 %v5536_v7, %v5466_v28  ;;  %v5404_v63 = vpop.f32.mrf.mxu1 }
 0x4b8   : > { %v6484_v27 = vadd.s32 %v6482_v57, %v6476_v34  ;;  %10774 = vst [vmem:[%s14396_s10] sm:$0xff] %v10758_v50  ;;  %v6215_v0 = vsel %vm6092_vm4, %v6214_v17, %v14258_v10  ;;  %v6434_v24 = vsel %vm6430_vm7, %v6414_v46, %v14260_v8  ;;  %v6435_v21 = vsel %vm6433_vm1, %v14264_v20, 2102212464 }
 0x4b9   : > { %vm6485_vm5 = vc.u32 %v6483_v55, %v6479_v5  ;;  %v6213_v40 = vsel %vm6092_vm4, %v6212_v41, %v6211_v13  ;;  %v6458_v30 = vshrl.u32 %v14338_v49, 16  ;;  %v6478_v3 = vshrl.u32 %v14345_v22, 16 }
 0x4ba   : > { %v6486_v38 = vsel %vm6485_vm5, 1, %v16566_v42  ;;  %v14428_v10 = vsel %vm14365_vm9, %v14001_v32, %v6213_v40  ;;  %v6706_v17 = vand.u32 2147483647, %v14406_v61  ;;  %v5355_v20 = vadd.f32 %v5354_v52, %v14316_v44 }
 0x4bb   : > { %v6488_v8 = vadd.s32 %v6486_v38, %v6484_v27  ;;  %v6218_v60 = vmul.f32 %v14428_v10, %v14428_v10  ;;  %v6436_v49 = vsel %vm6432_vm8, %v14262_v1, %v6435_v21  ;;  %v6468_v22 = vadd.s32 %v6467_v43, %v6458_v30 }
 0x4bc   : > { %v6709_v12 = vand.u32 2139095040, %v14406_v61  ;;  %v4615_v14 = vadd.f32 %v16590_v33, %v14229_v45  ;;  %v6217_v48 = vsel %vm14365_vm9, 0, %v6215_v0  ;;  %v6480_v47 = vshrl.u32 %v14358_v29, 16 }
 0x4bd   : > { %v6489_v44 = vadd.s32 %v6488_v8, %v6478_v3  ;;  %v6219_v6 = vmul.f32 -0.001358992, %v6218_v60  ;;  %v6226_v34 = vmul.f32 -0.00019511016, %v6218_v60  ;;  %v6487_v28 = vadd.s32 %v6483_v55, %v6479_v5 }
 0x4be   : > { %v6710_v7 = vshrl.u32 %v6709_v12, 23  ;;  %v6437_v1 = vsel %vm6431_vm14, %v6434_v24, %v6436_v49  ;;  %v6713_v50 = vand.u32 8388607, %v6706_v17  ;;  %v14447_v13 = vadd.f32 %v5404_v63, %v5355_v20 }
 0x4bf   : > { %v6490_v54 = vadd.s32 %v6489_v44, %v6480_v47  ;;  %v6220_v45 = vadd.f32 0.041655596, %v6219_v6  ;;  %v6227_v57 = vadd.f32 0.008332121, %v6226_v34  ;;  %vm6493_vm1 = vc.u32 %v6468_v22, %v6487_v28 }
 0x4c0   : > { %v10977_v35 = vadd.s32 4294967169, %v6710_v7  ;;  %v14451_v29 = vmul.f32 %v14223_v39, %v14145_v58  ;;  %v6234_v46 = vand.u32 3, %v6217_v48  ;;  %v8732_v5 = vadd.s32 3, %v6217_v48 }
 0x4c1   : > { %v6494_v55 = vadd.s32 1, %v6490_v54  ;;  %v6221_v27 = vmul.f32 %v6220_v45, %v6218_v60  ;;  %v6228_v56 = vmul.f32 %v6227_v57, %v6218_v60  ;;  %v6491_v41 = vmul.u32 %v14311_v53, %v6437_v1 }
 0x4c2   : > { %v6716_v43 = vadd.s32 1, %v10977_v35  ;;  %v14455_v52 = vmul.f32 %v4615_v14, %v14149_v16  ;;  %v6714_v24 = vor.u32 8388608, %v6713_v50  ;;  %v7017_v21 = vand.u32 2139095040, %v14447_v13 }
 0x4c3   : > { %v6495_v0 = vsel %vm6493_vm1, %v6494_v55, %v6490_v54  ;;  %v6222_v40 = vadd.f32 -0.4999988, %v6221_v27  ;;  %v6229_v30 = vadd.f32 -0.16666654, %v6228_v56  ;;  %v14460_v58 = vadd.f32 %v13939_v15, %v13941_v59 }
 0x4c4   : > { %v6496_v3 = vadd.s32 %v6495_v0, %v6491_v41  ;;  %vm6717_vm7 = vcmp.gt.s32.totalorder %v6716_v43, 0  ;;  %v14464_v39 = vadd.f32 %v13949_v4, %v13951_v36  ;;  %v8733_v53 = vand.u32 3, %v8732_v5 }
 0x4c5   : > { %v6718_v38 = vsel %vm6717_vm7, %v6716_v43, 0  ;;  %v6223_v16 = vmul.f32 %v6222_v40, %v6218_v60  ;;  %v6230_v8 = vmul.f32 %v6229_v30, %v6218_v60  ;;  %vm6235_vm8 = vcmp.lt.s32.totalorder %v6234_v46, 2 }
 0x4c6   : > { %vm6236_vm14 = vcmp.eq.s32.totalorder %v6234_v46, 0  ;;  %v6497_v20 = vadd.s32 536870912, %v6496_v3  ;;  %vm6233_vm6 = vweird.f32 %v14001_v32  ;;  %v6720_v49 = vand.u32 31, %v6718_v38 }
 0x4c7   : > { %v14467_v12 = vshll.u32 %v6714_v24, 8  ;;  %v7014_v63 = vand.u32 2147483647, %v14447_v13  ;;  %v7018_v15 = vshrl.u32 %v7017_v21, 23  ;;  %v6224_v59 = vadd.f32 1.0, %v6223_v16 }
 0x4c8   : > { %v6231_v33 = vadd.f32 1.0, %v6230_v8  ;;  %vm6239_vm10 = vcmp.eq.s32.totalorder %v6234_v46, 2  ;;  %v6498_v4 = vshrl.u32 %v6497_v20, 30  ;;  %vm8734_vm12 = vcmp.lt.s32.totalorder %v8733_v53, 2 }
 0x4c9   : > { %vm8735_vm13 = vcmp.eq.s32.totalorder %v8733_v53, 0  ;;  %vm8738_vm15 = vcmp.eq.s32.totalorder %v8733_v53, 2  ;;  %v6721_v36 = vsub.s32 32, %v6720_v49  ;;  %v6240_v14 = vxor.u32 2147483648, %v6224_v59 }
 0x4ca   : > { %v6232_v60 = vmul.f32 %v6231_v33, %v14428_v10  ;;  %v14471_v48 = vadd.s32 %v6487_v28, %v6468_v22  ;;  %v6499_v47 = vshll.u32 %v6498_v4, 30  ;;  %v14474_v44 = vand.u32 65535, %v14467_v12 }
 0x4cb   : > { %v14477_v6 = vshrl.u32 %v14467_v12, 16  ;;  %v10983_v34 = vadd.s32 4294967169, %v7018_v15  ;;  %v14481_v7 = vand.u32 8388607, %v7014_v63  ;;  %vm6400_vm0 = vcmp.lt.s32.totalorder %v14170_v9, 0 }
 0x4cc   : > { %v6237_v1 = vxor.u32 2147483648, %v6232_v60  ;;  %v14484_v54 = vsub.s32 %v6496_v3, %v6499_v47  ;;  %v14486_v10 = vshrl.u32 %v6718_v38, 5  ;;  %v6723_v22 = vshll.u32 %v16557_v23, %v6720_v49 }
 0x4cd   : > { %v6241_v28 = vsel %vm6239_vm10, %v6240_v14, %v6232_v60  ;;  %v8740_v50 = vsel %vm8738_vm15, %v6240_v14, %v6232_v60  ;;  %v6726_v45 = vshll.u32 %v16558_v31, %v6720_v49  ;;  %v6730_v57 = vshrl.u32 %v16560_v62, %v6721_v36 }
 0x4ce   : > { %v6238_v35 = vsel %vm6236_vm14, %v6224_v59, %v6237_v1  ;;  %v8737_v5 = vsel %vm8735_vm13, %v6224_v59, %v6237_v1  ;;  %vm6501_vm3 = vcmp.lt.s32.totalorder %v14484_v54, 0  ;;  %v6502_v55 = vsub.s32 0, %v14484_v54 }
 0x4cf   : > { %v6242_v27 = vsel %vm6235_vm8, %v6238_v35, %v6241_v28  ;;  %v8741_v56 = vsel %vm8734_vm12, %v8737_v5, %v8740_v50  ;;  %v6724_v41 = vshrl.u32 %v16558_v31, %v6721_v36  ;;  %v6727_v43 = vshrl.u32 %v16559_v25, %v6721_v36 }
 0x4d0   : > { %v6243_v0 = vsel %vm6233_vm6, nan, %v6242_v27  ;;  %v8742_v24 = vsel %vm6233_vm6, nan, %v8741_v56  ;;  %v6503_v21 = vsel %vm6501_vm3, %v6502_v55, %v14484_v54  ;;  %v6729_v40 = vshll.u32 %v16559_v25, %v6720_v49 }
 0x4d1   : > { %v8248_v46 = vmul.f32 %v6243_v0, %v14451_v29  ;;  %v10760_v30 = vmul.f32 %v8742_v24, %v14451_v29  ;;  %v16591_v3 = vand.u32 2147483647, %v14170_v9  ;;  %v6504_v38 = vclz %v6503_v21 }
 0x4d2   : > { %v6522_v16 = vsub.s32 4, %v6498_v4  ;;  %v6731_v8 = vor.u32 %v6730_v57, %v6729_v40  ;;  %v6732_v32 = vshll.u32 %v16560_v62, %v6720_v49  ;;  %v6733_v20 = vshrl.u32 %v16561_v51, %v6721_v36 }
 0x4d3   : > { %vm14511_vm4 = vcmp.le.f32.partialorder %v16591_v3, 0.7853982  ;;  %v7024_v15 = vadd.s32 1, %v10983_v34  ;;  %8264 = vst [vmem:[%s14384_s7 + $0x10] sm:$0xff] %v8248_v46  ;;  %v10972_v59 = vadd.s32 4294967294, %v6504_v38  ;;  %v6725_v33 = vor.u32 %v6724_v41, %v6723_v22 }
 0x4d4   : > { %v6728_v60 = vor.u32 %v6727_v43, %v6726_v45  ;;  %v6736_v29 = vshrl.u32 %v16562_v11, %v6721_v36  ;;  %10776 = vst [vmem:[%s14396_s10 + $0x10] sm:$0xff] %v10760_v30  ;;  %v6722_v14 = vshrl.u32 %v16557_v23, %v6721_v36  ;;  %v6734_v47 = vor.u32 %v6733_v20, %v6732_v32 }
 0x4d5   : > { %v6735_v1 = vshll.u32 %v16561_v51, %v6720_v49  ;;  %vm6738_vm2 = vcmp.lt.s32.totalorder %v14486_v10, 1  ;;  %vm10973_vm9 = vcmp.lt.s32.totalorder %v10972_v59, 0  ;;  %v6523_v28 = vsel %vm6400_vm0, %v6522_v16, %v6498_v4 }
 0x4d6   : > { %vm6739_vm11 = vcmp.lt.s32.totalorder %v14486_v10, 2  ;;  %vm6741_vm5 = vcmp.lt.s32.totalorder %v14486_v10, 4  ;;  %v6507_v34 = vsel %vm10973_vm9, 0, %v10972_v59  ;;  %vm6740_vm1 = vcmp.lt.s32.totalorder %v14486_v10, 3 }
 0x4d7   : > { %v6737_v22 = vor.u32 %v6736_v29, %v6735_v1  ;;  %v6743_v36 = vsel %vm6741_vm5, %v6731_v8, 2102212464  ;;  %v6508_v50 = vsub.s32 32, %v6507_v34  ;;  %v6512_v45 = vsub.s32 4294967266, %v6507_v34 }
 0x4d8   : > { %v6742_v49 = vsel %vm6738_vm2, %v6722_v14, %v6725_v33  ;;  %v6744_v57 = vsel %vm6740_vm1, %v6728_v60, %v6743_v36  ;;  %v6509_v4 = vshll.u32 %v14484_v54, %v6507_v34  ;;  %v6746_v35 = vsel %vm6738_vm2, %v6725_v33, %v6728_v60 }
 0x4d9   : > { %v6747_v5 = vsel %vm6741_vm5, %v6734_v47, 920167782  ;;  %v6750_v55 = vsel %vm6738_vm2, %v6728_v60, %v6731_v8  ;;  %v6510_v27 = vshrl.u32 %v14471_v48, %v6508_v50  ;;  %v6513_v56 = vadd.s32 127, %v6512_v45 }
 0x4da   : > { %v6748_v41 = vsel %vm6740_vm1, %v6731_v8, %v6747_v5  ;;  %v6751_v43 = vsel %vm6741_vm5, %v6737_v22, 1326507024  ;;  %v6525_v54 = vsel %vm14511_vm4, 0, %v6523_v28  ;;  %v14550_v0 = vsel %vm6739_vm11, %v6742_v49, %v6744_v57 }
 0x4db   : > { %v6749_v24 = vsel %vm6739_vm11, %v6746_v35, %v6748_v41  ;;  %v6752_v48 = vsel %vm6740_vm1, %v6734_v47, %v6751_v43  ;;  %v6511_v21 = vor.u32 %v6510_v27, %v6509_v4  ;;  %v6514_v40 = vshll.u32 %v6513_v56, 23 }
 0x4dc   : > { %v6753_v46 = vsel %vm6739_vm11, %v6750_v55, %v6752_v48  ;;  %v6779_v30 = vand.u32 65535, %v6749_v24  ;;  %v6780_v16 = vshrl.u32 %v6749_v24, 16  ;;  %vm7025_vm7 = vcmp.gt.s32.totalorder %v7024_v15, 0 }
 0x4dd   : > { %v6757_v3 = vand.u32 65535, %v6753_v46  ;;  %v6758_v38 = vshrl.u32 %v6753_v46, 16  ;;  %v6515_v8 = vor.u32 4788187, %v6514_v40  ;;  %v14558_v32 = vand.u32 3, %v6525_v54 }
 0x4de   : > { %v6783_v20 = vmul.u32 %v6779_v30, %v14477_v6  ;;  %v7022_v59 = vor.u32 8388608, %v14481_v7  ;;  %v14562_v33 = vadd.s32 3, %v6525_v54  ;;  %v6799_v10 = vmul.u32 %v14467_v12, %v14550_v0 }
 0x4df   : > { %v6760_v60 = vmul.u32 %v6758_v38, %v14474_v44  ;;  %v6761_v29 = vmul.u32 %v6757_v3, %v14477_v6  ;;  %v6516_v14 = vand.u32 2147483647, %v6515_v8  ;;  %v6518_v47 = vcvt.s32.f32 %v6511_v21 }
 0x4e0   : > { %v6782_v1 = vmul.u32 %v6780_v16, %v14474_v44  ;;  %v7026_v28 = vsel %vm7025_vm7, %v7024_v15, 0  ;;  %v6759_v34 = vmul.u32 %v6757_v3, %v14474_v44  ;;  %v6762_v22 = vmul.u32 %v6758_v38, %v14477_v6 }
 0x4e1   : > { %v6763_v36 = vshll.u32 %v6760_v60, 16  ;;  %v6781_v50 = vmul.u32 %v6779_v30, %v14474_v44  ;;  %v6519_v45 = vmul.f32 %v6518_v47, %v6516_v14  ;;  %v6784_v49 = vmul.u32 %v6780_v16, %v14477_v6 }
 0x4e2   : > { %v6785_v57 = vshll.u32 %v6782_v1, 16  ;;  %v6787_v4 = vshll.u32 %v6783_v20, 16  ;;  %v6765_v35 = vshll.u32 %v6761_v29, 16  ;;  %v7028_v55 = vand.u32 31, %v7026_v28 }
 0x4e3   : > { %vm6767_vm8 = vc.u32 %v6759_v34, %v6763_v36  ;;  %v6769_v5 = vadd.s32 %v6763_v36, %v6759_v34  ;;  %v6520_v27 = vxor.u32 2147483648, %v6519_v45  ;;  %v6764_v21 = vshrl.u32 %v6760_v60, 16 }
 0x4e4   : > { %v6768_v56 = vsel %vm6767_vm8, 1, %v16566_v42  ;;  %vm6789_vm14 = vc.u32 %v6781_v50, %v6785_v57  ;;  %v6791_v15 = vadd.s32 %v6785_v57, %v6781_v50  ;;  %v14575_v54 = vsub.s32 32, %v7028_v55 }
 0x4e5   : > { %v6770_v41 = vadd.s32 %v6768_v56, %v6762_v22  ;;  %vm6771_vm6 = vc.u32 %v6769_v5, %v6765_v35  ;;  %v6790_v43 = vsel %vm6789_vm14, 1, %v16566_v42  ;;  %v6521_v44 = vsel %vm6400_vm0, %v6520_v27, %v6519_v45 }
 0x4e6   : > { %v6772_v6 = vsel %vm6771_vm6, 1, %v16566_v42  ;;  %v6792_v24 = vadd.s32 %v6790_v43, %v6784_v49  ;;  %vm6793_vm10 = vc.u32 %v6791_v15, %v6787_v4  ;;  %v6524_v48 = vsel %vm14511_vm4, %v14170_v9, %v6521_v44 }
 0x4e7   : > { %v6774_v40 = vadd.s32 %v6772_v6, %v6770_v41  ;;  %v6794_v46 = vsel %vm6793_vm10, 1, %v16566_v42  ;;  %v6526_v30 = vmul.f32 %v6524_v48, %v6524_v48  ;;  %v6786_v3 = vshrl.u32 %v6782_v1, 16 }
 0x4e8   : > { %v6796_v38 = vadd.s32 %v6794_v46, %v6792_v24  ;;  %v14584_v16 = vshrl.u32 %v7026_v28, 5  ;;  %v6766_v8 = vshrl.u32 %v6761_v29, 16  ;;  %v6788_v47 = vshrl.u32 %v6783_v20, 16 }
 0x4e9   : > { %v6775_v14 = vadd.s32 %v6774_v40, %v6764_v21  ;;  %v14586_v34 = vadd.s32 %v6791_v15, %v6787_v4  ;;  %v6527_v22 = vmul.f32 -0.001358992, %v6526_v30  ;;  %v6534_v36 = vmul.f32 -0.00019511016, %v6526_v30 }
 0x4ea   : > { %v6797_v50 = vadd.s32 %v6796_v38, %v6786_v3  ;;  %v7035_v53 = vshrl.u32 %v16559_v25, %v14575_v54  ;;  %v7031_v45 = vshll.u32 %v16557_v23, %v7028_v55  ;;  %v7032_v1 = vshrl.u32 %v16558_v31, %v14575_v54 }
 0x4eb   : > { %v14590_v60 = vadd.s32 %v6775_v14, %v6766_v8  ;;  %v7038_v29 = vshrl.u32 %v16560_v62, %v14575_v54  ;;  %v6528_v28 = vadd.f32 0.041655596, %v6527_v22  ;;  %v6535_v20 = vadd.f32 0.008332121, %v6534_v36 }
 0x4ec   : > { %v6798_v49 = vadd.s32 %v6797_v50, %v6788_v47  ;;  %v7034_v57 = vshll.u32 %v16558_v31, %v7028_v55  ;;  %v7037_v4 = vshll.u32 %v16559_v25, %v7028_v55  ;;  %v7040_v35 = vshll.u32 %v16560_v62, %v7028_v55 }
 0x4ed   : > { %vm6801_vm12 = vc.u32 %v14590_v60, %v14586_v34  ;;  %v7041_v5 = vshrl.u32 %v16561_v51, %v14575_v54  ;;  %v6529_v27 = vmul.f32 %v6528_v28, %v6526_v30  ;;  %v6536_v56 = vmul.f32 %v6535_v20, %v6526_v30 }
 0x4ee   : > { %v6802_v15 = vadd.s32 1, %v6798_v49  ;;  %v14604_v41 = vor.u32 %v7035_v53, %v7034_v57  ;;  %v14606_v43 = vor.u32 %v7038_v29, %v7037_v4  ;;  %v7043_v6 = vshll.u32 %v16561_v51, %v7028_v55 }
 0x4ef   : > { %v7042_v44 = vor.u32 %v7041_v5, %v7040_v35  ;;  %v7044_v24 = vshrl.u32 %v16562_v11, %v14575_v54  ;;  %v6530_v21 = vadd.f32 -0.4999988, %v6529_v27  ;;  %v6537_v40 = vadd.f32 -0.16666654, %v6536_v56 }
 0x4f0   : > { %v6803_v46 = vsel %vm6801_vm12, %v6802_v15, %v6798_v49  ;;  %v14611_v3 = vor.u32 %v7032_v1, %v7031_v45  ;;  %v9043_v38 = vand.u32 3, %v14562_v33  ;;  %vm7046_vm13 = vcmp.lt.s32.totalorder %v14584_v16, 1 }
 0x4f1   : > { %v6804_v8 = vadd.s32 %v6803_v46, %v6799_v10  ;;  %v7045_v14 = vor.u32 %v7044_v24, %v7043_v6  ;;  %v6531_v47 = vmul.f32 %v6530_v21, %v6526_v30  ;;  %v6538_v22 = vmul.f32 %v6537_v40, %v6526_v30 }
 0x4f2   : > { %vm7047_vm15 = vcmp.lt.s32.totalorder %v14584_v16, 2  ;;  %vm7049_vm0 = vcmp.lt.s32.totalorder %v14584_v16, 4  ;;  %vm6541_vm3 = vweird.f32 %v14170_v9  ;;  %vm7048_vm4 = vcmp.lt.s32.totalorder %v14584_v16, 3  ;;  %v16596_v9 = vld [vmem:[#allocation104_spill] sm:$0xff] }
 0x4f3   : > { %v6805_v55 = vadd.s32 536870912, %v6804_v8  ;;  %v7055_v33 = vsel %vm7049_vm0, %v7042_v44, 920167782  ;;  %v7058_v12 = vsel %vm7046_vm13, %v14604_v41, %v14606_v43  ;;  %v6532_v0 = vadd.f32 1.0, %v6531_v47 }
 0x4f4   : > { %v6539_v10 = vadd.f32 1.0, %v6538_v22  ;;  %v7054_v30 = vsel %vm7046_vm13, %v14611_v3, %v14604_v41  ;;  %v7059_v36 = vsel %vm7049_vm0, %v7045_v14, 1326507024  ;;  %v7056_v53 = vsel %vm7048_vm4, %v14606_v43, %v7055_v33  ;;  %v16594_v22 = vld [vmem:[#allocation39_spill] sm:$0xff]  ;;  %v16595_v33 = vld [vmem:[#allocation100_spill] sm:$0xff] }
 0x4f5   : > { %v14634_v50 = vshrl.u32 %v6805_v55, 30  ;;  %v7060_v45 = vsel %vm7048_vm4, %v7042_v44, %v7059_v36  ;;  %v14643_v1 = vshll.u32 %v7022_v59, 8  ;;  %vm6543_vm2 = vcmp.lt.s32.totalorder %v14558_v32, 2  ;;  %v5540_v36 = vpop.f32.mrf.mxu3 }
 0x4f6   : > { %v6540_v29 = vmul.f32 %v6539_v10, %v6524_v48  ;;  %v6548_v28 = vxor.u32 2147483648, %v6532_v0  ;;  %v7061_v20 = vsel %vm7047_vm15, %v7058_v12, %v7060_v45  ;;  %vm6544_vm9 = vcmp.eq.s32.totalorder %v14558_v32, 0 }
 0x4f7   : > { %vm6547_vm11 = vcmp.eq.s32.totalorder %v14558_v32, 2  ;;  %vm9044_vm5 = vcmp.lt.s32.totalorder %v9043_v38, 2  ;;  %v6807_v49 = vshll.u32 %v14634_v50, 30  ;;  %vm9045_vm1 = vcmp.eq.s32.totalorder %v9043_v38, 0 }
 0x4f8   : > { %v6545_v57 = vxor.u32 2147483648, %v6540_v29  ;;  %vm9048_vm7 = vcmp.eq.s32.totalorder %v9043_v38, 2  ;;  %v7057_v7 = vsel %vm7047_vm15, %v7054_v30, %v7056_v53  ;;  %v6549_v59 = vsel %vm6547_vm11, %v6548_v28, %v6540_v29  ;;  %v5474_v30 = vpop.f32.mrf.mxu2 }
 0x4f9   : > { %v14653_v48 = vsub.s32 %v6804_v8, %v6807_v49  ;;  %v7063_v4 = vand.u32 65535, %v14643_v1  ;;  %v7066_v35 = vshrl.u32 %v7061_v20, 16  ;;  %v9050_v56 = vsel %vm9048_vm7, %v6548_v28, %v6540_v29 }
 0x4fa   : > { %v6546_v5 = vsel %vm6544_vm9, %v6532_v0, %v6545_v57  ;;  %v9047_v27 = vsel %vm9045_vm1, %v6532_v0, %v6545_v57  ;;  %v7065_v15 = vand.u32 65535, %v7061_v20  ;;  %v7064_v46 = vshrl.u32 %v14643_v1, 16  ;;  %v5358_v57 = vpop.f32.mrf.mxu0 }
 0x4fb   : > { %v6550_v44 = vsel %vm6543_vm2, %v6546_v5, %v6549_v59  ;;  %v9051_v6 = vsel %vm9044_vm5, %v9047_v27, %v9050_v56  ;;  %vm6809_vm8 = vcmp.lt.s32.totalorder %v14653_v48, 0  ;;  %v6810_v24 = vsub.s32 0, %v14653_v48 }
 0x4fc   : > { %v6551_v21 = vsel %vm6541_vm3, nan, %v6550_v44  ;;  %v9052_v40 = vsel %vm6541_vm3, nan, %v9051_v6  ;;  %v7088_v38 = vshrl.u32 %v7057_v7, 16  ;;  %v7068_v47 = vmul.u32 %v7066_v35, %v7063_v4 }
 0x4fd   : > { %v8250_v8 = vmul.f32 %v6551_v21, %v14455_v52  ;;  %v10762_v32 = vmul.f32 %v9052_v40, %v14455_v52  ;;  %v6811_v14 = vsel %vm6809_vm8, %v6810_v24, %v14653_v48  ;;  %v14670_v55 = vadd.f32 %v16594_v22, %v14012_v19  ;;  %v16597_v19 = vld [vmem:[#allocation137_spill] sm:$0xff]  ;;  %v5408_v24 = vpop.f32.mrf.mxu1 }
 0x4fe   : > { %v14674_v12 = vadd.f32 %v16595_v33, %v14179_v26  ;;  %v14678_v0 = vadd.f32 %v16596_v9, %v14183_v18  ;;  %v6812_v10 = vclz %v6811_v14  ;;  %v7030_v52 = vshrl.u32 %v16557_v23, %v14575_v54  ;;  %v16598_v26 = vld [vmem:[#allocation138_spill] sm:$0xff] }
 0x4ff   : > { %8266 = vst [vmem:[%s14384_s7 + $0x20] sm:$0xff] %v8250_v8  ;;  %v7069_v53 = vmul.u32 %v7065_v15, %v7064_v46  ;;  %v7071_v45 = vshll.u32 %v7068_v47, 16  ;;  %v7087_v29 = vand.u32 65535, %v7057_v7  ;;  %v5303_v28 = vadd.f32 %v16597_v19, %v14460_v58 }
 0x500   : > { %v5309_v20 = vadd.f32 %v16598_v26, %v14464_v39  ;;  %10778 = vst [vmem:[%s14396_s10 + $0x20] sm:$0xff] %v10762_v32  ;;  %v10978_v49 = vadd.s32 4294967294, %v6812_v10  ;;  %v7067_v18 = vmul.u32 %v7065_v15, %v7063_v4  ;;  %v6800_v59 = vadd.s32 %v14586_v34, %v14590_v60  ;;  %v5482_v19 = vpop.f32.mrf.mxu2 }
 0x501   : > { %v7050_v54 = vsel %vm7046_vm13, %v7030_v52, %v14611_v3  ;;  %v7051_v7 = vsel %vm7049_vm0, %v14606_v43, 2102212464  ;;  %v7090_v5 = vmul.u32 %v7088_v38, %v7063_v4  ;;  %v7070_v58 = vmul.u32 %v7066_v35, %v7064_v46 }
 0x502   : > { %vm10979_vm14 = vcmp.lt.s32.totalorder %v10978_v49, 0  ;;  %vm7075_vm6 = vc.u32 %v7067_v18, %v7071_v45  ;;  %v7077_v39 = vadd.s32 %v7071_v45, %v7067_v18  ;;  %vm6708_vm10 = vcmp.lt.s32.totalorder %v14406_v61, 0 }
 0x503   : > { %v6815_v27 = vsel %vm10979_vm14, 0, %v10978_v49  ;;  %v7073_v56 = vshll.u32 %v7069_v53, 16  ;;  %v7076_v15 = vsel %vm7075_vm6, 1, %v16566_v42  ;;  %v7091_v34 = vmul.u32 %v7087_v29, %v7064_v46 }
 0x504   : > { %v6816_v60 = vsub.s32 32, %v6815_v27  ;;  %v6820_v44 = vsub.s32 4294967266, %v6815_v27  ;;  %v7072_v6 = vshrl.u32 %v7068_v47, 16  ;;  %v7078_v3 = vadd.s32 %v7076_v15, %v7070_v58 }
 0x505   : > { %vm7079_vm12 = vc.u32 %v7077_v39, %v7073_v56  ;;  %v7089_v21 = vmul.u32 %v7087_v29, %v7063_v4  ;;  %v7092_v43 = vmul.u32 %v7088_v38, %v7064_v46  ;;  %v7093_v40 = vshll.u32 %v7090_v5, 16  ;;  %v5544_v4 = vpop.f32.mrf.mxu3 }
 0x506   : > { %v6817_v35 = vshll.u32 %v14653_v48, %v6815_v27  ;;  %v6818_v8 = vshrl.u32 %v6800_v59, %v6816_v60  ;;  %v6821_v32 = vadd.s32 127, %v6820_v44  ;;  %v7080_v14 = vsel %vm7079_vm12, 1, %v16566_v42  ;;  %v5362_v59 = vpop.f32.mrf.mxu0 }
 0x507   : > { %v7082_v22 = vadd.s32 %v7080_v14, %v7078_v3  ;;  %v7095_v33 = vshll.u32 %v7091_v34, 16  ;;  %vm7097_vm13 = vc.u32 %v7089_v21, %v7093_v40  ;;  %v7099_v9 = vadd.s32 %v7093_v40, %v7089_v21  ;;  %v5412_v21 = vpop.f32.mrf.mxu1 }
 0x508   : > { %v6819_v10 = vor.u32 %v6818_v8, %v6817_v35  ;;  %v6822_v52 = vshll.u32 %v6821_v32, 23  ;;  %v6830_v47 = vsub.s32 4, %v14634_v50  ;;  %v7098_v45 = vsel %vm7097_vm13, 1, %v16566_v42  ;;  %v16603_v32 = vld [vmem:[#allocation121_spill] sm:$0xff] }
 0x509   : > { %v7052_v48 = vsel %vm7048_vm4, %v14604_v41, %v7051_v7  ;;  %v7083_v46 = vadd.s32 %v7082_v22, %v7072_v6  ;;  %v7100_v38 = vadd.s32 %v7098_v45, %v7092_v43  ;;  %vm7101_vm0 = vc.u32 %v7099_v9, %v7095_v33  ;;  %v16602_v43 = vld [vmem:[#allocation106_spill] sm:$0xff]  ;;  %v16604_v22 = vld [vmem:[#allocation123_spill] sm:$0xff] }
 0x50a   : > { %v6823_v29 = vor.u32 4788187, %v6822_v52  ;;  %v7074_v26 = vshrl.u32 %v7069_v53, 16  ;;  %v7102_v49 = vsel %vm7101_vm0, 1, %v16566_v42  ;;  %v14706_v18 = vadd.f32 %v5540_v36, %v5474_v30  ;;  %v16599_v36 = vld [vmem:[#allocation102_spill] sm:$0xff] }
 0x50b   : > { %v7094_v58 = vshrl.u32 %v7090_v5, 16  ;;  %v7104_v39 = vadd.s32 %v7102_v49, %v7100_v38  ;;  %v5359_v27 = vadd.f32 %v5358_v57, %v5303_v28  ;;  %v14708_v56 = vadd.f32 %v5544_v4, %v5482_v19  ;;  %v16605_v19 = vld [vmem:[#allocation37_spill] sm:$0xff]  ;;  %v16608_v49 = vld [vmem:[#allocation111_spill] sm:$0xff] }
 0x50c   : > { %v6824_v15 = vand.u32 2147483647, %v6823_v29  ;;  %v6826_v60 = vcvt.s32.f32 %v6819_v10  ;;  %v6831_v41 = vsel %vm6708_vm10, %v6830_v47, %v14634_v50  ;;  %v14713_v7 = vadd.s32 %v7083_v46, %v7074_v26  ;;  %v16607_v46 = vld [vmem:[#allocation105_spill] sm:$0xff] }
 0x50d   : > { %v7096_v44 = vshrl.u32 %v7091_v34, 16  ;;  %v7105_v53 = vadd.s32 %v7104_v39, %v7094_v58  ;;  %v14715_v6 = vadd.f32 %v5408_v24, %v5359_v27  ;;  %v5363_v30 = vadd.f32 %v5362_v59, %v5309_v20 }
 0x50e   : > { %v4505_v5 = vadd.f32 %v16599_v36, %v14674_v12  ;;  %vm14721_vm3 = vcmp.le.f32.partialorder %v6706_v17, 0.7853982  ;;  %v6827_v57 = vmul.f32 %v6826_v60, %v6824_v15  ;;  %v7103_v3 = vadd.s32 %v7099_v9, %v7095_v33  ;;  %v16610_v15 = vld [vmem:[#allocation120_spill] sm:$0xff] }
 0x50f   : > { %v7053_v50 = vsel %vm7047_vm15, %v7050_v54, %v7052_v48  ;;  %v7106_v34 = vadd.s32 %v7105_v53, %v7096_v44  ;;  %v7322_v24 = vand.u32 2147483647, %v14715_v6  ;;  %v7325_v20 = vand.u32 2139095040, %v14715_v6  ;;  %v16606_v48 = vld [vmem:[#allocation107_spill] sm:$0xff] }
 0x510   : > { %v4511_v12 = vadd.f32 %v16602_v43, %v14678_v0  ;;  %v6828_v40 = vxor.u32 2147483648, %v6827_v57  ;;  %v6833_v17 = vsel %vm14721_vm3, 0, %v6831_v41  ;;  %vm7109_vm4 = vc.u32 %v14713_v7, %v7103_v3 }
 0x511   : > { %v7110_v35 = vadd.s32 1, %v7106_v34  ;;  %v7326_v8 = vshrl.u32 %v7325_v20, 23  ;;  %v7329_v16 = vand.u32 8388607, %v7322_v24  ;;  %v14736_v54 = vadd.f32 %v5412_v21, %v5363_v30 }
 0x512   : > { %v4568_v14 = vadd.f32 %v16603_v32, %v4505_v5  ;;  %v4572_v33 = vadd.f32 %v16604_v22, %v4511_v12  ;;  %v6829_v0 = vsel %vm6708_vm10, %v6828_v40, %v6827_v57  ;;  %v7107_v9 = vmul.u32 %v14643_v1, %v7053_v50  ;;  %v16609_v1 = vld [vmem:[#allocation109_spill] sm:$0xff] }
 0x513   : > { %v14746_v10 = vsel %vm14721_vm3, %v14406_v61, %v6829_v0  ;;  %v9352_v52 = vadd.s32 3, %v6833_v17  ;;  %v7111_v47 = vsel %vm7109_vm4, %v7110_v35, %v7106_v34  ;;  %v10989_v45 = vadd.s32 4294967169, %v7326_v8  ;;  %v16612_v34 = vld [vmem:[#allocation108_spill] sm:$0xff] }
 0x514   : > { %v3843_v4 = vadd.f32 %v16605_v19, %v14670_v55  ;;  %v4393_v38 = vadd.f32 %v16607_v46, %v16606_v48  ;;  %v6834_v29 = vmul.f32 %v14746_v10, %v14746_v10  ;;  %v7112_v26 = vadd.s32 %v7111_v47, %v7107_v9  ;;  %v16611_v55 = vld [vmem:[#allocation122_spill] sm:$0xff]  ;;  %v16613_v35 = vld [vmem:[#allocation112_spill] sm:$0xff] }
 0x515   : > { %v4397_v59 = vadd.f32 %v16609_v1, %v16608_v49  ;;  %v7330_v58 = vor.u32 8388608, %v7329_v16  ;;  %v7332_v39 = vadd.s32 1, %v10989_v45  ;;  %v7633_v27 = vand.u32 2139095040, %v14736_v54 }
 0x516   : > { %v4619_v60 = vadd.f32 %v16610_v15, %v4568_v14  ;;  %v6835_v41 = vmul.f32 -0.001358992, %v6834_v29  ;;  %v6842_v44 = vmul.f32 -0.00019511016, %v6834_v29  ;;  %v7113_v53 = vadd.s32 536870912, %v7112_v26  ;;  %v16614_v14 = vld [vmem:[#allocation11_spill] sm:$0xff] }
 0x517   : > { %v4623_v30 = vadd.f32 %v16611_v55, %v4572_v33  ;;  %v14759_v36 = vand.u32 3, %v6833_v17  ;;  %v14761_v5 = vand.u32 3, %v9352_v52  ;;  %vm7333_vm15 = vcmp.gt.s32.totalorder %v7332_v39, 0 }
 0x518   : > { %v6836_v28 = vadd.f32 0.041655596, %v6835_v41  ;;  %v6843_v57 = vadd.f32 0.008332121, %v6842_v44  ;;  %v7114_v21 = vshrl.u32 %v7113_v53, 30  ;;  %v7334_v50 = vsel %vm7333_vm15, %v7332_v39, 0 }
 0x519   : > { %v14764_v20 = vadd.f32 %v16612_v34, %v4393_v38  ;;  %v7336_v43 = vand.u32 31, %v7334_v50  ;;  %v14766_v12 = vshll.u32 %v7330_v58, 8  ;;  %v7634_v40 = vshrl.u32 %v7633_v27, 23 }
 0x51a   : > { %v14769_v8 = vadd.f32 %v16613_v35, %v4397_v59  ;;  %v6837_v16 = vmul.f32 %v6836_v28, %v6834_v29  ;;  %v6844_v17 = vmul.f32 %v6843_v57, %v6834_v29  ;;  %v7115_v32 = vshll.u32 %v7114_v21, 30 }
 0x51b   : > { %v14772_v22 = vmul.f32 %v4619_v60, %v16614_v14  ;;  %v14774_v33 = vmul.f32 %v4623_v30, %v3843_v4  ;;  %vm7016_vm2 = vcmp.lt.s32.totalorder %v14447_v13, 0  ;;  %v14777_v0 = vsub.s32 32, %v7336_v43 }
 0x51c   : > { %v6838_v9 = vadd.f32 -0.4999988, %v6837_v16  ;;  %v6845_v52 = vadd.f32 -0.16666654, %v6844_v17  ;;  %vm6855_vm9 = vcmp.eq.s32.totalorder %v14759_v36, 2  ;;  %vm9358_vm11 = vcmp.eq.s32.totalorder %v14761_v5, 2 }
 0x51d   : > { %v14781_v47 = vsub.s32 %v7112_v26, %v7115_v32  ;;  %vm6852_vm5 = vcmp.eq.s32.totalorder %v14759_v36, 0  ;;  %vm9355_vm1 = vcmp.eq.s32.totalorder %v14761_v5, 0  ;;  %v7108_v45 = vadd.s32 %v7103_v3, %v14713_v7 }
 0x51e   : > { %v14787_v19 = vand.u32 65535, %v14766_v12  ;;  %v16367_v4 = vand.u32 2147483647, %v14736_v54  ;;  %v10995_v48 = vadd.s32 4294967169, %v7634_v40  ;;  %v6839_v46 = vmul.f32 %v6838_v9, %v6834_v29 }
 0x51f   : > { %v6846_v38 = vmul.f32 %v6845_v52, %v6834_v29  ;;  %vm6851_vm7 = vcmp.lt.s32.totalorder %v14759_v36, 2  ;;  %vm9354_vm8 = vcmp.lt.s32.totalorder %v14761_v5, 2  ;;  %vm7117_vm14 = vcmp.lt.s32.totalorder %v14781_v47, 0 }
 0x520   : > { %v7118_v26 = vsub.s32 0, %v14781_v47  ;;  %vm6849_vm6 = vweird.f32 %v14406_v61  ;;  %v7138_v49 = vsub.s32 4, %v7114_v21  ;;  %v7340_v7 = vshrl.u32 %v16558_v31, %v14777_v0 }
 0x521   : > { %v7343_v3 = vshrl.u32 %v16559_v25, %v14777_v0  ;;  %v14800_v1 = vshrl.u32 %v14766_v12, 16  ;;  %v6840_v29 = vadd.f32 1.0, %v6839_v46  ;;  %v6847_v59 = vadd.f32 1.0, %v6846_v38 }
 0x522   : > { %v7119_v58 = vsel %vm7117_vm14, %v7118_v26, %v14781_v47  ;;  %v7346_v39 = vshrl.u32 %v16560_v62, %v14777_v0  ;;  %vm14807_vm10 = vcmp.le.f32.partialorder %v7014_v63, 0.7853982  ;;  %v14811_v60 = vshrl.u32 %v7334_v50, 5 }
 0x523   : > { %v7120_v15 = vclz %v7119_v58  ;;  %v7339_v41 = vshll.u32 %v16557_v23, %v7336_v43  ;;  %v14814_v44 = vadd.s32 1, %v10995_v48  ;;  %v6848_v53 = vmul.f32 %v6847_v59, %v14746_v10 }
 0x524   : > { %v6856_v55 = vxor.u32 2147483648, %v6840_v29  ;;  %v7342_v30 = vshll.u32 %v16558_v31, %v7336_v43  ;;  %v7345_v28 = vshll.u32 %v16559_v25, %v7336_v43  ;;  %v7139_v63 = vsel %vm7016_vm2, %v7138_v49, %v7114_v21 }
 0x525   : > { %v10984_v57 = vadd.s32 4294967294, %v7120_v15  ;;  %v7341_v34 = vor.u32 %v7340_v7, %v7339_v41  ;;  %v7349_v50 = vshrl.u32 %v16561_v51, %v14777_v0  ;;  %v6853_v40 = vxor.u32 2147483648, %v6848_v53 }
 0x526   : > { %v7344_v35 = vor.u32 %v7343_v3, %v7342_v30  ;;  %v7347_v16 = vor.u32 %v7346_v39, %v7345_v28  ;;  %v7348_v17 = vshll.u32 %v16560_v62, %v7336_v43  ;;  %v6857_v10 = vsel %vm6855_vm9, %v6856_v55, %v6848_v53 }
 0x527   : > { %v9360_v32 = vsel %vm9358_vm11, %v6856_v55, %v6848_v53  ;;  %vm10985_vm12 = vcmp.lt.s32.totalorder %v10984_v57, 0  ;;  %v7351_v14 = vshll.u32 %v16561_v51, %v7336_v43  ;;  %v6854_v21 = vsel %vm6852_vm5, %v6840_v29, %v6853_v40 }
 0x528   : > { %v9357_v9 = vsel %vm9355_vm1, %v6840_v29, %v6853_v40  ;;  %v7123_v52 = vsel %vm10985_vm12, 0, %v10984_v57  ;;  %v7352_v48 = vshrl.u32 %v16562_v11, %v14777_v0  ;;  %v6858_v46 = vsel %vm6851_vm7, %v6854_v21, %v6857_v10 }
 0x529   : > { %v9361_v38 = vsel %vm9354_vm8, %v9357_v9, %v9360_v32  ;;  %v7124_v26 = vsub.s32 32, %v7123_v52  ;;  %v7350_v49 = vor.u32 %v7349_v50, %v7348_v17  ;;  %v6859_v43 = vsel %vm6849_vm6, nan, %v6858_v46 }
 0x52a   : > { %v9362_v7 = vsel %vm6849_vm6, nan, %v9361_v38  ;;  %v7125_v3 = vshll.u32 %v14781_v47, %v7123_v52  ;;  %v7128_v29 = vsub.s32 4294967266, %v7123_v52  ;;  %v8252_v59 = vmul.f32 %v6859_v43, %v14772_v22 }
 0x52b   : > { %v10764_v36 = vmul.f32 %v9362_v7, %v14772_v22  ;;  %v7126_v58 = vshrl.u32 %v7108_v45, %v7124_v26  ;;  %v7353_v5 = vor.u32 %v7352_v48, %v7351_v14  ;;  %v14848_v15 = vsel %vm14807_vm10, 0, %v7139_v63 }
 0x52c   : > { %v7129_v39 = vadd.s32 127, %v7128_v29  ;;  %vm7354_vm13 = vcmp.lt.s32.totalorder %v14811_v60, 1  ;;  %vm7357_vm0 = vcmp.lt.s32.totalorder %v14811_v60, 4  ;;  %8268 = vst [vmem:[%s14384_s7 + $0x30] sm:$0xff] %v8252_v59  ;;  %v7338_v47 = vshrl.u32 %v16557_v23, %v14777_v0 }
 0x52d   : > { %v7127_v61 = vor.u32 %v7126_v58, %v7125_v3  ;;  %v7359_v41 = vsel %vm7357_vm0, %v7347_v16, 2102212464  ;;  %v7362_v53 = vsel %vm7354_vm13, %v7341_v34, %v7344_v35  ;;  %10780 = vst [vmem:[%s14396_s10 + $0x30] sm:$0xff] %v10764_v36  ;;  %vm7356_vm3 = vcmp.lt.s32.totalorder %v14811_v60, 3 }
 0x52e   : > { %v7130_v22 = vshll.u32 %v7129_v39, 23  ;;  %v7363_v45 = vsel %vm7357_vm0, %v7350_v49, 920167782  ;;  %v7366_v55 = vsel %vm7354_vm13, %v7344_v35, %v7347_v16  ;;  %vm7355_vm4 = vcmp.lt.s32.totalorder %v14811_v60, 2 }
 0x52f   : > { %v7358_v30 = vsel %vm7354_vm13, %v7338_v47, %v7341_v34  ;;  %v7364_v28 = vsel %vm7356_vm3, %v7347_v16, %v7363_v45  ;;  %v7367_v57 = vsel %vm7357_vm0, %v7353_v5, 1326507024  ;;  %v7360_v50 = vsel %vm7356_vm3, %v7344_v35, %v7359_v41 }
 0x530   : > { %v7131_v63 = vor.u32 4788187, %v7130_v22  ;;  %v7365_v40 = vsel %vm7355_vm4, %v7362_v53, %v7364_v28  ;;  %v7368_v17 = vsel %vm7356_vm3, %v7350_v49, %v7367_v57  ;;  %v7134_v0 = vcvt.s32.f32 %v7127_v61 }
 0x531   : > { %v7369_v10 = vsel %vm7355_vm4, %v7366_v55, %v7368_v17  ;;  %v7395_v32 = vand.u32 65535, %v7365_v40  ;;  %v7396_v14 = vshrl.u32 %v7365_v40, 16  ;;  %vm7641_vm15 = vcmp.gt.s32.totalorder %v14814_v44, 0 }
 0x532   : > { %v7132_v21 = vand.u32 2147483647, %v7131_v63  ;;  %v7373_v9 = vand.u32 65535, %v7369_v10  ;;  %v7374_v52 = vshrl.u32 %v7369_v10, 16  ;;  %v9662_v34 = vadd.s32 3, %v14848_v15 }
 0x533   : > { %v7398_v16 = vmul.u32 %v7396_v14, %v14787_v19  ;;  %v7399_v35 = vmul.u32 %v7395_v32, %v14800_v1  ;;  %v14868_v48 = vand.u32 8388607, %v16367_v4  ;;  %v14872_v38 = vsel %vm7355_vm4, %v7358_v30, %v7360_v50 }
 0x534   : > { %v7135_v46 = vmul.f32 %v7134_v0, %v7132_v21  ;;  %v7376_v26 = vmul.u32 %v7374_v52, %v14787_v19  ;;  %v7377_v49 = vmul.u32 %v7373_v9, %v14800_v1  ;;  %v7397_v43 = vmul.u32 %v7395_v32, %v14787_v19 }
 0x535   : > { %v7400_v7 = vmul.u32 %v7396_v14, %v14800_v1  ;;  %v7401_v3 = vshll.u32 %v7398_v16, 16  ;;  %v7642_v29 = vsel %vm7641_vm15, %v14814_v44, 0  ;;  %v7375_v36 = vmul.u32 %v7373_v9, %v14787_v19 }
 0x536   : > { %v7136_v59 = vxor.u32 2147483648, %v7135_v46  ;;  %v7378_v58 = vmul.u32 %v7374_v52, %v14800_v1  ;;  %v7379_v5 = vshll.u32 %v7376_v26, 16  ;;  %v7381_v60 = vshll.u32 %v7377_v49, 16 }
 0x537   : > { %v7403_v39 = vshll.u32 %v7399_v35, 16  ;;  %vm7405_vm9 = vc.u32 %v7397_v43, %v7401_v3  ;;  %v7407_v61 = vadd.s32 %v7401_v3, %v7397_v43  ;;  %v7380_v30 = vshrl.u32 %v7376_v26, 16 }
 0x538   : > { %v7137_v47 = vsel %vm7016_vm2, %v7136_v59, %v7135_v46  ;;  %vm7383_vm11 = vc.u32 %v7375_v36, %v7379_v5  ;;  %v7385_v41 = vadd.s32 %v7379_v5, %v7375_v36  ;;  %v7406_v53 = vsel %vm7405_vm9, 1, %v16566_v42 }
 0x539   : > { %v14887_v44 = vsel %vm14807_vm10, %v14447_v13, %v7137_v47  ;;  %v7384_v19 = vsel %vm7383_vm11, 1, %v16566_v42  ;;  %v7408_v1 = vadd.s32 %v7406_v53, %v7400_v7  ;;  %vm7409_vm5 = vc.u32 %v7407_v61, %v7403_v39 }
 0x53a   : > { %v7142_v22 = vmul.f32 %v14887_v44, %v14887_v44  ;;  %v7386_v45 = vadd.s32 %v7384_v19, %v7378_v58  ;;  %vm7387_vm1 = vc.u32 %v7385_v41, %v7381_v60  ;;  %v7410_v55 = vsel %vm7409_vm5, 1, %v16566_v42 }
 0x53b   : > { %v7388_v28 = vsel %vm7387_vm1, 1, %v16566_v42  ;;  %v7402_v57 = vshrl.u32 %v7398_v16, 16  ;;  %v7412_v63 = vadd.s32 %v7410_v55, %v7408_v1  ;;  %v7644_v17 = vand.u32 31, %v7642_v29 }
 0x53c   : > { %v7143_v50 = vmul.f32 -0.001358992, %v7142_v22  ;;  %v7150_v27 = vmul.f32 -0.00019511016, %v7142_v22  ;;  %v7390_v40 = vadd.s32 %v7388_v28, %v7386_v45  ;;  %v14895_v0 = vand.u32 3, %v14848_v15 }
 0x53d   : > { %v7382_v10 = vshrl.u32 %v7377_v49, 16  ;;  %v7404_v32 = vshrl.u32 %v7399_v35, 16  ;;  %v7413_v14 = vadd.s32 %v7412_v63, %v7402_v57  ;;  %v14897_v46 = vsub.s32 32, %v7644_v17 }
 0x53e   : > { %v7144_v21 = vadd.f32 0.041655596, %v7143_v50  ;;  %v7151_v9 = vadd.f32 0.008332121, %v7150_v27  ;;  %v7391_v52 = vadd.s32 %v7390_v40, %v7380_v30  ;;  %v14899_v26 = vand.u32 3, %v9662_v34 }
 0x53f   : > { %v7414_v43 = vadd.s32 %v7413_v14, %v7404_v32  ;;  %v7415_v16 = vmul.u32 %v14766_v12, %v14872_v38  ;;  %v7638_v7 = vor.u32 8388608, %v14868_v48  ;;  %v14906_v49 = vadd.s32 %v7407_v61, %v7403_v39 }
 0x540   : > { %v7145_v3 = vmul.f32 %v7144_v21, %v7142_v22  ;;  %v7152_v59 = vmul.f32 %v7151_v9, %v7142_v22  ;;  %v14904_v15 = vadd.s32 %v7391_v52, %v7382_v10  ;;  %v14908_v36 = vshrl.u32 %v7642_v29, 5 }
 0x541   : > { %v7418_v35 = vadd.s32 1, %v7414_v43  ;;  %v7650_v58 = vshll.u32 %v16558_v31, %v7644_v17  ;;  %v7651_v34 = vshrl.u32 %v16559_v25, %v14897_v46  ;;  %vm7163_vm2 = vcmp.eq.s32.totalorder %v14895_v0, 2 }
 0x542   : > { %v7146_v5 = vadd.f32 -0.4999988, %v7145_v3  ;;  %v7153_v60 = vadd.f32 -0.16666654, %v7152_v59  ;;  %vm7417_vm7 = vc.u32 %v14904_v15, %v14906_v49  ;;  %v7654_v12 = vshrl.u32 %v16560_v62, %v14897_v46 }
 0x543   : > { %vm7160_vm8 = vcmp.eq.s32.totalorder %v14895_v0, 0  ;;  %vm9665_vm14 = vcmp.eq.s32.totalorder %v14899_v26, 0  ;;  %v7419_v48 = vsel %vm7417_vm7, %v7418_v35, %v7414_v43  ;;  %v7647_v38 = vshll.u32 %v16557_v23, %v7644_v17 }
 0x544   : > { %v7648_v29 = vshrl.u32 %v16558_v31, %v14897_v46  ;;  %v7653_v39 = vshll.u32 %v16559_v25, %v7644_v17  ;;  %v7147_v61 = vmul.f32 %v7146_v5, %v7142_v22  ;;  %v7154_v47 = vmul.f32 %v7153_v60, %v7142_v22 }
 0x545   : > { %vm7159_vm6 = vcmp.lt.s32.totalorder %v14895_v0, 2  ;;  %vm9664_vm10 = vcmp.lt.s32.totalorder %v14899_v26, 2  ;;  %v7420_v41 = vadd.s32 %v7419_v48, %v7415_v16  ;;  %v14926_v53 = vor.u32 %v7651_v34, %v7650_v58 }
 0x546   : > { %vm7157_vm12 = vweird.f32 %v14447_v13  ;;  %v7656_v19 = vshll.u32 %v16560_v62, %v7644_v17  ;;  %v7657_v1 = vshrl.u32 %v16561_v51, %v14897_v46  ;;  %v7659_v45 = vshll.u32 %v16561_v51, %v7644_v17 }
 0x547   : > { %v7660_v55 = vshrl.u32 %v16562_v11, %v14897_v46  ;;  %v7148_v22 = vadd.f32 1.0, %v7147_v61  ;;  %v7155_v30 = vadd.f32 1.0, %v7154_v47  ;;  %v7421_v28 = vadd.s32 536870912, %v7420_v41  ;;  %v16619_v47 = vld [vmem:[#allocation110_spill] sm:$0xff] }
 0x548   : > { %v14935_v57 = vor.u32 %v7654_v12, %v7653_v39  ;;  %vm9668_vm13 = vcmp.eq.s32.totalorder %v14899_v26, 2  ;;  %v7649_v63 = vor.u32 %v7648_v29, %v7647_v38  ;;  %v7658_v50 = vor.u32 %v7657_v1, %v7656_v19  ;;  %v14980_v38 = vpop.f32.mrf.mxu2  ;;  %v16617_v29 = vld [vmem:[#allocation6_spill] sm:$0xff] }
 0x549   : > { %v7661_v27 = vor.u32 %v7660_v55, %v7659_v45  ;;  %v7156_v40 = vmul.f32 %v7155_v30, %v14887_v44  ;;  %v7164_v10 = vxor.u32 2147483648, %v7148_v22  ;;  %v14939_v32 = vshrl.u32 %v7421_v28, 30  ;;  %v16618_v39 = vld [vmem:[#allocation14_spill] sm:$0xff]  ;;  %v16620_v45 = vld [vmem:[#allocation139_spill] sm:$0xff]  ;;  %v16621_v55 = vld [vmem:[#allocation140_spill] sm:$0xff] }
 0x54a   : > { %vm7665_vm0 = vcmp.lt.s32.totalorder %v14908_v36, 4  ;;  %vm7662_vm3 = vcmp.lt.s32.totalorder %v14908_v36, 1  ;;  %vm7663_vm4 = vcmp.lt.s32.totalorder %v14908_v36, 2  ;;  %vm7664_vm15 = vcmp.lt.s32.totalorder %v14908_v36, 3 }
 0x54b   : > { %v7675_v17 = vsel %vm7665_vm0, %v7661_v27, 1326507024  ;;  %v7161_v14 = vxor.u32 2147483648, %v7156_v40  ;;  %v7423_v21 = vshll.u32 %v14939_v32, 30  ;;  %v7671_v44 = vsel %vm7665_vm0, %v7658_v50, 920167782 }
 0x54c   : > { %v7674_v9 = vsel %vm7662_vm3, %v14926_v53, %v14935_v57  ;;  %v7165_v52 = vsel %vm7163_vm2, %v7164_v10, %v7156_v40  ;;  %v9670_v43 = vsel %vm9668_vm13, %v7164_v10, %v7156_v40  ;;  %v7670_v16 = vsel %vm7662_vm3, %v7649_v63, %v14926_v53  ;;  %v5548_v10 = vpop.f32.mrf.mxu3 }
 0x54d   : > { %v7676_v3 = vsel %vm7664_vm15, %v7658_v50, %v7675_v17  ;;  %v7162_v59 = vsel %vm7160_vm8, %v7148_v22, %v7161_v14  ;;  %v9667_v35 = vsel %vm9665_vm14, %v7148_v22, %v7161_v14  ;;  %v14967_v58 = vsub.s32 %v7420_v41, %v7423_v21  ;;  %v16622_v17 = vld [vmem:[#allocation8_spill] sm:$0xff]  ;;  %v16623_v14 = vld [vmem:[#allocation18_spill] sm:$0xff]  ;;  %v16624_v21 = vld [vmem:[#allocation43_spill] sm:$0xff] }
 0x54e   : > { %v14969_v34 = vshll.u32 %v7638_v7, 8  ;;  %v7166_v5 = vsel %vm7159_vm6, %v7162_v59, %v7165_v52  ;;  %v9671_v60 = vsel %vm9664_vm10, %v9667_v35, %v9670_v43  ;;  %v7672_v12 = vsel %vm7664_vm15, %v14935_v57, %v7671_v44  ;;  %v16626_v43 = vld [vmem:[#allocation125_spill] sm:$0xff] }
 0x54f   : > { %v7677_v48 = vsel %vm7663_vm4, %v7674_v9, %v7676_v3  ;;  %v7167_v7 = vsel %vm7157_vm12, nan, %v7166_v5  ;;  %v9672_v0 = vsel %vm7157_vm12, nan, %v9671_v60  ;;  %vm7425_vm9 = vcmp.lt.s32.totalorder %v14967_v58, 0  ;;  %v16625_v9 = vld [vmem:[#allocation113_spill] sm:$0xff]  ;;  %v5366_v60 = vpop.f32.mrf.mxu0 }
 0x550   : > { %v7426_v26 = vsub.s32 0, %v14967_v58  ;;  %v3737_v61 = vadd.f32 %v16618_v39, %v16617_v29  ;;  %v4517_v41 = vadd.f32 %v16619_v47, %v14764_v20  ;;  %v8254_v19 = vmul.f32 %v7167_v7, %v14774_v33  ;;  %v16628_v7 = vld [vmem:[#allocation142_spill] sm:$0xff]  ;;  %v5416_v47 = vpop.f32.mrf.mxu1 }
 0x551   : > { %v10766_v1 = vmul.f32 %v9672_v0, %v14774_v33  ;;  %v5249_v22 = vadd.f32 %v16621_v55, %v16620_v45  ;;  %v7673_v30 = vsel %vm7663_vm4, %v7670_v16, %v7672_v12  ;;  %v7679_v28 = vand.u32 65535, %v14969_v34  ;;  %v16627_v12 = vld [vmem:[#allocation141_spill] sm:$0xff]  ;;  %v16629_v0 = vld [vmem:[#allocation143_spill] sm:$0xff] }
 0x552   : > { %v7427_v13 = vsel %vm7425_vm9, %v7426_v26, %v14967_v58  ;;  %8270 = vst [vmem:[%s14384_s7 + $0x40] sm:$0xff] %v8254_v19  ;;  %v7680_v27 = vshrl.u32 %v14969_v34, 16  ;;  %v7681_v20 = vand.u32 65535, %v7677_v48  ;;  %v7682_v40 = vshrl.u32 %v7677_v48, 16 }
 0x553   : > { %v7428_v50 = vclz %v7427_v13  ;;  %v15004_v33 = vadd.f32 %v16623_v14, %v16622_v17  ;;  %v15007_v44 = vadd.f32 %v16624_v21, %v3737_v61  ;;  %v15011_v52 = vadd.f32 %v16625_v9, %v14769_v8  ;;  %10782 = vst [vmem:[%s14396_s10 + $0x40] sm:$0xff] %v10766_v1 }
 0x554   : > { %v15014_v16 = vadd.f32 %v16626_v43, %v4517_v41  ;;  %v7646_v59 = vshrl.u32 %v16557_v23, %v14897_v46  ;;  %v7684_v35 = vmul.u32 %v7682_v40, %v7679_v28  ;;  %v15019_v5 = vmul.u32 %v7681_v20, %v7680_v27 }
 0x555   : > { %v10990_v3 = vadd.s32 4294967294, %v7428_v50  ;;  %v5315_v48 = vadd.f32 %v16627_v12, %v5249_v22  ;;  %v5525_v26 = vadd.f32 %v16629_v0, %v16628_v7  ;;  %v7416_v8 = vadd.s32 %v14906_v49, %v14904_v15  ;;  %v5498_v49 = vpop.f32.mrf.mxu2  ;;  %v5552_v7 = vpop.f32.mrf.mxu3 }
 0x556   : > { %v7703_v29 = vand.u32 65535, %v7673_v30  ;;  %v15028_v39 = vsel %vm7662_vm3, %v7646_v59, %v7649_v63  ;;  %v7683_v61 = vmul.u32 %v7681_v20, %v7679_v28  ;;  %v7687_v46 = vshll.u32 %v7684_v35, 16 }
 0x557   : > { %vm10991_vm11 = vcmp.lt.s32.totalorder %v10990_v3, 0  ;;  %v7667_v19 = vsel %vm7665_vm0, %v14935_v57, 2102212464  ;;  %v7686_v1 = vmul.u32 %v7682_v40, %v7680_v27  ;;  %v7704_v45 = vshrl.u32 %v7673_v30, 16 }
 0x558   : > { %v7431_v41 = vsel %vm10991_vm11, 0, %v10990_v3  ;;  %v7689_v15 = vshll.u32 %v15019_v5, 16  ;;  %vm7691_vm5 = vc.u32 %v7683_v61, %v7687_v46  ;;  %v7693_v63 = vadd.s32 %v7687_v46, %v7683_v61 }
 0x559   : > { %v7432_v55 = vsub.s32 32, %v7431_v41  ;;  %v7436_v22 = vsub.s32 4294967266, %v7431_v41  ;;  %v7692_v13 = vsel %vm7691_vm5, 1, %v16566_v42  ;;  %v7706_v50 = vmul.u32 %v7704_v45, %v7679_v28 }
 0x55a   : > { %v7707_v20 = vmul.u32 %v7703_v29, %v7680_v27  ;;  %vm7324_vm1 = vcmp.lt.s32.totalorder %v14715_v6, 0  ;;  %v7433_v17 = vshll.u32 %v14967_v58, %v7431_v41  ;;  %v7694_v57 = vadd.s32 %v7692_v13, %v7686_v1  ;;  %v5576_v41 = vpop.f32.mrf.mxu0 }
 0x55b   : > { %v7434_v14 = vshrl.u32 %v7416_v8, %v7432_v55  ;;  %v7437_v21 = vadd.s32 127, %v7436_v22  ;;  %v7688_v40 = vshrl.u32 %v7684_v35, 16  ;;  %vm7695_vm2 = vc.u32 %v7693_v63, %v7689_v15  ;;  %v5635_v15 = vpop.f32.mrf.mxu1 }
 0x55c   : > { %v7705_v30 = vmul.u32 %v7703_v29, %v7679_v28  ;;  %v7709_v9 = vshll.u32 %v7706_v50, 16  ;;  %v7696_v59 = vsel %vm7695_vm2, 1, %v16566_v42  ;;  %v7708_v12 = vmul.u32 %v7704_v45, %v7680_v27 }
 0x55d   : > { %v7435_v43 = vor.u32 %v7434_v14, %v7433_v17  ;;  %v7438_v3 = vshll.u32 %v7437_v21, 23  ;;  %v7698_v0 = vadd.s32 %v7696_v59, %v7694_v57  ;;  %v7711_v61 = vshll.u32 %v7707_v20, 16 }
 0x55e   : > { %vm7713_vm7 = vc.u32 %v7705_v30, %v7709_v9  ;;  %v7715_v46 = vadd.s32 %v7709_v9, %v7705_v30  ;;  %v7446_v58 = vsub.s32 4, %v14939_v32  ;;  %v7690_v8 = vshrl.u32 %v15019_v5, 16 }
 0x55f   : > { %v7439_v4 = vor.u32 4788187, %v7438_v3  ;;  %v7714_v35 = vsel %vm7713_vm7, 1, %v16566_v42  ;;  %v7442_v28 = vcvt.s32.f32 %v7435_v43  ;;  %v7699_v29 = vadd.s32 %v7698_v0, %v7688_v40  ;;  %v5701_v40 = vpop.f32.mrf.mxu2  ;;  %v16630_v43 = vld [vmem:[#allocation127_spill] sm:$0xff] }
 0x560   : > { %v7716_v1 = vadd.s32 %v7714_v35, %v7708_v12  ;;  %vm7717_vm8 = vc.u32 %v7715_v46, %v7711_v61  ;;  %v15043_v45 = vadd.f32 %v5548_v10, %v14980_v38  ;;  %v5367_v22 = vadd.f32 %v5366_v60, %v5315_v48 }
 0x561   : > { %v7440_v55 = vand.u32 2147483647, %v7439_v4  ;;  %v7718_v27 = vsel %vm7717_vm8, 1, %v16566_v42  ;;  %v7710_v13 = vshrl.u32 %v7706_v50, 16  ;;  %v15045_v17 = vadd.f32 %v5552_v7, %v5498_v49 }
 0x562   : > { %v7720_v63 = vadd.s32 %v7718_v27, %v7716_v1  ;;  %v5577_v5 = vadd.f32 %v5576_v41, %v5525_v26  ;;  %v7668_v21 = vsel %vm7664_vm15, %v14926_v53, %v7667_v19  ;;  %v15050_v57 = vadd.s32 %v7699_v29, %v7690_v8  ;;  %v5751_v53 = vpop.f32.mrf.mxu3  ;;  %v16632_v1 = vld [vmem:[#allocation41_spill] sm:$0xff]  ;;  %v16633_v27 = vld [vmem:[#allocation124_spill] sm:$0xff] }
 0x563   : > { %v7443_v14 = vmul.f32 %v7442_v28, %v7440_v55  ;;  %v15052_v4 = vadd.f32 %v5416_v47, %v5367_v22  ;;  %v7447_v38 = vsel %vm7324_vm1, %v7446_v58, %v14939_v32  ;;  %v7712_v10 = vshrl.u32 %v7707_v20, 16 }
 0x564   : > { %v7721_v60 = vadd.s32 %v7720_v63, %v7710_v13  ;;  %v5636_v48 = vadd.f32 %v5635_v15, %v5577_v5  ;;  %vm7323_vm14 = vcmp.le.f32.partialorder %v7322_v24, 0.7853982  ;;  %v7719_v49 = vadd.s32 %v7715_v46, %v7711_v61  ;;  %v16631_v61 = vld [vmem:[#allocation47_spill] sm:$0xff] }
 0x565   : > { %v7444_v26 = vxor.u32 2147483648, %v7443_v14  ;;  %v7941_v50 = vand.u32 2139095040, %v15052_v4  ;;  %v7669_v47 = vsel %vm7663_vm4, %v15028_v39, %v7668_v21  ;;  %v7938_v30 = vand.u32 2147483647, %v15052_v4 }
 0x566   : > { %v7722_v19 = vadd.s32 %v7721_v60, %v7712_v10  ;;  %v5702_v9 = vadd.f32 %v5701_v40, %v5636_v48  ;;  %v7449_v20 = vsel %vm7323_vm14, 0, %v7447_v38  ;;  %vm7725_vm6 = vc.u32 %v15050_v57, %v7719_v49 }
 0x567   : > { %v7445_v32 = vsel %vm7324_vm1, %v7444_v26, %v7443_v14  ;;  %v7942_v24 = vshrl.u32 %v7941_v50, 23  ;;  %v4580_v3 = vadd.f32 %v16630_v43, %v15011_v52  ;;  %v7723_v39 = vmul.u32 %v14969_v34, %v7669_v47  ;;  %v16634_v34 = vld [vmem:[#allocation126_spill] sm:$0xff]  ;;  %v16635_v14 = vld [vmem:[#allocation45_spill] sm:$0xff] }
 0x568   : > { %v7448_v59 = vsel %vm7323_vm14, %v14715_v6, %v7445_v32  ;;  %v7726_v12 = vadd.s32 1, %v7722_v19  ;;  %v15070_v7 = vadd.f32 %v5751_v53, %v5702_v9  ;;  %v3800_v46 = vadd.f32 %v16631_v61, %v15004_v33 }
 0x569   : > { %v7450_v36 = vmul.f32 %v7448_v59, %v7448_v59  ;;  %v11001_v0 = vadd.s32 4294967169, %v7942_v24  ;;  %v9972_v58 = vadd.s32 3, %v7449_v20  ;;  %v7945_v35 = vand.u32 8388607, %v7938_v30 }
 0x56a   : > { %v7727_v8 = vsel %vm7725_vm6, %v7726_v12, %v7722_v19  ;;  %v3847_v55 = vadd.f32 %v16632_v1, %v15007_v44  ;;  %v4627_v22 = vadd.f32 %v16633_v27, %v15014_v16  ;;  %v4631_v15 = vadd.f32 %v16634_v34, %v4580_v3 }
 0x56b   : > { %v7451_v41 = vmul.f32 -0.001358992, %v7450_v36  ;;  %v7458_v28 = vmul.f32 -0.00019511016, %v7450_v36  ;;  %v7728_v52 = vadd.s32 %v7727_v8, %v7723_v39  ;;  %v7948_v29 = vadd.s32 1, %v11001_v0 }
 0x56c   : > { %v5939_v13 = vand.u32 2139095040, %v15070_v7  ;;  %v3851_v21 = vadd.f32 %v16635_v14, %v3800_v46  ;;  %v7466_v40 = vand.u32 3, %v7449_v20  ;;  %v7946_v38 = vor.u32 8388608, %v7945_v35 }
 0x56d   : > { %v7452_v33 = vadd.f32 0.041655596, %v7451_v41  ;;  %v7459_v63 = vadd.f32 0.008332121, %v7458_v28  ;;  %v7729_v5 = vadd.s32 536870912, %v7728_v52  ;;  %vm7949_vm10 = vcmp.gt.s32.totalorder %v7948_v29, 0 }
 0x56e   : > { %v7950_v10 = vsel %vm7949_vm10, %v7948_v29, 0  ;;  %v9973_v26 = vand.u32 3, %v9972_v58  ;;  %v5023_v50 = vmul.f32 %v4627_v22, %v3847_v55  ;;  %v5940_v53 = vshrl.u32 %v5939_v13, 23 }
 0x56f   : > { %v7453_v60 = vmul.f32 %v7452_v33, %v7450_v36  ;;  %v7460_v48 = vmul.f32 %v7459_v63, %v7450_v36  ;;  %v15084_v44 = vshrl.u32 %v7729_v5, 30  ;;  %v15086_v16 = vand.u32 31, %v7950_v10 }
 0x570   : > { %v15088_v47 = vmul.f32 %v4631_v15, %v3851_v21  ;;  %vm7468_vm12 = vcmp.eq.s32.totalorder %v7466_v40, 0  ;;  %vm7471_vm13 = vcmp.eq.s32.totalorder %v7466_v40, 2  ;;  %v15094_v24 = vshll.u32 %v7946_v38, 8 }
 0x571   : > { %v7454_v19 = vadd.f32 -0.4999988, %v7453_v60  ;;  %v7461_v9 = vadd.f32 -0.16666654, %v7460_v48  ;;  %v7731_v32 = vshll.u32 %v15084_v44, 30  ;;  %v15092_v20 = vsub.s32 32, %v15086_v16 }
 0x572   : > { %vm7467_vm0 = vcmp.lt.s32.totalorder %v7466_v40, 2  ;;  %vm9974_vm3 = vcmp.lt.s32.totalorder %v9973_v26, 2  ;;  %vm7465_vm4 = vweird.f32 %v14715_v6  ;;  %vm9975_vm15 = vcmp.eq.s32.totalorder %v9973_v26, 0 }
 0x573   : > { %v7455_v43 = vmul.f32 %v7454_v19, %v7450_v36  ;;  %v7462_v3 = vmul.f32 %v7461_v9, %v7450_v36  ;;  %v15096_v12 = vsub.s32 %v7728_v52, %v7731_v32  ;;  %vm9978_vm9 = vcmp.eq.s32.totalorder %v9973_v26, 2 }
 0x574   : > { %v7724_v39 = vadd.s32 %v7719_v49, %v15050_v57  ;;  %v10962_v0 = vadd.s32 4294967169, %v5940_v53  ;;  %v7956_v36 = vshrl.u32 %v16558_v31, %v15092_v20  ;;  %v15105_v8 = vand.u32 65535, %v15094_v24 }
 0x575   : > { %v7456_v61 = vadd.f32 1.0, %v7455_v43  ;;  %v7463_v46 = vadd.f32 1.0, %v7462_v3  ;;  %vm7733_vm11 = vcmp.lt.s32.totalorder %v15096_v12, 0  ;;  %v7734_v58 = vsub.s32 0, %v15096_v12 }
 0x576   : > { %v15108_v35 = vshrl.u32 %v15094_v24, 16  ;;  %v5936_v41 = vand.u32 2147483647, %v15070_v7  ;;  %vm7632_vm5 = vcmp.lt.s32.totalorder %v14736_v54, 0  ;;  %v15113_v52 = vshrl.u32 %v7950_v10, 5 }
 0x577   : > { %v7464_v28 = vmul.f32 %v7463_v46, %v7448_v59  ;;  %v7472_v57 = vxor.u32 2147483648, %v7456_v61  ;;  %v7735_v49 = vsel %vm7733_vm11, %v7734_v58, %v15096_v12  ;;  %v7754_v1 = vsub.s32 4, %v15084_v44 }
 0x578   : > { %v7736_v29 = vclz %v7735_v49  ;;  %v7955_v55 = vshll.u32 %v16557_v23, %v15086_v16  ;;  %v15118_v27 = vadd.s32 1, %v10962_v0  ;;  %v7958_v34 = vshll.u32 %v16558_v31, %v15086_v16 }
 0x579   : > { %v7469_v22 = vxor.u32 2147483648, %v7464_v28  ;;  %v7959_v59 = vshrl.u32 %v16559_v25, %v15092_v20  ;;  %v7961_v15 = vshll.u32 %v16559_v25, %v15086_v16  ;;  %v7962_v63 = vshrl.u32 %v16560_v62, %v15092_v20 }
 0x57a   : > { %v10996_v13 = vadd.s32 4294967294, %v7736_v29  ;;  %v7957_v33 = vor.u32 %v7956_v36, %v7955_v55  ;;  %v7965_v5 = vshrl.u32 %v16561_v51, %v15092_v20  ;;  %v7473_v21 = vsel %vm7471_vm13, %v7472_v57, %v7464_v28 }
 0x57b   : > { %v7470_v14 = vsel %vm7468_vm12, %v7456_v61, %v7469_v22  ;;  %v9977_v38 = vsel %vm9975_vm15, %v7456_v61, %v7469_v22  ;;  %v9980_v10 = vsel %vm9978_vm9, %v7472_v57, %v7464_v28  ;;  %v16636_v60 = vand.u32 2147483647, %v14736_v54 }
 0x57c   : > { %v7474_v53 = vsel %vm7467_vm0, %v7470_v14, %v7473_v21  ;;  %v9981_v19 = vsel %vm9974_vm3, %v9977_v38, %v9980_v10  ;;  %vm10997_vm2 = vcmp.lt.s32.totalorder %v10996_v13, 0  ;;  %v7964_v9 = vshll.u32 %v16560_v62, %v15086_v16 }
 0x57d   : > { %vm15136_vm1 = vcmp.le.f32.partialorder %v16636_v60, 0.7853982  ;;  %v7475_v32 = vsel %vm7465_vm4, nan, %v7474_v53  ;;  %v9982_v43 = vsel %vm7465_vm4, nan, %v9981_v19  ;;  %v7739_v3 = vsel %vm10997_vm2, 0, %v10996_v13 }
 0x57e   : > { %v7960_v0 = vor.u32 %v7959_v59, %v7958_v34  ;;  %v8256_v61 = vmul.f32 %v7475_v32, %v5023_v50  ;;  %v10768_v46 = vmul.f32 %v9982_v43, %v5023_v50  ;;  %v7740_v40 = vsub.s32 32, %v7739_v3 }
 0x57f   : > { %v7966_v58 = vor.u32 %v7965_v5, %v7964_v9  ;;  %v7744_v26 = vsub.s32 4294967266, %v7739_v3  ;;  %v7963_v36 = vor.u32 %v7962_v63, %v7961_v15  ;;  %v7967_v28 = vshll.u32 %v16561_v51, %v15086_v16 }
 0x580   : > { %v7968_v57 = vshrl.u32 %v16562_v11, %v15092_v20  ;;  %8272 = vst [vmem:[%s14384_s7 + $0x50] sm:$0xff] %v8256_v61  ;;  %v7741_v49 = vshll.u32 %v15096_v12, %v7739_v3  ;;  %v7742_v6 = vshrl.u32 %v7724_v39, %v7740_v40  ;;  %v7755_v29 = vsel %vm7632_vm5, %v7754_v1, %v15084_v44 }
 0x581   : > { %vm7970_vm7 = vcmp.lt.s32.totalorder %v15113_v52, 1  ;;  %10784 = vst [vmem:[%s14396_s10 + $0x50] sm:$0xff] %v10768_v46  ;;  %v7745_v50 = vadd.s32 127, %v7744_v26  ;;  %vm7971_vm8 = vcmp.lt.s32.totalorder %v15113_v52, 2  ;;  %vm7973_vm14 = vcmp.lt.s32.totalorder %v15113_v52, 4 }
 0x582   : > { %v7969_v55 = vor.u32 %v7968_v57, %v7967_v28  ;;  %v7743_v16 = vor.u32 %v7742_v6, %v7741_v49  ;;  %vm7972_vm6 = vcmp.lt.s32.totalorder %v15113_v52, 3  ;;  %v7978_v12 = vsel %vm7970_vm7, %v7957_v33, %v7960_v0 }
 0x583   : > { %v7979_v39 = vsel %vm7973_vm14, %v7966_v58, 920167782  ;;  %v7746_v22 = vshll.u32 %v7745_v50, 23  ;;  %v7975_v34 = vsel %vm7973_vm14, %v7963_v36, 2102212464  ;;  %v7982_v1 = vsel %vm7970_vm7, %v7960_v0, %v7963_v36 }
 0x584   : > { %v7980_v44 = vsel %vm7972_vm6, %v7963_v36, %v7979_v39  ;;  %v7757_v59 = vsel %vm15136_vm1, 0, %v7755_v29  ;;  %v7954_v15 = vshrl.u32 %v16557_v23, %v15092_v20  ;;  %v7983_v63 = vsel %vm7973_vm14, %v7969_v55, 1326507024 }
 0x585   : > { %v7981_v13 = vsel %vm7971_vm8, %v7978_v12, %v7980_v44  ;;  %v7747_v5 = vor.u32 4788187, %v7746_v22  ;;  %v7984_v14 = vsel %vm7972_vm6, %v7966_v58, %v7983_v63  ;;  %v7750_v10 = vcvt.s32.f32 %v7743_v16 }
 0x586   : > { %v8011_v21 = vand.u32 65535, %v7981_v13  ;;  %v8012_v38 = vshrl.u32 %v7981_v13, 16  ;;  %v7974_v60 = vsel %vm7970_vm7, %v7954_v15, %v7957_v33  ;;  %v7976_v53 = vsel %vm7972_vm6, %v7960_v0, %v7975_v34 }
 0x587   : > { %v7985_v20 = vsel %vm7971_vm8, %v7982_v1, %v7984_v14  ;;  %v7748_v19 = vand.u32 2147483647, %v7747_v5  ;;  %vm5947_vm10 = vcmp.gt.s32.totalorder %v15118_v27, 0  ;;  %v10282_v43 = vadd.s32 3, %v7757_v59 }
 0x588   : > { %v7989_v9 = vand.u32 65535, %v7985_v20  ;;  %v7990_v32 = vshrl.u32 %v7985_v20, 16  ;;  %v8014_v3 = vmul.u32 %v8012_v38, %v15105_v8  ;;  %v8015_v61 = vmul.u32 %v8011_v21, %v15108_v35 }
 0x589   : > { %v15187_v46 = vand.u32 8388607, %v5936_v41  ;;  %v7751_v33 = vmul.f32 %v7750_v10, %v7748_v19  ;;  %v15191_v0 = vsel %vm7971_vm8, %v7974_v60, %v7976_v53  ;;  %v8013_v26 = vmul.u32 %v8011_v21, %v15105_v8 }
 0x58a   : > { %v7992_v40 = vmul.u32 %v7990_v32, %v15105_v8  ;;  %v7993_v58 = vmul.u32 %v7989_v9, %v15108_v35  ;;  %v8016_v36 = vmul.u32 %v8012_v38, %v15108_v35  ;;  %v8017_v28 = vshll.u32 %v8014_v3, 16 }
 0x58b   : > { %v5948_v57 = vsel %vm5947_vm10, %v15118_v27, 0  ;;  %v7752_v49 = vxor.u32 2147483648, %v7751_v33  ;;  %v7991_v6 = vmul.u32 %v7989_v9, %v15105_v8  ;;  %v7994_v29 = vmul.u32 %v7990_v32, %v15108_v35 }
 0x58c   : > { %v7995_v50 = vshll.u32 %v7992_v40, 16  ;;  %v7997_v52 = vshll.u32 %v7993_v58, 16  ;;  %v8019_v55 = vshll.u32 %v8015_v61, 16  ;;  %vm8021_vm12 = vc.u32 %v8013_v26, %v8017_v28 }
 0x58d   : > { %v8023_v16 = vadd.s32 %v8017_v28, %v8013_v26  ;;  %v7753_v12 = vsel %vm7632_vm5, %v7752_v49, %v7751_v33  ;;  %v8022_v22 = vsel %vm8021_vm12, 1, %v16566_v42  ;;  %v7996_v15 = vshrl.u32 %v7992_v40, 16 }
 0x58e   : > { %vm7999_vm13 = vc.u32 %v7991_v6, %v7995_v50  ;;  %v8001_v39 = vadd.s32 %v7995_v50, %v7991_v6  ;;  %v15206_v27 = vsel %vm15136_vm1, %v14736_v54, %v7753_v12  ;;  %v8024_v35 = vadd.s32 %v8022_v22, %v8016_v36 }
 0x58f   : > { %v8000_v8 = vsel %vm7999_vm13, 1, %v16566_v42  ;;  %vm8025_vm0 = vc.u32 %v8023_v16, %v8019_v55  ;;  %v7758_v34 = vmul.f32 %v15206_v27, %v15206_v27  ;;  %v8018_v63 = vshrl.u32 %v8014_v3, 16 }
 0x590   : > { %v8002_v44 = vadd.s32 %v8000_v8, %v7994_v29  ;;  %vm8003_vm3 = vc.u32 %v8001_v39, %v7997_v52  ;;  %v8026_v1 = vsel %vm8025_vm0, 1, %v16566_v42  ;;  %v5950_v38 = vand.u32 31, %v5948_v57 }
 0x591   : > { %v8004_v13 = vsel %vm8003_vm3, 1, %v16566_v42  ;;  %v8028_v5 = vadd.s32 %v8026_v1, %v8024_v35  ;;  %v7759_v14 = vmul.f32 -0.001358992, %v7758_v34  ;;  %v7766_v48 = vmul.f32 -0.00019511016, %v7758_v34 }
 0x592   : > { %v8006_v21 = vadd.s32 %v8004_v13, %v8002_v44  ;;  %v15213_v10 = vand.u32 3, %v7757_v59  ;;  %v7998_v60 = vshrl.u32 %v7993_v58, 16  ;;  %v8020_v53 = vshrl.u32 %v8015_v61, 16 }
 0x593   : > { %v8029_v20 = vadd.s32 %v8028_v5, %v8018_v63  ;;  %v7760_v19 = vadd.f32 0.041655596, %v7759_v14  ;;  %v7767_v9 = vadd.f32 0.008332121, %v7766_v48  ;;  %v15215_v33 = vsub.s32 32, %v5950_v38 }
 0x594   : > { %v8007_v32 = vadd.s32 %v8006_v21, %v7996_v15  ;;  %v15217_v26 = vand.u32 3, %v10282_v43  ;;  %v8031_v3 = vmul.u32 %v15094_v24, %v15191_v0  ;;  %v5944_v36 = vor.u32 8388608, %v15187_v46  ;;  %v16640_v46 = vld [vmem:[#allocation17_spill] sm:$0xff] }
 0x595   : > { %v8030_v40 = vadd.s32 %v8029_v20, %v8020_v53  ;;  %v7761_v28 = vmul.f32 %v7760_v19, %v7758_v34  ;;  %v7768_v49 = vmul.f32 %v7767_v9, %v7758_v34  ;;  %v15224_v58 = vadd.s32 %v8023_v16, %v8019_v55 }
 0x596   : > { %v15222_v59 = vadd.s32 %v8007_v32, %v7998_v60  ;;  %v15226_v6 = vshrl.u32 %v5948_v57, 5  ;;  %v5956_v29 = vshll.u32 %v16558_v31, %v5950_v38  ;;  %v5957_v43 = vshrl.u32 %v16559_v25, %v15215_v33 }
 0x597   : > { %v8034_v61 = vadd.s32 1, %v8030_v40  ;;  %v7762_v50 = vadd.f32 -0.4999988, %v7761_v28  ;;  %v7769_v52 = vadd.f32 -0.16666654, %v7768_v49  ;;  %vm7779_vm4 = vcmp.eq.s32.totalorder %v15213_v10, 2 }
 0x598   : > { %vm8033_vm15 = vc.u32 %v15222_v59, %v15224_v58  ;;  %v5960_v24 = vshrl.u32 %v16560_v62, %v15215_v33  ;;  %vm7776_vm9 = vcmp.eq.s32.totalorder %v15213_v10, 0  ;;  %vm10285_vm11 = vcmp.eq.s32.totalorder %v15217_v26, 0 }
 0x599   : > { %v8035_v0 = vsel %vm8033_vm15, %v8034_v61, %v8030_v40  ;;  %v5953_v57 = vshll.u32 %v16557_v23, %v5950_v38  ;;  %v5954_v55 = vshrl.u32 %v16558_v31, %v15215_v33  ;;  %v5959_v16 = vshll.u32 %v16559_v25, %v5950_v38 }
 0x59a   : > { %v7763_v12 = vmul.f32 %v7762_v50, %v7758_v34  ;;  %v7770_v39 = vmul.f32 %v7769_v52, %v7758_v34  ;;  %vm7775_vm5 = vcmp.lt.s32.totalorder %v15213_v10, 2  ;;  %vm10284_vm1 = vcmp.lt.s32.totalorder %v15217_v26, 2 }
 0x59b   : > { %v8036_v22 = vadd.s32 %v8035_v0, %v8031_v3  ;;  %v15244_v8 = vor.u32 %v5957_v43, %v5956_v29  ;;  %vm7773_vm2 = vweird.f32 %v14736_v54  ;;  %v5962_v35 = vshll.u32 %v16560_v62, %v5950_v38 }
 0x59c   : > { %v5963_v44 = vshrl.u32 %v16561_v51, %v15215_v33  ;;  %v5965_v1 = vshll.u32 %v16561_v51, %v5950_v38  ;;  %v5966_v15 = vshrl.u32 %v16562_v11, %v15215_v33  ;;  %v7764_v34 = vadd.f32 1.0, %v7763_v12 }
 0x59d   : > { %v7771_v13 = vadd.f32 1.0, %v7770_v39  ;;  %v8037_v63 = vadd.s32 536870912, %v8036_v22  ;;  %v15253_v5 = vor.u32 %v5960_v24, %v5959_v16  ;;  %vm10288_vm7 = vcmp.eq.s32.totalorder %v15217_v26, 2 }
 0x59e   : > { %v15256_v14 = vor.u32 %v5954_v55, %v5953_v57  ;;  %v5964_v48 = vor.u32 %v5963_v44, %v5962_v35  ;;  %v5967_v21 = vor.u32 %v5966_v15, %v5965_v1  ;;  %v7780_v53 = vxor.u32 2147483648, %v7764_v34 }
 0x59f   : > { %v7772_v60 = vmul.f32 %v7771_v13, %v15206_v27  ;;  %v15259_v20 = vshrl.u32 %v8037_v63, 30  ;;  %vm5971_vm8 = vcmp.lt.s32.totalorder %v15226_v6, 4  ;;  %vm5968_vm14 = vcmp.lt.s32.totalorder %v15226_v6, 1  ;;  %v5581_v13 = vpop.f32.mrf.mxu0  ;;  %v16641_v63 = vld [vmem:[#allocation24_spill] sm:$0xff] }
 0x5a0   : > { %vm5969_vm6 = vcmp.lt.s32.totalorder %v15226_v6, 2  ;;  %v5977_v38 = vsel %vm5971_vm8, %v5964_v48, 920167782  ;;  %v5981_v19 = vsel %vm5971_vm8, %v5967_v21, 1326507024  ;;  %vm5970_vm10 = vcmp.lt.s32.totalorder %v15226_v6, 3 }
 0x5a1   : > { %v7777_v9 = vxor.u32 2147483648, %v7772_v60  ;;  %v8039_v32 = vshll.u32 %v15259_v20, 30  ;;  %v5980_v27 = vsel %vm5968_vm14, %v15244_v8, %v15253_v5  ;;  %v7781_v40 = vsel %vm7779_vm4, %v7780_v53, %v7772_v60 }
 0x5a2   : > { %v10290_v3 = vsel %vm10288_vm7, %v7780_v53, %v7772_v60  ;;  %v5976_v28 = vsel %vm5968_vm14, %v15256_v14, %v15244_v8  ;;  %v5982_v49 = vsel %vm5970_vm10, %v5964_v48, %v5981_v19  ;;  %v5978_v50 = vsel %vm5970_vm10, %v15253_v5, %v5977_v38  ;;  %v16642_v48 = vld [vmem:[#allocation26_spill] sm:$0xff] }
 0x5a3   : > { %v7778_v61 = vsel %vm7776_vm9, %v7764_v34, %v7777_v9  ;;  %v10287_v29 = vsel %vm10285_vm11, %v7764_v34, %v7777_v9  ;;  %v8040_v43 = vsub.s32 %v8036_v22, %v8039_v32  ;;  %v5983_v0 = vsel %vm5969_vm6, %v5980_v27, %v5982_v49  ;;  %v16639_v22 = vld [vmem:[#allocation19_spill] sm:$0xff]  ;;  %v5641_v9 = vpop.f32.mrf.mxu1  ;;  %v16643_v32 = vld [vmem:[#allocation20_spill] sm:$0xff] }
 0x5a4   : > { %v7782_v52 = vsel %vm7775_vm5, %v7778_v61, %v7781_v40  ;;  %v10291_v24 = vsel %vm10284_vm1, %v10287_v29, %v10290_v3  ;;  %v15299_v57 = vshll.u32 %v5944_v36, 8  ;;  %v5979_v39 = vsel %vm5969_vm6, %v5976_v28, %v5978_v50  ;;  %v16644_v40 = vld [vmem:[#allocation55_spill] sm:$0xff]  ;;  %v5705_v50 = vpop.f32.mrf.mxu2 }
 0x5a5   : > { %v7783_v55 = vsel %vm7773_vm2, nan, %v7782_v52  ;;  %v10292_v16 = vsel %vm7773_vm2, nan, %v10291_v24  ;;  %vm8041_vm12 = vcmp.lt.s32.totalorder %v8040_v43, 0  ;;  %v8042_v10 = vsub.s32 0, %v8040_v43 }
 0x5a6   : > { %v8258_v12 = vmul.f32 %v7783_v55, %v15088_v47  ;;  %v10770_v26 = vmul.f32 %v10292_v16, %v15088_v47  ;;  %v3621_v36 = vadd.f32 %v16640_v46, %v16639_v22  ;;  %v5987_v44 = vand.u32 65535, %v5983_v0 }
 0x5a7   : > { %v8043_v35 = vsel %vm8041_vm12, %v8042_v10, %v8040_v43  ;;  %v5985_v54 = vand.u32 65535, %v15299_v57  ;;  %v5986_v15 = vshrl.u32 %v15299_v57, 16  ;;  %v5988_v34 = vshrl.u32 %v5983_v0, 16 }
 0x5a8   : > { %8274 = vst [vmem:[%s14384_s7 + $0x60] sm:$0xff] %v8258_v12  ;;  %v8044_v1 = vclz %v8043_v35  ;;  %v3969_v21 = vadd.f32 %v16642_v48, %v16641_v63  ;;  %v6010_v47 = vshrl.u32 %v5979_v39, 16  ;;  %v6009_v19 = vand.u32 65535, %v5979_v39  ;;  %v5755_v35 = vpop.f32.mrf.mxu3 }
 0x5a9   : > { %10786 = vst [vmem:[%s14396_s10 + $0x60] sm:$0xff] %v10770_v26  ;;  %v5990_v53 = vmul.u32 %v5988_v34, %v5985_v54  ;;  %v5991_v38 = vmul.u32 %v5987_v44, %v5986_v15  ;;  %v3682_v27 = vadd.f32 %v16643_v32, %v3621_v36  ;;  %v5952_v28 = vshrl.u32 %v16557_v23, %v15215_v33 }
 0x5aa   : > { %v11002_v60 = vadd.s32 4294967294, %v8044_v1  ;;  %v15319_v3 = vadd.f32 %v16644_v40, %v3969_v21  ;;  %v8032_v49 = vadd.s32 %v15224_v58, %v15222_v59  ;;  %v5989_v61 = vmul.u32 %v5987_v44, %v5985_v54 }
 0x5ab   : > { %v5993_v29 = vshll.u32 %v5990_v53, 16  ;;  %v5992_v24 = vmul.u32 %v5988_v34, %v5986_v15  ;;  %v5995_v0 = vshll.u32 %v5991_v38, 16  ;;  %v6012_v55 = vmul.u32 %v6010_v47, %v5985_v54 }
 0x5ac   : > { %vm11003_vm13 = vcmp.lt.s32.totalorder %v11002_v60, 0  ;;  %v6011_v12 = vmul.u32 %v6009_v19, %v5985_v54  ;;  %v6013_v33 = vmul.u32 %v6009_v19, %v5986_v15  ;;  %v5972_v44 = vsel %vm5968_vm14, %v5952_v28, %v15256_v14  ;;  %v5586_v54 = vpop.f32.mrf.mxu0 }
 0x5ad   : > { %v8047_v52 = vsel %vm11003_vm13, 0, %v11002_v60  ;;  %vm5997_vm0 = vc.u32 %v5989_v61, %v5993_v29  ;;  %v5999_v22 = vadd.s32 %v5993_v29, %v5989_v61  ;;  %v6015_v58 = vshll.u32 %v6012_v55, 16 }
 0x5ae   : > { %v8048_v16 = vsub.s32 32, %v8047_v52  ;;  %v8052_v10 = vsub.s32 4294967266, %v8047_v52  ;;  %v8049_v26 = vshll.u32 %v8040_v43, %v8047_v52  ;;  %v5998_v39 = vsel %vm5997_vm0, 1, %v16566_v42 }
 0x5af   : > { %v6000_v59 = vadd.s32 %v5998_v39, %v5992_v24  ;;  %v5994_v1 = vshrl.u32 %v5990_v53, 16  ;;  %vm6001_vm3 = vc.u32 %v5999_v22, %v5995_v0  ;;  %v6014_v34 = vmul.u32 %v6010_v47, %v5986_v15  ;;  %v16645_v53 = vld [vmem:[#allocation4_spill] sm:$0xff]  ;;  %v5647_v15 = vpop.f32.mrf.mxu1 }
 0x5b0   : > { %v8050_v46 = vshrl.u32 %v8032_v49, %v8048_v16  ;;  %v8053_v36 = vadd.s32 127, %v8052_v10  ;;  %v6002_v43 = vsel %vm6001_vm3, 1, %v16566_v42  ;;  %vm6019_vm4 = vc.u32 %v6011_v12, %v6015_v58  ;;  %v5709_v10 = vpop.f32.mrf.mxu2 }
 0x5b1   : > { %v6004_v21 = vadd.s32 %v6002_v43, %v6000_v59  ;;  %v6017_v60 = vshll.u32 %v6013_v33, 16  ;;  %v6020_v19 = vsel %vm6019_vm4, 1, %v16566_v42  ;;  %v6021_v32 = vadd.s32 %v6015_v58, %v6011_v12 }
 0x5b2   : > { %v8051_v63 = vor.u32 %v8050_v46, %v8049_v26  ;;  %v8054_v48 = vshll.u32 %v8053_v36, 23  ;;  %v5973_v49 = vsel %vm5971_vm8, %v15253_v5, 2102212464  ;;  %v6022_v14 = vadd.s32 %v6020_v19, %v6014_v34 }
 0x5b3   : > { %v5582_v28 = vadd.f32 %v5581_v13, %v16645_v53  ;;  %v5996_v47 = vshrl.u32 %v5991_v38, 16  ;;  %v6005_v61 = vadd.s32 %v6004_v21, %v5994_v1  ;;  %vm6023_vm15 = vc.u32 %v6021_v32, %v6017_v60 }
 0x5b4   : > { %v8055_v40 = vor.u32 4788187, %v8054_v48  ;;  %v5587_v29 = vadd.f32 %v5586_v54, %v14208_v37  ;;  %v8058_v24 = vcvt.s32.f32 %v8051_v63  ;;  %v6024_v0 = vsel %vm6023_vm15, 1, %v16566_v42  ;;  %v16646_v37 = vld [vmem:[#allocation22_spill] sm:$0xff] }
 0x5b5   : > { %v5642_v16 = vadd.f32 %v5641_v9, %v5582_v28  ;;  %v5974_v12 = vsel %vm5970_vm10, %v15244_v8, %v5973_v49  ;;  %v6016_v5 = vshrl.u32 %v6012_v55, 16  ;;  %v6026_v26 = vadd.s32 %v6024_v0, %v6022_v14  ;;  %v16647_v9 = vld [vmem:[#allocation53_spill] sm:$0xff]  ;;  %v5759_v55 = vpop.f32.mrf.mxu3 }
 0x5b6   : > { %v8056_v52 = vand.u32 2147483647, %v8055_v40  ;;  %v5648_v39 = vadd.f32 %v5647_v15, %v5587_v29  ;;  %v8062_v38 = vsub.s32 4, %v15259_v20  ;;  %v15341_v22 = vadd.s32 %v6005_v61, %v5996_v47  ;;  %v16651_v47 = vld [vmem:[#allocation56_spill] sm:$0xff] }
 0x5b7   : > { %v5706_v46 = vadd.f32 %v5705_v50, %v5642_v16  ;;  %v3749_v36 = vadd.f32 %v16646_v37, %v3682_v27  ;;  %v6018_v59 = vshrl.u32 %v6013_v33, 16  ;;  %v6027_v58 = vadd.s32 %v6026_v26, %v6016_v5  ;;  %v16653_v37 = vld [vmem:[#allocation58_spill] sm:$0xff] }
 0x5b8   : > { %v8059_v13 = vmul.f32 %v8058_v24, %v8056_v52  ;;  %v5710_v1 = vadd.f32 %v5709_v10, %v5648_v39  ;;  %v4083_v34 = vadd.f32 %v16647_v9, %v15319_v3  ;;  %v15346_v48 = vadd.s32 %v6021_v32, %v6017_v60  ;;  %v16650_v32 = vld [vmem:[#allocation51_spill] sm:$0xff]  ;;  %v16652_v10 = vld [vmem:[#allocation49_spill] sm:$0xff]  ;;  %v16654_v9 = vld [vmem:[#allocation128_spill] sm:$0xff] }
 0x5b9   : > { %v15348_v8 = vadd.f32 %v5755_v35, %v5706_v46  ;;  %vm15352_vm9 = vcmp.le.f32.partialorder %v7938_v30, 0.7853982  ;;  %vm7940_vm11 = vcmp.lt.s32.totalorder %v15052_v4, 0  ;;  %v5975_v27 = vsel %vm5969_vm6, %v5972_v44, %v5974_v12 }
 0x5ba   : > { %v8060_v63 = vxor.u32 2147483648, %v8059_v13  ;;  %v6028_v50 = vadd.s32 %v6027_v58, %v6018_v59  ;;  %v8063_v3 = vsel %vm7940_vm11, %v8062_v38, %v15259_v20  ;;  %vm6031_vm5 = vc.u32 %v15341_v22, %v15346_v48 }
 0x5bb   : > { %v6247_v35 = vand.u32 2139095040, %v15348_v8  ;;  %v6244_v21 = vand.u32 2147483647, %v15348_v8  ;;  %v15367_v60 = vadd.f32 %v5759_v55, %v5710_v1  ;;  %v6029_v44 = vmul.u32 %v15299_v57, %v5975_v27  ;;  %v16655_v27 = vld [vmem:[#allocation129_spill] sm:$0xff] }
 0x5bc   : > { %v8061_v33 = vsel %vm7940_vm11, %v8060_v63, %v8059_v13  ;;  %v6032_v54 = vadd.s32 1, %v6028_v50  ;;  %v3804_v20 = vadd.f32 %v16650_v32, %v3749_v36  ;;  %v8065_v40 = vsel %vm15352_vm9, 0, %v8063_v3 }
 0x5bd   : > { %v8064_v30 = vsel %vm15352_vm9, %v15052_v4, %v8061_v33  ;;  %v6248_v19 = vshrl.u32 %v6247_v35, 23  ;;  %v4152_v61 = vadd.f32 %v16651_v47, %v4083_v34  ;;  %v6251_v29 = vand.u32 8388607, %v6244_v21 }
 0x5be   : > { %v8066_v6 = vmul.f32 %v8064_v30, %v8064_v30  ;;  %v6033_v49 = vsel %vm6031_vm5, %v6032_v54, %v6028_v50  ;;  %v6555_v52 = vand.u32 2139095040, %v15367_v60  ;;  %v3855_v12 = vadd.f32 %v16652_v10, %v3804_v20 }
 0x5bf   : > { %v6034_v28 = vadd.s32 %v6033_v49, %v6029_v44  ;;  %v10968_v15 = vadd.s32 4294967169, %v6248_v19  ;;  %v8082_v5 = vand.u32 3, %v8065_v40  ;;  %v10592_v26 = vadd.s32 3, %v8065_v40 }
 0x5c0   : > { %v8067_v14 = vmul.f32 -0.001358992, %v8066_v6  ;;  %v8074_v53 = vmul.f32 -0.00019511016, %v8066_v6  ;;  %v6552_v39 = vand.u32 2147483647, %v15367_v60  ;;  %v4203_v36 = vadd.f32 %v16653_v37, %v4152_v61 }
 0x5c1   : > { %v6035_v0 = vadd.s32 536870912, %v6034_v28  ;;  %v6254_v16 = vadd.s32 1, %v10968_v15  ;;  %v6252_v59 = vor.u32 8388608, %v6251_v29  ;;  %v6556_v1 = vshrl.u32 %v6555_v52, 23 }
 0x5c2   : > { %v8068_v24 = vadd.f32 0.041655596, %v8067_v14  ;;  %v8075_v57 = vadd.f32 0.008332121, %v8074_v53  ;;  %v5027_v34 = vmul.f32 %v16654_v9, %v3855_v12  ;;  %v15385_v50 = vmul.f32 %v16655_v27, %v4203_v36 }
 0x5c3   : > { %v15379_v46 = vshrl.u32 %v6035_v0, 30  ;;  %vm6255_vm1 = vcmp.gt.s32.totalorder %v6254_v16, 0  ;;  %vm8084_vm2 = vcmp.eq.s32.totalorder %v8082_v5, 0  ;;  %v10593_v33 = vand.u32 3, %v10592_v26 }
 0x5c4   : > { %v8069_v13 = vmul.f32 %v8068_v24, %v8066_v6  ;;  %v8076_v38 = vmul.f32 %v8075_v57, %v8066_v6  ;;  %v6256_v58 = vsel %vm6255_vm1, %v6254_v16, 0  ;;  %vm8083_vm7 = vcmp.lt.s32.totalorder %v8082_v5, 2 }
 0x5c5   : > { %v6037_v43 = vshll.u32 %v15379_v46, 30  ;;  %v6258_v3 = vand.u32 31, %v6256_v58  ;;  %v15391_v19 = vand.u32 8388607, %v6552_v39  ;;  %vm8081_vm8 = vweird.f32 %v15052_v4 }
 0x5c6   : > { %v8070_v63 = vadd.f32 -0.4999988, %v8069_v13  ;;  %v8077_v55 = vadd.f32 -0.16666654, %v8076_v38  ;;  %vm8087_vm14 = vcmp.eq.s32.totalorder %v8082_v5, 2  ;;  %v15396_v20 = vshll.u32 %v6252_v59, 8 }
 0x5c7   : > { %v15387_v44 = vsub.s32 %v6034_v28, %v6037_v43  ;;  %v15394_v32 = vsub.s32 32, %v6258_v3  ;;  %v10974_v40 = vadd.s32 4294967169, %v6556_v1  ;;  %vm10594_vm10 = vcmp.lt.s32.totalorder %v10593_v33, 2 }
 0x5c8   : > { %v8071_v35 = vmul.f32 %v8070_v63, %v8066_v6  ;;  %v8078_v54 = vmul.f32 %v8077_v55, %v8066_v6  ;;  %vm10595_vm12 = vcmp.eq.s32.totalorder %v10593_v33, 0  ;;  %vm10598_vm13 = vcmp.eq.s32.totalorder %v10593_v33, 2 }
 0x5c9   : > { %vm6039_vm6 = vcmp.lt.s32.totalorder %v15387_v44, 0  ;;  %v6040_v6 = vsub.s32 0, %v15387_v44  ;;  %v6030_v53 = vadd.s32 %v15346_v48, %v15341_v22  ;;  %v6560_v61 = vor.u32 8388608, %v15391_v19 }
 0x5ca   : > { %v8072_v49 = vadd.f32 1.0, %v8071_v35  ;;  %v8079_v14 = vadd.f32 1.0, %v8078_v54  ;;  %vm5938_vm0 = vcmp.lt.s32.totalorder %v15070_v7, 0  ;;  %v6262_v52 = vshrl.u32 %v16558_v31, %v15394_v32 }
 0x5cb   : > { %v6041_v47 = vsel %vm6039_vm6, %v6040_v6, %v15387_v44  ;;  %v15408_v24 = vand.u32 65535, %v15396_v20  ;;  %v15411_v57 = vshrl.u32 %v15396_v20, 16  ;;  %v6060_v22 = vsub.s32 4, %v15379_v46 }
 0x5cc   : > { %v8080_v28 = vmul.f32 %v8079_v14, %v8064_v30  ;;  %v8088_v15 = vxor.u32 2147483648, %v8072_v49  ;;  %v6042_v29 = vclz %v6041_v47  ;;  %v15414_v48 = vshrl.u32 %v6256_v58, 5 }
 0x5cd   : > { %v15416_v30 = vadd.s32 1, %v10974_v40  ;;  %v6261_v10 = vshll.u32 %v16557_v23, %v6258_v3  ;;  %v6264_v12 = vshll.u32 %v16558_v31, %v6258_v3  ;;  %v6265_v26 = vshrl.u32 %v16559_v25, %v15394_v32 }
 0x5ce   : > { %v8085_v0 = vxor.u32 2147483648, %v8080_v28  ;;  %v10963_v16 = vadd.s32 4294967294, %v6042_v29  ;;  %v8089_v38 = vsel %vm8087_vm14, %v8088_v15, %v8080_v28  ;;  %v10600_v36 = vsel %vm10598_vm13, %v8088_v15, %v8080_v28 }
 0x5cf   : > { %vm15430_vm3 = vcmp.le.f32.partialorder %v5936_v41, 0.7853982  ;;  %v6263_v9 = vor.u32 %v6262_v52, %v6261_v10  ;;  %v6268_v43 = vshrl.u32 %v16560_v62, %v15394_v32  ;;  %v6267_v41 = vshll.u32 %v16559_v25, %v6258_v3 }
 0x5d0   : > { %v8086_v13 = vsel %vm8084_vm2, %v8072_v49, %v8085_v0  ;;  %v10597_v37 = vsel %vm10595_vm12, %v8072_v49, %v8085_v0  ;;  %vm10964_vm4 = vcmp.lt.s32.totalorder %v10963_v16, 0  ;;  %v6266_v40 = vor.u32 %v6265_v26, %v6264_v12 }
 0x5d1   : > { %v8090_v59 = vsel %vm8083_vm7, %v8086_v13, %v8089_v38  ;;  %v10601_v58 = vsel %vm10594_vm10, %v10597_v37, %v10600_v36  ;;  %v6045_v5 = vsel %vm10964_vm4, 0, %v10963_v16  ;;  %v6270_v49 = vshll.u32 %v16560_v62, %v6258_v3 }
 0x5d2   : > { %v8091_v63 = vsel %vm8081_vm8, nan, %v8090_v59  ;;  %v10602_v55 = vsel %vm8081_vm8, nan, %v10601_v58  ;;  %v6046_v35 = vsub.s32 32, %v6045_v5  ;;  %v6050_v54 = vsub.s32 4294967266, %v6045_v5 }
 0x5d3   : > { %v8260_v27 = vmul.f32 %v8091_v63, %v5027_v34  ;;  %v10772_v33 = vmul.f32 %v10602_v55, %v5027_v34  ;;  %v6271_v14 = vshrl.u32 %v16561_v51, %v15394_v32  ;;  %v6269_v6 = vor.u32 %v6268_v43, %v6267_v41 }
 0x5d4   : > { %v6048_v4 = vshrl.u32 %v6030_v53, %v6046_v35  ;;  %v6273_v28 = vshll.u32 %v16561_v51, %v6258_v3  ;;  %v6274_v15 = vshrl.u32 %v16562_v11, %v15394_v32  ;;  %v6047_v34 = vshll.u32 %v15387_v44, %v6045_v5 }
 0x5d5   : > { %8276 = vst [vmem:[%s14384_s7 + $0x70] sm:$0xff] %v8260_v27  ;;  %v6051_v47 = vadd.s32 127, %v6050_v54  ;;  %v6061_v29 = vsel %vm5938_vm0, %v6060_v22, %v15379_v46  ;;  %v6272_v52 = vor.u32 %v6271_v14, %v6270_v49  ;;  %vm6276_vm15 = vcmp.lt.s32.totalorder %v15414_v48, 1 }
 0x5d6   : > { %10788 = vst [vmem:[%s14396_s10 + $0x70] sm:$0xff] %v10772_v33  ;;  %v6275_v0 = vor.u32 %v6274_v15, %v6273_v28  ;;  %vm6278_vm9 = vcmp.lt.s32.totalorder %v15414_v48, 3  ;;  %vm6279_vm11 = vcmp.lt.s32.totalorder %v15414_v48, 4  ;;  %v6049_v3 = vor.u32 %v6048_v4, %v6047_v34 }
 0x5d7   : > { %v6052_v53 = vshll.u32 %v6051_v47, 23  ;;  %v6284_v16 = vsel %vm6276_vm15, %v6263_v9, %v6266_v40  ;;  %v6285_v44 = vsel %vm6279_vm11, %v6272_v52, 920167782  ;;  %vm6277_vm5 = vcmp.lt.s32.totalorder %v15414_v48, 2 }
 0x5d8   : > { %v6286_v46 = vsel %vm6278_vm9, %v6269_v6, %v6285_v44  ;;  %v6288_v22 = vsel %vm6276_vm15, %v6266_v40, %v6269_v6  ;;  %vm6563_vm1 = vcmp.gt.s32.totalorder %v15416_v30, 0  ;;  %v6063_v12 = vsel %vm15430_vm3, 0, %v6061_v29 }
 0x5d9   : > { %v6053_v10 = vor.u32 4788187, %v6052_v53  ;;  %v6287_v26 = vsel %vm6277_vm5, %v6284_v16, %v6286_v46  ;;  %v6289_v13 = vsel %vm6279_vm11, %v6275_v0, 1326507024  ;;  %v6260_v38 = vshrl.u32 %v16557_v23, %v15394_v32 }
 0x5da   : > { %v6290_v37 = vsel %vm6278_vm9, %v6272_v52, %v6289_v13  ;;  %v6317_v36 = vand.u32 65535, %v6287_v26  ;;  %v6318_v59 = vshrl.u32 %v6287_v26, 16  ;;  %v6056_v63 = vcvt.s32.f32 %v6049_v3 }
 0x5db   : > { %v6054_v58 = vand.u32 2147483647, %v6053_v10  ;;  %v6281_v55 = vsel %vm6279_vm11, %v6269_v6, 2102212464  ;;  %v6291_v5 = vsel %vm6277_vm5, %v6288_v22, %v6290_v37  ;;  %v15480_v43 = vand.u32 3, %v6063_v12 }
 0x5dc   : > { %v6295_v27 = vand.u32 65535, %v6291_v5  ;;  %v6296_v33 = vshrl.u32 %v6291_v5, 16  ;;  %v6320_v35 = vmul.u32 %v6318_v59, %v15408_v24  ;;  %v8577_v41 = vadd.s32 3, %v6063_v12 }
 0x5dd   : > { %v6057_v32 = vmul.f32 %v6056_v63, %v6054_v58  ;;  %v6280_v54 = vsel %vm6276_vm15, %v6260_v38, %v6263_v9  ;;  %v6321_v49 = vmul.u32 %v6317_v36, %v15411_v57  ;;  %v6282_v14 = vsel %vm6278_vm9, %v6266_v40, %v6281_v55 }
 0x5de   : > { %v6298_v4 = vmul.u32 %v6296_v33, %v15408_v24  ;;  %v6299_v6 = vmul.u32 %v6295_v27, %v15411_v57  ;;  %v6564_v28 = vsel %vm6563_vm1, %v15416_v30, 0  ;;  %v6319_v34 = vmul.u32 %v6317_v36, %v15408_v24 }
 0x5df   : > { %v6058_v15 = vxor.u32 2147483648, %v6057_v32  ;;  %v6322_v47 = vmul.u32 %v6318_v59, %v15411_v57  ;;  %v6323_v29 = vshll.u32 %v6320_v35, 16  ;;  %v6297_v9 = vmul.u32 %v6295_v27, %v15408_v24 }
 0x5e0   : > { %v6300_v52 = vmul.u32 %v6296_v33, %v15411_v57  ;;  %v6301_v0 = vshll.u32 %v6298_v4, 16  ;;  %v6325_v40 = vshll.u32 %v6321_v49, 16  ;;  %v6303_v53 = vshll.u32 %v6299_v6, 16 }
 0x5e1   : > { %v6059_v3 = vsel %vm5938_vm0, %v6058_v15, %v6057_v32  ;;  %vm6327_vm2 = vc.u32 %v6319_v34, %v6323_v29  ;;  %v6329_v16 = vadd.s32 %v6323_v29, %v6319_v34  ;;  %v6324_v12 = vshrl.u32 %v6320_v35, 16 }
 0x5e2   : > { %v15502_v30 = vsel %vm15430_vm3, %v15070_v7, %v6059_v3  ;;  %vm6305_vm7 = vc.u32 %v6297_v9, %v6301_v0  ;;  %v6307_v44 = vadd.s32 %v6301_v0, %v6297_v9  ;;  %v6328_v46 = vsel %vm6327_vm2, 1, %v16566_v42 }
 0x5e3   : > { %v6064_v24 = vmul.f32 %v15502_v30, %v15502_v30  ;;  %v6306_v57 = vsel %vm6305_vm7, 1, %v16566_v42  ;;  %v6330_v22 = vadd.s32 %v6328_v46, %v6322_v47  ;;  %vm6331_vm8 = vc.u32 %v6329_v16, %v6325_v40 }
 0x5e4   : > { %v6308_v10 = vadd.s32 %v6306_v57, %v6300_v52  ;;  %vm6309_vm14 = vc.u32 %v6307_v44, %v6303_v53  ;;  %v6332_v26 = vsel %vm6331_vm8, 1, %v16566_v42  ;;  %v6283_v36 = vsel %vm6277_vm5, %v6280_v54, %v6282_v14 }
 0x5e5   : > { %v6065_v13 = vmul.f32 -0.001358992, %v6064_v24  ;;  %v6072_v1 = vmul.f32 -0.00019511016, %v6064_v24  ;;  %v6310_v38 = vsel %vm6309_vm14, 1, %v16566_v42  ;;  %v6334_v37 = vadd.s32 %v6332_v26, %v6330_v22 }
 0x5e6   : > { %v6302_v59 = vshrl.u32 %v6298_v4, 16  ;;  %v6312_v58 = vadd.s32 %v6310_v38, %v6308_v10  ;;  %v6566_v63 = vand.u32 31, %v6564_v28  ;;  %v6326_v27 = vshrl.u32 %v6321_v49, 16 }
 0x5e7   : > { %v6066_v55 = vadd.f32 0.041655596, %v6065_v13  ;;  %v6073_v5 = vadd.f32 0.008332121, %v6072_v1  ;;  %v6335_v33 = vadd.s32 %v6334_v37, %v6324_v12  ;;  %v15512_v32 = vand.u32 3, %v8577_v41 }
 0x5e8   : > { %v6304_v35 = vshrl.u32 %v6299_v6, 16  ;;  %v6313_v15 = vadd.s32 %v6312_v58, %v6302_v59  ;;  %v15514_v34 = vsub.s32 32, %v6566_v63  ;;  %v6337_v52 = vmul.u32 %v15396_v20, %v6283_v36 }
 0x5e9   : > { %v6067_v47 = vmul.f32 %v6066_v55, %v6064_v24  ;;  %v6074_v29 = vmul.f32 %v6073_v5, %v6064_v24  ;;  %v6336_v9 = vadd.s32 %v6335_v33, %v6326_v27  ;;  %v15519_v54 = vadd.s32 %v6329_v16, %v6325_v40 }
 0x5ea   : > { %v15517_v48 = vadd.s32 %v6313_v15, %v6304_v35  ;;  %v15521_v14 = vshrl.u32 %v6564_v28, 5  ;;  %v6570_v49 = vshrl.u32 %v16558_v31, %v15514_v34  ;;  %vm6085_vm6 = vcmp.eq.s32.totalorder %v15480_v43, 2 }
 0x5eb   : > { %v6068_v41 = vadd.f32 -0.4999988, %v6067_v47  ;;  %v6075_v4 = vadd.f32 -0.16666654, %v6074_v29  ;;  %v6340_v6 = vadd.s32 1, %v6336_v9  ;;  %v6569_v0 = vshll.u32 %v16557_v23, %v6566_v63 }
 0x5ec   : > { %vm6082_vm10 = vcmp.eq.s32.totalorder %v15480_v43, 0  ;;  %vm6339_vm12 = vc.u32 %v15517_v48, %v15519_v54  ;;  %v6572_v20 = vshll.u32 %v16558_v31, %v6566_v63  ;;  %v6573_v28 = vshrl.u32 %v16559_v25, %v15514_v34 }
 0x5ed   : > { %v6576_v40 = vshrl.u32 %v16560_v62, %v15514_v34  ;;  %v6069_v3 = vmul.f32 %v6068_v41, %v6064_v24  ;;  %v6076_v53 = vmul.f32 %v6075_v4, %v6064_v24  ;;  %vm6081_vm13 = vcmp.lt.s32.totalorder %v15480_v43, 2 }
 0x5ee   : > { %vm8579_vm0 = vcmp.lt.s32.totalorder %v15512_v32, 2  ;;  %v6341_v16 = vsel %vm6339_vm12, %v6340_v6, %v6336_v9  ;;  %v6575_v44 = vshll.u32 %v16559_v25, %v6566_v63  ;;  %vm6079_vm3 = vweird.f32 %v15070_v7 }
 0x5ef   : > { %v6342_v46 = vadd.s32 %v6341_v16, %v6337_v52  ;;  %v15539_v57 = vor.u32 %v6570_v49, %v6569_v0  ;;  %v6578_v22 = vshll.u32 %v16560_v62, %v6566_v63  ;;  %v6579_v10 = vshrl.u32 %v16561_v51, %v15514_v34 }
 0x5f0   : > { %v6070_v12 = vadd.f32 1.0, %v6069_v3  ;;  %v6077_v26 = vadd.f32 1.0, %v6076_v53  ;;  %v6581_v24 = vshll.u32 %v16561_v51, %v6566_v63  ;;  %v6582_v13 = vshrl.u32 %v16562_v11, %v15514_v34 }
 0x5f1   : > { %v6343_v1 = vadd.s32 536870912, %v6342_v46  ;;  %v15547_v38 = vor.u32 %v6573_v28, %v6572_v20  ;;  %v15549_v37 = vor.u32 %v6576_v40, %v6575_v44  ;;  %v6580_v36 = vor.u32 %v6579_v10, %v6578_v22 }
 0x5f2   : > { %v6078_v59 = vmul.f32 %v6077_v26, %v15502_v30  ;;  %v6086_v58 = vxor.u32 2147483648, %v6070_v12  ;;  %v6583_v55 = vor.u32 %v6582_v13, %v6581_v24  ;;  %vm6587_vm4 = vcmp.lt.s32.totalorder %v15521_v14, 4  ;;  %v16658_v13 = vld [vmem:[#allocation28_spill] sm:$0xff] }
 0x5f3   : > { %vm8580_vm15 = vcmp.eq.s32.totalorder %v15512_v32, 0  ;;  %vm8583_vm9 = vcmp.eq.s32.totalorder %v15512_v32, 2  ;;  %v15555_v63 = vshrl.u32 %v6343_v1, 30  ;;  %v6593_v5 = vsel %vm6587_vm4, %v6580_v36, 920167782  ;;  %v16659_v1 = vld [vmem:[#allocation30_spill] sm:$0xff] }
 0x5f4   : > { %v6083_v27 = vxor.u32 2147483648, %v6078_v59  ;;  %vm6584_vm11 = vcmp.lt.s32.totalorder %v15521_v14, 1  ;;  %vm6586_vm5 = vcmp.lt.s32.totalorder %v15521_v14, 3  ;;  %v15563_v30 = vshll.u32 %v6560_v61, 8 }
 0x5f5   : > { %v6087_v33 = vsel %vm6085_vm6, %v6086_v58, %v6078_v59  ;;  %v8585_v35 = vsel %vm8583_vm9, %v6086_v58, %v6078_v59  ;;  %v6345_v15 = vshll.u32 %v15555_v63, 30  ;;  %v6592_v47 = vsel %vm6584_vm11, %v15539_v57, %v15547_v38  ;;  %v16660_v59 = vld [vmem:[#allocation32_spill] sm:$0xff]  ;;  %v16661_v58 = vld [vmem:[#allocation34_spill] sm:$0xff] }
 0x5f6   : > { %v6084_v29 = vsel %vm6082_vm10, %v6070_v12, %v6083_v27  ;;  %v8582_v9 = vsel %vm8580_vm15, %v6070_v12, %v6083_v27  ;;  %v6594_v19 = vsel %vm6586_vm5, %v15549_v37, %v6593_v5  ;;  %v6597_v61 = vsel %vm6587_vm4, %v6583_v55, 1326507024 }
 0x5f7   : > { %v6088_v52 = vsel %vm6081_vm13, %v6084_v29, %v6087_v33  ;;  %v8586_v49 = vsel %vm8579_vm0, %v8582_v9, %v8585_v35  ;;  %v6346_v41 = vsub.s32 %v6342_v46, %v6345_v15  ;;  %v6596_v4 = vsel %vm6584_vm11, %v15547_v38, %v15549_v37  ;;  %v5591_v33 = vpop.f32.mrf.mxu0 }
 0x5f8   : > { %v6089_v6 = vsel %vm6079_vm3, nan, %v6088_v52  ;;  %v8587_v0 = vsel %vm6079_vm3, nan, %v8586_v49  ;;  %vm6585_vm1 = vcmp.lt.s32.totalorder %v15521_v14, 2  ;;  %v6598_v43 = vsel %vm6586_vm5, %v6580_v36, %v6597_v61 }
 0x5f9   : > { %v8247_v32 = vmul.f32 %v6089_v6, %v15385_v50  ;;  %v10759_v20 = vmul.f32 %v8587_v0, %v15385_v50  ;;  %vm6347_vm2 = vcmp.lt.s32.totalorder %v6346_v41, 0  ;;  %v6348_v28 = vsub.s32 0, %v6346_v41 }
 0x5fa   : > { %v6595_v40 = vsel %vm6585_vm1, %v6592_v47, %v6594_v19  ;;  %v6599_v3 = vsel %vm6585_vm1, %v6596_v4, %v6598_v43  ;;  %v6601_v7 = vand.u32 65535, %v15563_v30  ;;  %v6602_v16 = vshrl.u32 %v15563_v30, 16 }
 0x5fb   : > { %8263 = vst [vmem:[%s14384_s7 + $0x8] sm:$0xff] %v8247_v32  ;;  %v6349_v53 = vsel %vm6347_vm2, %v6348_v28, %v6346_v41  ;;  %v6603_v44 = vand.u32 65535, %v6599_v3  ;;  %v6604_v46 = vshrl.u32 %v6599_v3, 16  ;;  %v6625_v26 = vand.u32 65535, %v6595_v40  ;;  %v5653_v32 = vpop.f32.mrf.mxu1 }
 0x5fc   : > { %10775 = vst [vmem:[%s14396_s10 + $0x8] sm:$0xff] %v10759_v20  ;;  %v6350_v22 = vclz %v6349_v53  ;;  %v6626_v24 = vshrl.u32 %v6595_v40, 16  ;;  %v3973_v36 = vadd.f32 %v16659_v1, %v16658_v13  ;;  %v3977_v55 = vadd.f32 %v16661_v58, %v16660_v59  ;;  %v16662_v13 = vld [vmem:[#allocation59_spill] sm:$0xff]  ;;  %v5713_v59 = vpop.f32.mrf.mxu2 }
 0x5fd   : > { %v6606_v10 = vmul.u32 %v6604_v46, %v6601_v7  ;;  %v6607_v50 = vmul.u32 %v6603_v44, %v6602_v16  ;;  %v6605_v5 = vmul.u32 %v6603_v44, %v6601_v7  ;;  %v6338_v35 = vadd.s32 %v15519_v54, %v15517_v48 }
 0x5fe   : > { %v10969_v12 = vadd.s32 4294967294, %v6350_v22  ;;  %v6608_v15 = vmul.u32 %v6604_v46, %v6602_v16  ;;  %v6628_v19 = vmul.u32 %v6626_v24, %v6601_v7  ;;  %v6627_v4 = vmul.u32 %v6625_v26, %v6601_v7 }
 0x5ff   : > { %v6609_v27 = vshll.u32 %v6606_v10, 16  ;;  %v6611_v47 = vshll.u32 %v6607_v50, 16  ;;  %v6629_v43 = vmul.u32 %v6625_v26, %v6602_v16  ;;  %v6610_v40 = vshrl.u32 %v6606_v10, 16 }
 0x600   : > { %vm10970_vm7 = vcmp.lt.s32.totalorder %v10969_v12, 0  ;;  %v6631_v54 = vshll.u32 %v6628_v19, 16  ;;  %v6630_v53 = vmul.u32 %v6626_v24, %v6602_v16  ;;  %v4028_v7 = vadd.f32 %v16662_v13, %v3973_v36 }
 0x601   : > { %v6353_v29 = vsel %vm10970_vm7, 0, %v10969_v12  ;;  %vm6613_vm8 = vc.u32 %v6605_v5, %v6609_v27  ;;  %v6615_v9 = vadd.s32 %v6609_v27, %v6605_v5  ;;  %v6633_v44 = vshll.u32 %v6629_v43, 16  ;;  %v5596_v27 = vpop.f32.mrf.mxu0 }
 0x602   : > { %v6354_v61 = vsub.s32 32, %v6353_v29  ;;  %v6358_v52 = vsub.s32 4294967266, %v6353_v29  ;;  %v6614_v49 = vsel %vm6613_vm8, 1, %v16566_v42  ;;  %v6355_v6 = vshll.u32 %v6346_v41, %v6353_v29 }
 0x603   : > { %v6616_v0 = vadd.s32 %v6614_v49, %v6608_v15  ;;  %vm6617_vm14 = vc.u32 %v6615_v9, %v6611_v47  ;;  %vm6635_vm6 = vc.u32 %v6627_v4, %v6631_v54  ;;  %v6637_v12 = vadd.s32 %v6631_v54, %v6627_v4 }
 0x604   : > { %v6356_v20 = vshrl.u32 %v6338_v35, %v6354_v61  ;;  %v6359_v28 = vadd.s32 127, %v6358_v52  ;;  %v6618_v48 = vsel %vm6617_vm14, 1, %v16566_v42  ;;  %v6568_v41 = vshrl.u32 %v16557_v23, %v15514_v34 }
 0x605   : > { %v6620_v3 = vadd.s32 %v6618_v48, %v6616_v0  ;;  %v6636_v1 = vsel %vm6635_vm6, 1, %v16566_v42  ;;  %v6589_v10 = vsel %vm6587_vm4, %v15549_v37, 2102212464  ;;  %vm6639_vm10 = vc.u32 %v6637_v12, %v6633_v44 }
 0x606   : > { %v6357_v46 = vor.u32 %v6356_v20, %v6355_v6  ;;  %v6360_v22 = vshll.u32 %v6359_v28, 23  ;;  %v6638_v16 = vadd.s32 %v6636_v1, %v6630_v53  ;;  %v6588_v24 = vsel %vm6584_vm11, %v6568_v41, %v15539_v57  ;;  %v5763_v57 = vpop.f32.mrf.mxu3  ;;  %v5659_v20 = vpop.f32.mrf.mxu1  ;;  %v16665_v53 = vld [vmem:[#allocation61_spill] sm:$0xff] }
 0x607   : > { %v6621_v26 = vadd.s32 %v6620_v3, %v6610_v40  ;;  %v6612_v5 = vshrl.u32 %v6607_v50, 16  ;;  %v6640_v36 = vsel %vm6639_vm10, 1, %v16566_v42  ;;  %v5592_v34 = vadd.f32 %v5591_v33, %v14408_v2  ;;  %v16663_v33 = vld [vmem:[#allocation63_spill] sm:$0xff] }
 0x608   : > { %v6361_v58 = vor.u32 4788187, %v6360_v22  ;;  %v6364_v15 = vcvt.s32.f32 %v6357_v46  ;;  %v6632_v47 = vshrl.u32 %v6628_v19, 16  ;;  %v6642_v29 = vadd.s32 %v6640_v36, %v6638_v16 }
 0x609   : > { %v6368_v9 = vsub.s32 4, %v15555_v63  ;;  %v6590_v37 = vsel %vm6586_vm5, %v15547_v38, %v6589_v10  ;;  %v15628_v61 = vadd.s32 %v6621_v26, %v6612_v5  ;;  %v5654_v52 = vadd.f32 %v5653_v32, %v5592_v34  ;;  %v16664_v32 = vld [vmem:[#allocation57_spill] sm:$0xff] }
 0x60a   : > { %v6362_v35 = vand.u32 2147483647, %v6361_v58  ;;  %v6634_v49 = vshrl.u32 %v6629_v43, 16  ;;  %v6643_v4 = vadd.s32 %v6642_v29, %v6632_v47  ;;  %v5597_v2 = vadd.f32 %v5596_v27, %v14706_v18  ;;  %v16668_v29 = vld [vmem:[#allocation36_spill] sm:$0xff] }
 0x60b   : > { %v4033_v6 = vadd.f32 %v16663_v33, %v3977_v55  ;;  %v15632_v0 = vadd.s32 %v6637_v12, %v6633_v44  ;;  %v5714_v19 = vadd.f32 %v5713_v59, %v5654_v52  ;;  %vm6246_vm12 = vcmp.lt.s32.totalorder %v15348_v8, 0 }
 0x60c   : > { %v6365_v50 = vmul.f32 %v6364_v15, %v6362_v35  ;;  %v6591_v38 = vsel %vm6585_vm1, %v6588_v24, %v6590_v37  ;;  %v6644_v48 = vadd.s32 %v6643_v4, %v6634_v49  ;;  %v4089_v54 = vadd.f32 %v16664_v32, %v4028_v7  ;;  %v16667_v24 = vld [vmem:[#allocation64_spill] sm:$0xff]  ;;  %v16670_v49 = vld [vmem:[#allocation62_spill] sm:$0xff] }
 0x60d   : > { %v6369_v43 = vsel %vm6246_vm12, %v6368_v9, %v15555_v63  ;;  %vm6647_vm13 = vc.u32 %v15628_v61, %v15632_v0  ;;  %v15641_v18 = vadd.f32 %v5763_v57, %v5714_v19  ;;  %vm6245_vm0 = vcmp.le.f32.partialorder %v6244_v21, 0.7853982  ;;  %v5717_v63 = vpop.f32.mrf.mxu2  ;;  %v16666_v21 = vld [vmem:[#allocation60_spill] sm:$0xff]  ;;  %v16669_v9 = vld [vmem:[#allocation38_spill] sm:$0xff] }
 0x60e   : > { %v6366_v28 = vxor.u32 2147483648, %v6365_v50  ;;  %v6648_v40 = vadd.s32 1, %v6644_v48  ;;  %v5660_v3 = vadd.f32 %v5659_v20, %v5597_v2  ;;  %v4095_v44 = vadd.f32 %v16665_v53, %v4033_v6  ;;  %v5767_v27 = vpop.f32.mrf.mxu3  ;;  %v16671_v19 = vld [vmem:[#allocation66_spill] sm:$0xff] }
 0x60f   : > { %v6645_v46 = vmul.u32 %v15563_v30, %v6591_v38  ;;  %v6863_v22 = vand.u32 2139095040, %v15641_v18  ;;  %v6371_v12 = vsel %vm6245_vm0, 0, %v6369_v43  ;;  %v6860_v41 = vand.u32 2147483647, %v15641_v18 }
 0x610   : > { %v6367_v55 = vsel %vm6246_vm12, %v6366_v28, %v6365_v50  ;;  %v6649_v7 = vsel %vm6647_vm13, %v6648_v40, %v6644_v48  ;;  %v4156_v59 = vadd.f32 %v16666_v21, %v4089_v54  ;;  %v5718_v16 = vadd.f32 %v5717_v63, %v5660_v3 }
 0x611   : > { %v6370_v14 = vsel %vm6245_vm0, %v15348_v8, %v6367_v55  ;;  %v6650_v26 = vadd.s32 %v6649_v7, %v6645_v46  ;;  %v6864_v1 = vshrl.u32 %v6863_v22, 23  ;;  %v4160_v5 = vadd.f32 %v16667_v24, %v4095_v44  ;;  %v16672_v55 = vld [vmem:[#allocation130_spill] sm:$0xff] }
 0x612   : > { %v6372_v13 = vmul.f32 %v6370_v14, %v6370_v14  ;;  %v8887_v36 = vadd.s32 3, %v6371_v12  ;;  %v6867_v47 = vand.u32 8388607, %v6860_v41  ;;  %v15656_v37 = vadd.f32 %v16669_v9, %v16668_v29 }
 0x613   : > { %v6651_v34 = vadd.s32 536870912, %v6650_v26  ;;  %v10980_v30 = vadd.s32 4294967169, %v6864_v1  ;;  %v6388_v52 = vand.u32 3, %v6371_v12  ;;  %v4207_v4 = vadd.f32 %v16670_v49, %v4156_v59 }
 0x614   : > { %v6373_v58 = vmul.f32 -0.001358992, %v6372_v13  ;;  %v6380_v10 = vmul.f32 -0.00019511016, %v6372_v13  ;;  %v15661_v6 = vadd.f32 %v5767_v27, %v5718_v16  ;;  %v15664_v20 = vadd.f32 %v16671_v19, %v4160_v5 }
 0x615   : > { %v15658_v57 = vshrl.u32 %v6651_v34, 30  ;;  %v6870_v50 = vadd.s32 1, %v10980_v30  ;;  %v8888_v28 = vand.u32 3, %v8887_v36  ;;  %v6868_v54 = vor.u32 8388608, %v6867_v47 }
 0x616   : > { %v6374_v35 = vadd.f32 0.041655596, %v6373_v58  ;;  %v6381_v15 = vadd.f32 0.008332121, %v6380_v10  ;;  %v5016_v40 = vmul.f32 %v16672_v55, %v4207_v4  ;;  %vm6390_vm4 = vcmp.eq.s32.totalorder %v6388_v52, 0 }
 0x617   : > { %v6653_v38 = vshll.u32 %v15658_v57, 30  ;;  %vm6871_vm3 = vcmp.gt.s32.totalorder %v6870_v50, 0  ;;  %vm6389_vm15 = vcmp.lt.s32.totalorder %v6388_v52, 2  ;;  %vm6393_vm9 = vcmp.eq.s32.totalorder %v6388_v52, 2 }
 0x618   : > { %v6375_v2 = vmul.f32 %v6374_v35, %v6372_v13  ;;  %v6382_v33 = vmul.f32 %v6381_v15, %v6372_v13  ;;  %v6872_v43 = vsel %vm6871_vm3, %v6870_v50, 0  ;;  %v7168_v22 = vand.u32 2147483647, %v15661_v6 }
 0x619   : > { %v15668_v3 = vsub.s32 %v6650_v26, %v6653_v38  ;;  %v6874_v53 = vand.u32 31, %v6872_v43  ;;  %vm6387_vm11 = vweird.f32 %v15348_v8  ;;  %vm8889_vm5 = vcmp.lt.s32.totalorder %v8888_v28, 2 }
 0x61a   : > { %v6376_v48 = vadd.f32 -0.4999988, %v6375_v2  ;;  %v6383_v32 = vadd.f32 -0.16666654, %v6382_v33  ;;  %v7171_v12 = vand.u32 2139095040, %v15661_v6  ;;  %v15677_v21 = vshll.u32 %v6868_v54, 8 }
 0x61b   : > { %vm6655_vm1 = vcmp.lt.s32.totalorder %v15668_v3, 0  ;;  %v6656_v63 = vsub.s32 0, %v15668_v3  ;;  %v15675_v26 = vsub.s32 32, %v6874_v53  ;;  %vm8890_vm2 = vcmp.eq.s32.totalorder %v8888_v28, 0 }
 0x61c   : > { %v6377_v44 = vmul.f32 %v6376_v48, %v6372_v13  ;;  %v6384_v46 = vmul.f32 %v6383_v32, %v6372_v13  ;;  %vm8893_vm7 = vcmp.eq.s32.totalorder %v8888_v28, 2  ;;  %v6646_v13 = vadd.s32 %v15632_v0, %v15628_v61 }
 0x61d   : > { %v6657_v59 = vsel %vm6655_vm1, %v6656_v63, %v15668_v3  ;;  %v15684_v24 = vand.u32 8388607, %v7168_v22  ;;  %vm6554_vm8 = vcmp.lt.s32.totalorder %v15367_v60, 0  ;;  %v6676_v5 = vsub.s32 4, %v15658_v57 }
 0x61e   : > { %v6378_v7 = vadd.f32 1.0, %v6377_v44  ;;  %v6385_v1 = vadd.f32 1.0, %v6384_v46  ;;  %v6658_v16 = vclz %v6657_v59  ;;  %v6878_v36 = vshrl.u32 %v16558_v31, %v15675_v26 }
 0x61f   : > { %v6881_v34 = vshrl.u32 %v16559_v25, %v15675_v26  ;;  %v7172_v61 = vshrl.u32 %v7171_v12, 23  ;;  %v15694_v27 = vand.u32 65535, %v15677_v21  ;;  %v15698_v47 = vshrl.u32 %v6872_v43, 5 }
 0x620   : > { %v6386_v58 = vmul.f32 %v6385_v1, %v6370_v14  ;;  %v6394_v10 = vxor.u32 2147483648, %v6378_v7  ;;  %v10975_v30 = vadd.s32 4294967294, %v6658_v16  ;;  %v6877_v14 = vshll.u32 %v16557_v23, %v6874_v53 }
 0x621   : > { %v6880_v29 = vshll.u32 %v16558_v31, %v6874_v53  ;;  %vm15707_vm6 = vcmp.le.f32.partialorder %v6552_v39, 0.7853982  ;;  %v6883_v28 = vshll.u32 %v16559_v25, %v6874_v53  ;;  %v6884_v39 = vshrl.u32 %v16560_v62, %v15675_v26 }
 0x622   : > { %v6391_v0 = vxor.u32 2147483648, %v6386_v58  ;;  %v6395_v35 = vsel %vm6393_vm9, %v6394_v10, %v6386_v58  ;;  %v8895_v15 = vsel %vm8893_vm7, %v6394_v10, %v6386_v58  ;;  %vm10976_vm14 = vcmp.lt.s32.totalorder %v10975_v30, 0 }
 0x623   : > { %v6879_v49 = vor.u32 %v6878_v36, %v6877_v14  ;;  %v6661_v19 = vsel %vm10976_vm14, 0, %v10975_v30  ;;  %v6882_v38 = vor.u32 %v6881_v34, %v6880_v29  ;;  %v6886_v63 = vshll.u32 %v16560_v62, %v6874_v53 }
 0x624   : > { %v6392_v9 = vsel %vm6390_vm4, %v6378_v7, %v6391_v0  ;;  %v8892_v50 = vsel %vm8890_vm2, %v6378_v7, %v6391_v0  ;;  %v6662_v52 = vsub.s32 32, %v6661_v19  ;;  %v6666_v55 = vsub.s32 4294967266, %v6661_v19 }
 0x625   : > { %v6396_v4 = vsel %vm6389_vm15, %v6392_v9, %v6395_v35  ;;  %v8896_v2 = vsel %vm8889_vm5, %v8892_v50, %v8895_v15  ;;  %v6663_v44 = vshll.u32 %v15668_v3, %v6661_v19  ;;  %v6887_v12 = vshrl.u32 %v16561_v51, %v15675_v26 }
 0x626   : > { %v6397_v48 = vsel %vm6387_vm11, nan, %v6396_v4  ;;  %v8897_v32 = vsel %vm6387_vm11, nan, %v8896_v2  ;;  %v6664_v46 = vshrl.u32 %v6646_v13, %v6662_v52  ;;  %v6667_v8 = vadd.s32 127, %v6666_v55 }
 0x627   : > { %v8249_v54 = vmul.f32 %v6397_v48, %v5016_v40  ;;  %v10761_v43 = vmul.f32 %v8897_v32, %v5016_v40  ;;  %v6885_v7 = vor.u32 %v6884_v39, %v6883_v28  ;;  %v6889_v1 = vshll.u32 %v16561_v51, %v6874_v53 }
 0x628   : > { %v6890_v40 = vshrl.u32 %v16562_v11, %v15675_v26  ;;  %v6665_v59 = vor.u32 %v6664_v46, %v6663_v44  ;;  %v6677_v3 = vsel %vm6554_vm8, %v6676_v5, %v15658_v57  ;;  %v6888_v13 = vor.u32 %v6887_v12, %v6886_v63 }
 0x629   : > { %8265 = vst [vmem:[%s14384_s7 + $0x18] sm:$0xff] %v8249_v54  ;;  %v6910_v58 = vshrl.u32 %v15677_v21, 16  ;;  %v6668_v10 = vshll.u32 %v6667_v8, 23  ;;  %vm6892_vm10 = vcmp.lt.s32.totalorder %v15698_v47, 1  ;;  %vm6895_vm12 = vcmp.lt.s32.totalorder %v15698_v47, 4 }
 0x62a   : > { %10777 = vst [vmem:[%s14396_s10 + $0x18] sm:$0xff] %v10761_v43  ;;  %v6891_v16 = vor.u32 %v6890_v40, %v6889_v1  ;;  %vm6894_vm13 = vcmp.lt.s32.totalorder %v15698_v47, 3  ;;  %v6900_v53 = vsel %vm6892_vm10, %v6879_v49, %v6882_v38  ;;  %v6901_v36 = vsel %vm6895_vm12, %v6888_v13, 920167782 }
 0x62b   : > { %v10986_v34 = vadd.s32 4294967169, %v7172_v61  ;;  %v6669_v0 = vor.u32 4788187, %v6668_v10  ;;  %vm6893_vm0 = vcmp.lt.s32.totalorder %v15698_v47, 2  ;;  %v6902_v57 = vsel %vm6894_vm13, %v6885_v7, %v6901_v36 }
 0x62c   : > { %v6904_v5 = vsel %vm6892_vm10, %v6882_v38, %v6885_v7  ;;  %v6672_v30 = vcvt.s32.f32 %v6665_v59  ;;  %v6679_v14 = vsel %vm15707_vm6, 0, %v6677_v3  ;;  %v6903_v35 = vsel %vm6893_vm0, %v6900_v53, %v6902_v57 }
 0x62d   : > { %v6905_v15 = vsel %vm6895_vm12, %v6891_v16, 1326507024  ;;  %v6670_v61 = vand.u32 2147483647, %v6669_v0  ;;  %v6933_v9 = vand.u32 65535, %v6903_v35  ;;  %v6934_v50 = vshrl.u32 %v6903_v35, 16 }
 0x62e   : > { %v6906_v29 = vsel %vm6894_vm13, %v6888_v13, %v6905_v15  ;;  %v6876_v4 = vshrl.u32 %v16557_v23, %v15675_v26  ;;  %v6897_v2 = vsel %vm6895_vm12, %v6885_v7, 2102212464  ;;  %v7178_v48 = vadd.s32 1, %v10986_v34 }
 0x62f   : > { %v6907_v19 = vsel %vm6893_vm0, %v6904_v5, %v6906_v29  ;;  %v6673_v32 = vmul.f32 %v6672_v30, %v6670_v61  ;;  %v15757_v52 = vand.u32 3, %v6679_v14  ;;  %v9197_v43 = vadd.s32 3, %v6679_v14 }
 0x630   : > { %v6911_v28 = vand.u32 65535, %v6907_v19  ;;  %v6912_v54 = vshrl.u32 %v6907_v19, 16  ;;  %v6896_v55 = vsel %vm6892_vm10, %v6876_v4, %v6879_v49  ;;  %v6936_v39 = vmul.u32 %v6934_v50, %v15694_v27 }
 0x631   : > { %v6937_v44 = vmul.u32 %v6933_v9, %v6910_v58  ;;  %v6674_v26 = vxor.u32 2147483648, %v6673_v32  ;;  %v6898_v46 = vsel %vm6894_vm13, %v6882_v38, %v6897_v2  ;;  %v6935_v8 = vmul.u32 %v6933_v9, %v15694_v27 }
 0x632   : > { %v6914_v63 = vmul.u32 %v6912_v54, %v15694_v27  ;;  %v6915_v12 = vmul.u32 %v6911_v28, %v6910_v58  ;;  %v6938_v7 = vmul.u32 %v6934_v50, %v6910_v58  ;;  %v6939_v1 = vshll.u32 %v6936_v39, 16 }
 0x633   : > { %vm7179_vm3 = vcmp.gt.s32.totalorder %v7178_v48, 0  ;;  %v6675_v40 = vsel %vm6554_vm8, %v6674_v26, %v6673_v32  ;;  %v6913_v49 = vmul.u32 %v6911_v28, %v15694_v27  ;;  %v6916_v59 = vmul.u32 %v6912_v54, %v6910_v58 }
 0x634   : > { %v6917_v3 = vshll.u32 %v6914_v63, 16  ;;  %v15772_v13 = vsel %vm15707_vm6, %v15367_v60, %v6675_v40  ;;  %v6919_v38 = vshll.u32 %v6915_v12, 16  ;;  %v6941_v10 = vshll.u32 %v6937_v44, 16 }
 0x635   : > { %vm6943_vm4 = vc.u32 %v6935_v8, %v6939_v1  ;;  %v6680_v16 = vmul.f32 %v15772_v13, %v15772_v13  ;;  %v6945_v27 = vadd.s32 %v6939_v1, %v6935_v8  ;;  %v7180_v0 = vsel %vm7179_vm3, %v7178_v48, 0 }
 0x636   : > { %vm6921_vm15 = vc.u32 %v6913_v49, %v6917_v3  ;;  %v6923_v53 = vadd.s32 %v6917_v3, %v6913_v49  ;;  %v6944_v36 = vsel %vm6943_vm4, 1, %v16566_v42  ;;  %v15779_v30 = vand.u32 3, %v9197_v43  ;;  %v16675_v43 = vld [vmem:[#allocation131_spill] sm:$0xff] }
 0x637   : > { %v6922_v34 = vsel %vm6921_vm15, 1, %v16566_v42  ;;  %v6946_v58 = vadd.s32 %v6944_v36, %v6938_v7  ;;  %v6681_v57 = vmul.f32 -0.001358992, %v6680_v16  ;;  %v6688_v33 = vmul.f32 -0.00019511016, %v6680_v16 }
 0x638   : > { %v6924_v5 = vadd.s32 %v6922_v34, %v6916_v59  ;;  %vm6925_vm9 = vc.u32 %v6923_v53, %v6919_v38  ;;  %v6918_v14 = vshrl.u32 %v6914_v63, 16  ;;  %vm6947_vm11 = vc.u32 %v6945_v27, %v6941_v10 }
 0x639   : > { %v6926_v35 = vsel %vm6925_vm9, 1, %v16566_v42  ;;  %v6682_v15 = vadd.f32 0.041655596, %v6681_v57  ;;  %v6689_v61 = vadd.f32 0.008332121, %v6688_v33  ;;  %v6948_v9 = vsel %vm6947_vm11, 1, %v16566_v42 }
 0x63a   : > { %v6928_v29 = vadd.s32 %v6926_v35, %v6924_v5  ;;  %v6899_v50 = vsel %vm6893_vm0, %v6896_v55, %v6898_v46  ;;  %v6940_v4 = vshrl.u32 %v6936_v39, 16  ;;  %v6950_v2 = vadd.s32 %v6948_v9, %v6946_v58 }
 0x63b   : > { %v7182_v19 = vand.u32 31, %v7180_v0  ;;  %v6683_v48 = vmul.f32 %v6682_v15, %v6680_v16  ;;  %v6690_v32 = vmul.f32 %v6689_v61, %v6680_v16  ;;  %v6920_v28 = vshrl.u32 %v6915_v12, 16 }
 0x63c   : > { %v6929_v54 = vadd.s32 %v6928_v29, %v6918_v14  ;;  %v15787_v26 = vmul.f32 %v16675_v43, %v15664_v20  ;;  %v6942_v63 = vshrl.u32 %v6937_v44, 16  ;;  %v6951_v8 = vadd.s32 %v6950_v2, %v6940_v4 }
 0x63d   : > { %v15789_v7 = vsub.s32 32, %v7182_v19  ;;  %v6684_v1 = vadd.f32 -0.4999988, %v6683_v48  ;;  %v6691_v40 = vadd.f32 -0.16666654, %v6690_v32  ;;  %vm6701_vm5 = vcmp.eq.s32.totalorder %v15757_v52, 2 }
 0x63e   : > { %vm9203_vm1 = vcmp.eq.s32.totalorder %v15779_v30, 2  ;;  %v15793_v47 = vadd.s32 %v6929_v54, %v6920_v28  ;;  %v15795_v55 = vadd.s32 %v6945_v27, %v6941_v10  ;;  %vm6698_vm2 = vcmp.eq.s32.totalorder %v15757_v52, 0 }
 0x63f   : > { %vm9200_vm7 = vcmp.eq.s32.totalorder %v15779_v30, 0  ;;  %v6952_v20 = vadd.s32 %v6951_v8, %v6942_v63  ;;  %v6953_v39 = vmul.u32 %v15677_v21, %v6899_v50  ;;  %v7176_v44 = vor.u32 8388608, %v15684_v24 }
 0x640   : > { %v15801_v46 = vshrl.u32 %v7180_v0, 5  ;;  %v6685_v12 = vmul.f32 %v6684_v1, %v6680_v16  ;;  %v6692_v49 = vmul.f32 %v6691_v40, %v6680_v16  ;;  %vm6697_vm8 = vcmp.lt.s32.totalorder %v15757_v52, 2 }
 0x641   : > { %vm9199_vm14 = vcmp.lt.s32.totalorder %v15779_v30, 2  ;;  %vm6955_vm6 = vc.u32 %v15793_v47, %v15795_v55  ;;  %v7188_v59 = vshll.u32 %v16558_v31, %v7182_v19  ;;  %vm6695_vm10 = vweird.f32 %v15367_v60 }
 0x642   : > { %v6956_v3 = vadd.s32 1, %v6952_v20  ;;  %v7189_v21 = vshrl.u32 %v16559_v25, %v15789_v7  ;;  %v7191_v24 = vshll.u32 %v16559_v25, %v7182_v19  ;;  %v7192_v38 = vshrl.u32 %v16560_v62, %v15789_v7 }
 0x643   : > { %v6686_v10 = vadd.f32 1.0, %v6685_v12  ;;  %v6693_v16 = vadd.f32 1.0, %v6692_v49  ;;  %v7186_v53 = vshrl.u32 %v16558_v31, %v15789_v7  ;;  %v7195_v36 = vshrl.u32 %v16561_v51, %v15789_v7 }
 0x644   : > { %v6957_v34 = vsel %vm6955_vm6, %v6956_v3, %v6952_v20  ;;  %v7194_v27 = vshll.u32 %v16560_v62, %v7182_v19  ;;  %v7197_v58 = vshll.u32 %v16561_v51, %v7182_v19  ;;  %v7198_v0 = vshrl.u32 %v16562_v11, %v15789_v7 }
 0x645   : > { %v6694_v57 = vmul.f32 %v6693_v16, %v15772_v13  ;;  %v6702_v33 = vxor.u32 2147483648, %v6686_v10  ;;  %v6958_v5 = vadd.s32 %v6957_v34, %v6953_v39  ;;  %v7185_v14 = vshll.u32 %v16557_v23, %v7182_v19 }
 0x646   : > { %v15824_v35 = vor.u32 %v7189_v21, %v7188_v59  ;;  %v15826_v15 = vor.u32 %v7192_v38, %v7191_v24  ;;  %v7196_v61 = vor.u32 %v7195_v36, %v7194_v27  ;;  %v7199_v29 = vor.u32 %v7198_v0, %v7197_v58  ;;  %v16676_v24 = vld [vmem:[#allocation67_spill] sm:$0xff]  ;;  %v5601_v58 = vpop.f32.mrf.mxu0  ;;  %v16677_v0 = vld [vmem:[#allocation40_spill] sm:$0xff] }
 0x647   : > { %v6699_v9 = vxor.u32 2147483648, %v6694_v57  ;;  %v6959_v50 = vadd.s32 536870912, %v6958_v5  ;;  %vm7200_vm12 = vcmp.lt.s32.totalorder %v15801_v46, 1  ;;  %v15829_v4 = vshll.u32 %v7176_v44, 8 }
 0x648   : > { %v6703_v2 = vsel %vm6701_vm5, %v6702_v33, %v6694_v57  ;;  %v9205_v13 = vsel %vm9203_vm1, %v6702_v33, %v6694_v57  ;;  %v15835_v48 = vor.u32 %v7186_v53, %v7185_v14  ;;  %vm7203_vm13 = vcmp.lt.s32.totalorder %v15801_v46, 4  ;;  %v16678_v57 = vld [vmem:[#allocation42_spill] sm:$0xff] }
 0x649   : > { %v6700_v19 = vsel %vm6698_vm2, %v6686_v10, %v6699_v9  ;;  %v9202_v32 = vsel %vm9200_vm7, %v6686_v10, %v6699_v9  ;;  %v15842_v28 = vshrl.u32 %v6959_v50, 30  ;;  %v7213_v54 = vsel %vm7203_vm13, %v7199_v29, 1326507024 }
 0x64a   : > { %v6704_v43 = vsel %vm6697_vm8, %v6700_v19, %v6703_v2  ;;  %v9206_v63 = vsel %vm9199_vm14, %v9202_v32, %v9205_v13  ;;  %v7209_v8 = vsel %vm7203_vm13, %v7196_v61, 920167782  ;;  %v7212_v1 = vsel %vm7200_vm12, %v15824_v35, %v15826_v15  ;;  %v16680_v2 = vld [vmem:[#allocation71_spill] sm:$0xff] }
 0x64b   : > { %v6705_v40 = vsel %vm6695_vm10, nan, %v6704_v43  ;;  %v9207_v20 = vsel %vm6695_vm10, nan, %v9206_v63  ;;  %v6961_v52 = vshll.u32 %v15842_v28, 30  ;;  %vm7202_vm0 = vcmp.lt.s32.totalorder %v15801_v46, 3 }
 0x64c   : > { %v8251_v30 = vmul.f32 %v6705_v40, %v15787_v26  ;;  %v10763_v39 = vmul.f32 %v9207_v20, %v15787_v26  ;;  %vm7201_vm3 = vcmp.lt.s32.totalorder %v15801_v46, 2  ;;  %v7214_v44 = vsel %vm7202_vm0, %v7196_v61, %v7213_v54  ;;  %v16679_v61 = vld [vmem:[#allocation65_spill] sm:$0xff] }
 0x64d   : > { %v6962_v12 = vsub.s32 %v6958_v5, %v6961_v52  ;;  %v7208_v60 = vsel %vm7200_vm12, %v15835_v48, %v15824_v35  ;;  %v7210_v49 = vsel %vm7202_vm0, %v15826_v15, %v7209_v8  ;;  %v7215_v59 = vsel %vm7201_vm3, %v7212_v1, %v7214_v44  ;;  %v5665_v1 = vpop.f32.mrf.mxu1 }
 0x64e   : > { %8267 = vst [vmem:[%s14384_s7 + $0x28] sm:$0xff] %v8251_v30  ;;  %v7217_v26 = vand.u32 65535, %v15829_v4  ;;  %v7219_v3 = vand.u32 65535, %v7215_v59  ;;  %v7220_v21 = vshrl.u32 %v7215_v59, 16  ;;  %v4038_v38 = vadd.f32 %v16676_v24, %v15656_v37 }
 0x64f   : > { %10779 = vst [vmem:[%s14396_s10 + $0x28] sm:$0xff] %v10763_v39  ;;  %vm6963_vm4 = vcmp.lt.s32.totalorder %v6962_v12, 0  ;;  %v6964_v10 = vsub.s32 0, %v6962_v12  ;;  %v7218_v16 = vshrl.u32 %v15829_v4, 16  ;;  %v7211_v53 = vsel %vm7201_vm3, %v7208_v60, %v7210_v49 }
 0x650   : > { %v7222_v36 = vmul.u32 %v7220_v21, %v7217_v26  ;;  %v3985_v33 = vadd.f32 %v16678_v57, %v16677_v0  ;;  %v15887_v29 = vadd.f32 %v16679_v61, %v4038_v38  ;;  %v7221_v37 = vmul.u32 %v7219_v3, %v7217_v26  ;;  %v5721_v38 = vpop.f32.mrf.mxu2 }
 0x651   : > { %v6965_v34 = vsel %vm6963_vm4, %v6964_v10, %v6962_v12  ;;  %v7223_v27 = vmul.u32 %v7219_v3, %v7218_v16  ;;  %v7241_v9 = vand.u32 65535, %v7211_v53  ;;  %v7242_v50 = vshrl.u32 %v7211_v53, 16 }
 0x652   : > { %v6966_v5 = vclz %v6965_v34  ;;  %v7225_v14 = vshll.u32 %v7222_v36, 16  ;;  %v4043_v13 = vadd.f32 %v16680_v2, %v3985_v33  ;;  %v6954_v19 = vadd.s32 %v15795_v55, %v15793_v47  ;;  %v5771_v2 = vpop.f32.mrf.mxu3 }
 0x653   : > { %v7224_v54 = vmul.u32 %v7220_v21, %v7218_v16  ;;  %v7227_v43 = vshll.u32 %v7223_v27, 16  ;;  %v7244_v8 = vmul.u32 %v7242_v50, %v7217_v26  ;;  %v7226_v40 = vshrl.u32 %v7222_v36, 16 }
 0x654   : > { %v10981_v32 = vadd.s32 4294967294, %v6966_v5  ;;  %vm7229_vm15 = vc.u32 %v7221_v37, %v7225_v14  ;;  %v7231_v63 = vadd.s32 %v7225_v14, %v7221_v37  ;;  %v7245_v52 = vmul.u32 %v7241_v9, %v7218_v16 }
 0x655   : > { %v7230_v20 = vsel %vm7229_vm15, 1, %v16566_v42  ;;  %v7247_v44 = vshll.u32 %v7244_v8, 16  ;;  %v7243_v55 = vmul.u32 %v7241_v9, %v7217_v26  ;;  %v7246_v21 = vmul.u32 %v7242_v50, %v7218_v16  ;;  %v5606_v26 = vpop.f32.mrf.mxu0 }
 0x656   : > { %vm10982_vm9 = vcmp.lt.s32.totalorder %v10981_v32, 0  ;;  %v7232_v39 = vadd.s32 %v7230_v20, %v7224_v54  ;;  %vm7233_vm11 = vc.u32 %v7231_v63, %v7227_v43  ;;  %v7249_v24 = vshll.u32 %v7245_v52, 16 }
 0x657   : > { %v6969_v30 = vsel %vm10982_vm9, 0, %v10981_v32  ;;  %v7234_v47 = vsel %vm7233_vm11, 1, %v16566_v42  ;;  %vm7251_vm5 = vc.u32 %v7243_v55, %v7247_v44  ;;  %v7253_v36 = vadd.s32 %v7247_v44, %v7243_v55 }
 0x658   : > { %v6970_v60 = vsub.s32 32, %v6969_v30  ;;  %v6974_v49 = vsub.s32 4294967266, %v6969_v30  ;;  %v6971_v59 = vshll.u32 %v6962_v12, %v6969_v30  ;;  %v7236_v3 = vadd.s32 %v7234_v47, %v7232_v39 }
 0x659   : > { %v7184_v34 = vshrl.u32 %v16557_v23, %v15789_v7  ;;  %v7205_v0 = vsel %vm7203_vm13, %v15826_v15, 2102212464  ;;  %v7252_v33 = vsel %vm7251_vm5, 1, %v16566_v42  ;;  %vm7255_vm1 = vc.u32 %v7253_v36, %v7249_v24 }
 0x65a   : > { %v6972_v10 = vshrl.u32 %v6954_v19, %v6970_v60  ;;  %v6975_v53 = vadd.s32 127, %v6974_v49  ;;  %v7237_v57 = vadd.s32 %v7236_v3, %v7226_v40  ;;  %v7254_v16 = vadd.s32 %v7252_v33, %v7246_v21  ;;  %v16682_v49 = vld [vmem:[#allocation68_spill] sm:$0xff]  ;;  %v5775_v33 = vpop.f32.mrf.mxu3 }
 0x65b   : > { %v7204_v14 = vsel %vm7200_vm12, %v7184_v34, %v15835_v48  ;;  %v7228_v61 = vshrl.u32 %v7223_v27, 16  ;;  %v7256_v37 = vsel %vm7255_vm1, 1, %v16566_v42  ;;  %v5602_v7 = vadd.f32 %v5601_v58, %v14708_v56  ;;  %v5671_v27 = vpop.f32.mrf.mxu1  ;;  %v16681_v58 = vld [vmem:[#allocation69_spill] sm:$0xff]  ;;  %v16683_v3 = vld [vmem:[#allocation72_spill] sm:$0xff] }
 0x65c   : > { %v6973_v12 = vor.u32 %v6972_v10, %v6971_v59  ;;  %v6976_v5 = vshll.u32 %v6975_v53, 23  ;;  %v7248_v50 = vshrl.u32 %v7244_v8, 16  ;;  %v7258_v15 = vadd.s32 %v7256_v37, %v7254_v16  ;;  %v16685_v16 = vld [vmem:[#allocation74_spill] sm:$0xff] }
 0x65d   : > { %v5607_v19 = vadd.f32 %v5606_v26, %v15043_v45  ;;  %v6984_v32 = vsub.s32 4, %v15842_v28  ;;  %v7206_v54 = vsel %vm7202_vm0, %v15824_v35, %v7205_v0  ;;  %v15910_v43 = vadd.s32 %v7237_v57, %v7228_v61 }
 0x65e   : > { %v6977_v9 = vor.u32 4788187, %v6976_v5  ;;  %v5666_v48 = vadd.f32 %v5665_v1, %v5602_v7  ;;  %v6980_v40 = vcvt.s32.f32 %v6973_v12  ;;  %v7250_v20 = vshrl.u32 %v7245_v52, 16 }
 0x65f   : > { %v7259_v56 = vadd.s32 %v7258_v15, %v7248_v50  ;;  %v4107_v8 = vadd.f32 %v16681_v58, %v4043_v13  ;;  %vm6862_vm2 = vcmp.lt.s32.totalorder %v15641_v18, 0  ;;  %v15914_v30 = vadd.s32 %v7253_v36, %v7249_v24  ;;  %v5725_v13 = vpop.f32.mrf.mxu2 }
 0x660   : > { %v6978_v63 = vand.u32 2147483647, %v6977_v9  ;;  %v5722_v45 = vadd.f32 %v5721_v38, %v5666_v48  ;;  %v7207_v44 = vsel %vm7201_vm3, %v7204_v14, %v7206_v54  ;;  %v5672_v60 = vadd.f32 %v5671_v27, %v5607_v19  ;;  %v16687_v27 = vld [vmem:[#allocation133_spill] sm:$0xff] }
 0x661   : > { %v7260_v35 = vadd.s32 %v7259_v56, %v7250_v20  ;;  %v6985_v1 = vsel %vm6862_vm2, %v6984_v32, %v15842_v28  ;;  %vm7263_vm7 = vc.u32 %v15910_v43, %v15914_v30  ;;  %v4164_v47 = vadd.f32 %v16682_v49, %v15887_v29 }
 0x662   : > { %v6981_v39 = vmul.f32 %v6980_v40, %v6978_v63  ;;  %v15923_v52 = vadd.f32 %v5771_v2, %v5722_v45  ;;  %v4168_v46 = vadd.f32 %v16683_v3, %v4107_v8  ;;  %vm6861_vm8 = vcmp.le.f32.partialorder %v6860_v41, 0.7853982  ;;  %v16686_v2 = vld [vmem:[#allocation132_spill] sm:$0xff] }
 0x663   : > { %v7264_v59 = vadd.s32 1, %v7260_v35  ;;  %v7261_v21 = vmul.u32 %v15829_v4, %v7207_v44  ;;  %v6987_v38 = vsel %vm6861_vm8, 0, %v6985_v1  ;;  %v5726_v53 = vadd.f32 %v5725_v13, %v5672_v60  ;;  %v16684_v4 = vld [vmem:[#allocation70_spill] sm:$0xff] }
 0x664   : > { %v6982_v55 = vxor.u32 2147483648, %v6981_v39  ;;  %v7479_v28 = vand.u32 2139095040, %v15923_v52  ;;  %v7476_v34 = vand.u32 2147483647, %v15923_v52  ;;  %v9507_v26 = vadd.s32 3, %v6987_v38 }
 0x665   : > { %v7265_v10 = vsel %vm7263_vm7, %v7264_v59, %v7260_v35  ;;  %v4215_v5 = vadd.f32 %v16684_v4, %v4164_v47  ;;  %v4219_v14 = vadd.f32 %v16685_v16, %v4168_v46  ;;  %v15940_v15 = vadd.f32 %v5775_v33, %v5726_v53 }
 0x666   : > { %v6983_v24 = vsel %vm6862_vm2, %v6982_v55, %v6981_v39  ;;  %v7266_v29 = vadd.s32 %v7265_v10, %v7261_v21  ;;  %v7480_v0 = vshrl.u32 %v7479_v28, 23  ;;  %v7483_v9 = vand.u32 8388607, %v7476_v34 }
 0x667   : > { %v6986_v36 = vsel %vm6861_vm8, %v15641_v18, %v6983_v24  ;;  %v15943_v19 = vmul.f32 %v16686_v2, %v4215_v5  ;;  %v15945_v48 = vand.u32 3, %v6987_v38  ;;  %v15948_v63 = vmul.f32 %v16687_v27, %v4219_v14 }
 0x668   : > { %v6988_v57 = vmul.f32 %v6986_v36, %v6986_v36  ;;  %v7267_v41 = vadd.s32 536870912, %v7266_v29  ;;  %v10992_v12 = vadd.s32 4294967169, %v7480_v0  ;;  %v15950_v40 = vand.u32 3, %v9507_v26 }
 0x669   : > { %vm15954_vm6 = vcmp.le.f32.partialorder %v7168_v22, 0.7853982  ;;  %vm7170_vm10 = vcmp.lt.s32.totalorder %v15661_v6, 0  ;;  %v7484_v44 = vor.u32 8388608, %v7483_v9  ;;  %v7787_v60 = vand.u32 2139095040, %v15940_v15 }
 0x66a   : > { %v6989_v61 = vmul.f32 -0.001358992, %v6988_v57  ;;  %v6996_v37 = vmul.f32 -0.00019511016, %v6988_v57  ;;  %v7268_v7 = vshrl.u32 %v7267_v41, 30  ;;  %v7486_v50 = vadd.s32 1, %v10992_v12 }
 0x66b   : > { %vm7009_vm12 = vcmp.eq.s32.totalorder %v15945_v48, 2  ;;  %vm7006_vm13 = vcmp.eq.s32.totalorder %v15945_v48, 0  ;;  %vm9510_vm0 = vcmp.eq.s32.totalorder %v15950_v40, 0  ;;  %v7784_v47 = vand.u32 2147483647, %v15940_v15 }
 0x66c   : > { %v6990_v32 = vadd.f32 0.041655596, %v6989_v61  ;;  %v6997_v54 = vadd.f32 0.008332121, %v6996_v37  ;;  %v7269_v20 = vshll.u32 %v7268_v7, 30  ;;  %vm7487_vm14 = vcmp.gt.s32.totalorder %v7486_v50, 0 }
 0x66d   : > { %v7488_v45 = vsel %vm7487_vm14, %v7486_v50, 0  ;;  %v7292_v49 = vsub.s32 4, %v7268_v7  ;;  %vm7005_vm4 = vcmp.lt.s32.totalorder %v15945_v48, 2  ;;  %vm9509_vm15 = vcmp.lt.s32.totalorder %v15950_v40, 2 }
 0x66e   : > { %v6991_v56 = vmul.f32 %v6990_v32, %v6988_v57  ;;  %v6998_v58 = vmul.f32 %v6997_v54, %v6988_v57  ;;  %v15959_v39 = vsub.s32 %v7266_v29, %v7269_v20  ;;  %v15961_v35 = vand.u32 31, %v7488_v45 }
 0x66f   : > { %vm9513_vm9 = vcmp.eq.s32.totalorder %v15950_v40, 2  ;;  %vm7003_vm11 = vweird.f32 %v15641_v18  ;;  %v7262_v46 = vadd.s32 %v15914_v30, %v15910_v43  ;;  %v15978_v28 = vshll.u32 %v7484_v44, 8 }
 0x670   : > { %v6992_v1 = vadd.f32 -0.4999988, %v6991_v56  ;;  %v6999_v13 = vadd.f32 -0.16666654, %v6998_v58  ;;  %vm7271_vm3 = vcmp.lt.s32.totalorder %v15959_v39, 0  ;;  %v7272_v22 = vsub.s32 0, %v15959_v39 }
 0x671   : > { %v7491_v3 = vsub.s32 32, %v15961_v35  ;;  %v7788_v24 = vshrl.u32 %v7787_v60, 23  ;;  %v7293_v29 = vsel %vm7170_vm10, %v7292_v49, %v7268_v7  ;;  %v7493_v0 = vshll.u32 %v16557_v23, %v15961_v35 }
 0x672   : > { %v6993_v55 = vmul.f32 %v6992_v1, %v6988_v57  ;;  %v7000_v59 = vmul.f32 %v6999_v13, %v6988_v57  ;;  %v7273_v21 = vsel %vm7271_vm3, %v7272_v22, %v15959_v39  ;;  %v15988_v43 = vand.u32 8388607, %v7784_v47 }
 0x673   : > { %v7274_v53 = vclz %v7273_v21  ;;  %v7494_v57 = vshrl.u32 %v16558_v31, %v7491_v3  ;;  %v7497_v33 = vshrl.u32 %v16559_v25, %v7491_v3  ;;  %v7496_v12 = vshll.u32 %v16558_v31, %v15961_v35 }
 0x674   : > { %v6994_v38 = vadd.f32 1.0, %v6993_v55  ;;  %v7001_v10 = vadd.f32 1.0, %v7000_v59  ;;  %v7295_v4 = vsel %vm15954_vm6, 0, %v7293_v29  ;;  %v15994_v5 = vshrl.u32 %v7488_v45, 5 }
 0x675   : > { %v10987_v41 = vadd.s32 4294967294, %v7274_v53  ;;  %v15997_v16 = vand.u32 65535, %v15978_v28  ;;  %v15999_v14 = vadd.s32 4294967169, %v7788_v24  ;;  %v7495_v37 = vor.u32 %v7494_v57, %v7493_v0 }
 0x676   : > { %v7002_v30 = vmul.f32 %v7001_v10, %v6986_v36  ;;  %v7010_v26 = vxor.u32 2147483648, %v6994_v38  ;;  %v7498_v7 = vor.u32 %v7497_v33, %v7496_v12  ;;  %v7499_v2 = vshll.u32 %v16559_v25, %v15961_v35 }
 0x677   : > { %vm10988_vm5 = vcmp.lt.s32.totalorder %v10987_v41, 0  ;;  %v7500_v20 = vshrl.u32 %v16560_v62, %v7491_v3  ;;  %v7502_v44 = vshll.u32 %v16560_v62, %v15961_v35  ;;  %v7503_v49 = vshrl.u32 %v16561_v51, %v7491_v3 }
 0x678   : > { %v7007_v61 = vxor.u32 2147483648, %v7002_v30  ;;  %v7011_v36 = vsel %vm7009_vm12, %v7010_v26, %v7002_v30  ;;  %v9515_v9 = vsel %vm9513_vm9, %v7010_v26, %v7002_v30  ;;  %v7277_v50 = vsel %vm10988_vm5, 0, %v10987_v41 }
 0x679   : > { %v7278_v27 = vsub.s32 32, %v7277_v50  ;;  %v7282_v45 = vsub.s32 4294967266, %v7277_v50  ;;  %v7279_v22 = vshll.u32 %v15959_v39, %v7277_v50  ;;  %v7501_v59 = vor.u32 %v7500_v20, %v7499_v2 }
 0x67a   : > { %v7008_v32 = vsel %vm7006_vm13, %v6994_v38, %v7007_v61  ;;  %v9512_v54 = vsel %vm9510_vm0, %v6994_v38, %v7007_v61  ;;  %v7504_v21 = vor.u32 %v7503_v49, %v7502_v44  ;;  %v7505_v24 = vshll.u32 %v16561_v51, %v15961_v35 }
 0x67b   : > { %v7012_v56 = vsel %vm7005_vm4, %v7008_v32, %v7011_v36  ;;  %v9516_v58 = vsel %vm9509_vm15, %v9512_v54, %v9515_v9  ;;  %v7280_v13 = vshrl.u32 %v7262_v46, %v7278_v27  ;;  %v7283_v55 = vadd.s32 127, %v7282_v45 }
 0x67c   : > { %v7013_v60 = vsel %vm7003_vm11, nan, %v7012_v56  ;;  %v9517_v1 = vsel %vm7003_vm11, nan, %v9516_v58  ;;  %v7506_v38 = vshrl.u32 %v16562_v11, %v7491_v3  ;;  %v9817_v46 = vadd.s32 3, %v7295_v4 }
 0x67d   : > { %v8253_v48 = vmul.f32 %v7013_v60, %v15943_v19  ;;  %v10765_v40 = vmul.f32 %v9517_v1, %v15943_v19  ;;  %v7281_v18 = vor.u32 %v7280_v13, %v7279_v22  ;;  %v7284_v10 = vshll.u32 %v7283_v55, 23 }
 0x67e   : > { %v7526_v53 = vshrl.u32 %v15978_v28, 16  ;;  %v7492_v29 = vshrl.u32 %v16557_v23, %v7491_v3  ;;  %v7507_v19 = vor.u32 %v7506_v38, %v7505_v24  ;;  %vm7508_vm1 = vcmp.lt.s32.totalorder %v15994_v5, 1 }
 0x67f   : > { %8269 = vst [vmem:[%s14384_s7 + $0x38] sm:$0xff] %v8253_v48  ;;  %vm7511_vm2 = vcmp.lt.s32.totalorder %v15994_v5, 4  ;;  %v7285_v39 = vor.u32 4788187, %v7284_v10  ;;  %vm7510_vm7 = vcmp.lt.s32.totalorder %v15994_v5, 3  ;;  %v7516_v35 = vsel %vm7508_vm1, %v7495_v37, %v7498_v7 }
 0x680   : > { %10781 = vst [vmem:[%s14396_s10 + $0x38] sm:$0xff] %v10765_v40  ;;  %v7517_v0 = vsel %vm7511_vm2, %v7504_v21, 920167782  ;;  %vm7509_vm8 = vcmp.lt.s32.totalorder %v15994_v5, 2  ;;  %v7520_v3 = vsel %vm7508_vm1, %v7498_v7, %v7501_v59  ;;  %v7521_v33 = vsel %vm7511_vm2, %v7507_v19, 1326507024 }
 0x681   : > { %v7518_v57 = vsel %vm7510_vm7, %v7501_v59, %v7517_v0  ;;  %v7286_v30 = vand.u32 2147483647, %v7285_v39  ;;  %v7288_v26 = vcvt.s32.f32 %v7281_v18  ;;  %v7522_v12 = vsel %vm7510_vm7, %v7504_v21, %v7521_v33 }
 0x682   : > { %v7519_v41 = vsel %vm7509_vm8, %v7516_v35, %v7518_v57  ;;  %v7513_v61 = vsel %vm7511_vm2, %v7501_v59, 2102212464  ;;  %v7523_v36 = vsel %vm7509_vm8, %v7520_v3, %v7522_v12  ;;  %v16049_v32 = vand.u32 3, %v7295_v4 }
 0x683   : > { %v7549_v9 = vand.u32 65535, %v7519_v41  ;;  %v7550_v50 = vshrl.u32 %v7519_v41, 16  ;;  %v7289_v2 = vmul.f32 %v7288_v26, %v7286_v30  ;;  %v7527_v54 = vand.u32 65535, %v7523_v36 }
 0x684   : > { %v7528_v27 = vshrl.u32 %v7523_v36, 16  ;;  %v16051_v20 = vand.u32 3, %v9817_v46  ;;  %v7512_v56 = vsel %vm7508_vm1, %v7492_v29, %v7495_v37  ;;  %v7514_v60 = vsel %vm7510_vm7, %v7498_v7, %v7513_v61 }
 0x685   : > { %v7552_v58 = vmul.u32 %v7550_v50, %v15997_v16  ;;  %v7553_v45 = vmul.u32 %v7549_v9, %v7526_v53  ;;  %v7290_v44 = vxor.u32 2147483648, %v7289_v2  ;;  %v7531_v13 = vmul.u32 %v7527_v54, %v7526_v53 }
 0x686   : > { %v7530_v1 = vmul.u32 %v7528_v27, %v15997_v16  ;;  %v7551_v4 = vmul.u32 %v7549_v9, %v15997_v16  ;;  %v7554_v49 = vmul.u32 %v7550_v50, %v7526_v53  ;;  %v7794_v40 = vadd.s32 1, %v15999_v14 }
 0x687   : > { %v7555_v48 = vshll.u32 %v7552_v58, 16  ;;  %v7291_v22 = vsel %vm7170_vm10, %v7290_v44, %v7289_v2  ;;  %v7529_v37 = vmul.u32 %v7527_v54, %v15997_v16  ;;  %v7532_v55 = vmul.u32 %v7528_v27, %v7526_v53 }
 0x688   : > { %v7533_v59 = vshll.u32 %v7530_v1, 16  ;;  %v16067_v7 = vsel %vm15954_vm6, %v15661_v6, %v7291_v22  ;;  %v7535_v21 = vshll.u32 %v7531_v13, 16  ;;  %v7557_v24 = vshll.u32 %v7553_v45, 16 }
 0x689   : > { %vm7559_vm14 = vc.u32 %v7551_v4, %v7555_v48  ;;  %v7296_v38 = vmul.f32 %v16067_v7, %v16067_v7  ;;  %v7561_v16 = vadd.s32 %v7555_v48, %v7551_v4  ;;  %vm7795_vm10 = vcmp.gt.s32.totalorder %v7794_v40, 0 }
 0x68a   : > { %vm7537_vm12 = vc.u32 %v7529_v37, %v7533_v59  ;;  %v7539_v14 = vadd.s32 %v7533_v59, %v7529_v37  ;;  %v7560_v18 = vsel %vm7559_vm14, 1, %v16566_v42  ;;  %v7534_v19 = vshrl.u32 %v7530_v1, 16 }
 0x68b   : > { %v7538_v10 = vsel %vm7537_vm12, 1, %v16566_v42  ;;  %v7562_v46 = vadd.s32 %v7560_v18, %v7554_v49  ;;  %v7297_v53 = vmul.f32 -0.001358992, %v7296_v38  ;;  %v7304_v29 = vmul.f32 -0.00019511016, %v7296_v38 }
 0x68c   : > { %v7540_v8 = vadd.s32 %v7538_v10, %v7532_v55  ;;  %vm7541_vm6 = vc.u32 %v7539_v14, %v7535_v21  ;;  %vm7563_vm13 = vc.u32 %v7561_v16, %v7557_v24  ;;  %v7796_v35 = vsel %vm7795_vm10, %v7794_v40, 0 }
 0x68d   : > { %v7542_v39 = vsel %vm7541_vm6, 1, %v16566_v42  ;;  %v7298_v0 = vadd.f32 0.041655596, %v7297_v53  ;;  %v7305_v57 = vadd.f32 0.008332121, %v7304_v29  ;;  %v7564_v33 = vsel %vm7563_vm13, 1, %v16566_v42 }
 0x68e   : > { %v7544_v3 = vadd.s32 %v7542_v39, %v7540_v8  ;;  %v7515_v30 = vsel %vm7509_vm8, %v7512_v56, %v7514_v60  ;;  %v7556_v26 = vshrl.u32 %v7552_v58, 16  ;;  %v7566_v41 = vadd.s32 %v7564_v33, %v7562_v46 }
 0x68f   : > { %v7798_v12 = vand.u32 31, %v7796_v35  ;;  %v7299_v61 = vmul.f32 %v7298_v0, %v7296_v38  ;;  %v7306_v36 = vmul.f32 %v7305_v57, %v7296_v38  ;;  %v7536_v9 = vshrl.u32 %v7531_v13, 16 }
 0x690   : > { %v7545_v50 = vadd.s32 %v7544_v3, %v7534_v19  ;;  %v7558_v2 = vshrl.u32 %v7553_v45, 16  ;;  %v7567_v54 = vadd.s32 %v7566_v41, %v7556_v26  ;;  %v7792_v27 = vor.u32 8388608, %v15988_v43 }
 0x691   : > { %v16078_v44 = vsub.s32 32, %v7798_v12  ;;  %v7300_v1 = vadd.f32 -0.4999988, %v7299_v61  ;;  %v7307_v4 = vadd.f32 -0.16666654, %v7306_v36  ;;  %vm7317_vm0 = vcmp.eq.s32.totalorder %v16049_v32, 2 }
 0x692   : > { %v16081_v49 = vadd.s32 %v7545_v50, %v7536_v9  ;;  %v16083_v5 = vadd.s32 %v7561_v16, %v7557_v24  ;;  %vm7314_vm3 = vcmp.eq.s32.totalorder %v16049_v32, 0  ;;  %vm9820_vm4 = vcmp.eq.s32.totalorder %v16051_v20, 0 }
 0x693   : > { %vm9823_vm15 = vcmp.eq.s32.totalorder %v16051_v20, 2  ;;  %v7568_v56 = vadd.s32 %v7567_v54, %v7558_v2  ;;  %v7569_v58 = vmul.u32 %v15978_v28, %v7515_v30  ;;  %v7301_v43 = vmul.f32 %v7300_v1, %v7296_v38 }
 0x694   : > { %v7308_v45 = vmul.f32 %v7307_v4, %v7296_v38  ;;  %vm7313_vm9 = vcmp.lt.s32.totalorder %v16049_v32, 2  ;;  %vm9819_vm11 = vcmp.lt.s32.totalorder %v16051_v20, 2  ;;  %vm7571_vm5 = vc.u32 %v16081_v49, %v16083_v5 }
 0x695   : > { %v16093_v60 = vshrl.u32 %v7796_v35, 5  ;;  %vm7311_vm1 = vweird.f32 %v15661_v6  ;;  %v7572_v13 = vadd.s32 1, %v7568_v56  ;;  %v7801_v48 = vshll.u32 %v16557_v23, %v7798_v12 }
 0x696   : > { %v7802_v40 = vshrl.u32 %v16558_v31, %v16078_v44  ;;  %v7805_v28 = vshrl.u32 %v16559_v25, %v16078_v44  ;;  %v7302_v22 = vadd.f32 1.0, %v7301_v43  ;;  %v7309_v37 = vadd.f32 1.0, %v7308_v45 }
 0x697   : > { %v7808_v55 = vshrl.u32 %v16560_v62, %v16078_v44  ;;  %v7811_v59 = vshrl.u32 %v16561_v51, %v16078_v44  ;;  %v7573_v21 = vsel %vm7571_vm5, %v7572_v13, %v7568_v56  ;;  %v7804_v24 = vshll.u32 %v16558_v31, %v7798_v12 }
 0x698   : > { %v7810_v38 = vshll.u32 %v16560_v62, %v7798_v12  ;;  %v7814_v14 = vshrl.u32 %v16562_v11, %v16078_v44  ;;  %v7310_v18 = vmul.f32 %v7309_v37, %v16067_v7  ;;  %v7318_v10 = vxor.u32 2147483648, %v7302_v22 }
 0x699   : > { %v7574_v16 = vadd.s32 %v7573_v21, %v7569_v58  ;;  %v7807_v46 = vshll.u32 %v16559_v25, %v7798_v12  ;;  %v7803_v53 = vor.u32 %v7802_v40, %v7801_v48  ;;  %v16111_v29 = vor.u32 %v7805_v28, %v7804_v24 }
 0x69a   : > { %v7812_v8 = vor.u32 %v7811_v59, %v7810_v38  ;;  %v7813_v19 = vshll.u32 %v16561_v51, %v7798_v12  ;;  %v7315_v39 = vxor.u32 2147483648, %v7310_v18  ;;  %v16114_v57 = vshll.u32 %v7792_v27, 8 }
 0x69b   : > { %v7575_v35 = vadd.s32 536870912, %v7574_v16  ;;  %v7809_v0 = vor.u32 %v7808_v55, %v7807_v46  ;;  %v7319_v3 = vsel %vm7317_vm0, %v7318_v10, %v7310_v18  ;;  %v9825_v7 = vsel %vm9823_vm15, %v7318_v10, %v7310_v18 }
 0x69c   : > { %v7815_v33 = vor.u32 %v7814_v14, %v7813_v19  ;;  %vm7816_vm2 = vcmp.lt.s32.totalorder %v16093_v60, 1  ;;  %v7316_v30 = vsel %vm7314_vm3, %v7302_v22, %v7315_v39  ;;  %v9822_v26 = vsel %vm9820_vm4, %v7302_v22, %v7315_v39 }
 0x69d   : > { %v16125_v41 = vshrl.u32 %v7575_v35, 30  ;;  %vm7819_vm7 = vcmp.lt.s32.totalorder %v16093_v60, 4  ;;  %v7320_v12 = vsel %vm7313_vm9, %v7316_v30, %v7319_v3  ;;  %v9826_v61 = vsel %vm9819_vm11, %v9822_v26, %v9825_v7 }
 0x69e   : > { %v7824_v36 = vsel %vm7816_vm2, %v7803_v53, %v16111_v29  ;;  %v7825_v9 = vsel %vm7819_vm7, %v7812_v8, 920167782  ;;  %v7321_v50 = vsel %vm7311_vm1, nan, %v7320_v12  ;;  %v9827_v2 = vsel %vm7311_vm1, nan, %v9826_v61 }
 0x69f   : > { %v7577_v32 = vshll.u32 %v16125_v41, 30  ;;  %vm7818_vm8 = vcmp.lt.s32.totalorder %v16093_v60, 3  ;;  %v8255_v20 = vmul.f32 %v7321_v50, %v15948_v63  ;;  %v10767_v54 = vmul.f32 %v9827_v2, %v15948_v63  ;;  %v5611_v2 = vpop.f32.mrf.mxu0 }
 0x6a0   : > { %vm7817_vm14 = vcmp.lt.s32.totalorder %v16093_v60, 2  ;;  %v7826_v27 = vsel %vm7818_vm8, %v7809_v0, %v7825_v9  ;;  %v7828_v6 = vsel %vm7816_vm2, %v16111_v29, %v7809_v0  ;;  %v7829_v56 = vsel %vm7819_vm7, %v7815_v33, 1326507024 }
 0x6a1   : > { %v7578_v1 = vsub.s32 %v7574_v16, %v7577_v32  ;;  %v7827_v4 = vsel %vm7817_vm14, %v7824_v36, %v7826_v27  ;;  %8271 = vst [vmem:[%s14384_s7 + $0x48] sm:$0xff] %v8255_v20  ;;  %v7830_v63 = vsel %vm7818_vm8, %v7812_v8, %v7829_v56  ;;  %v7833_v58 = vand.u32 65535, %v16114_v57  ;;  %v5677_v56 = vpop.f32.mrf.mxu1 }
 0x6a2   : > { %v7857_v43 = vand.u32 65535, %v7827_v4  ;;  %v7858_v45 = vshrl.u32 %v7827_v4, 16  ;;  %10783 = vst [vmem:[%s14396_s10 + $0x48] sm:$0xff] %v10767_v54  ;;  %v7831_v48 = vsel %vm7817_vm14, %v7828_v6, %v7830_v63  ;;  %v7834_v40 = vshrl.u32 %v16114_v57, 16 }
 0x6a3   : > { %vm7579_vm12 = vcmp.lt.s32.totalorder %v7578_v1, 0  ;;  %v7580_v13 = vsub.s32 0, %v7578_v1  ;;  %v7800_v37 = vshrl.u32 %v16557_v23, %v16078_v44  ;;  %v7835_v59 = vand.u32 65535, %v7831_v48 }
 0x6a4   : > { %v7860_v28 = vmul.u32 %v7858_v45, %v7833_v58  ;;  %v7836_v21 = vshrl.u32 %v7831_v48, 16  ;;  %v7861_v24 = vmul.u32 %v7857_v43, %v7834_v40  ;;  %v7570_v14 = vadd.s32 %v16083_v5, %v16081_v49  ;;  %v16691_v48 = vld [vmem:[#allocation46_spill] sm:$0xff] }
 0x6a5   : > { %v7581_v22 = vsel %vm7579_vm12, %v7580_v13, %v7578_v1  ;;  %v7820_v10 = vsel %vm7816_vm2, %v7800_v37, %v7803_v53  ;;  %v7859_v16 = vmul.u32 %v7857_v43, %v7833_v58  ;;  %v7821_v46 = vsel %vm7819_vm7, %v7809_v0, 2102212464  ;;  %v16690_v13 = vld [vmem:[#allocation44_spill] sm:$0xff] }
 0x6a6   : > { %v7582_v55 = vclz %v7581_v22  ;;  %v7863_v38 = vshll.u32 %v7860_v28, 16  ;;  %v7838_v8 = vmul.u32 %v7836_v21, %v7833_v58  ;;  %v7839_v19 = vmul.u32 %v7835_v59, %v7834_v40 }
 0x6a7   : > { %v7862_v39 = vmul.u32 %v7858_v45, %v7834_v40  ;;  %v7865_v44 = vshll.u32 %v7861_v24, 16  ;;  %v7837_v7 = vmul.u32 %v7835_v59, %v7833_v58  ;;  %v7840_v33 = vmul.u32 %v7836_v21, %v7834_v40 }
 0x6a8   : > { %v10993_v18 = vadd.s32 4294967294, %v7582_v55  ;;  %vm7867_vm6 = vc.u32 %v7859_v16, %v7863_v38  ;;  %v7869_v35 = vadd.s32 %v7863_v38, %v7859_v16  ;;  %v7841_v30 = vshll.u32 %v7838_v8, 16  ;;  %v5729_v55 = vpop.f32.mrf.mxu2 }
 0x6a9   : > { %v7843_v12 = vshll.u32 %v7839_v19, 16  ;;  %v7868_v61 = vsel %vm7867_vm6, 1, %v16566_v42  ;;  %v7864_v20 = vshrl.u32 %v7860_v28, 16  ;;  %v7822_v63 = vsel %vm7818_vm8, %v16111_v29, %v7821_v46 }
 0x6aa   : > { %vm10994_vm10 = vcmp.lt.s32.totalorder %v10993_v18, 0  ;;  %vm7845_vm13 = vc.u32 %v7837_v7, %v7841_v30  ;;  %v7847_v53 = vadd.s32 %v7841_v30, %v7837_v7  ;;  %vm7871_vm0 = vc.u32 %v7869_v35, %v7865_v44  ;;  %v16692_v7 = vld [vmem:[#allocation75_spill] sm:$0xff] }
 0x6ab   : > { %v7585_v3 = vsel %vm10994_vm10, 0, %v10993_v18  ;;  %v7846_v9 = vsel %vm7845_vm13, 1, %v16566_v42  ;;  %v7870_v50 = vadd.s32 %v7868_v61, %v7862_v39  ;;  %v7872_v54 = vsel %vm7871_vm0, 1, %v16566_v42 }
 0x6ac   : > { %v7586_v49 = vsub.s32 32, %v7585_v3  ;;  %v7587_v5 = vshll.u32 %v7578_v1, %v7585_v3  ;;  %v7590_v26 = vsub.s32 4294967266, %v7585_v3  ;;  %v7848_v32 = vadd.s32 %v7846_v9, %v7840_v33 }
 0x6ad   : > { %vm7849_vm3 = vc.u32 %v7847_v53, %v7843_v12  ;;  %v7874_v6 = vadd.s32 %v7872_v54, %v7870_v50  ;;  %v7842_v58 = vshrl.u32 %v7838_v8, 16  ;;  %v5612_v45 = vadd.f32 %v5611_v2, %v15045_v17  ;;  %v5779_v8 = vpop.f32.mrf.mxu3  ;;  %v16694_v54 = vld [vmem:[#allocation76_spill] sm:$0xff] }
 0x6ae   : > { %v7588_v0 = vshrl.u32 %v7570_v14, %v7586_v49  ;;  %v7591_v36 = vadd.s32 127, %v7590_v26  ;;  %v7850_v4 = vsel %vm7849_vm3, 1, %v16566_v42  ;;  %v3989_v40 = vadd.f32 %v16691_v48, %v16690_v13 }
 0x6af   : > { %v7852_v43 = vadd.s32 %v7850_v4, %v7848_v32  ;;  %v7866_v22 = vshrl.u32 %v7861_v24, 16  ;;  %v7875_v37 = vadd.s32 %v7874_v6, %v7864_v20  ;;  %v7600_v59 = vsub.s32 4, %v16125_v41 }
 0x6b0   : > { %v7589_v27 = vor.u32 %v7588_v0, %v7587_v5  ;;  %v7592_v1 = vshll.u32 %v7591_v36, 23  ;;  %v7844_v21 = vshrl.u32 %v7839_v19, 16  ;;  %v5678_v14 = vadd.f32 %v5677_v56, %v5612_v45 }
 0x6b1   : > { %v7853_v38 = vadd.s32 %v7852_v43, %v7842_v58  ;;  %v7823_v29 = vsel %vm7817_vm14, %v7820_v10, %v7822_v63  ;;  %v7876_v46 = vadd.s32 %v7875_v37, %v7866_v22  ;;  %v7873_v39 = vadd.s32 %v7869_v35, %v7865_v44  ;;  %v16693_v44 = vld [vmem:[#allocation73_spill] sm:$0xff] }
 0x6b2   : > { %v7593_v28 = vor.u32 4788187, %v7592_v1  ;;  %v7596_v16 = vcvt.s32.f32 %v7589_v27  ;;  %v5730_v3 = vadd.f32 %v5729_v55, %v5678_v14  ;;  %v4048_v33 = vadd.f32 %v16692_v7, %v3989_v40  ;;  %v16695_v40 = vld [vmem:[#allocation78_spill] sm:$0xff]  ;;  %v16696_v55 = vld [vmem:[#allocation48_spill] sm:$0xff] }
 0x6b3   : > { %v7854_v17 = vadd.s32 %v7853_v38, %v7844_v21  ;;  %v7880_v30 = vadd.s32 1, %v7876_v46  ;;  %vm7478_vm4 = vcmp.lt.s32.totalorder %v15923_v52, 0  ;;  %v7877_v19 = vmul.u32 %v16114_v57, %v7823_v29 }
 0x6b4   : > { %v7594_v18 = vand.u32 2147483647, %v7593_v28  ;;  %v16187_v49 = vadd.f32 %v5779_v8, %v5730_v3  ;;  %v7601_v60 = vsel %vm7478_vm4, %v7600_v59, %v16125_v41  ;;  %v4113_v35 = vadd.f32 %v16693_v44, %v4048_v33  ;;  %v16697_v59 = vld [vmem:[#allocation50_spill] sm:$0xff] }
 0x6b5   : > { %vm7879_vm15 = vc.u32 %v7854_v17, %v7873_v39  ;;  %vm7477_vm9 = vcmp.le.f32.partialorder %v7476_v34, 0.7853982  ;;  %v16211_v21 = vadd.f32 %v16697_v59, %v16696_v55  ;;  %vm7619_vm12 = vweird.f32 %v15923_v52 }
 0x6b6   : > { %v7597_v24 = vmul.f32 %v7596_v16, %v7594_v18  ;;  %v7881_v10 = vsel %vm7879_vm15, %v7880_v30, %v7876_v46  ;;  %v8095_v12 = vand.u32 2139095040, %v16187_v49  ;;  %v7603_v0 = vsel %vm7477_vm9, 0, %v7601_v60  ;;  %v16698_v16 = vld [vmem:[#allocation134_spill] sm:$0xff] }
 0x6b7   : > { %v7882_v26 = vadd.s32 %v7881_v10, %v7877_v19  ;;  %v10127_v20 = vadd.s32 3, %v7603_v0  ;;  %v4172_v27 = vadd.f32 %v16694_v54, %v4113_v35  ;;  %v8092_v4 = vand.u32 2147483647, %v16187_v49 }
 0x6b8   : > { %v7598_v5 = vxor.u32 2147483648, %v7597_v24  ;;  %v8096_v36 = vshrl.u32 %v8095_v12, 23  ;;  %v7620_v63 = vand.u32 3, %v7603_v0  ;;  %v7878_v33 = vadd.s32 %v7873_v39, %v7854_v17 }
 0x6b9   : > { %v7883_v57 = vadd.s32 536870912, %v7882_v26  ;;  %v10128_v13 = vand.u32 3, %v10127_v20  ;;  %v4223_v28 = vadd.f32 %v16695_v40, %v4172_v27  ;;  %v16207_v37 = vand.u32 8388607, %v8092_v4 }
 0x6ba   : > { %v7599_v53 = vsel %vm7478_vm4, %v7598_v5, %v7597_v24  ;;  %v11004_v2 = vadd.s32 4294967169, %v8096_v36  ;;  %vm7622_vm1 = vcmp.eq.s32.totalorder %v7620_v63, 0  ;;  %vm7625_vm2 = vcmp.eq.s32.totalorder %v7620_v63, 2 }
 0x6bb   : > { %v7602_v61 = vsel %vm7477_vm9, %v15923_v52, %v7599_v53  ;;  %v16195_v50 = vshrl.u32 %v7883_v57, 30  ;;  %v5024_v29 = vmul.f32 %v16698_v16, %v4223_v28  ;;  %vm7621_vm7 = vcmp.lt.s32.totalorder %v7620_v63, 2 }
 0x6bc   : > { %v7604_v9 = vmul.f32 %v7602_v61, %v7602_v61  ;;  %v8102_v34 = vadd.s32 1, %v11004_v2  ;;  %vm10129_vm8 = vcmp.lt.s32.totalorder %v10128_v13, 2  ;;  %vm10130_vm14 = vcmp.eq.s32.totalorder %v10128_v13, 0 }
 0x6bd   : > { %v7885_v1 = vshll.u32 %v16195_v50, 30  ;;  %vm10133_vm10 = vcmp.eq.s32.totalorder %v10128_v13, 2  ;;  %v8100_v24 = vor.u32 8388608, %v16207_v37  ;;  %vm7786_vm13 = vcmp.lt.s32.totalorder %v15940_v15, 0 }
 0x6be   : > { %v7605_v41 = vmul.f32 -0.001358992, %v7604_v9  ;;  %v7612_v32 = vmul.f32 -0.00019511016, %v7604_v9  ;;  %vm8103_vm11 = vcmp.gt.s32.totalorder %v8102_v34, 0 }
 0x6bf   : > { %v16200_v58 = vsub.s32 %v7882_v26, %v7885_v1  ;;  %v8104_v48 = vsel %vm8103_vm11, %v8102_v34, 0  ;;  %v16255_v59 = vshll.u32 %v8100_v24, 8  ;;  %vm7785_vm9 = vcmp.le.f32.partialorder %v7784_v47, 0.7853982 }
 0x6c0   : > { %v7606_v6 = vadd.f32 0.041655596, %v7605_v41  ;;  %v7613_v56 = vadd.f32 0.008332121, %v7612_v32  ;;  %v8106_v18 = vand.u32 31, %v8104_v48  ;;  %v16219_v10 = vshrl.u32 %v8104_v48, 5 }
 0x6c1   : > { %vm7887_vm5 = vcmp.lt.s32.totalorder %v16200_v58, 0  ;;  %v7888_v22 = vsub.s32 0, %v16200_v58 }
 0x6c2   : > { %v7607_v43 = vmul.f32 %v7606_v6, %v7604_v9  ;;  %v7614_v45 = vmul.f32 %v7613_v56, %v7604_v9  ;;  %v16217_v30 = vsub.s32 32, %v8106_v18  ;;  %v8109_v26 = vshll.u32 %v16557_v23, %v8106_v18 }
 0x6c3   : > { %v7889_v46 = vsel %vm7887_vm5, %v7888_v22, %v16200_v58  ;;  %v8112_v44 = vshll.u32 %v16558_v31, %v8106_v18  ;;  %v8115_v35 = vshll.u32 %v16559_v25, %v8106_v18  ;;  %vm8124_vm0 = vcmp.lt.s32.totalorder %v16219_v10, 1 }
 0x6c4   : > { %v7608_v38 = vadd.f32 -0.4999988, %v7607_v43  ;;  %v7615_v14 = vadd.f32 -0.16666654, %v7614_v45  ;;  %v7890_v7 = vclz %v7889_v46  ;;  %v8110_v12 = vshrl.u32 %v16558_v31, %v16217_v30 }
 0x6c5   : > { %v8113_v39 = vshrl.u32 %v16559_v25, %v16217_v30  ;;  %v8116_v36 = vshrl.u32 %v16560_v62, %v16217_v30  ;;  %v8122_v63 = vshrl.u32 %v16562_v11, %v16217_v30  ;;  %vm8127_vm3 = vcmp.lt.s32.totalorder %v16219_v10, 4 }
 0x6c6   : > { %v7609_v8 = vmul.f32 %v7608_v38, %v7604_v9  ;;  %v7616_v3 = vmul.f32 %v7615_v14, %v7604_v9  ;;  %v10999_v60 = vadd.s32 4294967294, %v7890_v7  ;;  %v16228_v57 = vor.u32 %v8110_v12, %v8109_v26 }
 0x6c7   : > { %v8118_v9 = vshll.u32 %v16560_v62, %v8106_v18  ;;  %v16236_v54 = vor.u32 %v8113_v39, %v8112_v44  ;;  %v16238_v25 = vor.u32 %v8116_v36, %v8115_v35  ;;  %v8119_v62 = vshrl.u32 %v16561_v51, %v16217_v30 }
 0x6c8   : > { %v7610_v19 = vadd.f32 1.0, %v7609_v8  ;;  %v7617_v5 = vadd.f32 1.0, %v7616_v3  ;;  %vm11000_vm6 = vcmp.lt.s32.totalorder %v10999_v60, 0  ;;  %vm8126_vm4 = vcmp.lt.s32.totalorder %v16219_v10, 3  ;;  %v16699_v8 = vld [vmem:[#allocation79_spill] sm:$0xff] }
 0x6c9   : > { %v7893_v0 = vsel %vm11000_vm6, 0, %v10999_v60  ;;  %v8120_v28 = vor.u32 %v8119_v62, %v8118_v9  ;;  %v8132_v11 = vsel %vm8124_vm0, %v16228_v57, %v16236_v54  ;;  %vm8125_vm15 = vcmp.lt.s32.totalorder %v16219_v10, 2 }
 0x6ca   : > { %v7618_v53 = vmul.f32 %v7617_v5, %v7602_v61  ;;  %v7626_v17 = vxor.u32 2147483648, %v7610_v19  ;;  %v7894_v32 = vsub.s32 32, %v7893_v0  ;;  %v7895_v61 = vshll.u32 %v16200_v58, %v7893_v0 }
 0x6cb   : > { %v7898_v20 = vsub.s32 4294967266, %v7893_v0  ;;  %v8121_v58 = vshll.u32 %v16561_v51, %v8106_v18  ;;  %v7908_v51 = vsub.s32 4, %v16195_v50  ;;  %v8133_v14 = vsel %vm8127_vm3, %v8120_v28, 920167782  ;;  %v16700_v0 = vld [vmem:[#allocation77_spill] sm:$0xff] }
 0x6cc   : > { %v7623_v2 = vxor.u32 2147483648, %v7618_v53  ;;  %v7627_v41 = vsel %vm7625_vm2, %v7626_v17, %v7618_v53  ;;  %v10135_v31 = vsel %vm10133_vm10, %v7626_v17, %v7618_v53  ;;  %v7896_v34 = vshrl.u32 %v7878_v33, %v7894_v32 }
 0x6cd   : > { %v7899_v43 = vadd.s32 127, %v7898_v20  ;;  %v8123_v52 = vor.u32 %v8122_v63, %v8121_v58  ;;  %v8136_v18 = vsel %vm8124_vm0, %v16236_v54, %v16238_v25  ;;  %v4053_v3 = vadd.f32 %v16699_v8, %v16211_v21 }
 0x6ce   : > { %v7624_v27 = vsel %vm7622_vm1, %v7610_v19, %v7623_v2  ;;  %v10132_v1 = vsel %vm10130_vm14, %v7610_v19, %v7623_v2  ;;  %v7897_v40 = vor.u32 %v7896_v34, %v7895_v61  ;;  %v7909_v7 = vsel %vm7786_vm13, %v7908_v51, %v16195_v50 }
 0x6cf   : > { %v7628_v6 = vsel %vm7621_vm7, %v7624_v27, %v7627_v41  ;;  %v10136_v56 = vsel %vm10129_vm8, %v10132_v1, %v10135_v31  ;;  %v7900_v55 = vshll.u32 %v7899_v43, 23  ;;  %v8137_v46 = vsel %vm8127_vm3, %v8123_v52, 1326507024 }
 0x6d0   : > { %v7629_v45 = vsel %vm7619_vm12, nan, %v7628_v6  ;;  %v10137_v48 = vsel %vm7619_vm12, nan, %v10136_v56  ;;  %v7904_v13 = vcvt.s32.f32 %v7897_v40  ;;  %v8138_v24 = vsel %vm8126_vm4, %v8120_v28, %v8137_v46 }
 0x6d1   : > { %v8257_v22 = vmul.f32 %v7629_v45, %v5024_v29  ;;  %v10769_v37 = vmul.f32 %v10137_v48, %v5024_v29  ;;  %v7901_v38 = vor.u32 4788187, %v7900_v55  ;;  %v8134_v29 = vsel %vm8126_vm4, %v16238_v25, %v8133_v14 }
 0x6d2   : > { %v8135_v33 = vsel %vm8125_vm15, %v8132_v11, %v8134_v29  ;;  %v8139_v5 = vsel %vm8125_vm15, %v8136_v18, %v8138_v24  ;;  %v8141_v60 = vand.u32 65535, %v16255_v59  ;;  %v8142_v12 = vshrl.u32 %v16255_v59, 16 }
 0x6d3   : > { %8273 = vst [vmem:[%s14384_s7 + $0x58] sm:$0xff] %v8257_v22  ;;  %v7902_v16 = vand.u32 2147483647, %v7901_v38  ;;  %v8165_v26 = vand.u32 65535, %v8135_v33  ;;  %v8143_v21 = vand.u32 65535, %v8139_v5  ;;  %v8144_v44 = vshrl.u32 %v8139_v5, 16 }
 0x6d4   : > { %10785 = vst [vmem:[%s14396_s10 + $0x58] sm:$0xff] %v10769_v37  ;;  %v8166_v35 = vshrl.u32 %v8135_v33, 16  ;;  %v4119_v36 = vadd.f32 %v16700_v0, %v4053_v3  ;;  %v7911_v2 = vsel %vm7785_vm9, 0, %v7909_v7  ;;  %v8108_v14 = vshrl.u32 %v16557_v23, %v16217_v30 }
 0x6d5   : > { %v7905_v19 = vmul.f32 %v7904_v13, %v7902_v16  ;;  %v8146_v50 = vmul.u32 %v8144_v44, %v8141_v60  ;;  %v8147_v17 = vmul.u32 %v8143_v21, %v8142_v12  ;;  %v8169_v39 = vmul.u32 %v8165_v26, %v8142_v12 }
 0x6d6   : > { %v8168_v41 = vmul.u32 %v8166_v35, %v8141_v60  ;;  %v8145_v32 = vmul.u32 %v8143_v21, %v8141_v60  ;;  %v8167_v20 = vmul.u32 %v8165_v26, %v8141_v60  ;;  %v8148_v1 = vmul.u32 %v8144_v44, %v8142_v12  ;;  %v16701_v26 = vld [vmem:[#allocation80_spill] sm:$0xff] }
 0x6d7   : > { %v7906_v53 = vxor.u32 2147483648, %v7905_v19  ;;  %v8149_v61 = vshll.u32 %v8146_v50, 16  ;;  %v8170_v34 = vmul.u32 %v8166_v35, %v8142_v12  ;;  %v8151_v47 = vshll.u32 %v8147_v17, 16 }
 0x6d8   : > { %v8171_v62 = vshll.u32 %v8168_v41, 16  ;;  %v8173_v56 = vshll.u32 %v8169_v39, 16  ;;  %v8129_v13 = vsel %vm8127_vm3, %v16238_v25, 2102212464  ;;  %v8150_v51 = vshrl.u32 %v8146_v50, 16 }
 0x6d9   : > { %v7907_v9 = vsel %vm7786_vm13, %v7906_v53, %v7905_v19  ;;  %vm8153_vm11 = vc.u32 %v8145_v32, %v8149_v61  ;;  %v8155_v6 = vadd.s32 %v8149_v61, %v8145_v32  ;;  %v8152_v16 = vshrl.u32 %v8147_v17, 16 }
 0x6da   : > { %v7910_v31 = vsel %vm7785_vm9, %v15940_v15, %v7907_v9  ;;  %v8154_v45 = vsel %vm8153_vm11, 1, %v16566_v42  ;;  %vm8175_vm5 = vc.u32 %v8167_v20, %v8171_v62  ;;  %v8177_v28 = vadd.s32 %v8171_v62, %v8167_v20  ;;  %v16702_v9 = vld [vmem:[#allocation82_spill] sm:$0xff] }
 0x6db   : > { %v7912_v27 = vmul.f32 %v7910_v31, %v7910_v31  ;;  %v8156_v48 = vadd.s32 %v8154_v45, %v8148_v1  ;;  %vm8157_vm1 = vc.u32 %v8155_v6, %v8151_v47  ;;  %v8176_v40 = vsel %vm8175_vm5, 1, %v16566_v42  ;;  %v16703_v1 = vld [vmem:[#allocation135_spill] sm:$0xff] }
 0x6dc   : > { %v8158_v55 = vsel %vm8157_vm1, 1, %v16566_v42  ;;  %v8178_v63 = vadd.s32 %v8176_v40, %v8170_v34  ;;  %vm8179_vm2 = vc.u32 %v8177_v28, %v8173_v56  ;;  %v8172_v46 = vshrl.u32 %v8168_v41, 16 }
 0x6dd   : > { %v7913_v43 = vmul.f32 -0.001358992, %v7912_v27  ;;  %v7920_v58 = vmul.f32 -0.00019511016, %v7912_v27  ;;  %v8160_v38 = vadd.s32 %v8158_v55, %v8156_v48  ;;  %v8180_v18 = vsel %vm8179_vm2, 1, %v16566_v42 }
 0x6de   : > { %v8182_v8 = vadd.s32 %v8180_v18, %v8178_v63  ;;  %v8128_v25 = vsel %vm8124_vm0, %v8108_v14, %v16228_v57  ;;  %v8130_v33 = vsel %vm8126_vm4, %v16236_v54, %v8129_v13  ;;  %v10437_v24 = vadd.s32 3, %v7911_v2 }
 0x6df   : > { %v7914_v22 = vadd.f32 0.041655596, %v7913_v43  ;;  %v7921_v37 = vadd.f32 0.008332121, %v7920_v58  ;;  %v8161_v29 = vadd.s32 %v8160_v38, %v8150_v51  ;;  %v8174_v5 = vshrl.u32 %v8169_v39, 16 }
 0x6e0   : > { %v8183_v23 = vadd.s32 %v8182_v8, %v8172_v46  ;;  %v8181_v60 = vadd.s32 %v8177_v28, %v8173_v56  ;;  %v4176_v12 = vadd.f32 %v16701_v26, %v4119_v36  ;;  %v7928_v21 = vand.u32 3, %v7911_v2 }
 0x6e1   : > { %v7915_v52 = vmul.f32 %v7914_v22, %v7912_v27  ;;  %v7922_v11 = vmul.f32 %v7921_v37, %v7912_v27  ;;  %v8162_v19 = vadd.s32 %v8161_v29, %v8152_v16  ;;  %v8131_v44 = vsel %vm8125_vm15, %v8128_v25, %v8130_v33 }
 0x6e2   : > { %v8184_v35 = vadd.s32 %v8183_v23, %v8174_v5  ;;  %v10438_v50 = vand.u32 3, %v10437_v24  ;;  %v8185_v39 = vmul.u32 %v16255_v59, %v8131_v44  ;;  %v4227_v41 = vadd.f32 %v16702_v9, %v4176_v12  ;;  %v16704_v24 = vld [vmem:[#allocation52_spill] sm:$0xff] }
 0x6e3   : > { %v7916_v3 = vadd.f32 -0.4999988, %v7915_v52  ;;  %v7923_v7 = vadd.f32 -0.16666654, %v7922_v11  ;;  %vm8187_vm7 = vc.u32 %v8162_v19, %v8181_v60  ;;  %vm7929_vm8 = vcmp.lt.s32.totalorder %v7928_v21, 2  ;;  %v16708_v9 = vld [vmem:[#allocation84_spill] sm:$0xff] }
 0x6e4   : > { %v8188_v17 = vadd.s32 1, %v8184_v35  ;;  %vm7930_vm14 = vcmp.eq.s32.totalorder %v7928_v21, 0  ;;  %vm7933_vm12 = vcmp.eq.s32.totalorder %v7928_v21, 2  ;;  %vm10439_vm10 = vcmp.lt.s32.totalorder %v10438_v50, 2 }
 0x6e5   : > { %v7917_v30 = vmul.f32 %v7916_v3, %v7912_v27  ;;  %v7924_v42 = vmul.f32 %v7923_v7, %v7912_v27  ;;  %vm10440_vm6 = vcmp.eq.s32.totalorder %v10438_v50, 0  ;;  %vm10443_vm13 = vcmp.eq.s32.totalorder %v10438_v50, 2 }
 0x6e6   : > { %v8189_v32 = vsel %vm8187_vm7, %v8188_v17, %v8184_v35  ;;  %v5026_v59 = vmul.f32 %v16703_v1, %v4227_v41  ;;  %vm7927_vm0 = vweird.f32 %v15940_v15  ;;  %v8186_v15 = vadd.s32 %v8181_v60, %v8162_v19  ;;  %v16705_v19 = vld [vmem:[#allocation54_spill] sm:$0xff]  ;;  %v16706_v60 = vld [vmem:[#allocation83_spill] sm:$0xff] }
 0x6e7   : > { %v7918_v53 = vadd.f32 1.0, %v7917_v30  ;;  %v7925_v57 = vadd.f32 1.0, %v7924_v42  ;;  %v8190_v2 = vadd.s32 %v8189_v32, %v8185_v39  ;;  %vm8094_vm15 = vcmp.lt.s32.totalorder %v16187_v49, 0 }
 0x6e8   : > { %vm8093_vm9 = vcmp.le.f32.partialorder %v8092_v4, 0.7853982  ;;  %v3997_v5 = vadd.f32 %v16705_v19, %v16704_v24 }
 0x6e9   : > { %v7926_v54 = vmul.f32 %v7925_v57, %v7910_v31  ;;  %v7934_v0 = vxor.u32 2147483648, %v7918_v53  ;;  %v8191_v27 = vadd.s32 536870912, %v8190_v2  ;;  %v16707_v57 = vld [vmem:[#allocation81_spill] sm:$0xff] }
 0x6ea   : > { %v4058_v26 = vadd.f32 %v16706_v60, %v3997_v5 }
 0x6eb   : > { %v7931_v36 = vxor.u32 2147483648, %v7926_v54  ;;  %v7935_v10 = vsel %vm7933_vm12, %v7934_v0, %v7926_v54  ;;  %v10445_v31 = vsel %vm10443_vm13, %v7934_v0, %v7926_v54  ;;  %v8192_v56 = vshrl.u32 %v8191_v27, 30 }
 0x6ec   : > { %v4125_v4 = vadd.f32 %v16707_v57, %v4058_v26 }
 0x6ed   : > { %v7932_v61 = vsel %vm7930_vm14, %v7918_v53, %v7931_v36  ;;  %v10442_v20 = vsel %vm10440_vm6, %v7918_v53, %v7931_v36  ;;  %v8193_v45 = vshll.u32 %v8192_v56, 30  ;;  %v8216_v7 = vsub.s32 4, %v8192_v56 }
 0x6ee   : > { %v7936_v34 = vsel %vm7929_vm8, %v7932_v61, %v7935_v10  ;;  %v10446_v62 = vsel %vm10439_vm10, %v10442_v20, %v10445_v31  ;;  %v4180_v41 = vadd.f32 %v16708_v9, %v4125_v4  ;;  %v16709_v31 = vld [vmem:[#allocation86_spill] sm:$0xff]  ;;  %vm8235_vm14 = vweird.f32 %v16187_v49 }
 0x6ef   : > { %v7937_v47 = vsel %vm7927_vm0, nan, %v7936_v34  ;;  %v10447_v6 = vsel %vm7927_vm0, nan, %v10446_v62  ;;  %v8194_v48 = vsub.s32 %v8190_v2, %v8193_v45  ;;  %v8217_v42 = vsel %vm8094_vm15, %v8216_v7, %v8192_v56 }
 0x6f0   : > { %v8259_v43 = vmul.f32 %v7937_v47, %v5026_v59  ;;  %v10771_v58 = vmul.f32 %v10447_v6, %v5026_v59  ;;  %v8219_v44 = vsel %vm8093_vm9, 0, %v8217_v42  ;;  %v4231_v27 = vadd.f32 %v16709_v31, %v4180_v41  ;;  %v16710_v6 = vld [vmem:[#allocation136_spill] sm:$0xff] }
 0x6f1   : > { %vm8195_vm3 = vcmp.lt.s32.totalorder %v8194_v48, 0  ;;  %v8196_v40 = vsub.s32 0, %v8194_v48  ;;  %v10747_v54 = vadd.s32 3, %v8219_v44  ;;  %v8236_v2 = vand.u32 3, %v8219_v44 }
 0x6f2   : > { %8275 = vst [vmem:[%s14384_s7 + $0x68] sm:$0xff] %v8259_v43  ;;  %v5028_v56 = vmul.f32 %v16710_v6, %v4231_v27 }
 0x6f3   : > { %10787 = vst [vmem:[%s14396_s10 + $0x68] sm:$0xff] %v10771_v58  ;;  %v8197_v28 = vsel %vm8195_vm3, %v8196_v40, %v8194_v48  ;;  %v10748_v10 = vand.u32 3, %v10747_v54  ;;  %vm8237_vm11 = vcmp.lt.s32.totalorder %v8236_v2, 2  ;;  %vm8238_vm5 = vcmp.eq.s32.totalorder %v8236_v2, 0 }
 0x6f4   : > { %v8198_v22 = vclz %v8197_v28  ;;  %vm8241_vm1 = vcmp.eq.s32.totalorder %v8236_v2, 2 }
 0x6f5   : > { %vm10749_vm2 = vcmp.lt.s32.totalorder %v10748_v10, 2  ;;  %vm10750_vm7 = vcmp.eq.s32.totalorder %v10748_v10, 0  ;;  %vm10753_vm8 = vcmp.eq.s32.totalorder %v10748_v10, 2 }
 0x6f6   : > { %v11005_v37 = vadd.s32 4294967294, %v8198_v22 }
 0x6f8   : > { %vm11006_vm4 = vcmp.lt.s32.totalorder %v11005_v37, 0 }
 0x6f9   : > { %v8201_v55 = vsel %vm11006_vm4, 0, %v11005_v37 }
 0x6fa   : > { %v8202_v63 = vsub.s32 32, %v8201_v55  ;;  %v8206_v13 = vsub.s32 4294967266, %v8201_v55  ;;  %v8203_v51 = vshll.u32 %v8194_v48, %v8201_v55 }
 0x6fc   : > { %v8204_v38 = vshrl.u32 %v8186_v15, %v8202_v63  ;;  %v8207_v52 = vadd.s32 127, %v8206_v13 }
 0x6fe   : > { %v8205_v11 = vor.u32 %v8204_v38, %v8203_v51  ;;  %v8208_v14 = vshll.u32 %v8207_v52, 23 }
 0x700   : > { %v8209_v18 = vor.u32 4788187, %v8208_v14  ;;  %v8212_v29 = vcvt.s32.f32 %v8205_v11 }
 0x702   : > { %v8210_v16 = vand.u32 2147483647, %v8209_v18 }
 0x704   : > { %v8213_v46 = vmul.f32 %v8212_v29, %v8210_v16 }
 0x706   : > { %v8214_v8 = vxor.u32 2147483648, %v8213_v46 }
 0x708   : > { %v8215_v3 = vsel %vm8094_vm15, %v8214_v8, %v8213_v46 }
 0x709   : > { %v8218_v25 = vsel %vm8093_vm9, %v16187_v49, %v8215_v3 }
 0x70a   : > { %v8220_v33 = vmul.f32 %v8218_v25, %v8218_v25 }
 0x70c   : > { %v8221_v23 = vmul.f32 -0.001358992, %v8220_v33  ;;  %v8228_v30 = vmul.f32 -0.00019511016, %v8220_v33 }
 0x70e   : > { %v8222_v12 = vadd.f32 0.041655596, %v8221_v23  ;;  %v8229_v21 = vadd.f32 0.008332121, %v8228_v30 }
 0x710   : > { %v8223_v35 = vmul.f32 %v8222_v12, %v8220_v33  ;;  %v8230_v53 = vmul.f32 %v8229_v21, %v8220_v33 }
 0x712   : > { %v8224_v50 = vadd.f32 -0.4999988, %v8223_v35  ;;  %v8231_v17 = vadd.f32 -0.16666654, %v8230_v53 }
 0x714   : > { %v8225_v0 = vmul.f32 %v8224_v50, %v8220_v33  ;;  %v8232_v39 = vmul.f32 %v8231_v17, %v8220_v33 }
 0x716   : > { %v8226_v32 = vadd.f32 1.0, %v8225_v0  ;;  %v8233_v36 = vadd.f32 1.0, %v8232_v39 }
 0x718   : > { %v8234_v61 = vmul.f32 %v8233_v36, %v8218_v25  ;;  %v8242_v20 = vxor.u32 2147483648, %v8226_v32 }
 0x71a   : > { %v8239_v1 = vxor.u32 2147483648, %v8234_v61  ;;  %v8243_v34 = vsel %vm8241_vm1, %v8242_v20, %v8234_v61  ;;  %v10755_v47 = vsel %vm10753_vm8, %v8242_v20, %v8234_v61 }
 0x71c   : > { %v8240_v59 = vsel %vm8238_vm5, %v8226_v32, %v8239_v1  ;;  %v10752_v62 = vsel %vm10750_vm7, %v8226_v32, %v8239_v1 }
 0x71d   : > { %v8244_v43 = vsel %vm8237_vm11, %v8240_v59, %v8243_v34  ;;  %v10756_v58 = vsel %vm10749_vm2, %v10752_v62, %v10755_v47 }
 0x71e   : > { %v8245_v45 = vsel %vm8235_vm14, nan, %v8244_v43  ;;  %v10757_v48 = vsel %vm8235_vm14, nan, %v10756_v58 }
 0x71f   : > { %v8261_v40 = vmul.f32 %v8245_v45, %v5028_v56  ;;  %v10773_v28 = vmul.f32 %v10757_v48, %v5028_v56 }
 0x721   : > { %8277 = vst [vmem:[%s14384_s7 + $0x78] sm:$0xff] %v8261_v40 }
 0x722   : > { %10789 = vst [vmem:[%s14396_s10 + $0x78] sm:$0xff] %v10773_v28 }
 0x723 PF: > { %s17_s21 = sadd.s32 1, %s11203_s21  }
 0x724   : > { %p14_p4 = scmp.ge.s32.totalorder %s17_s21, 4  }
 0x726   :  { %16 = sbr.rel (!%p14_p4) target bundleno = 1 (0x1), region = 85 }

</bundles_post_ra>
